<compile_context>
chip_gen: v7x
topology: tpu7x:2x2x1
jax: 0.10.0
libtpu: 0.0.40
codegen_flags: <defaults>
</compile_context>

<pallas_src>
import functools

import jax
import jax.numpy as jnp
from jax.experimental import pallas as pl
from jax.experimental.pallas import tpu as pltpu

# Scaled-down VGG19: real widths (64,128,256,512,512) -> (8,16,32,64,64)
_BLOCK_WIDTHS = {1: 8, 2: 16, 3: 32, 4: 64, 5: 64}
_BLOCK_NCONVS = {1: 2, 2: 2, 3: 4, 4: 4, 5: 1}   # stop right after relu5_1
STYLE_LAYERS = ("relu1_1", "relu2_1", "relu3_1", "relu4_1", "relu5_1")
CONTENT_LAYERS = ("relu4_2",)

_CIN_PAD0 = 8                      # input image channels padded 3 -> 8
_VMEM_LIMIT = 48 * 1024 * 1024     # > v5e/v6e/v7x scoped defaults, < v7x physical


def _log2(n):
    assert n >= 1 and (n & (n - 1)) == 0, "sizes must be powers of two"
    return int(n).bit_length() - 1


def _build_layer_meta():
    """Static per-conv metadata: padded Cin, Cout, packed-weight row offset."""
    meta = []
    cin = _CIN_PAD0
    row = 0
    for block in range(1, 6):
        cout = _BLOCK_WIDTHS[block]
        for ci in range(1, _BLOCK_NCONVS[block] + 1):
            meta.append(dict(name=f"conv{block}_{ci}", block=block, idx=ci,
                             cin=cin, cout=cout, row=row, kdim=9 * cin))
            row += -(-cout // 16) * 16      # 16-row-aligned blocks (bf16 tiles)
            cin = cout
    return meta, row


_LAYER_META, _W_ROWS = _build_layer_meta()      # 13 convs, 512 packed rows
_K_MAX = max(m["kdim"] for m in _LAYER_META)    # 576


# ------------------------- in-kernel building blocks -------------------------
def _lane_coords(B, H, W):
    """(y, x) int32 of shape (1, B*H*W) for lane index m = b*H*W + y*W + x."""
    M = B * H * W
    m = jax.lax.broadcasted_iota(jnp.int32, (1, M), 1)
    x = m & (W - 1)
    y = (m >> _log2(W)) & (H - 1)
    return y, x


def _boundary_masks(B, H, W):
    y, x = _lane_coords(B, H, W)
    ymasks = {-1: y >= 1, 1: y < H - 1}
    xmasks = {-1: x >= 1, 1: x < W - 1}
    return ymasks, xmasks


def _conv3x3_bias_relu(h, w, b, H, W, ymasks, xmasks):
    """Zero-padded 3x3 conv + bias + ReLU on (Cin, M) activations, M = B*H*W.

    The nine shifted/masked activation copies are stacked along sublanes into
    one (9*Cin, M) RHS and contracted against host-packed (Cout, 9*Cin) bf16
    weights in a single MXU matmul with f32 accumulation.  Shifts are lane
    rolls masked at image borders, so images stacked along the lane axis never
    bleed into each other.
    """
    _, M = h.shape
    slabs = []
    for oy in (-1, 0, 1):
        for ox in (-1, 0, 1):
            s = oy * W + ox                   # source-pixel offset along lanes
            shift = (-s) % M
            shifted = h if shift == 0 else pltpu.roll(h, shift, axis=1)
            valid = None
            if oy != 0:
                valid = ymasks[oy]
            if ox != 0:
                valid = xmasks[ox] if valid is None else (valid & xmasks[ox])
            if valid is not None:
                shifted = jnp.where(valid, shifted, 0.0)
            slabs.append(shifted)
    rhs = jnp.concatenate(slabs, axis=0).astype(jnp.bfloat16)   # (9*Cin, M)
    acc = jnp.dot(w, rhs, preferred_element_type=jnp.float32)   # (Cout, M) f32
    return jnp.maximum(acc + b, 0.0)


def _maxpool2x2(h, B, H, W):
    """2x2 stride-2 max pool: (C, B*H*W) -> (C, B*(H//2)*(W//2)).

    Pairwise max along x then y, followed by a matmul-free log2-step lane
    compaction: (1) compact even lanes (even x), (2) compact even row-groups
    of width W//2 (even y).  Only rolls + selects; no big temporaries.
    """
    _, M = h.shape
    Ho, Wo = H // 2, W // 2
    Mo = B * Ho * Wo
    lane = jax.lax.broadcasted_iota(jnp.int32, (1, M), 1)

    m = jnp.maximum(h, pltpu.roll(h, M - 1, axis=1))     # pair along x
    m = jnp.maximum(m, pltpu.roll(m, M - W, axis=1))     # pair along y
    # Pool value for output pixel (b, yo, xo) now sits at lane b*H*W+2yo*W+2xo.

    # Phase 1: even-lane compaction (lane 2m -> m).
    for j in range(_log2(M) - 1):
        period = 1 << (j + 2)
        lo, hi = 1 << j, 1 << (j + 1)
        r = lane & (period - 1)
        take = (r >= lo) & (r < hi)
        m = jnp.where(take, pltpu.roll(m, M - (1 << j), axis=1), m)
    # Value now at lane (b*H + 2*yo)*Wo + xo.

    # Phase 2: even-group compaction over groups of width Wo (group 2k -> k).
    grp = lane >> _log2(Wo)
    for j in range(_log2(B * H) - 1):
        period = 1 << (j + 2)
        lo, hi = 1 << j, 1 << (j + 1)
        r = grp & (period - 1)
        take = (r >= lo) & (r < hi)
        m = jnp.where(take, pltpu.roll(m, M - (Wo << j), axis=1), m)
    # Value now at lane (b*Ho + yo)*Wo + xo = b*Ho*Wo + yo*Wo + xo.
    return m[:, 0:Mo]


def _gram(feat, hw):
    """Gram of image 0's features: feat (C, B*hw) -> (C, C) / (C*hw)."""
    c = feat.shape[0]
    f = feat[:, 0:hw].astype(jnp.bfloat16)
    g = jax.lax.dot_general(f, f, (((1,), (1,)), ((), ())),
                            preferred_element_type=jnp.float32)
    return g * (1.0 / (c * hw))


def _sum_all(v):
    return jnp.sum(jnp.sum(v, axis=1, keepdims=True), axis=0, keepdims=True)


def _tv_l1(img, H, W):
    """L1 total variation of one image laid out as (C, H*W); returns (1, 1)."""
    M = H * W
    y, x = _lane_coords(1, H, W)
    dx = pltpu.roll(img, M - 1, axis=1) - img
    dx = jnp.where(x < W - 1, jnp.abs(dx), 0.0)
    dy = pltpu.roll(img, M - W, axis=1) - img
    dy = jnp.where(y < H - 1, jnp.abs(dy), 0.0)
    return _sum_all(dx) + _sum_all(dy)


def _trunk_features(img, w_ref, b_ref, B, H, W, needed):
    """Run the VGG19 trunk up to relu5_1 on (8, B*H*W) stacked activations.

    w_ref: (512, 576) bf16 packed weights; b_ref: (512, 1) f32 packed biases.
    Returns {relu_name: (features (C, B*h*w), h, w)} for layers in `needed`.
    """
    feats = {}
    h = img
    Hc, Wc = H, W
    ymasks = xmasks = None
    for m in _LAYER_META:
        if m["idx"] == 1:
            ymasks, xmasks = _boundary_masks(B, Hc, Wc)
        w = w_ref[m["row"]:m["row"] + m["cout"], 0:m["kdim"]]
        b = b_ref[m["row"]:m["row"] + m["cout"], :]
        h = _conv3x3_bias_relu(h, w, b, Hc, Wc, ymasks, xmasks)
        name = f"relu{m['block']}_{m['idx']}"
        if name in needed:
            feats[name] = (h, Hc, Wc)
        if m["block"] == 5 and m["idx"] == 1:
            return feats                     # VGG19Loss breaks after relu5_1
        if m["idx"] == _BLOCK_NCONVS[m["block"]]:
            h = _maxpool2x2(h, B, Hc, Wc)
            Hc //= 2
            Wc //= 2
    return feats


# ------------------------------ fused kernels --------------------------------
def _style_capture_kernel(H, W):
    def kernel(img_ref, w_ref, b_ref, g1, g2, g3, g4, g5):
        gram_refs = (g1, g2, g3, g4, g5)
        feats = _trunk_features(img_ref[...], w_ref, b_ref, 1, H, W,
                                frozenset(STYLE_LAYERS))
        for g_ref, layer in zip(gram_refs, STYLE_LAYERS):
            feat, hc, wc = feats[layer]
            g_ref[...] = _gram(feat, hc * wc)
    return kernel


def _loss_kernel(H, W, content_weight, style_weight, tv_weight):
    needed = frozenset(STYLE_LAYERS) | frozenset(CONTENT_LAYERS)

    def kernel(in_ref, ct_ref, w_ref, b_ref, gt1, gt2, gt3, gt4, gt5, out_ref):
        gram_tgt_refs = (gt1, gt2, gt3, gt4, gt5)
        x_in = in_ref[...]                           # (8, H*W)
        imgs = jnp.concatenate([x_in, ct_ref[...]], axis=1)   # [input|content]

        # TV: only the call on `input` survives in the PyTorch module.
        loss = _tv_l1(x_in, H, W) * tv_weight

        # Batched trunk: content capture pass + input loss pass share the MXU.
        feats = _trunk_features(imgs, w_ref, b_ref, 2, H, W, needed)

        # Style terms: MSE between input Grams and the captured style Grams.
        for g_ref, layer in zip(gram_tgt_refs, STYLE_LAYERS):
            feat, hc, wc = feats[layer]
            c = feat.shape[0]
            d = _gram(feat, hc * wc) - g_ref[...]
            loss = loss + _sum_all(d * d) * (style_weight / (c * c))

        # Content terms: MSE between input and content features.
        for layer in CONTENT_LAYERS:
            feat, hc, wc = feats[layer]
            c = feat.shape[0]
            hw = hc * wc
            d = feat - pltpu.roll(feat, hw, axis=1)  # lanes [0,hw): in - content
            lane = jax.lax.broadcasted_iota(jnp.int32, (1, 2 * hw), 1)
            d = jnp.where(lane < hw, d, 0.0)
            loss = loss + _sum_all(d * d) * (content_weight / (c * hw))

        out_ref[...] = loss

    return kernel


# ------------------------------- host wrappers --------------------------------
def _vmem_spec():
    return pl.BlockSpec(memory_space=pltpu.MemorySpace.VMEM)


def _compiler_params():
    return pltpu.CompilerParams(vmem_limit_bytes=_VMEM_LIMIT)


def _nchw_to_cm(img_nchw):
    # (1, C, H, W) -> channels-on-sublanes / flattened-pixels-on-lanes,
    # zero-padded to 8 channel rows (conv1_1 weights for pad rows are zero).
    assert img_nchw.shape[0] == 1, "style-transfer loss assumes batch size 1"
    _, c, h, w = img_nchw.shape
    assert c <= _CIN_PAD0
    x = img_nchw[0].reshape(c, h * w).astype(jnp.float32)
    return jnp.pad(x, ((0, _CIN_PAD0 - c), (0, 0)))


def init_vgg_params(key):
    """Synthetic VGG19 weights, pre-packed for the MXU:
       w: (512, 576) bf16  -- per layer (Cout, 9*Cin_pad) at a 16-aligned row
                              offset, tap-major along the K axis
       b: (512, 1)  f32   -- biases at the same row offsets
    """
    w_all = jnp.zeros((_W_ROWS, _K_MAX), jnp.float32)
    b_all = jnp.zeros((_W_ROWS, 1), jnp.float32)
    cin_real = 3
    for m in _LAYER_META:
        key, kw, kb = jax.random.split(key, 3)
        w9 = jax.random.normal(kw, (9, m["cout"], cin_real), jnp.float32) \
            * jnp.sqrt(2.0 / (9 * cin_real))
        b = jax.random.normal(kb, (m["cout"], 1), jnp.float32) * 0.01
        w9p = jnp.zeros((9, m["cout"], m["cin"]), jnp.float32)
        w9p = w9p.at[:, :, :cin_real].set(w9)
        wp = jnp.transpose(w9p, (1, 0, 2)).reshape(m["cout"], m["kdim"])
        w_all = w_all.at[m["row"]:m["row"] + m["cout"], :m["kdim"]].set(wp)
        b_all = b_all.at[m["row"]:m["row"] + m["cout"], :].set(b)
        cin_real = m["cout"]
    return {"w": w_all.astype(jnp.bfloat16), "b": b_all}


def capture_style_targets(style_nchw, params):
    """__init__-time pass: one fused Pallas kernel -> 5 style Gram targets."""
    x = _nchw_to_cm(style_nchw)
    _, _, H, W = style_nchw.shape
    assert (H & (H - 1)) == 0 and (W & (W - 1)) == 0 and H >= 16 and W >= 16
    widths = [_BLOCK_WIDTHS[int(layer[4])] for layer in STYLE_LAYERS]
    out_shape = tuple(jax.ShapeDtypeStruct((c, c), jnp.float32) for c in widths)
    return pl.pallas_call(
        _style_capture_kernel(H, W),
        out_shape=out_shape,
        in_specs=[_vmem_spec()] * 3,
        out_specs=tuple(_vmem_spec() for _ in widths),
        compiler_params=_compiler_params(),
    )(x, params["w"], params["b"])


def vgg19_loss(input_nchw, content_nchw, style_grams, params,
               content_weight=1.0, style_weight=100.0, tv_weight=1e-5):
    """forward(input, content_img): single fused trunk + loss-epilogue kernel."""
    x_in = _nchw_to_cm(input_nchw)
    x_ct = _nchw_to_cm(content_nchw)
    _, _, H, W = input_nchw.shape
    assert (H & (H - 1)) == 0 and (W & (W - 1)) == 0 and H >= 16 and W >= 16
    out = pl.pallas_call(
        _loss_kernel(H, W, float(content_weight), float(style_weight),
                     float(tv_weight)),
        out_shape=jax.ShapeDtypeStruct((1, 1), jnp.float32),
        in_specs=[_vmem_spec()] * (4 + len(style_grams)),
        out_specs=_vmem_spec(),
        compiler_params=_compiler_params(),
    )(x_in, x_ct, params["w"], params["b"], *style_grams)
    return out[0, 0]


if __name__ == "__main__":
    key = jax.random.PRNGKey(0)
    k_in, k_ct, k_st, k_par = jax.random.split(key, 4)

    N, C, H, W = 1, 3, 16, 16
    input_img = jax.random.uniform(k_in, (N, C, H, W), jnp.float32)
    content_img = jax.random.uniform(k_ct, (N, C, H, W), jnp.float32)
    style_img = jax.random.uniform(k_st, (N, C, H, W), jnp.float32)
    params = init_vgg_params(k_par)

    # __init__: capture style Gram targets once (single fused Pallas call).
    style_grams = jax.jit(capture_style_targets)(style_img, params)
    jax.block_until_ready(style_grams)

    # forward(input, content_img): one fused Pallas call per optimization step.
    loss_fn = jax.jit(functools.partial(vgg19_loss,
                                        content_weight=1.0,
                                        style_weight=100.0,
                                        tv_weight=1e-5))
    loss = loss_fn(input_img, content_img, style_grams, params)
    jax.block_until_ready(loss)
    assert loss.shape == () and bool(jnp.isfinite(loss))
    print("KERNEL_OK")
</pallas_src>

<mosaic_0001>
module attributes {stable_mosaic.version = 11 : i64} {
  func.func @kernel(%arg0: memref<8x256xf32, #tpu.memory_space<vmem>>, %arg1: memref<512x576xbf16, #tpu.memory_space<vmem>>, %arg2: memref<512x1xf32, #tpu.memory_space<vmem>>, %arg3: memref<8x8xf32, #tpu.memory_space<vmem>>, %arg4: memref<16x16xf32, #tpu.memory_space<vmem>>, %arg5: memref<32x32xf32, #tpu.memory_space<vmem>>, %arg6: memref<64x64xf32, #tpu.memory_space<vmem>>, %arg7: memref<64x64xf32, #tpu.memory_space<vmem>>) attributes {dimension_semantics = [], scalar_prefetch = 0 : i64, scratch_operands = 0 : i64, tpu.core_type = #tpu.core_type<tc>} {
    %c0 = arith.constant 0 : index
    %c0_0 = arith.constant 0 : index
    %0 = vector.load %arg0[%c0, %c0_0] : memref<8x256xf32, #tpu.memory_space<vmem>>, vector<8x256xf32>
    %1 = tpu.iota {dimensions = array<i32: 1>} : vector<1x256xi32>
    %c15_i32 = arith.constant 15 : i32
    %2 = vector.broadcast %c15_i32 : i32 to vector<1x256xi32>
    %3 = arith.andi %1, %2 : vector<1x256xi32>
    %c4_i32 = arith.constant 4 : i32
    %4 = vector.broadcast %c4_i32 : i32 to vector<1x256xi32>
    %5 = arith.shrsi %1, %4 : vector<1x256xi32>
    %c15_i32_1 = arith.constant 15 : i32
    %6 = vector.broadcast %c15_i32_1 : i32 to vector<1x256xi32>
    %7 = arith.andi %5, %6 : vector<1x256xi32>
    %c1_i32 = arith.constant 1 : i32
    %8 = vector.broadcast %c1_i32 : i32 to vector<1x256xi32>
    %9 = arith.cmpi sge, %7, %8 : vector<1x256xi32>
    %c15_i32_2 = arith.constant 15 : i32
    %10 = vector.broadcast %c15_i32_2 : i32 to vector<1x256xi32>
    %11 = arith.cmpi slt, %7, %10 : vector<1x256xi32>
    %c1_i32_3 = arith.constant 1 : i32
    %12 = vector.broadcast %c1_i32_3 : i32 to vector<1x256xi32>
    %13 = arith.cmpi sge, %3, %12 : vector<1x256xi32>
    %c15_i32_4 = arith.constant 15 : i32
    %14 = vector.broadcast %c15_i32_4 : i32 to vector<1x256xi32>
    %15 = arith.cmpi slt, %3, %14 : vector<1x256xi32>
    %c0_5 = arith.constant 0 : index
    %c0_6 = arith.constant 0 : index
    %16 = vector.load %arg1[%c0_5, %c0_6] : memref<512x576xbf16, #tpu.memory_space<vmem>>, vector<8x72xbf16>
    %c0_7 = arith.constant 0 : index
    %c0_8 = arith.constant 0 : index
    %17 = vector.load %arg2[%c0_7, %c0_8] : memref<512x1xf32, #tpu.memory_space<vmem>>, vector<8x1xf32>
    %c17_i32 = arith.constant 17 : i32
    %18 = tpu.dynamic_rotate %0 by %c17_i32 dim 1 : vector<8x256xf32>, i32 -> vector<8x256xf32>
    %19 = arith.andi %9, %13 : vector<1x256xi1>
    %cst = arith.constant 0.000000e+00 : f32
    %20 = vector.shape_cast %19 : vector<1x256xi1> to vector<1x256xi1>
    %21 = vector.broadcast %20 : vector<1x256xi1> to vector<8x256xi1>
    %22 = vector.broadcast %cst : f32 to vector<8x256xf32>
    %23 = arith.select %21, %18, %22 : vector<8x256xi1>, vector<8x256xf32>
    %c16_i32 = arith.constant 16 : i32
    %24 = tpu.dynamic_rotate %0 by %c16_i32 dim 1 : vector<8x256xf32>, i32 -> vector<8x256xf32>
    %cst_9 = arith.constant 0.000000e+00 : f32
    %25 = vector.shape_cast %9 : vector<1x256xi1> to vector<1x256xi1>
    %26 = vector.broadcast %25 : vector<1x256xi1> to vector<8x256xi1>
    %27 = vector.broadcast %cst_9 : f32 to vector<8x256xf32>
    %28 = arith.select %26, %24, %27 : vector<8x256xi1>, vector<8x256xf32>
    %c15_i32_10 = arith.constant 15 : i32
    %29 = tpu.dynamic_rotate %0 by %c15_i32_10 dim 1 : vector<8x256xf32>, i32 -> vector<8x256xf32>
    %30 = arith.andi %9, %15 : vector<1x256xi1>
    %cst_11 = arith.constant 0.000000e+00 : f32
    %31 = vector.shape_cast %30 : vector<1x256xi1> to vector<1x256xi1>
    %32 = vector.broadcast %31 : vector<1x256xi1> to vector<8x256xi1>
    %33 = vector.broadcast %cst_11 : f32 to vector<8x256xf32>
    %34 = arith.select %32, %29, %33 : vector<8x256xi1>, vector<8x256xf32>
    %c1_i32_12 = arith.constant 1 : i32
    %35 = tpu.dynamic_rotate %0 by %c1_i32_12 dim 1 : vector<8x256xf32>, i32 -> vector<8x256xf32>
    %cst_13 = arith.constant 0.000000e+00 : f32
    %36 = vector.shape_cast %13 : vector<1x256xi1> to vector<1x256xi1>
    %37 = vector.broadcast %36 : vector<1x256xi1> to vector<8x256xi1>
    %38 = vector.broadcast %cst_13 : f32 to vector<8x256xf32>
    %39 = arith.select %37, %35, %38 : vector<8x256xi1>, vector<8x256xf32>
    %c255_i32 = arith.constant 255 : i32
    %40 = tpu.dynamic_rotate %0 by %c255_i32 dim 1 : vector<8x256xf32>, i32 -> vector<8x256xf32>
    %cst_14 = arith.constant 0.000000e+00 : f32
    %41 = vector.shape_cast %15 : vector<1x256xi1> to vector<1x256xi1>
    %42 = vector.broadcast %41 : vector<1x256xi1> to vector<8x256xi1>
    %43 = vector.broadcast %cst_14 : f32 to vector<8x256xf32>
    %44 = arith.select %42, %40, %43 : vector<8x256xi1>, vector<8x256xf32>
    %c241_i32 = arith.constant 241 : i32
    %45 = tpu.dynamic_rotate %0 by %c241_i32 dim 1 : vector<8x256xf32>, i32 -> vector<8x256xf32>
    %46 = arith.andi %11, %13 : vector<1x256xi1>
    %cst_15 = arith.constant 0.000000e+00 : f32
    %47 = vector.shape_cast %46 : vector<1x256xi1> to vector<1x256xi1>
    %48 = vector.broadcast %47 : vector<1x256xi1> to vector<8x256xi1>
    %49 = vector.broadcast %cst_15 : f32 to vector<8x256xf32>
    %50 = arith.select %48, %45, %49 : vector<8x256xi1>, vector<8x256xf32>
    %c240_i32 = arith.constant 240 : i32
    %51 = tpu.dynamic_rotate %0 by %c240_i32 dim 1 : vector<8x256xf32>, i32 -> vector<8x256xf32>
    %cst_16 = arith.constant 0.000000e+00 : f32
    %52 = vector.shape_cast %11 : vector<1x256xi1> to vector<1x256xi1>
    %53 = vector.broadcast %52 : vector<1x256xi1> to vector<8x256xi1>
    %54 = vector.broadcast %cst_16 : f32 to vector<8x256xf32>
    %55 = arith.select %53, %51, %54 : vector<8x256xi1>, vector<8x256xf32>
    %c239_i32 = arith.constant 239 : i32
    %56 = tpu.dynamic_rotate %0 by %c239_i32 dim 1 : vector<8x256xf32>, i32 -> vector<8x256xf32>
    %57 = arith.andi %11, %15 : vector<1x256xi1>
    %cst_17 = arith.constant 0.000000e+00 : f32
    %58 = vector.shape_cast %57 : vector<1x256xi1> to vector<1x256xi1>
    %59 = vector.broadcast %58 : vector<1x256xi1> to vector<8x256xi1>
    %60 = vector.broadcast %cst_17 : f32 to vector<8x256xf32>
    %61 = arith.select %59, %56, %60 : vector<8x256xi1>, vector<8x256xf32>
    %62 = tpu.concatenate %23, %28, %34, %39, %0, %44, %50, %55, %61 in 0 : vector<8x256xf32>, vector<8x256xf32>, vector<8x256xf32>, vector<8x256xf32>, vector<8x256xf32>, vector<8x256xf32>, vector<8x256xf32>, vector<8x256xf32>, vector<8x256xf32> -> vector<72x256xf32>
    %63 = arith.truncf %62 : vector<72x256xf32> to vector<72x256xbf16>
    %cst_18 = arith.constant dense<0.000000e+00> : vector<8x256xf32>
    %64 = tpu.matmul %16, %63, %cst_18 {dimension_numbers = #tpu.dot_dimension_numbers<[1], [0], [0], [1], [0, 0, 1, 1], [], []>} : vector<8x72xbf16>, vector<72x256xbf16>, vector<8x256xf32> -> vector<8x256xf32>
    %65 = vector.broadcast %17 : vector<8x1xf32> to vector<8x256xf32>
    %66 = arith.addf %64, %65 : vector<8x256xf32>
    %cst_19 = arith.constant 0.000000e+00 : f32
    %67 = vector.broadcast %cst_19 : f32 to vector<8x256xf32>
    %68 = arith.maximumf %66, %67 : vector<8x256xf32>
    %c16 = arith.constant 16 : index
    %c0_20 = arith.constant 0 : index
    %69 = vector.load %arg1[%c16, %c0_20] : memref<512x576xbf16, #tpu.memory_space<vmem>>, vector<8x72xbf16>
    %c16_21 = arith.constant 16 : index
    %c0_22 = arith.constant 0 : index
    %70 = vector.load %arg2[%c16_21, %c0_22] : memref<512x1xf32, #tpu.memory_space<vmem>>, vector<8x1xf32>
    %c17_i32_23 = arith.constant 17 : i32
    %71 = tpu.dynamic_rotate %68 by %c17_i32_23 dim 1 : vector<8x256xf32>, i32 -> vector<8x256xf32>
    %72 = arith.andi %9, %13 : vector<1x256xi1>
    %cst_24 = arith.constant 0.000000e+00 : f32
    %73 = vector.shape_cast %72 : vector<1x256xi1> to vector<1x256xi1>
    %74 = vector.broadcast %73 : vector<1x256xi1> to vector<8x256xi1>
    %75 = vector.broadcast %cst_24 : f32 to vector<8x256xf32>
    %76 = arith.select %74, %71, %75 : vector<8x256xi1>, vector<8x256xf32>
    %c16_i32_25 = arith.constant 16 : i32
    %77 = tpu.dynamic_rotate %68 by %c16_i32_25 dim 1 : vector<8x256xf32>, i32 -> vector<8x256xf32>
    %cst_26 = arith.constant 0.000000e+00 : f32
    %78 = vector.shape_cast %9 : vector<1x256xi1> to vector<1x256xi1>
    %79 = vector.broadcast %78 : vector<1x256xi1> to vector<8x256xi1>
    %80 = vector.broadcast %cst_26 : f32 to vector<8x256xf32>
    %81 = arith.select %79, %77, %80 : vector<8x256xi1>, vector<8x256xf32>
    %c15_i32_27 = arith.constant 15 : i32
    %82 = tpu.dynamic_rotate %68 by %c15_i32_27 dim 1 : vector<8x256xf32>, i32 -> vector<8x256xf32>
    %83 = arith.andi %9, %15 : vector<1x256xi1>
    %cst_28 = arith.constant 0.000000e+00 : f32
    %84 = vector.shape_cast %83 : vector<1x256xi1> to vector<1x256xi1>
    %85 = vector.broadcast %84 : vector<1x256xi1> to vector<8x256xi1>
    %86 = vector.broadcast %cst_28 : f32 to vector<8x256xf32>
    %87 = arith.select %85, %82, %86 : vector<8x256xi1>, vector<8x256xf32>
    %c1_i32_29 = arith.constant 1 : i32
    %88 = tpu.dynamic_rotate %68 by %c1_i32_29 dim 1 : vector<8x256xf32>, i32 -> vector<8x256xf32>
    %cst_30 = arith.constant 0.000000e+00 : f32
    %89 = vector.shape_cast %13 : vector<1x256xi1> to vector<1x256xi1>
    %90 = vector.broadcast %89 : vector<1x256xi1> to vector<8x256xi1>
    %91 = vector.broadcast %cst_30 : f32 to vector<8x256xf32>
    %92 = arith.select %90, %88, %91 : vector<8x256xi1>, vector<8x256xf32>
    %c255_i32_31 = arith.constant 255 : i32
    %93 = tpu.dynamic_rotate %68 by %c255_i32_31 dim 1 : vector<8x256xf32>, i32 -> vector<8x256xf32>
    %cst_32 = arith.constant 0.000000e+00 : f32
    %94 = vector.shape_cast %15 : vector<1x256xi1> to vector<1x256xi1>
    %95 = vector.broadcast %94 : vector<1x256xi1> to vector<8x256xi1>
    %96 = vector.broadcast %cst_32 : f32 to vector<8x256xf32>
    %97 = arith.select %95, %93, %96 : vector<8x256xi1>, vector<8x256xf32>
    %c241_i32_33 = arith.constant 241 : i32
    %98 = tpu.dynamic_rotate %68 by %c241_i32_33 dim 1 : vector<8x256xf32>, i32 -> vector<8x256xf32>
    %99 = arith.andi %11, %13 : vector<1x256xi1>
    %cst_34 = arith.constant 0.000000e+00 : f32
    %100 = vector.shape_cast %99 : vector<1x256xi1> to vector<1x256xi1>
    %101 = vector.broadcast %100 : vector<1x256xi1> to vector<8x256xi1>
    %102 = vector.broadcast %cst_34 : f32 to vector<8x256xf32>
    %103 = arith.select %101, %98, %102 : vector<8x256xi1>, vector<8x256xf32>
    %c240_i32_35 = arith.constant 240 : i32
    %104 = tpu.dynamic_rotate %68 by %c240_i32_35 dim 1 : vector<8x256xf32>, i32 -> vector<8x256xf32>
    %cst_36 = arith.constant 0.000000e+00 : f32
    %105 = vector.shape_cast %11 : vector<1x256xi1> to vector<1x256xi1>
    %106 = vector.broadcast %105 : vector<1x256xi1> to vector<8x256xi1>
    %107 = vector.broadcast %cst_36 : f32 to vector<8x256xf32>
    %108 = arith.select %106, %104, %107 : vector<8x256xi1>, vector<8x256xf32>
    %c239_i32_37 = arith.constant 239 : i32
    %109 = tpu.dynamic_rotate %68 by %c239_i32_37 dim 1 : vector<8x256xf32>, i32 -> vector<8x256xf32>
    %110 = arith.andi %11, %15 : vector<1x256xi1>
    %cst_38 = arith.constant 0.000000e+00 : f32
    %111 = vector.shape_cast %110 : vector<1x256xi1> to vector<1x256xi1>
    %112 = vector.broadcast %111 : vector<1x256xi1> to vector<8x256xi1>
    %113 = vector.broadcast %cst_38 : f32 to vector<8x256xf32>
    %114 = arith.select %112, %109, %113 : vector<8x256xi1>, vector<8x256xf32>
    %115 = tpu.concatenate %76, %81, %87, %92, %68, %97, %103, %108, %114 in 0 : vector<8x256xf32>, vector<8x256xf32>, vector<8x256xf32>, vector<8x256xf32>, vector<8x256xf32>, vector<8x256xf32>, vector<8x256xf32>, vector<8x256xf32>, vector<8x256xf32> -> vector<72x256xf32>
    %116 = arith.truncf %115 : vector<72x256xf32> to vector<72x256xbf16>
    %cst_39 = arith.constant dense<0.000000e+00> : vector<8x256xf32>
    %117 = tpu.matmul %69, %116, %cst_39 {dimension_numbers = #tpu.dot_dimension_numbers<[1], [0], [0], [1], [0, 0, 1, 1], [], []>} : vector<8x72xbf16>, vector<72x256xbf16>, vector<8x256xf32> -> vector<8x256xf32>
    %118 = vector.broadcast %70 : vector<8x1xf32> to vector<8x256xf32>
    %119 = arith.addf %117, %118 : vector<8x256xf32>
    %cst_40 = arith.constant 0.000000e+00 : f32
    %120 = vector.broadcast %cst_40 : f32 to vector<8x256xf32>
    %121 = arith.maximumf %119, %120 : vector<8x256xf32>
    %122 = tpu.iota {dimensions = array<i32: 1>} : vector<1x256xi32>
    %c255_i32_41 = arith.constant 255 : i32
    %123 = tpu.dynamic_rotate %121 by %c255_i32_41 dim 1 : vector<8x256xf32>, i32 -> vector<8x256xf32>
    %124 = arith.maximumf %121, %123 : vector<8x256xf32>
    %c240_i32_42 = arith.constant 240 : i32
    %125 = tpu.dynamic_rotate %124 by %c240_i32_42 dim 1 : vector<8x256xf32>, i32 -> vector<8x256xf32>
    %126 = arith.maximumf %124, %125 : vector<8x256xf32>
    %c3_i32 = arith.constant 3 : i32
    %127 = vector.broadcast %c3_i32 : i32 to vector<1x256xi32>
    %128 = arith.andi %122, %127 : vector<1x256xi32>
    %c1_i32_43 = arith.constant 1 : i32
    %129 = vector.broadcast %c1_i32_43 : i32 to vector<1x256xi32>
    %130 = arith.cmpi sge, %128, %129 : vector<1x256xi32>
    %c2_i32 = arith.constant 2 : i32
    %131 = vector.broadcast %c2_i32 : i32 to vector<1x256xi32>
    %132 = arith.cmpi slt, %128, %131 : vector<1x256xi32>
    %133 = arith.andi %130, %132 : vector<1x256xi1>
    %c255_i32_44 = arith.constant 255 : i32
    %134 = tpu.dynamic_rotate %126 by %c255_i32_44 dim 1 : vector<8x256xf32>, i32 -> vector<8x256xf32>
    %135 = vector.shape_cast %133 : vector<1x256xi1> to vector<1x256xi1>
    %136 = vector.broadcast %135 : vector<1x256xi1> to vector<8x256xi1>
    %137 = arith.select %136, %134, %126 : vector<8x256xi1>, vector<8x256xf32>
    %c7_i32 = arith.constant 7 : i32
    %138 = vector.broadcast %c7_i32 : i32 to vector<1x256xi32>
    %139 = arith.andi %122, %138 : vector<1x256xi32>
    %c2_i32_45 = arith.constant 2 : i32
    %140 = vector.broadcast %c2_i32_45 : i32 to vector<1x256xi32>
    %141 = arith.cmpi sge, %139, %140 : vector<1x256xi32>
    %c4_i32_46 = arith.constant 4 : i32
    %142 = vector.broadcast %c4_i32_46 : i32 to vector<1x256xi32>
    %143 = arith.cmpi slt, %139, %142 : vector<1x256xi32>
    %144 = arith.andi %141, %143 : vector<1x256xi1>
    %c254_i32 = arith.constant 254 : i32
    %145 = tpu.dynamic_rotate %137 by %c254_i32 dim 1 : vector<8x256xf32>, i32 -> vector<8x256xf32>
    %146 = vector.shape_cast %144 : vector<1x256xi1> to vector<1x256xi1>
    %147 = vector.broadcast %146 : vector<1x256xi1> to vector<8x256xi1>
    %148 = arith.select %147, %145, %137 : vector<8x256xi1>, vector<8x256xf32>
    %c15_i32_47 = arith.constant 15 : i32
    %149 = vector.broadcast %c15_i32_47 : i32 to vector<1x256xi32>
    %150 = arith.andi %122, %149 : vector<1x256xi32>
    %c4_i32_48 = arith.constant 4 : i32
    %151 = vector.broadcast %c4_i32_48 : i32 to vector<1x256xi32>
    %152 = arith.cmpi sge, %150, %151 : vector<1x256xi32>
    %c8_i32 = arith.constant 8 : i32
    %153 = vector.broadcast %c8_i32 : i32 to vector<1x256xi32>
    %154 = arith.cmpi slt, %150, %153 : vector<1x256xi32>
    %155 = arith.andi %152, %154 : vector<1x256xi1>
    %c252_i32 = arith.constant 252 : i32
    %156 = tpu.dynamic_rotate %148 by %c252_i32 dim 1 : vector<8x256xf32>, i32 -> vector<8x256xf32>
    %157 = vector.shape_cast %155 : vector<1x256xi1> to vector<1x256xi1>
    %158 = vector.broadcast %157 : vector<1x256xi1> to vector<8x256xi1>
    %159 = arith.select %158, %156, %148 : vector<8x256xi1>, vector<8x256xf32>
    %c31_i32 = arith.constant 31 : i32
    %160 = vector.broadcast %c31_i32 : i32 to vector<1x256xi32>
    %161 = arith.andi %122, %160 : vector<1x256xi32>
    %c8_i32_49 = arith.constant 8 : i32
    %162 = vector.broadcast %c8_i32_49 : i32 to vector<1x256xi32>
    %163 = arith.cmpi sge, %161, %162 : vector<1x256xi32>
    %c16_i32_50 = arith.constant 16 : i32
    %164 = vector.broadcast %c16_i32_50 : i32 to vector<1x256xi32>
    %165 = arith.cmpi slt, %161, %164 : vector<1x256xi32>
    %166 = arith.andi %163, %165 : vector<1x256xi1>
    %c248_i32 = arith.constant 248 : i32
    %167 = tpu.dynamic_rotate %159 by %c248_i32 dim 1 : vector<8x256xf32>, i32 -> vector<8x256xf32>
    %168 = vector.shape_cast %166 : vector<1x256xi1> to vector<1x256xi1>
    %169 = vector.broadcast %168 : vector<1x256xi1> to vector<8x256xi1>
    %170 = arith.select %169, %167, %159 : vector<8x256xi1>, vector<8x256xf32>
    %c63_i32 = arith.constant 63 : i32
    %171 = vector.broadcast %c63_i32 : i32 to vector<1x256xi32>
    %172 = arith.andi %122, %171 : vector<1x256xi32>
    %c16_i32_51 = arith.constant 16 : i32
    %173 = vector.broadcast %c16_i32_51 : i32 to vector<1x256xi32>
    %174 = arith.cmpi sge, %172, %173 : vector<1x256xi32>
    %c32_i32 = arith.constant 32 : i32
    %175 = vector.broadcast %c32_i32 : i32 to vector<1x256xi32>
    %176 = arith.cmpi slt, %172, %175 : vector<1x256xi32>
    %177 = arith.andi %174, %176 : vector<1x256xi1>
    %c240_i32_52 = arith.constant 240 : i32
    %178 = tpu.dynamic_rotate %170 by %c240_i32_52 dim 1 : vector<8x256xf32>, i32 -> vector<8x256xf32>
    %179 = vector.shape_cast %177 : vector<1x256xi1> to vector<1x256xi1>
    %180 = vector.broadcast %179 : vector<1x256xi1> to vector<8x256xi1>
    %181 = arith.select %180, %178, %170 : vector<8x256xi1>, vector<8x256xf32>
    %c127_i32 = arith.constant 127 : i32
    %182 = vector.broadcast %c127_i32 : i32 to vector<1x256xi32>
    %183 = arith.andi %122, %182 : vector<1x256xi32>
    %c32_i32_53 = arith.constant 32 : i32
    %184 = vector.broadcast %c32_i32_53 : i32 to vector<1x256xi32>
    %185 = arith.cmpi sge, %183, %184 : vector<1x256xi32>
    %c64_i32 = arith.constant 64 : i32
    %186 = vector.broadcast %c64_i32 : i32 to vector<1x256xi32>
    %187 = arith.cmpi slt, %183, %186 : vector<1x256xi32>
    %188 = arith.andi %185, %187 : vector<1x256xi1>
    %c224_i32 = arith.constant 224 : i32
    %189 = tpu.dynamic_rotate %181 by %c224_i32 dim 1 : vector<8x256xf32>, i32 -> vector<8x256xf32>
    %190 = vector.shape_cast %188 : vector<1x256xi1> to vector<1x256xi1>
    %191 = vector.broadcast %190 : vector<1x256xi1> to vector<8x256xi1>
    %192 = arith.select %191, %189, %181 : vector<8x256xi1>, vector<8x256xf32>
    %c255_i32_54 = arith.constant 255 : i32
    %193 = vector.broadcast %c255_i32_54 : i32 to vector<1x256xi32>
    %194 = arith.andi %122, %193 : vector<1x256xi32>
    %c64_i32_55 = arith.constant 64 : i32
    %195 = vector.broadcast %c64_i32_55 : i32 to vector<1x256xi32>
    %196 = arith.cmpi sge, %194, %195 : vector<1x256xi32>
    %c128_i32 = arith.constant 128 : i32
    %197 = vector.broadcast %c128_i32 : i32 to vector<1x256xi32>
    %198 = arith.cmpi slt, %194, %197 : vector<1x256xi32>
    %199 = arith.andi %196, %198 : vector<1x256xi1>
    %c192_i32 = arith.constant 192 : i32
    %200 = tpu.dynamic_rotate %192 by %c192_i32 dim 1 : vector<8x256xf32>, i32 -> vector<8x256xf32>
    %201 = vector.shape_cast %199 : vector<1x256xi1> to vector<1x256xi1>
    %202 = vector.broadcast %201 : vector<1x256xi1> to vector<8x256xi1>
    %203 = arith.select %202, %200, %192 : vector<8x256xi1>, vector<8x256xf32>
    %c3_i32_56 = arith.constant 3 : i32
    %204 = vector.broadcast %c3_i32_56 : i32 to vector<1x256xi32>
    %205 = arith.shrsi %122, %204 : vector<1x256xi32>
    %c3_i32_57 = arith.constant 3 : i32
    %206 = vector.broadcast %c3_i32_57 : i32 to vector<1x256xi32>
    %207 = arith.andi %205, %206 : vector<1x256xi32>
    %c1_i32_58 = arith.constant 1 : i32
    %208 = vector.broadcast %c1_i32_58 : i32 to vector<1x256xi32>
    %209 = arith.cmpi sge, %207, %208 : vector<1x256xi32>
    %c2_i32_59 = arith.constant 2 : i32
    %210 = vector.broadcast %c2_i32_59 : i32 to vector<1x256xi32>
    %211 = arith.cmpi slt, %207, %210 : vector<1x256xi32>
    %212 = arith.andi %209, %211 : vector<1x256xi1>
    %c248_i32_60 = arith.constant 248 : i32
    %213 = tpu.dynamic_rotate %203 by %c248_i32_60 dim 1 : vector<8x256xf32>, i32 -> vector<8x256xf32>
    %214 = vector.shape_cast %212 : vector<1x256xi1> to vector<1x256xi1>
    %215 = vector.broadcast %214 : vector<1x256xi1> to vector<8x256xi1>
    %216 = arith.select %215, %213, %203 : vector<8x256xi1>, vector<8x256xf32>
    %c7_i32_61 = arith.constant 7 : i32
    %217 = vector.broadcast %c7_i32_61 : i32 to vector<1x256xi32>
    %218 = arith.andi %205, %217 : vector<1x256xi32>
    %c2_i32_62 = arith.constant 2 : i32
    %219 = vector.broadcast %c2_i32_62 : i32 to vector<1x256xi32>
    %220 = arith.cmpi sge, %218, %219 : vector<1x256xi32>
    %c4_i32_63 = arith.constant 4 : i32
    %221 = vector.broadcast %c4_i32_63 : i32 to vector<1x256xi32>
    %222 = arith.cmpi slt, %218, %221 : vector<1x256xi32>
    %223 = arith.andi %220, %222 : vector<1x256xi1>
    %c240_i32_64 = arith.constant 240 : i32
    %224 = tpu.dynamic_rotate %216 by %c240_i32_64 dim 1 : vector<8x256xf32>, i32 -> vector<8x256xf32>
    %225 = vector.shape_cast %223 : vector<1x256xi1> to vector<1x256xi1>
    %226 = vector.broadcast %225 : vector<1x256xi1> to vector<8x256xi1>
    %227 = arith.select %226, %224, %216 : vector<8x256xi1>, vector<8x256xf32>
    %c15_i32_65 = arith.constant 15 : i32
    %228 = vector.broadcast %c15_i32_65 : i32 to vector<1x256xi32>
    %229 = arith.andi %205, %228 : vector<1x256xi32>
    %c4_i32_66 = arith.constant 4 : i32
    %230 = vector.broadcast %c4_i32_66 : i32 to vector<1x256xi32>
    %231 = arith.cmpi sge, %229, %230 : vector<1x256xi32>
    %c8_i32_67 = arith.constant 8 : i32
    %232 = vector.broadcast %c8_i32_67 : i32 to vector<1x256xi32>
    %233 = arith.cmpi slt, %229, %232 : vector<1x256xi32>
    %234 = arith.andi %231, %233 : vector<1x256xi1>
    %c224_i32_68 = arith.constant 224 : i32
    %235 = tpu.dynamic_rotate %227 by %c224_i32_68 dim 1 : vector<8x256xf32>, i32 -> vector<8x256xf32>
    %236 = vector.shape_cast %234 : vector<1x256xi1> to vector<1x256xi1>
    %237 = vector.broadcast %236 : vector<1x256xi1> to vector<8x256xi1>
    %238 = arith.select %237, %235, %227 : vector<8x256xi1>, vector<8x256xf32>
    %239 = vector.extract_strided_slice %238 {offsets = [0, 0], sizes = [8, 64], strides = [1, 1]} : vector<8x256xf32> to vector<8x64xf32>
    %240 = tpu.iota {dimensions = array<i32: 1>} : vector<1x64xi32>
    %c7_i32_69 = arith.constant 7 : i32
    %241 = vector.broadcast %c7_i32_69 : i32 to vector<1x64xi32>
    %242 = arith.andi %240, %241 : vector<1x64xi32>
    %c3_i32_70 = arith.constant 3 : i32
    %243 = vector.broadcast %c3_i32_70 : i32 to vector<1x64xi32>
    %244 = arith.shrsi %240, %243 : vector<1x64xi32>
    %c7_i32_71 = arith.constant 7 : i32
    %245 = vector.broadcast %c7_i32_71 : i32 to vector<1x64xi32>
    %246 = arith.andi %244, %245 : vector<1x64xi32>
    %c1_i32_72 = arith.constant 1 : i32
    %247 = vector.broadcast %c1_i32_72 : i32 to vector<1x64xi32>
    %248 = arith.cmpi sge, %246, %247 : vector<1x64xi32>
    %c7_i32_73 = arith.constant 7 : i32
    %249 = vector.broadcast %c7_i32_73 : i32 to vector<1x64xi32>
    %250 = arith.cmpi slt, %246, %249 : vector<1x64xi32>
    %c1_i32_74 = arith.constant 1 : i32
    %251 = vector.broadcast %c1_i32_74 : i32 to vector<1x64xi32>
    %252 = arith.cmpi sge, %242, %251 : vector<1x64xi32>
    %c7_i32_75 = arith.constant 7 : i32
    %253 = vector.broadcast %c7_i32_75 : i32 to vector<1x64xi32>
    %254 = arith.cmpi slt, %242, %253 : vector<1x64xi32>
    %c32 = arith.constant 32 : index
    %c0_76 = arith.constant 0 : index
    %255 = vector.load %arg1[%c32, %c0_76] : memref<512x576xbf16, #tpu.memory_space<vmem>>, vector<16x72xbf16>
    %c32_77 = arith.constant 32 : index
    %c0_78 = arith.constant 0 : index
    %256 = vector.load %arg2[%c32_77, %c0_78] : memref<512x1xf32, #tpu.memory_space<vmem>>, vector<16x1xf32>
    %c9_i32 = arith.constant 9 : i32
    %257 = tpu.dynamic_rotate %239 by %c9_i32 dim 1 : vector<8x64xf32>, i32 -> vector<8x64xf32>
    %258 = arith.andi %248, %252 : vector<1x64xi1>
    %cst_79 = arith.constant 0.000000e+00 : f32
    %259 = vector.shape_cast %258 : vector<1x64xi1> to vector<1x64xi1>
    %260 = vector.broadcast %259 : vector<1x64xi1> to vector<8x64xi1>
    %261 = vector.broadcast %cst_79 : f32 to vector<8x64xf32>
    %262 = arith.select %260, %257, %261 : vector<8x64xi1>, vector<8x64xf32>
    %c8_i32_80 = arith.constant 8 : i32
    %263 = tpu.dynamic_rotate %239 by %c8_i32_80 dim 1 : vector<8x64xf32>, i32 -> vector<8x64xf32>
    %cst_81 = arith.constant 0.000000e+00 : f32
    %264 = vector.shape_cast %248 : vector<1x64xi1> to vector<1x64xi1>
    %265 = vector.broadcast %264 : vector<1x64xi1> to vector<8x64xi1>
    %266 = vector.broadcast %cst_81 : f32 to vector<8x64xf32>
    %267 = arith.select %265, %263, %266 : vector<8x64xi1>, vector<8x64xf32>
    %c7_i32_82 = arith.constant 7 : i32
    %268 = tpu.dynamic_rotate %239 by %c7_i32_82 dim 1 : vector<8x64xf32>, i32 -> vector<8x64xf32>
    %269 = arith.andi %248, %254 : vector<1x64xi1>
    %cst_83 = arith.constant 0.000000e+00 : f32
    %270 = vector.shape_cast %269 : vector<1x64xi1> to vector<1x64xi1>
    %271 = vector.broadcast %270 : vector<1x64xi1> to vector<8x64xi1>
    %272 = vector.broadcast %cst_83 : f32 to vector<8x64xf32>
    %273 = arith.select %271, %268, %272 : vector<8x64xi1>, vector<8x64xf32>
    %c1_i32_84 = arith.constant 1 : i32
    %274 = tpu.dynamic_rotate %239 by %c1_i32_84 dim 1 : vector<8x64xf32>, i32 -> vector<8x64xf32>
    %cst_85 = arith.constant 0.000000e+00 : f32
    %275 = vector.shape_cast %252 : vector<1x64xi1> to vector<1x64xi1>
    %276 = vector.broadcast %275 : vector<1x64xi1> to vector<8x64xi1>
    %277 = vector.broadcast %cst_85 : f32 to vector<8x64xf32>
    %278 = arith.select %276, %274, %277 : vector<8x64xi1>, vector<8x64xf32>
    %c63_i32_86 = arith.constant 63 : i32
    %279 = tpu.dynamic_rotate %239 by %c63_i32_86 dim 1 : vector<8x64xf32>, i32 -> vector<8x64xf32>
    %cst_87 = arith.constant 0.000000e+00 : f32
    %280 = vector.shape_cast %254 : vector<1x64xi1> to vector<1x64xi1>
    %281 = vector.broadcast %280 : vector<1x64xi1> to vector<8x64xi1>
    %282 = vector.broadcast %cst_87 : f32 to vector<8x64xf32>
    %283 = arith.select %281, %279, %282 : vector<8x64xi1>, vector<8x64xf32>
    %c57_i32 = arith.constant 57 : i32
    %284 = tpu.dynamic_rotate %239 by %c57_i32 dim 1 : vector<8x64xf32>, i32 -> vector<8x64xf32>
    %285 = arith.andi %250, %252 : vector<1x64xi1>
    %cst_88 = arith.constant 0.000000e+00 : f32
    %286 = vector.shape_cast %285 : vector<1x64xi1> to vector<1x64xi1>
    %287 = vector.broadcast %286 : vector<1x64xi1> to vector<8x64xi1>
    %288 = vector.broadcast %cst_88 : f32 to vector<8x64xf32>
    %289 = arith.select %287, %284, %288 : vector<8x64xi1>, vector<8x64xf32>
    %c56_i32 = arith.constant 56 : i32
    %290 = tpu.dynamic_rotate %239 by %c56_i32 dim 1 : vector<8x64xf32>, i32 -> vector<8x64xf32>
    %cst_89 = arith.constant 0.000000e+00 : f32
    %291 = vector.shape_cast %250 : vector<1x64xi1> to vector<1x64xi1>
    %292 = vector.broadcast %291 : vector<1x64xi1> to vector<8x64xi1>
    %293 = vector.broadcast %cst_89 : f32 to vector<8x64xf32>
    %294 = arith.select %292, %290, %293 : vector<8x64xi1>, vector<8x64xf32>
    %c55_i32 = arith.constant 55 : i32
    %295 = tpu.dynamic_rotate %239 by %c55_i32 dim 1 : vector<8x64xf32>, i32 -> vector<8x64xf32>
    %296 = arith.andi %250, %254 : vector<1x64xi1>
    %cst_90 = arith.constant 0.000000e+00 : f32
    %297 = vector.shape_cast %296 : vector<1x64xi1> to vector<1x64xi1>
    %298 = vector.broadcast %297 : vector<1x64xi1> to vector<8x64xi1>
    %299 = vector.broadcast %cst_90 : f32 to vector<8x64xf32>
    %300 = arith.select %298, %295, %299 : vector<8x64xi1>, vector<8x64xf32>
    %301 = tpu.concatenate %262, %267, %273, %278, %239, %283, %289, %294, %300 in 0 : vector<8x64xf32>, vector<8x64xf32>, vector<8x64xf32>, vector<8x64xf32>, vector<8x64xf32>, vector<8x64xf32>, vector<8x64xf32>, vector<8x64xf32>, vector<8x64xf32> -> vector<72x64xf32>
    %302 = arith.truncf %301 : vector<72x64xf32> to vector<72x64xbf16>
    %cst_91 = arith.constant dense<0.000000e+00> : vector<16x64xf32>
    %303 = tpu.matmul %255, %302, %cst_91 {dimension_numbers = #tpu.dot_dimension_numbers<[1], [0], [0], [1], [0, 0, 1, 1], [], []>} : vector<16x72xbf16>, vector<72x64xbf16>, vector<16x64xf32> -> vector<16x64xf32>
    %304 = vector.broadcast %256 : vector<16x1xf32> to vector<16x64xf32>
    %305 = arith.addf %303, %304 : vector<16x64xf32>
    %cst_92 = arith.constant 0.000000e+00 : f32
    %306 = vector.broadcast %cst_92 : f32 to vector<16x64xf32>
    %307 = arith.maximumf %305, %306 : vector<16x64xf32>
    %c48 = arith.constant 48 : index
    %c0_93 = arith.constant 0 : index
    %308 = vector.load %arg1[%c48, %c0_93] : memref<512x576xbf16, #tpu.memory_space<vmem>>, vector<16x144xbf16>
    %c48_94 = arith.constant 48 : index
    %c0_95 = arith.constant 0 : index
    %309 = vector.load %arg2[%c48_94, %c0_95] : memref<512x1xf32, #tpu.memory_space<vmem>>, vector<16x1xf32>
    %c9_i32_96 = arith.constant 9 : i32
    %310 = tpu.dynamic_rotate %307 by %c9_i32_96 dim 1 : vector<16x64xf32>, i32 -> vector<16x64xf32>
    %311 = arith.andi %248, %252 : vector<1x64xi1>
    %cst_97 = arith.constant 0.000000e+00 : f32
    %312 = vector.shape_cast %311 : vector<1x64xi1> to vector<1x64xi1>
    %313 = vector.broadcast %312 : vector<1x64xi1> to vector<16x64xi1>
    %314 = vector.broadcast %cst_97 : f32 to vector<16x64xf32>
    %315 = arith.select %313, %310, %314 : vector<16x64xi1>, vector<16x64xf32>
    %c8_i32_98 = arith.constant 8 : i32
    %316 = tpu.dynamic_rotate %307 by %c8_i32_98 dim 1 : vector<16x64xf32>, i32 -> vector<16x64xf32>
    %cst_99 = arith.constant 0.000000e+00 : f32
    %317 = vector.shape_cast %248 : vector<1x64xi1> to vector<1x64xi1>
    %318 = vector.broadcast %317 : vector<1x64xi1> to vector<16x64xi1>
    %319 = vector.broadcast %cst_99 : f32 to vector<16x64xf32>
    %320 = arith.select %318, %316, %319 : vector<16x64xi1>, vector<16x64xf32>
    %c7_i32_100 = arith.constant 7 : i32
    %321 = tpu.dynamic_rotate %307 by %c7_i32_100 dim 1 : vector<16x64xf32>, i32 -> vector<16x64xf32>
    %322 = arith.andi %248, %254 : vector<1x64xi1>
    %cst_101 = arith.constant 0.000000e+00 : f32
    %323 = vector.shape_cast %322 : vector<1x64xi1> to vector<1x64xi1>
    %324 = vector.broadcast %323 : vector<1x64xi1> to vector<16x64xi1>
    %325 = vector.broadcast %cst_101 : f32 to vector<16x64xf32>
    %326 = arith.select %324, %321, %325 : vector<16x64xi1>, vector<16x64xf32>
    %c1_i32_102 = arith.constant 1 : i32
    %327 = tpu.dynamic_rotate %307 by %c1_i32_102 dim 1 : vector<16x64xf32>, i32 -> vector<16x64xf32>
    %cst_103 = arith.constant 0.000000e+00 : f32
    %328 = vector.shape_cast %252 : vector<1x64xi1> to vector<1x64xi1>
    %329 = vector.broadcast %328 : vector<1x64xi1> to vector<16x64xi1>
    %330 = vector.broadcast %cst_103 : f32 to vector<16x64xf32>
    %331 = arith.select %329, %327, %330 : vector<16x64xi1>, vector<16x64xf32>
    %c63_i32_104 = arith.constant 63 : i32
    %332 = tpu.dynamic_rotate %307 by %c63_i32_104 dim 1 : vector<16x64xf32>, i32 -> vector<16x64xf32>
    %cst_105 = arith.constant 0.000000e+00 : f32
    %333 = vector.shape_cast %254 : vector<1x64xi1> to vector<1x64xi1>
    %334 = vector.broadcast %333 : vector<1x64xi1> to vector<16x64xi1>
    %335 = vector.broadcast %cst_105 : f32 to vector<16x64xf32>
    %336 = arith.select %334, %332, %335 : vector<16x64xi1>, vector<16x64xf32>
    %c57_i32_106 = arith.constant 57 : i32
    %337 = tpu.dynamic_rotate %307 by %c57_i32_106 dim 1 : vector<16x64xf32>, i32 -> vector<16x64xf32>
    %338 = arith.andi %250, %252 : vector<1x64xi1>
    %cst_107 = arith.constant 0.000000e+00 : f32
    %339 = vector.shape_cast %338 : vector<1x64xi1> to vector<1x64xi1>
    %340 = vector.broadcast %339 : vector<1x64xi1> to vector<16x64xi1>
    %341 = vector.broadcast %cst_107 : f32 to vector<16x64xf32>
    %342 = arith.select %340, %337, %341 : vector<16x64xi1>, vector<16x64xf32>
    %c56_i32_108 = arith.constant 56 : i32
    %343 = tpu.dynamic_rotate %307 by %c56_i32_108 dim 1 : vector<16x64xf32>, i32 -> vector<16x64xf32>
    %cst_109 = arith.constant 0.000000e+00 : f32
    %344 = vector.shape_cast %250 : vector<1x64xi1> to vector<1x64xi1>
    %345 = vector.broadcast %344 : vector<1x64xi1> to vector<16x64xi1>
    %346 = vector.broadcast %cst_109 : f32 to vector<16x64xf32>
    %347 = arith.select %345, %343, %346 : vector<16x64xi1>, vector<16x64xf32>
    %c55_i32_110 = arith.constant 55 : i32
    %348 = tpu.dynamic_rotate %307 by %c55_i32_110 dim 1 : vector<16x64xf32>, i32 -> vector<16x64xf32>
    %349 = arith.andi %250, %254 : vector<1x64xi1>
    %cst_111 = arith.constant 0.000000e+00 : f32
    %350 = vector.shape_cast %349 : vector<1x64xi1> to vector<1x64xi1>
    %351 = vector.broadcast %350 : vector<1x64xi1> to vector<16x64xi1>
    %352 = vector.broadcast %cst_111 : f32 to vector<16x64xf32>
    %353 = arith.select %351, %348, %352 : vector<16x64xi1>, vector<16x64xf32>
    %354 = tpu.concatenate %315, %320, %326, %331, %307, %336, %342, %347, %353 in 0 : vector<16x64xf32>, vector<16x64xf32>, vector<16x64xf32>, vector<16x64xf32>, vector<16x64xf32>, vector<16x64xf32>, vector<16x64xf32>, vector<16x64xf32>, vector<16x64xf32> -> vector<144x64xf32>
    %355 = arith.truncf %354 : vector<144x64xf32> to vector<144x64xbf16>
    %cst_112 = arith.constant dense<0.000000e+00> : vector<16x64xf32>
    %356 = tpu.matmul %308, %355, %cst_112 {dimension_numbers = #tpu.dot_dimension_numbers<[1], [0], [0], [1], [0, 0, 1, 1], [], []>} : vector<16x144xbf16>, vector<144x64xbf16>, vector<16x64xf32> -> vector<16x64xf32>
    %357 = vector.broadcast %309 : vector<16x1xf32> to vector<16x64xf32>
    %358 = arith.addf %356, %357 : vector<16x64xf32>
    %cst_113 = arith.constant 0.000000e+00 : f32
    %359 = vector.broadcast %cst_113 : f32 to vector<16x64xf32>
    %360 = arith.maximumf %358, %359 : vector<16x64xf32>
    %361 = tpu.iota {dimensions = array<i32: 1>} : vector<1x64xi32>
    %c63_i32_114 = arith.constant 63 : i32
    %362 = tpu.dynamic_rotate %360 by %c63_i32_114 dim 1 : vector<16x64xf32>, i32 -> vector<16x64xf32>
    %363 = arith.maximumf %360, %362 : vector<16x64xf32>
    %c56_i32_115 = arith.constant 56 : i32
    %364 = tpu.dynamic_rotate %363 by %c56_i32_115 dim 1 : vector<16x64xf32>, i32 -> vector<16x64xf32>
    %365 = arith.maximumf %363, %364 : vector<16x64xf32>
    %c3_i32_116 = arith.constant 3 : i32
    %366 = vector.broadcast %c3_i32_116 : i32 to vector<1x64xi32>
    %367 = arith.andi %361, %366 : vector<1x64xi32>
    %c1_i32_117 = arith.constant 1 : i32
    %368 = vector.broadcast %c1_i32_117 : i32 to vector<1x64xi32>
    %369 = arith.cmpi sge, %367, %368 : vector<1x64xi32>
    %c2_i32_118 = arith.constant 2 : i32
    %370 = vector.broadcast %c2_i32_118 : i32 to vector<1x64xi32>
    %371 = arith.cmpi slt, %367, %370 : vector<1x64xi32>
    %372 = arith.andi %369, %371 : vector<1x64xi1>
    %c63_i32_119 = arith.constant 63 : i32
    %373 = tpu.dynamic_rotate %365 by %c63_i32_119 dim 1 : vector<16x64xf32>, i32 -> vector<16x64xf32>
    %374 = vector.shape_cast %372 : vector<1x64xi1> to vector<1x64xi1>
    %375 = vector.broadcast %374 : vector<1x64xi1> to vector<16x64xi1>
    %376 = arith.select %375, %373, %365 : vector<16x64xi1>, vector<16x64xf32>
    %c7_i32_120 = arith.constant 7 : i32
    %377 = vector.broadcast %c7_i32_120 : i32 to vector<1x64xi32>
    %378 = arith.andi %361, %377 : vector<1x64xi32>
    %c2_i32_121 = arith.constant 2 : i32
    %379 = vector.broadcast %c2_i32_121 : i32 to vector<1x64xi32>
    %380 = arith.cmpi sge, %378, %379 : vector<1x64xi32>
    %c4_i32_122 = arith.constant 4 : i32
    %381 = vector.broadcast %c4_i32_122 : i32 to vector<1x64xi32>
    %382 = arith.cmpi slt, %378, %381 : vector<1x64xi32>
    %383 = arith.andi %380, %382 : vector<1x64xi1>
    %c62_i32 = arith.constant 62 : i32
    %384 = tpu.dynamic_rotate %376 by %c62_i32 dim 1 : vector<16x64xf32>, i32 -> vector<16x64xf32>
    %385 = vector.shape_cast %383 : vector<1x64xi1> to vector<1x64xi1>
    %386 = vector.broadcast %385 : vector<1x64xi1> to vector<16x64xi1>
    %387 = arith.select %386, %384, %376 : vector<16x64xi1>, vector<16x64xf32>
    %c15_i32_123 = arith.constant 15 : i32
    %388 = vector.broadcast %c15_i32_123 : i32 to vector<1x64xi32>
    %389 = arith.andi %361, %388 : vector<1x64xi32>
    %c4_i32_124 = arith.constant 4 : i32
    %390 = vector.broadcast %c4_i32_124 : i32 to vector<1x64xi32>
    %391 = arith.cmpi sge, %389, %390 : vector<1x64xi32>
    %c8_i32_125 = arith.constant 8 : i32
    %392 = vector.broadcast %c8_i32_125 : i32 to vector<1x64xi32>
    %393 = arith.cmpi slt, %389, %392 : vector<1x64xi32>
    %394 = arith.andi %391, %393 : vector<1x64xi1>
    %c60_i32 = arith.constant 60 : i32
    %395 = tpu.dynamic_rotate %387 by %c60_i32 dim 1 : vector<16x64xf32>, i32 -> vector<16x64xf32>
    %396 = vector.shape_cast %394 : vector<1x64xi1> to vector<1x64xi1>
    %397 = vector.broadcast %396 : vector<1x64xi1> to vector<16x64xi1>
    %398 = arith.select %397, %395, %387 : vector<16x64xi1>, vector<16x64xf32>
    %c31_i32_126 = arith.constant 31 : i32
    %399 = vector.broadcast %c31_i32_126 : i32 to vector<1x64xi32>
    %400 = arith.andi %361, %399 : vector<1x64xi32>
    %c8_i32_127 = arith.constant 8 : i32
    %401 = vector.broadcast %c8_i32_127 : i32 to vector<1x64xi32>
    %402 = arith.cmpi sge, %400, %401 : vector<1x64xi32>
    %c16_i32_128 = arith.constant 16 : i32
    %403 = vector.broadcast %c16_i32_128 : i32 to vector<1x64xi32>
    %404 = arith.cmpi slt, %400, %403 : vector<1x64xi32>
    %405 = arith.andi %402, %404 : vector<1x64xi1>
    %c56_i32_129 = arith.constant 56 : i32
    %406 = tpu.dynamic_rotate %398 by %c56_i32_129 dim 1 : vector<16x64xf32>, i32 -> vector<16x64xf32>
    %407 = vector.shape_cast %405 : vector<1x64xi1> to vector<1x64xi1>
    %408 = vector.broadcast %407 : vector<1x64xi1> to vector<16x64xi1>
    %409 = arith.select %408, %406, %398 : vector<16x64xi1>, vector<16x64xf32>
    %c63_i32_130 = arith.constant 63 : i32
    %410 = vector.broadcast %c63_i32_130 : i32 to vector<1x64xi32>
    %411 = arith.andi %361, %410 : vector<1x64xi32>
    %c16_i32_131 = arith.constant 16 : i32
    %412 = vector.broadcast %c16_i32_131 : i32 to vector<1x64xi32>
    %413 = arith.cmpi sge, %411, %412 : vector<1x64xi32>
    %c32_i32_132 = arith.constant 32 : i32
    %414 = vector.broadcast %c32_i32_132 : i32 to vector<1x64xi32>
    %415 = arith.cmpi slt, %411, %414 : vector<1x64xi32>
    %416 = arith.andi %413, %415 : vector<1x64xi1>
    %c48_i32 = arith.constant 48 : i32
    %417 = tpu.dynamic_rotate %409 by %c48_i32 dim 1 : vector<16x64xf32>, i32 -> vector<16x64xf32>
    %418 = vector.shape_cast %416 : vector<1x64xi1> to vector<1x64xi1>
    %419 = vector.broadcast %418 : vector<1x64xi1> to vector<16x64xi1>
    %420 = arith.select %419, %417, %409 : vector<16x64xi1>, vector<16x64xf32>
    %c2_i32_133 = arith.constant 2 : i32
    %421 = vector.broadcast %c2_i32_133 : i32 to vector<1x64xi32>
    %422 = arith.shrsi %361, %421 : vector<1x64xi32>
    %c3_i32_134 = arith.constant 3 : i32
    %423 = vector.broadcast %c3_i32_134 : i32 to vector<1x64xi32>
    %424 = arith.andi %422, %423 : vector<1x64xi32>
    %c1_i32_135 = arith.constant 1 : i32
    %425 = vector.broadcast %c1_i32_135 : i32 to vector<1x64xi32>
    %426 = arith.cmpi sge, %424, %425 : vector<1x64xi32>
    %c2_i32_136 = arith.constant 2 : i32
    %427 = vector.broadcast %c2_i32_136 : i32 to vector<1x64xi32>
    %428 = arith.cmpi slt, %424, %427 : vector<1x64xi32>
    %429 = arith.andi %426, %428 : vector<1x64xi1>
    %c60_i32_137 = arith.constant 60 : i32
    %430 = tpu.dynamic_rotate %420 by %c60_i32_137 dim 1 : vector<16x64xf32>, i32 -> vector<16x64xf32>
    %431 = vector.shape_cast %429 : vector<1x64xi1> to vector<1x64xi1>
    %432 = vector.broadcast %431 : vector<1x64xi1> to vector<16x64xi1>
    %433 = arith.select %432, %430, %420 : vector<16x64xi1>, vector<16x64xf32>
    %c7_i32_138 = arith.constant 7 : i32
    %434 = vector.broadcast %c7_i32_138 : i32 to vector<1x64xi32>
    %435 = arith.andi %422, %434 : vector<1x64xi32>
    %c2_i32_139 = arith.constant 2 : i32
    %436 = vector.broadcast %c2_i32_139 : i32 to vector<1x64xi32>
    %437 = arith.cmpi sge, %435, %436 : vector<1x64xi32>
    %c4_i32_140 = arith.constant 4 : i32
    %438 = vector.broadcast %c4_i32_140 : i32 to vector<1x64xi32>
    %439 = arith.cmpi slt, %435, %438 : vector<1x64xi32>
    %440 = arith.andi %437, %439 : vector<1x64xi1>
    %c56_i32_141 = arith.constant 56 : i32
    %441 = tpu.dynamic_rotate %433 by %c56_i32_141 dim 1 : vector<16x64xf32>, i32 -> vector<16x64xf32>
    %442 = vector.shape_cast %440 : vector<1x64xi1> to vector<1x64xi1>
    %443 = vector.broadcast %442 : vector<1x64xi1> to vector<16x64xi1>
    %444 = arith.select %443, %441, %433 : vector<16x64xi1>, vector<16x64xf32>
    %445 = vector.extract_strided_slice %444 {offsets = [0, 0], sizes = [16, 16], strides = [1, 1]} : vector<16x64xf32> to vector<16x16xf32>
    %446 = tpu.iota {dimensions = array<i32: 1>} : vector<1x16xi32>
    %c3_i32_142 = arith.constant 3 : i32
    %447 = vector.broadcast %c3_i32_142 : i32 to vector<1x16xi32>
    %448 = arith.andi %446, %447 : vector<1x16xi32>
    %c2_i32_143 = arith.constant 2 : i32
    %449 = vector.broadcast %c2_i32_143 : i32 to vector<1x16xi32>
    %450 = arith.shrsi %446, %449 : vector<1x16xi32>
    %c3_i32_144 = arith.constant 3 : i32
    %451 = vector.broadcast %c3_i32_144 : i32 to vector<1x16xi32>
    %452 = arith.andi %450, %451 : vector<1x16xi32>
    %c1_i32_145 = arith.constant 1 : i32
    %453 = vector.broadcast %c1_i32_145 : i32 to vector<1x16xi32>
    %454 = arith.cmpi sge, %452, %453 : vector<1x16xi32>
    %c3_i32_146 = arith.constant 3 : i32
    %455 = vector.broadcast %c3_i32_146 : i32 to vector<1x16xi32>
    %456 = arith.cmpi slt, %452, %455 : vector<1x16xi32>
    %c1_i32_147 = arith.constant 1 : i32
    %457 = vector.broadcast %c1_i32_147 : i32 to vector<1x16xi32>
    %458 = arith.cmpi sge, %448, %457 : vector<1x16xi32>
    %c3_i32_148 = arith.constant 3 : i32
    %459 = vector.broadcast %c3_i32_148 : i32 to vector<1x16xi32>
    %460 = arith.cmpi slt, %448, %459 : vector<1x16xi32>
    %c64 = arith.constant 64 : index
    %c0_149 = arith.constant 0 : index
    %461 = vector.load %arg1[%c64, %c0_149] : memref<512x576xbf16, #tpu.memory_space<vmem>>, vector<32x144xbf16>
    %c64_150 = arith.constant 64 : index
    %c0_151 = arith.constant 0 : index
    %462 = vector.load %arg2[%c64_150, %c0_151] : memref<512x1xf32, #tpu.memory_space<vmem>>, vector<32x1xf32>
    %c5_i32 = arith.constant 5 : i32
    %463 = tpu.dynamic_rotate %445 by %c5_i32 dim 1 : vector<16x16xf32>, i32 -> vector<16x16xf32>
    %464 = arith.andi %454, %458 : vector<1x16xi1>
    %cst_152 = arith.constant 0.000000e+00 : f32
    %465 = vector.shape_cast %464 : vector<1x16xi1> to vector<1x16xi1>
    %466 = vector.broadcast %465 : vector<1x16xi1> to vector<16x16xi1>
    %467 = vector.broadcast %cst_152 : f32 to vector<16x16xf32>
    %468 = arith.select %466, %463, %467 : vector<16x16xi1>, vector<16x16xf32>
    %c4_i32_153 = arith.constant 4 : i32
    %469 = tpu.dynamic_rotate %445 by %c4_i32_153 dim 1 : vector<16x16xf32>, i32 -> vector<16x16xf32>
    %cst_154 = arith.constant 0.000000e+00 : f32
    %470 = vector.shape_cast %454 : vector<1x16xi1> to vector<1x16xi1>
    %471 = vector.broadcast %470 : vector<1x16xi1> to vector<16x16xi1>
    %472 = vector.broadcast %cst_154 : f32 to vector<16x16xf32>
    %473 = arith.select %471, %469, %472 : vector<16x16xi1>, vector<16x16xf32>
    %c3_i32_155 = arith.constant 3 : i32
    %474 = tpu.dynamic_rotate %445 by %c3_i32_155 dim 1 : vector<16x16xf32>, i32 -> vector<16x16xf32>
    %475 = arith.andi %454, %460 : vector<1x16xi1>
    %cst_156 = arith.constant 0.000000e+00 : f32
    %476 = vector.shape_cast %475 : vector<1x16xi1> to vector<1x16xi1>
    %477 = vector.broadcast %476 : vector<1x16xi1> to vector<16x16xi1>
    %478 = vector.broadcast %cst_156 : f32 to vector<16x16xf32>
    %479 = arith.select %477, %474, %478 : vector<16x16xi1>, vector<16x16xf32>
    %c1_i32_157 = arith.constant 1 : i32
    %480 = tpu.dynamic_rotate %445 by %c1_i32_157 dim 1 : vector<16x16xf32>, i32 -> vector<16x16xf32>
    %cst_158 = arith.constant 0.000000e+00 : f32
    %481 = vector.shape_cast %458 : vector<1x16xi1> to vector<1x16xi1>
    %482 = vector.broadcast %481 : vector<1x16xi1> to vector<16x16xi1>
    %483 = vector.broadcast %cst_158 : f32 to vector<16x16xf32>
    %484 = arith.select %482, %480, %483 : vector<16x16xi1>, vector<16x16xf32>
    %c15_i32_159 = arith.constant 15 : i32
    %485 = tpu.dynamic_rotate %445 by %c15_i32_159 dim 1 : vector<16x16xf32>, i32 -> vector<16x16xf32>
    %cst_160 = arith.constant 0.000000e+00 : f32
    %486 = vector.shape_cast %460 : vector<1x16xi1> to vector<1x16xi1>
    %487 = vector.broadcast %486 : vector<1x16xi1> to vector<16x16xi1>
    %488 = vector.broadcast %cst_160 : f32 to vector<16x16xf32>
    %489 = arith.select %487, %485, %488 : vector<16x16xi1>, vector<16x16xf32>
    %c13_i32 = arith.constant 13 : i32
    %490 = tpu.dynamic_rotate %445 by %c13_i32 dim 1 : vector<16x16xf32>, i32 -> vector<16x16xf32>
    %491 = arith.andi %456, %458 : vector<1x16xi1>
    %cst_161 = arith.constant 0.000000e+00 : f32
    %492 = vector.shape_cast %491 : vector<1x16xi1> to vector<1x16xi1>
    %493 = vector.broadcast %492 : vector<1x16xi1> to vector<16x16xi1>
    %494 = vector.broadcast %cst_161 : f32 to vector<16x16xf32>
    %495 = arith.select %493, %490, %494 : vector<16x16xi1>, vector<16x16xf32>
    %c12_i32 = arith.constant 12 : i32
    %496 = tpu.dynamic_rotate %445 by %c12_i32 dim 1 : vector<16x16xf32>, i32 -> vector<16x16xf32>
    %cst_162 = arith.constant 0.000000e+00 : f32
    %497 = vector.shape_cast %456 : vector<1x16xi1> to vector<1x16xi1>
    %498 = vector.broadcast %497 : vector<1x16xi1> to vector<16x16xi1>
    %499 = vector.broadcast %cst_162 : f32 to vector<16x16xf32>
    %500 = arith.select %498, %496, %499 : vector<16x16xi1>, vector<16x16xf32>
    %c11_i32 = arith.constant 11 : i32
    %501 = tpu.dynamic_rotate %445 by %c11_i32 dim 1 : vector<16x16xf32>, i32 -> vector<16x16xf32>
    %502 = arith.andi %456, %460 : vector<1x16xi1>
    %cst_163 = arith.constant 0.000000e+00 : f32
    %503 = vector.shape_cast %502 : vector<1x16xi1> to vector<1x16xi1>
    %504 = vector.broadcast %503 : vector<1x16xi1> to vector<16x16xi1>
    %505 = vector.broadcast %cst_163 : f32 to vector<16x16xf32>
    %506 = arith.select %504, %501, %505 : vector<16x16xi1>, vector<16x16xf32>
    %507 = tpu.concatenate %468, %473, %479, %484, %445, %489, %495, %500, %506 in 0 : vector<16x16xf32>, vector<16x16xf32>, vector<16x16xf32>, vector<16x16xf32>, vector<16x16xf32>, vector<16x16xf32>, vector<16x16xf32>, vector<16x16xf32>, vector<16x16xf32> -> vector<144x16xf32>
    %508 = arith.truncf %507 : vector<144x16xf32> to vector<144x16xbf16>
    %cst_164 = arith.constant dense<0.000000e+00> : vector<32x16xf32>
    %509 = tpu.matmul %461, %508, %cst_164 {dimension_numbers = #tpu.dot_dimension_numbers<[1], [0], [0], [1], [0, 0, 1, 1], [], []>} : vector<32x144xbf16>, vector<144x16xbf16>, vector<32x16xf32> -> vector<32x16xf32>
    %510 = vector.broadcast %462 : vector<32x1xf32> to vector<32x16xf32>
    %511 = arith.addf %509, %510 : vector<32x16xf32>
    %cst_165 = arith.constant 0.000000e+00 : f32
    %512 = vector.broadcast %cst_165 : f32 to vector<32x16xf32>
    %513 = arith.maximumf %511, %512 : vector<32x16xf32>
    %c96 = arith.constant 96 : index
    %c0_166 = arith.constant 0 : index
    %514 = vector.load %arg1[%c96, %c0_166] : memref<512x576xbf16, #tpu.memory_space<vmem>>, vector<32x288xbf16>
    %c96_167 = arith.constant 96 : index
    %c0_168 = arith.constant 0 : index
    %515 = vector.load %arg2[%c96_167, %c0_168] : memref<512x1xf32, #tpu.memory_space<vmem>>, vector<32x1xf32>
    %c5_i32_169 = arith.constant 5 : i32
    %516 = tpu.dynamic_rotate %513 by %c5_i32_169 dim 1 : vector<32x16xf32>, i32 -> vector<32x16xf32>
    %517 = arith.andi %454, %458 : vector<1x16xi1>
    %cst_170 = arith.constant 0.000000e+00 : f32
    %518 = vector.shape_cast %517 : vector<1x16xi1> to vector<1x16xi1>
    %519 = vector.broadcast %518 : vector<1x16xi1> to vector<32x16xi1>
    %520 = vector.broadcast %cst_170 : f32 to vector<32x16xf32>
    %521 = arith.select %519, %516, %520 : vector<32x16xi1>, vector<32x16xf32>
    %c4_i32_171 = arith.constant 4 : i32
    %522 = tpu.dynamic_rotate %513 by %c4_i32_171 dim 1 : vector<32x16xf32>, i32 -> vector<32x16xf32>
    %cst_172 = arith.constant 0.000000e+00 : f32
    %523 = vector.shape_cast %454 : vector<1x16xi1> to vector<1x16xi1>
    %524 = vector.broadcast %523 : vector<1x16xi1> to vector<32x16xi1>
    %525 = vector.broadcast %cst_172 : f32 to vector<32x16xf32>
    %526 = arith.select %524, %522, %525 : vector<32x16xi1>, vector<32x16xf32>
    %c3_i32_173 = arith.constant 3 : i32
    %527 = tpu.dynamic_rotate %513 by %c3_i32_173 dim 1 : vector<32x16xf32>, i32 -> vector<32x16xf32>
    %528 = arith.andi %454, %460 : vector<1x16xi1>
    %cst_174 = arith.constant 0.000000e+00 : f32
    %529 = vector.shape_cast %528 : vector<1x16xi1> to vector<1x16xi1>
    %530 = vector.broadcast %529 : vector<1x16xi1> to vector<32x16xi1>
    %531 = vector.broadcast %cst_174 : f32 to vector<32x16xf32>
    %532 = arith.select %530, %527, %531 : vector<32x16xi1>, vector<32x16xf32>
    %c1_i32_175 = arith.constant 1 : i32
    %533 = tpu.dynamic_rotate %513 by %c1_i32_175 dim 1 : vector<32x16xf32>, i32 -> vector<32x16xf32>
    %cst_176 = arith.constant 0.000000e+00 : f32
    %534 = vector.shape_cast %458 : vector<1x16xi1> to vector<1x16xi1>
    %535 = vector.broadcast %534 : vector<1x16xi1> to vector<32x16xi1>
    %536 = vector.broadcast %cst_176 : f32 to vector<32x16xf32>
    %537 = arith.select %535, %533, %536 : vector<32x16xi1>, vector<32x16xf32>
    %c15_i32_177 = arith.constant 15 : i32
    %538 = tpu.dynamic_rotate %513 by %c15_i32_177 dim 1 : vector<32x16xf32>, i32 -> vector<32x16xf32>
    %cst_178 = arith.constant 0.000000e+00 : f32
    %539 = vector.shape_cast %460 : vector<1x16xi1> to vector<1x16xi1>
    %540 = vector.broadcast %539 : vector<1x16xi1> to vector<32x16xi1>
    %541 = vector.broadcast %cst_178 : f32 to vector<32x16xf32>
    %542 = arith.select %540, %538, %541 : vector<32x16xi1>, vector<32x16xf32>
    %c13_i32_179 = arith.constant 13 : i32
    %543 = tpu.dynamic_rotate %513 by %c13_i32_179 dim 1 : vector<32x16xf32>, i32 -> vector<32x16xf32>
    %544 = arith.andi %456, %458 : vector<1x16xi1>
    %cst_180 = arith.constant 0.000000e+00 : f32
    %545 = vector.shape_cast %544 : vector<1x16xi1> to vector<1x16xi1>
    %546 = vector.broadcast %545 : vector<1x16xi1> to vector<32x16xi1>
    %547 = vector.broadcast %cst_180 : f32 to vector<32x16xf32>
    %548 = arith.select %546, %543, %547 : vector<32x16xi1>, vector<32x16xf32>
    %c12_i32_181 = arith.constant 12 : i32
    %549 = tpu.dynamic_rotate %513 by %c12_i32_181 dim 1 : vector<32x16xf32>, i32 -> vector<32x16xf32>
    %cst_182 = arith.constant 0.000000e+00 : f32
    %550 = vector.shape_cast %456 : vector<1x16xi1> to vector<1x16xi1>
    %551 = vector.broadcast %550 : vector<1x16xi1> to vector<32x16xi1>
    %552 = vector.broadcast %cst_182 : f32 to vector<32x16xf32>
    %553 = arith.select %551, %549, %552 : vector<32x16xi1>, vector<32x16xf32>
    %c11_i32_183 = arith.constant 11 : i32
    %554 = tpu.dynamic_rotate %513 by %c11_i32_183 dim 1 : vector<32x16xf32>, i32 -> vector<32x16xf32>
    %555 = arith.andi %456, %460 : vector<1x16xi1>
    %cst_184 = arith.constant 0.000000e+00 : f32
    %556 = vector.shape_cast %555 : vector<1x16xi1> to vector<1x16xi1>
    %557 = vector.broadcast %556 : vector<1x16xi1> to vector<32x16xi1>
    %558 = vector.broadcast %cst_184 : f32 to vector<32x16xf32>
    %559 = arith.select %557, %554, %558 : vector<32x16xi1>, vector<32x16xf32>
    %560 = tpu.concatenate %521, %526, %532, %537, %513, %542, %548, %553, %559 in 0 : vector<32x16xf32>, vector<32x16xf32>, vector<32x16xf32>, vector<32x16xf32>, vector<32x16xf32>, vector<32x16xf32>, vector<32x16xf32>, vector<32x16xf32>, vector<32x16xf32> -> vector<288x16xf32>
    %561 = arith.truncf %560 : vector<288x16xf32> to vector<288x16xbf16>
    %cst_185 = arith.constant dense<0.000000e+00> : vector<32x16xf32>
    %562 = tpu.matmul %514, %561, %cst_185 {dimension_numbers = #tpu.dot_dimension_numbers<[1], [0], [0], [1], [0, 0, 1, 1], [], []>} : vector<32x288xbf16>, vector<288x16xbf16>, vector<32x16xf32> -> vector<32x16xf32>
    %563 = vector.broadcast %515 : vector<32x1xf32> to vector<32x16xf32>
    %564 = arith.addf %562, %563 : vector<32x16xf32>
    %cst_186 = arith.constant 0.000000e+00 : f32
    %565 = vector.broadcast %cst_186 : f32 to vector<32x16xf32>
    %566 = arith.maximumf %564, %565 : vector<32x16xf32>
    %c128 = arith.constant 128 : index
    %c0_187 = arith.constant 0 : index
    %567 = vector.load %arg1[%c128, %c0_187] : memref<512x576xbf16, #tpu.memory_space<vmem>>, vector<32x288xbf16>
    %c128_188 = arith.constant 128 : index
    %c0_189 = arith.constant 0 : index
    %568 = vector.load %arg2[%c128_188, %c0_189] : memref<512x1xf32, #tpu.memory_space<vmem>>, vector<32x1xf32>
    %c5_i32_190 = arith.constant 5 : i32
    %569 = tpu.dynamic_rotate %566 by %c5_i32_190 dim 1 : vector<32x16xf32>, i32 -> vector<32x16xf32>
    %570 = arith.andi %454, %458 : vector<1x16xi1>
    %cst_191 = arith.constant 0.000000e+00 : f32
    %571 = vector.shape_cast %570 : vector<1x16xi1> to vector<1x16xi1>
    %572 = vector.broadcast %571 : vector<1x16xi1> to vector<32x16xi1>
    %573 = vector.broadcast %cst_191 : f32 to vector<32x16xf32>
    %574 = arith.select %572, %569, %573 : vector<32x16xi1>, vector<32x16xf32>
    %c4_i32_192 = arith.constant 4 : i32
    %575 = tpu.dynamic_rotate %566 by %c4_i32_192 dim 1 : vector<32x16xf32>, i32 -> vector<32x16xf32>
    %cst_193 = arith.constant 0.000000e+00 : f32
    %576 = vector.shape_cast %454 : vector<1x16xi1> to vector<1x16xi1>
    %577 = vector.broadcast %576 : vector<1x16xi1> to vector<32x16xi1>
    %578 = vector.broadcast %cst_193 : f32 to vector<32x16xf32>
    %579 = arith.select %577, %575, %578 : vector<32x16xi1>, vector<32x16xf32>
    %c3_i32_194 = arith.constant 3 : i32
    %580 = tpu.dynamic_rotate %566 by %c3_i32_194 dim 1 : vector<32x16xf32>, i32 -> vector<32x16xf32>
    %581 = arith.andi %454, %460 : vector<1x16xi1>
    %cst_195 = arith.constant 0.000000e+00 : f32
    %582 = vector.shape_cast %581 : vector<1x16xi1> to vector<1x16xi1>
    %583 = vector.broadcast %582 : vector<1x16xi1> to vector<32x16xi1>
    %584 = vector.broadcast %cst_195 : f32 to vector<32x16xf32>
    %585 = arith.select %583, %580, %584 : vector<32x16xi1>, vector<32x16xf32>
    %c1_i32_196 = arith.constant 1 : i32
    %586 = tpu.dynamic_rotate %566 by %c1_i32_196 dim 1 : vector<32x16xf32>, i32 -> vector<32x16xf32>
    %cst_197 = arith.constant 0.000000e+00 : f32
    %587 = vector.shape_cast %458 : vector<1x16xi1> to vector<1x16xi1>
    %588 = vector.broadcast %587 : vector<1x16xi1> to vector<32x16xi1>
    %589 = vector.broadcast %cst_197 : f32 to vector<32x16xf32>
    %590 = arith.select %588, %586, %589 : vector<32x16xi1>, vector<32x16xf32>
    %c15_i32_198 = arith.constant 15 : i32
    %591 = tpu.dynamic_rotate %566 by %c15_i32_198 dim 1 : vector<32x16xf32>, i32 -> vector<32x16xf32>
    %cst_199 = arith.constant 0.000000e+00 : f32
    %592 = vector.shape_cast %460 : vector<1x16xi1> to vector<1x16xi1>
    %593 = vector.broadcast %592 : vector<1x16xi1> to vector<32x16xi1>
    %594 = vector.broadcast %cst_199 : f32 to vector<32x16xf32>
    %595 = arith.select %593, %591, %594 : vector<32x16xi1>, vector<32x16xf32>
    %c13_i32_200 = arith.constant 13 : i32
    %596 = tpu.dynamic_rotate %566 by %c13_i32_200 dim 1 : vector<32x16xf32>, i32 -> vector<32x16xf32>
    %597 = arith.andi %456, %458 : vector<1x16xi1>
    %cst_201 = arith.constant 0.000000e+00 : f32
    %598 = vector.shape_cast %597 : vector<1x16xi1> to vector<1x16xi1>
    %599 = vector.broadcast %598 : vector<1x16xi1> to vector<32x16xi1>
    %600 = vector.broadcast %cst_201 : f32 to vector<32x16xf32>
    %601 = arith.select %599, %596, %600 : vector<32x16xi1>, vector<32x16xf32>
    %c12_i32_202 = arith.constant 12 : i32
    %602 = tpu.dynamic_rotate %566 by %c12_i32_202 dim 1 : vector<32x16xf32>, i32 -> vector<32x16xf32>
    %cst_203 = arith.constant 0.000000e+00 : f32
    %603 = vector.shape_cast %456 : vector<1x16xi1> to vector<1x16xi1>
    %604 = vector.broadcast %603 : vector<1x16xi1> to vector<32x16xi1>
    %605 = vector.broadcast %cst_203 : f32 to vector<32x16xf32>
    %606 = arith.select %604, %602, %605 : vector<32x16xi1>, vector<32x16xf32>
    %c11_i32_204 = arith.constant 11 : i32
    %607 = tpu.dynamic_rotate %566 by %c11_i32_204 dim 1 : vector<32x16xf32>, i32 -> vector<32x16xf32>
    %608 = arith.andi %456, %460 : vector<1x16xi1>
    %cst_205 = arith.constant 0.000000e+00 : f32
    %609 = vector.shape_cast %608 : vector<1x16xi1> to vector<1x16xi1>
    %610 = vector.broadcast %609 : vector<1x16xi1> to vector<32x16xi1>
    %611 = vector.broadcast %cst_205 : f32 to vector<32x16xf32>
    %612 = arith.select %610, %607, %611 : vector<32x16xi1>, vector<32x16xf32>
    %613 = tpu.concatenate %574, %579, %585, %590, %566, %595, %601, %606, %612 in 0 : vector<32x16xf32>, vector<32x16xf32>, vector<32x16xf32>, vector<32x16xf32>, vector<32x16xf32>, vector<32x16xf32>, vector<32x16xf32>, vector<32x16xf32>, vector<32x16xf32> -> vector<288x16xf32>
    %614 = arith.truncf %613 : vector<288x16xf32> to vector<288x16xbf16>
    %cst_206 = arith.constant dense<0.000000e+00> : vector<32x16xf32>
    %615 = tpu.matmul %567, %614, %cst_206 {dimension_numbers = #tpu.dot_dimension_numbers<[1], [0], [0], [1], [0, 0, 1, 1], [], []>} : vector<32x288xbf16>, vector<288x16xbf16>, vector<32x16xf32> -> vector<32x16xf32>
    %616 = vector.broadcast %568 : vector<32x1xf32> to vector<32x16xf32>
    %617 = arith.addf %615, %616 : vector<32x16xf32>
    %cst_207 = arith.constant 0.000000e+00 : f32
    %618 = vector.broadcast %cst_207 : f32 to vector<32x16xf32>
    %619 = arith.maximumf %617, %618 : vector<32x16xf32>
    %c160 = arith.constant 160 : index
    %c0_208 = arith.constant 0 : index
    %620 = vector.load %arg1[%c160, %c0_208] : memref<512x576xbf16, #tpu.memory_space<vmem>>, vector<32x288xbf16>
    %c160_209 = arith.constant 160 : index
    %c0_210 = arith.constant 0 : index
    %621 = vector.load %arg2[%c160_209, %c0_210] : memref<512x1xf32, #tpu.memory_space<vmem>>, vector<32x1xf32>
    %c5_i32_211 = arith.constant 5 : i32
    %622 = tpu.dynamic_rotate %619 by %c5_i32_211 dim 1 : vector<32x16xf32>, i32 -> vector<32x16xf32>
    %623 = arith.andi %454, %458 : vector<1x16xi1>
    %cst_212 = arith.constant 0.000000e+00 : f32
    %624 = vector.shape_cast %623 : vector<1x16xi1> to vector<1x16xi1>
    %625 = vector.broadcast %624 : vector<1x16xi1> to vector<32x16xi1>
    %626 = vector.broadcast %cst_212 : f32 to vector<32x16xf32>
    %627 = arith.select %625, %622, %626 : vector<32x16xi1>, vector<32x16xf32>
    %c4_i32_213 = arith.constant 4 : i32
    %628 = tpu.dynamic_rotate %619 by %c4_i32_213 dim 1 : vector<32x16xf32>, i32 -> vector<32x16xf32>
    %cst_214 = arith.constant 0.000000e+00 : f32
    %629 = vector.shape_cast %454 : vector<1x16xi1> to vector<1x16xi1>
    %630 = vector.broadcast %629 : vector<1x16xi1> to vector<32x16xi1>
    %631 = vector.broadcast %cst_214 : f32 to vector<32x16xf32>
    %632 = arith.select %630, %628, %631 : vector<32x16xi1>, vector<32x16xf32>
    %c3_i32_215 = arith.constant 3 : i32
    %633 = tpu.dynamic_rotate %619 by %c3_i32_215 dim 1 : vector<32x16xf32>, i32 -> vector<32x16xf32>
    %634 = arith.andi %454, %460 : vector<1x16xi1>
    %cst_216 = arith.constant 0.000000e+00 : f32
    %635 = vector.shape_cast %634 : vector<1x16xi1> to vector<1x16xi1>
    %636 = vector.broadcast %635 : vector<1x16xi1> to vector<32x16xi1>
    %637 = vector.broadcast %cst_216 : f32 to vector<32x16xf32>
    %638 = arith.select %636, %633, %637 : vector<32x16xi1>, vector<32x16xf32>
    %c1_i32_217 = arith.constant 1 : i32
    %639 = tpu.dynamic_rotate %619 by %c1_i32_217 dim 1 : vector<32x16xf32>, i32 -> vector<32x16xf32>
    %cst_218 = arith.constant 0.000000e+00 : f32
    %640 = vector.shape_cast %458 : vector<1x16xi1> to vector<1x16xi1>
    %641 = vector.broadcast %640 : vector<1x16xi1> to vector<32x16xi1>
    %642 = vector.broadcast %cst_218 : f32 to vector<32x16xf32>
    %643 = arith.select %641, %639, %642 : vector<32x16xi1>, vector<32x16xf32>
    %c15_i32_219 = arith.constant 15 : i32
    %644 = tpu.dynamic_rotate %619 by %c15_i32_219 dim 1 : vector<32x16xf32>, i32 -> vector<32x16xf32>
    %cst_220 = arith.constant 0.000000e+00 : f32
    %645 = vector.shape_cast %460 : vector<1x16xi1> to vector<1x16xi1>
    %646 = vector.broadcast %645 : vector<1x16xi1> to vector<32x16xi1>
    %647 = vector.broadcast %cst_220 : f32 to vector<32x16xf32>
    %648 = arith.select %646, %644, %647 : vector<32x16xi1>, vector<32x16xf32>
    %c13_i32_221 = arith.constant 13 : i32
    %649 = tpu.dynamic_rotate %619 by %c13_i32_221 dim 1 : vector<32x16xf32>, i32 -> vector<32x16xf32>
    %650 = arith.andi %456, %458 : vector<1x16xi1>
    %cst_222 = arith.constant 0.000000e+00 : f32
    %651 = vector.shape_cast %650 : vector<1x16xi1> to vector<1x16xi1>
    %652 = vector.broadcast %651 : vector<1x16xi1> to vector<32x16xi1>
    %653 = vector.broadcast %cst_222 : f32 to vector<32x16xf32>
    %654 = arith.select %652, %649, %653 : vector<32x16xi1>, vector<32x16xf32>
    %c12_i32_223 = arith.constant 12 : i32
    %655 = tpu.dynamic_rotate %619 by %c12_i32_223 dim 1 : vector<32x16xf32>, i32 -> vector<32x16xf32>
    %cst_224 = arith.constant 0.000000e+00 : f32
    %656 = vector.shape_cast %456 : vector<1x16xi1> to vector<1x16xi1>
    %657 = vector.broadcast %656 : vector<1x16xi1> to vector<32x16xi1>
    %658 = vector.broadcast %cst_224 : f32 to vector<32x16xf32>
    %659 = arith.select %657, %655, %658 : vector<32x16xi1>, vector<32x16xf32>
    %c11_i32_225 = arith.constant 11 : i32
    %660 = tpu.dynamic_rotate %619 by %c11_i32_225 dim 1 : vector<32x16xf32>, i32 -> vector<32x16xf32>
    %661 = arith.andi %456, %460 : vector<1x16xi1>
    %cst_226 = arith.constant 0.000000e+00 : f32
    %662 = vector.shape_cast %661 : vector<1x16xi1> to vector<1x16xi1>
    %663 = vector.broadcast %662 : vector<1x16xi1> to vector<32x16xi1>
    %664 = vector.broadcast %cst_226 : f32 to vector<32x16xf32>
    %665 = arith.select %663, %660, %664 : vector<32x16xi1>, vector<32x16xf32>
    %666 = tpu.concatenate %627, %632, %638, %643, %619, %648, %654, %659, %665 in 0 : vector<32x16xf32>, vector<32x16xf32>, vector<32x16xf32>, vector<32x16xf32>, vector<32x16xf32>, vector<32x16xf32>, vector<32x16xf32>, vector<32x16xf32>, vector<32x16xf32> -> vector<288x16xf32>
    %667 = arith.truncf %666 : vector<288x16xf32> to vector<288x16xbf16>
    %cst_227 = arith.constant dense<0.000000e+00> : vector<32x16xf32>
    %668 = tpu.matmul %620, %667, %cst_227 {dimension_numbers = #tpu.dot_dimension_numbers<[1], [0], [0], [1], [0, 0, 1, 1], [], []>} : vector<32x288xbf16>, vector<288x16xbf16>, vector<32x16xf32> -> vector<32x16xf32>
    %669 = vector.broadcast %621 : vector<32x1xf32> to vector<32x16xf32>
    %670 = arith.addf %668, %669 : vector<32x16xf32>
    %cst_228 = arith.constant 0.000000e+00 : f32
    %671 = vector.broadcast %cst_228 : f32 to vector<32x16xf32>
    %672 = arith.maximumf %670, %671 : vector<32x16xf32>
    %673 = tpu.iota {dimensions = array<i32: 1>} : vector<1x16xi32>
    %c15_i32_229 = arith.constant 15 : i32
    %674 = tpu.dynamic_rotate %672 by %c15_i32_229 dim 1 : vector<32x16xf32>, i32 -> vector<32x16xf32>
    %675 = arith.maximumf %672, %674 : vector<32x16xf32>
    %c12_i32_230 = arith.constant 12 : i32
    %676 = tpu.dynamic_rotate %675 by %c12_i32_230 dim 1 : vector<32x16xf32>, i32 -> vector<32x16xf32>
    %677 = arith.maximumf %675, %676 : vector<32x16xf32>
    %c3_i32_231 = arith.constant 3 : i32
    %678 = vector.broadcast %c3_i32_231 : i32 to vector<1x16xi32>
    %679 = arith.andi %673, %678 : vector<1x16xi32>
    %c1_i32_232 = arith.constant 1 : i32
    %680 = vector.broadcast %c1_i32_232 : i32 to vector<1x16xi32>
    %681 = arith.cmpi sge, %679, %680 : vector<1x16xi32>
    %c2_i32_233 = arith.constant 2 : i32
    %682 = vector.broadcast %c2_i32_233 : i32 to vector<1x16xi32>
    %683 = arith.cmpi slt, %679, %682 : vector<1x16xi32>
    %684 = arith.andi %681, %683 : vector<1x16xi1>
    %c15_i32_234 = arith.constant 15 : i32
    %685 = tpu.dynamic_rotate %677 by %c15_i32_234 dim 1 : vector<32x16xf32>, i32 -> vector<32x16xf32>
    %686 = vector.shape_cast %684 : vector<1x16xi1> to vector<1x16xi1>
    %687 = vector.broadcast %686 : vector<1x16xi1> to vector<32x16xi1>
    %688 = arith.select %687, %685, %677 : vector<32x16xi1>, vector<32x16xf32>
    %c7_i32_235 = arith.constant 7 : i32
    %689 = vector.broadcast %c7_i32_235 : i32 to vector<1x16xi32>
    %690 = arith.andi %673, %689 : vector<1x16xi32>
    %c2_i32_236 = arith.constant 2 : i32
    %691 = vector.broadcast %c2_i32_236 : i32 to vector<1x16xi32>
    %692 = arith.cmpi sge, %690, %691 : vector<1x16xi32>
    %c4_i32_237 = arith.constant 4 : i32
    %693 = vector.broadcast %c4_i32_237 : i32 to vector<1x16xi32>
    %694 = arith.cmpi slt, %690, %693 : vector<1x16xi32>
    %695 = arith.andi %692, %694 : vector<1x16xi1>
    %c14_i32 = arith.constant 14 : i32
    %696 = tpu.dynamic_rotate %688 by %c14_i32 dim 1 : vector<32x16xf32>, i32 -> vector<32x16xf32>
    %697 = vector.shape_cast %695 : vector<1x16xi1> to vector<1x16xi1>
    %698 = vector.broadcast %697 : vector<1x16xi1> to vector<32x16xi1>
    %699 = arith.select %698, %696, %688 : vector<32x16xi1>, vector<32x16xf32>
    %c15_i32_238 = arith.constant 15 : i32
    %700 = vector.broadcast %c15_i32_238 : i32 to vector<1x16xi32>
    %701 = arith.andi %673, %700 : vector<1x16xi32>
    %c4_i32_239 = arith.constant 4 : i32
    %702 = vector.broadcast %c4_i32_239 : i32 to vector<1x16xi32>
    %703 = arith.cmpi sge, %701, %702 : vector<1x16xi32>
    %c8_i32_240 = arith.constant 8 : i32
    %704 = vector.broadcast %c8_i32_240 : i32 to vector<1x16xi32>
    %705 = arith.cmpi slt, %701, %704 : vector<1x16xi32>
    %706 = arith.andi %703, %705 : vector<1x16xi1>
    %c12_i32_241 = arith.constant 12 : i32
    %707 = tpu.dynamic_rotate %699 by %c12_i32_241 dim 1 : vector<32x16xf32>, i32 -> vector<32x16xf32>
    %708 = vector.shape_cast %706 : vector<1x16xi1> to vector<1x16xi1>
    %709 = vector.broadcast %708 : vector<1x16xi1> to vector<32x16xi1>
    %710 = arith.select %709, %707, %699 : vector<32x16xi1>, vector<32x16xf32>
    %c1_i32_242 = arith.constant 1 : i32
    %711 = vector.broadcast %c1_i32_242 : i32 to vector<1x16xi32>
    %712 = arith.shrsi %673, %711 : vector<1x16xi32>
    %c3_i32_243 = arith.constant 3 : i32
    %713 = vector.broadcast %c3_i32_243 : i32 to vector<1x16xi32>
    %714 = arith.andi %712, %713 : vector<1x16xi32>
    %c1_i32_244 = arith.constant 1 : i32
    %715 = vector.broadcast %c1_i32_244 : i32 to vector<1x16xi32>
    %716 = arith.cmpi sge, %714, %715 : vector<1x16xi32>
    %c2_i32_245 = arith.constant 2 : i32
    %717 = vector.broadcast %c2_i32_245 : i32 to vector<1x16xi32>
    %718 = arith.cmpi slt, %714, %717 : vector<1x16xi32>
    %719 = arith.andi %716, %718 : vector<1x16xi1>
    %c14_i32_246 = arith.constant 14 : i32
    %720 = tpu.dynamic_rotate %710 by %c14_i32_246 dim 1 : vector<32x16xf32>, i32 -> vector<32x16xf32>
    %721 = vector.shape_cast %719 : vector<1x16xi1> to vector<1x16xi1>
    %722 = vector.broadcast %721 : vector<1x16xi1> to vector<32x16xi1>
    %723 = arith.select %722, %720, %710 : vector<32x16xi1>, vector<32x16xf32>
    %724 = vector.extract_strided_slice %723 {offsets = [0, 0], sizes = [32, 4], strides = [1, 1]} : vector<32x16xf32> to vector<32x4xf32>
    %725 = tpu.iota {dimensions = array<i32: 1>} : vector<1x4xi32>
    %c1_i32_247 = arith.constant 1 : i32
    %726 = vector.broadcast %c1_i32_247 : i32 to vector<1x4xi32>
    %727 = arith.andi %725, %726 : vector<1x4xi32>
    %c1_i32_248 = arith.constant 1 : i32
    %728 = vector.broadcast %c1_i32_248 : i32 to vector<1x4xi32>
    %729 = arith.shrsi %725, %728 : vector<1x4xi32>
    %c1_i32_249 = arith.constant 1 : i32
    %730 = vector.broadcast %c1_i32_249 : i32 to vector<1x4xi32>
    %731 = arith.andi %729, %730 : vector<1x4xi32>
    %c1_i32_250 = arith.constant 1 : i32
    %732 = vector.broadcast %c1_i32_250 : i32 to vector<1x4xi32>
    %733 = arith.cmpi sge, %731, %732 : vector<1x4xi32>
    %c1_i32_251 = arith.constant 1 : i32
    %734 = vector.broadcast %c1_i32_251 : i32 to vector<1x4xi32>
    %735 = arith.cmpi slt, %731, %734 : vector<1x4xi32>
    %c1_i32_252 = arith.constant 1 : i32
    %736 = vector.broadcast %c1_i32_252 : i32 to vector<1x4xi32>
    %737 = arith.cmpi sge, %727, %736 : vector<1x4xi32>
    %c1_i32_253 = arith.constant 1 : i32
    %738 = vector.broadcast %c1_i32_253 : i32 to vector<1x4xi32>
    %739 = arith.cmpi slt, %727, %738 : vector<1x4xi32>
    %c192 = arith.constant 192 : index
    %c0_254 = arith.constant 0 : index
    %740 = vector.load %arg1[%c192, %c0_254] : memref<512x576xbf16, #tpu.memory_space<vmem>>, vector<64x288xbf16>
    %c192_255 = arith.constant 192 : index
    %c0_256 = arith.constant 0 : index
    %741 = vector.load %arg2[%c192_255, %c0_256] : memref<512x1xf32, #tpu.memory_space<vmem>>, vector<64x1xf32>
    %c3_i32_257 = arith.constant 3 : i32
    %742 = tpu.dynamic_rotate %724 by %c3_i32_257 dim 1 : vector<32x4xf32>, i32 -> vector<32x4xf32>
    %743 = arith.andi %733, %737 : vector<1x4xi1>
    %cst_258 = arith.constant 0.000000e+00 : f32
    %744 = vector.shape_cast %743 : vector<1x4xi1> to vector<1x4xi1>
    %745 = vector.broadcast %744 : vector<1x4xi1> to vector<32x4xi1>
    %746 = vector.broadcast %cst_258 : f32 to vector<32x4xf32>
    %747 = arith.select %745, %742, %746 : vector<32x4xi1>, vector<32x4xf32>
    %c2_i32_259 = arith.constant 2 : i32
    %748 = tpu.dynamic_rotate %724 by %c2_i32_259 dim 1 : vector<32x4xf32>, i32 -> vector<32x4xf32>
    %cst_260 = arith.constant 0.000000e+00 : f32
    %749 = vector.shape_cast %733 : vector<1x4xi1> to vector<1x4xi1>
    %750 = vector.broadcast %749 : vector<1x4xi1> to vector<32x4xi1>
    %751 = vector.broadcast %cst_260 : f32 to vector<32x4xf32>
    %752 = arith.select %750, %748, %751 : vector<32x4xi1>, vector<32x4xf32>
    %c1_i32_261 = arith.constant 1 : i32
    %753 = tpu.dynamic_rotate %724 by %c1_i32_261 dim 1 : vector<32x4xf32>, i32 -> vector<32x4xf32>
    %754 = arith.andi %733, %739 : vector<1x4xi1>
    %cst_262 = arith.constant 0.000000e+00 : f32
    %755 = vector.shape_cast %754 : vector<1x4xi1> to vector<1x4xi1>
    %756 = vector.broadcast %755 : vector<1x4xi1> to vector<32x4xi1>
    %757 = vector.broadcast %cst_262 : f32 to vector<32x4xf32>
    %758 = arith.select %756, %753, %757 : vector<32x4xi1>, vector<32x4xf32>
    %c1_i32_263 = arith.constant 1 : i32
    %759 = tpu.dynamic_rotate %724 by %c1_i32_263 dim 1 : vector<32x4xf32>, i32 -> vector<32x4xf32>
    %cst_264 = arith.constant 0.000000e+00 : f32
    %760 = vector.shape_cast %737 : vector<1x4xi1> to vector<1x4xi1>
    %761 = vector.broadcast %760 : vector<1x4xi1> to vector<32x4xi1>
    %762 = vector.broadcast %cst_264 : f32 to vector<32x4xf32>
    %763 = arith.select %761, %759, %762 : vector<32x4xi1>, vector<32x4xf32>
    %c3_i32_265 = arith.constant 3 : i32
    %764 = tpu.dynamic_rotate %724 by %c3_i32_265 dim 1 : vector<32x4xf32>, i32 -> vector<32x4xf32>
    %cst_266 = arith.constant 0.000000e+00 : f32
    %765 = vector.shape_cast %739 : vector<1x4xi1> to vector<1x4xi1>
    %766 = vector.broadcast %765 : vector<1x4xi1> to vector<32x4xi1>
    %767 = vector.broadcast %cst_266 : f32 to vector<32x4xf32>
    %768 = arith.select %766, %764, %767 : vector<32x4xi1>, vector<32x4xf32>
    %c3_i32_267 = arith.constant 3 : i32
    %769 = tpu.dynamic_rotate %724 by %c3_i32_267 dim 1 : vector<32x4xf32>, i32 -> vector<32x4xf32>
    %770 = arith.andi %735, %737 : vector<1x4xi1>
    %cst_268 = arith.constant 0.000000e+00 : f32
    %771 = vector.shape_cast %770 : vector<1x4xi1> to vector<1x4xi1>
    %772 = vector.broadcast %771 : vector<1x4xi1> to vector<32x4xi1>
    %773 = vector.broadcast %cst_268 : f32 to vector<32x4xf32>
    %774 = arith.select %772, %769, %773 : vector<32x4xi1>, vector<32x4xf32>
    %c2_i32_269 = arith.constant 2 : i32
    %775 = tpu.dynamic_rotate %724 by %c2_i32_269 dim 1 : vector<32x4xf32>, i32 -> vector<32x4xf32>
    %cst_270 = arith.constant 0.000000e+00 : f32
    %776 = vector.shape_cast %735 : vector<1x4xi1> to vector<1x4xi1>
    %777 = vector.broadcast %776 : vector<1x4xi1> to vector<32x4xi1>
    %778 = vector.broadcast %cst_270 : f32 to vector<32x4xf32>
    %779 = arith.select %777, %775, %778 : vector<32x4xi1>, vector<32x4xf32>
    %c1_i32_271 = arith.constant 1 : i32
    %780 = tpu.dynamic_rotate %724 by %c1_i32_271 dim 1 : vector<32x4xf32>, i32 -> vector<32x4xf32>
    %781 = arith.andi %735, %739 : vector<1x4xi1>
    %cst_272 = arith.constant 0.000000e+00 : f32
    %782 = vector.shape_cast %781 : vector<1x4xi1> to vector<1x4xi1>
    %783 = vector.broadcast %782 : vector<1x4xi1> to vector<32x4xi1>
    %784 = vector.broadcast %cst_272 : f32 to vector<32x4xf32>
    %785 = arith.select %783, %780, %784 : vector<32x4xi1>, vector<32x4xf32>
    %786 = tpu.concatenate %747, %752, %758, %763, %724, %768, %774, %779, %785 in 0 : vector<32x4xf32>, vector<32x4xf32>, vector<32x4xf32>, vector<32x4xf32>, vector<32x4xf32>, vector<32x4xf32>, vector<32x4xf32>, vector<32x4xf32>, vector<32x4xf32> -> vector<288x4xf32>
    %787 = arith.truncf %786 : vector<288x4xf32> to vector<288x4xbf16>
    %cst_273 = arith.constant dense<0.000000e+00> : vector<64x4xf32>
    %788 = tpu.matmul %740, %787, %cst_273 {dimension_numbers = #tpu.dot_dimension_numbers<[1], [0], [0], [1], [0, 0, 1, 1], [], []>} : vector<64x288xbf16>, vector<288x4xbf16>, vector<64x4xf32> -> vector<64x4xf32>
    %789 = vector.broadcast %741 : vector<64x1xf32> to vector<64x4xf32>
    %790 = arith.addf %788, %789 : vector<64x4xf32>
    %cst_274 = arith.constant 0.000000e+00 : f32
    %791 = vector.broadcast %cst_274 : f32 to vector<64x4xf32>
    %792 = arith.maximumf %790, %791 : vector<64x4xf32>
    %c256 = arith.constant 256 : index
    %c0_275 = arith.constant 0 : index
    %793 = vector.load %arg1[%c256, %c0_275] : memref<512x576xbf16, #tpu.memory_space<vmem>>, vector<64x576xbf16>
    %c256_276 = arith.constant 256 : index
    %c0_277 = arith.constant 0 : index
    %794 = vector.load %arg2[%c256_276, %c0_277] : memref<512x1xf32, #tpu.memory_space<vmem>>, vector<64x1xf32>
    %c3_i32_278 = arith.constant 3 : i32
    %795 = tpu.dynamic_rotate %792 by %c3_i32_278 dim 1 : vector<64x4xf32>, i32 -> vector<64x4xf32>
    %796 = arith.andi %733, %737 : vector<1x4xi1>
    %cst_279 = arith.constant 0.000000e+00 : f32
    %797 = vector.shape_cast %796 : vector<1x4xi1> to vector<1x4xi1>
    %798 = vector.broadcast %797 : vector<1x4xi1> to vector<64x4xi1>
    %799 = vector.broadcast %cst_279 : f32 to vector<64x4xf32>
    %800 = arith.select %798, %795, %799 : vector<64x4xi1>, vector<64x4xf32>
    %c2_i32_280 = arith.constant 2 : i32
    %801 = tpu.dynamic_rotate %792 by %c2_i32_280 dim 1 : vector<64x4xf32>, i32 -> vector<64x4xf32>
    %cst_281 = arith.constant 0.000000e+00 : f32
    %802 = vector.shape_cast %733 : vector<1x4xi1> to vector<1x4xi1>
    %803 = vector.broadcast %802 : vector<1x4xi1> to vector<64x4xi1>
    %804 = vector.broadcast %cst_281 : f32 to vector<64x4xf32>
    %805 = arith.select %803, %801, %804 : vector<64x4xi1>, vector<64x4xf32>
    %c1_i32_282 = arith.constant 1 : i32
    %806 = tpu.dynamic_rotate %792 by %c1_i32_282 dim 1 : vector<64x4xf32>, i32 -> vector<64x4xf32>
    %807 = arith.andi %733, %739 : vector<1x4xi1>
    %cst_283 = arith.constant 0.000000e+00 : f32
    %808 = vector.shape_cast %807 : vector<1x4xi1> to vector<1x4xi1>
    %809 = vector.broadcast %808 : vector<1x4xi1> to vector<64x4xi1>
    %810 = vector.broadcast %cst_283 : f32 to vector<64x4xf32>
    %811 = arith.select %809, %806, %810 : vector<64x4xi1>, vector<64x4xf32>
    %c1_i32_284 = arith.constant 1 : i32
    %812 = tpu.dynamic_rotate %792 by %c1_i32_284 dim 1 : vector<64x4xf32>, i32 -> vector<64x4xf32>
    %cst_285 = arith.constant 0.000000e+00 : f32
    %813 = vector.shape_cast %737 : vector<1x4xi1> to vector<1x4xi1>
    %814 = vector.broadcast %813 : vector<1x4xi1> to vector<64x4xi1>
    %815 = vector.broadcast %cst_285 : f32 to vector<64x4xf32>
    %816 = arith.select %814, %812, %815 : vector<64x4xi1>, vector<64x4xf32>
    %c3_i32_286 = arith.constant 3 : i32
    %817 = tpu.dynamic_rotate %792 by %c3_i32_286 dim 1 : vector<64x4xf32>, i32 -> vector<64x4xf32>
    %cst_287 = arith.constant 0.000000e+00 : f32
    %818 = vector.shape_cast %739 : vector<1x4xi1> to vector<1x4xi1>
    %819 = vector.broadcast %818 : vector<1x4xi1> to vector<64x4xi1>
    %820 = vector.broadcast %cst_287 : f32 to vector<64x4xf32>
    %821 = arith.select %819, %817, %820 : vector<64x4xi1>, vector<64x4xf32>
    %c3_i32_288 = arith.constant 3 : i32
    %822 = tpu.dynamic_rotate %792 by %c3_i32_288 dim 1 : vector<64x4xf32>, i32 -> vector<64x4xf32>
    %823 = arith.andi %735, %737 : vector<1x4xi1>
    %cst_289 = arith.constant 0.000000e+00 : f32
    %824 = vector.shape_cast %823 : vector<1x4xi1> to vector<1x4xi1>
    %825 = vector.broadcast %824 : vector<1x4xi1> to vector<64x4xi1>
    %826 = vector.broadcast %cst_289 : f32 to vector<64x4xf32>
    %827 = arith.select %825, %822, %826 : vector<64x4xi1>, vector<64x4xf32>
    %c2_i32_290 = arith.constant 2 : i32
    %828 = tpu.dynamic_rotate %792 by %c2_i32_290 dim 1 : vector<64x4xf32>, i32 -> vector<64x4xf32>
    %cst_291 = arith.constant 0.000000e+00 : f32
    %829 = vector.shape_cast %735 : vector<1x4xi1> to vector<1x4xi1>
    %830 = vector.broadcast %829 : vector<1x4xi1> to vector<64x4xi1>
    %831 = vector.broadcast %cst_291 : f32 to vector<64x4xf32>
    %832 = arith.select %830, %828, %831 : vector<64x4xi1>, vector<64x4xf32>
    %c1_i32_292 = arith.constant 1 : i32
    %833 = tpu.dynamic_rotate %792 by %c1_i32_292 dim 1 : vector<64x4xf32>, i32 -> vector<64x4xf32>
    %834 = arith.andi %735, %739 : vector<1x4xi1>
    %cst_293 = arith.constant 0.000000e+00 : f32
    %835 = vector.shape_cast %834 : vector<1x4xi1> to vector<1x4xi1>
    %836 = vector.broadcast %835 : vector<1x4xi1> to vector<64x4xi1>
    %837 = vector.broadcast %cst_293 : f32 to vector<64x4xf32>
    %838 = arith.select %836, %833, %837 : vector<64x4xi1>, vector<64x4xf32>
    %839 = tpu.concatenate %800, %805, %811, %816, %792, %821, %827, %832, %838 in 0 : vector<64x4xf32>, vector<64x4xf32>, vector<64x4xf32>, vector<64x4xf32>, vector<64x4xf32>, vector<64x4xf32>, vector<64x4xf32>, vector<64x4xf32>, vector<64x4xf32> -> vector<576x4xf32>
    %840 = arith.truncf %839 : vector<576x4xf32> to vector<576x4xbf16>
    %cst_294 = arith.constant dense<0.000000e+00> : vector<64x4xf32>
    %841 = tpu.matmul %793, %840, %cst_294 {dimension_numbers = #tpu.dot_dimension_numbers<[1], [0], [0], [1], [0, 0, 1, 1], [], []>} : vector<64x576xbf16>, vector<576x4xbf16>, vector<64x4xf32> -> vector<64x4xf32>
    %842 = vector.broadcast %794 : vector<64x1xf32> to vector<64x4xf32>
    %843 = arith.addf %841, %842 : vector<64x4xf32>
    %cst_295 = arith.constant 0.000000e+00 : f32
    %844 = vector.broadcast %cst_295 : f32 to vector<64x4xf32>
    %845 = arith.maximumf %843, %844 : vector<64x4xf32>
    %c320 = arith.constant 320 : index
    %c0_296 = arith.constant 0 : index
    %846 = vector.load %arg1[%c320, %c0_296] : memref<512x576xbf16, #tpu.memory_space<vmem>>, vector<64x576xbf16>
    %c320_297 = arith.constant 320 : index
    %c0_298 = arith.constant 0 : index
    %847 = vector.load %arg2[%c320_297, %c0_298] : memref<512x1xf32, #tpu.memory_space<vmem>>, vector<64x1xf32>
    %c3_i32_299 = arith.constant 3 : i32
    %848 = tpu.dynamic_rotate %845 by %c3_i32_299 dim 1 : vector<64x4xf32>, i32 -> vector<64x4xf32>
    %849 = arith.andi %733, %737 : vector<1x4xi1>
    %cst_300 = arith.constant 0.000000e+00 : f32
    %850 = vector.shape_cast %849 : vector<1x4xi1> to vector<1x4xi1>
    %851 = vector.broadcast %850 : vector<1x4xi1> to vector<64x4xi1>
    %852 = vector.broadcast %cst_300 : f32 to vector<64x4xf32>
    %853 = arith.select %851, %848, %852 : vector<64x4xi1>, vector<64x4xf32>
    %c2_i32_301 = arith.constant 2 : i32
    %854 = tpu.dynamic_rotate %845 by %c2_i32_301 dim 1 : vector<64x4xf32>, i32 -> vector<64x4xf32>
    %cst_302 = arith.constant 0.000000e+00 : f32
    %855 = vector.shape_cast %733 : vector<1x4xi1> to vector<1x4xi1>
    %856 = vector.broadcast %855 : vector<1x4xi1> to vector<64x4xi1>
    %857 = vector.broadcast %cst_302 : f32 to vector<64x4xf32>
    %858 = arith.select %856, %854, %857 : vector<64x4xi1>, vector<64x4xf32>
    %c1_i32_303 = arith.constant 1 : i32
    %859 = tpu.dynamic_rotate %845 by %c1_i32_303 dim 1 : vector<64x4xf32>, i32 -> vector<64x4xf32>
    %860 = arith.andi %733, %739 : vector<1x4xi1>
    %cst_304 = arith.constant 0.000000e+00 : f32
    %861 = vector.shape_cast %860 : vector<1x4xi1> to vector<1x4xi1>
    %862 = vector.broadcast %861 : vector<1x4xi1> to vector<64x4xi1>
    %863 = vector.broadcast %cst_304 : f32 to vector<64x4xf32>
    %864 = arith.select %862, %859, %863 : vector<64x4xi1>, vector<64x4xf32>
    %c1_i32_305 = arith.constant 1 : i32
    %865 = tpu.dynamic_rotate %845 by %c1_i32_305 dim 1 : vector<64x4xf32>, i32 -> vector<64x4xf32>
    %cst_306 = arith.constant 0.000000e+00 : f32
    %866 = vector.shape_cast %737 : vector<1x4xi1> to vector<1x4xi1>
    %867 = vector.broadcast %866 : vector<1x4xi1> to vector<64x4xi1>
    %868 = vector.broadcast %cst_306 : f32 to vector<64x4xf32>
    %869 = arith.select %867, %865, %868 : vector<64x4xi1>, vector<64x4xf32>
    %c3_i32_307 = arith.constant 3 : i32
    %870 = tpu.dynamic_rotate %845 by %c3_i32_307 dim 1 : vector<64x4xf32>, i32 -> vector<64x4xf32>
    %cst_308 = arith.constant 0.000000e+00 : f32
    %871 = vector.shape_cast %739 : vector<1x4xi1> to vector<1x4xi1>
    %872 = vector.broadcast %871 : vector<1x4xi1> to vector<64x4xi1>
    %873 = vector.broadcast %cst_308 : f32 to vector<64x4xf32>
    %874 = arith.select %872, %870, %873 : vector<64x4xi1>, vector<64x4xf32>
    %c3_i32_309 = arith.constant 3 : i32
    %875 = tpu.dynamic_rotate %845 by %c3_i32_309 dim 1 : vector<64x4xf32>, i32 -> vector<64x4xf32>
    %876 = arith.andi %735, %737 : vector<1x4xi1>
    %cst_310 = arith.constant 0.000000e+00 : f32
    %877 = vector.shape_cast %876 : vector<1x4xi1> to vector<1x4xi1>
    %878 = vector.broadcast %877 : vector<1x4xi1> to vector<64x4xi1>
    %879 = vector.broadcast %cst_310 : f32 to vector<64x4xf32>
    %880 = arith.select %878, %875, %879 : vector<64x4xi1>, vector<64x4xf32>
    %c2_i32_311 = arith.constant 2 : i32
    %881 = tpu.dynamic_rotate %845 by %c2_i32_311 dim 1 : vector<64x4xf32>, i32 -> vector<64x4xf32>
    %cst_312 = arith.constant 0.000000e+00 : f32
    %882 = vector.shape_cast %735 : vector<1x4xi1> to vector<1x4xi1>
    %883 = vector.broadcast %882 : vector<1x4xi1> to vector<64x4xi1>
    %884 = vector.broadcast %cst_312 : f32 to vector<64x4xf32>
    %885 = arith.select %883, %881, %884 : vector<64x4xi1>, vector<64x4xf32>
    %c1_i32_313 = arith.constant 1 : i32
    %886 = tpu.dynamic_rotate %845 by %c1_i32_313 dim 1 : vector<64x4xf32>, i32 -> vector<64x4xf32>
    %887 = arith.andi %735, %739 : vector<1x4xi1>
    %cst_314 = arith.constant 0.000000e+00 : f32
    %888 = vector.shape_cast %887 : vector<1x4xi1> to vector<1x4xi1>
    %889 = vector.broadcast %888 : vector<1x4xi1> to vector<64x4xi1>
    %890 = vector.broadcast %cst_314 : f32 to vector<64x4xf32>
    %891 = arith.select %889, %886, %890 : vector<64x4xi1>, vector<64x4xf32>
    %892 = tpu.concatenate %853, %858, %864, %869, %845, %874, %880, %885, %891 in 0 : vector<64x4xf32>, vector<64x4xf32>, vector<64x4xf32>, vector<64x4xf32>, vector<64x4xf32>, vector<64x4xf32>, vector<64x4xf32>, vector<64x4xf32>, vector<64x4xf32> -> vector<576x4xf32>
    %893 = arith.truncf %892 : vector<576x4xf32> to vector<576x4xbf16>
    %cst_315 = arith.constant dense<0.000000e+00> : vector<64x4xf32>
    %894 = tpu.matmul %846, %893, %cst_315 {dimension_numbers = #tpu.dot_dimension_numbers<[1], [0], [0], [1], [0, 0, 1, 1], [], []>} : vector<64x576xbf16>, vector<576x4xbf16>, vector<64x4xf32> -> vector<64x4xf32>
    %895 = vector.broadcast %847 : vector<64x1xf32> to vector<64x4xf32>
    %896 = arith.addf %894, %895 : vector<64x4xf32>
    %cst_316 = arith.constant 0.000000e+00 : f32
    %897 = vector.broadcast %cst_316 : f32 to vector<64x4xf32>
    %898 = arith.maximumf %896, %897 : vector<64x4xf32>
    %c384 = arith.constant 384 : index
    %c0_317 = arith.constant 0 : index
    %899 = vector.load %arg1[%c384, %c0_317] : memref<512x576xbf16, #tpu.memory_space<vmem>>, vector<64x576xbf16>
    %c384_318 = arith.constant 384 : index
    %c0_319 = arith.constant 0 : index
    %900 = vector.load %arg2[%c384_318, %c0_319] : memref<512x1xf32, #tpu.memory_space<vmem>>, vector<64x1xf32>
    %c3_i32_320 = arith.constant 3 : i32
    %901 = tpu.dynamic_rotate %898 by %c3_i32_320 dim 1 : vector<64x4xf32>, i32 -> vector<64x4xf32>
    %902 = arith.andi %733, %737 : vector<1x4xi1>
    %cst_321 = arith.constant 0.000000e+00 : f32
    %903 = vector.shape_cast %902 : vector<1x4xi1> to vector<1x4xi1>
    %904 = vector.broadcast %903 : vector<1x4xi1> to vector<64x4xi1>
    %905 = vector.broadcast %cst_321 : f32 to vector<64x4xf32>
    %906 = arith.select %904, %901, %905 : vector<64x4xi1>, vector<64x4xf32>
    %c2_i32_322 = arith.constant 2 : i32
    %907 = tpu.dynamic_rotate %898 by %c2_i32_322 dim 1 : vector<64x4xf32>, i32 -> vector<64x4xf32>
    %cst_323 = arith.constant 0.000000e+00 : f32
    %908 = vector.shape_cast %733 : vector<1x4xi1> to vector<1x4xi1>
    %909 = vector.broadcast %908 : vector<1x4xi1> to vector<64x4xi1>
    %910 = vector.broadcast %cst_323 : f32 to vector<64x4xf32>
    %911 = arith.select %909, %907, %910 : vector<64x4xi1>, vector<64x4xf32>
    %c1_i32_324 = arith.constant 1 : i32
    %912 = tpu.dynamic_rotate %898 by %c1_i32_324 dim 1 : vector<64x4xf32>, i32 -> vector<64x4xf32>
    %913 = arith.andi %733, %739 : vector<1x4xi1>
    %cst_325 = arith.constant 0.000000e+00 : f32
    %914 = vector.shape_cast %913 : vector<1x4xi1> to vector<1x4xi1>
    %915 = vector.broadcast %914 : vector<1x4xi1> to vector<64x4xi1>
    %916 = vector.broadcast %cst_325 : f32 to vector<64x4xf32>
    %917 = arith.select %915, %912, %916 : vector<64x4xi1>, vector<64x4xf32>
    %c1_i32_326 = arith.constant 1 : i32
    %918 = tpu.dynamic_rotate %898 by %c1_i32_326 dim 1 : vector<64x4xf32>, i32 -> vector<64x4xf32>
    %cst_327 = arith.constant 0.000000e+00 : f32
    %919 = vector.shape_cast %737 : vector<1x4xi1> to vector<1x4xi1>
    %920 = vector.broadcast %919 : vector<1x4xi1> to vector<64x4xi1>
    %921 = vector.broadcast %cst_327 : f32 to vector<64x4xf32>
    %922 = arith.select %920, %918, %921 : vector<64x4xi1>, vector<64x4xf32>
    %c3_i32_328 = arith.constant 3 : i32
    %923 = tpu.dynamic_rotate %898 by %c3_i32_328 dim 1 : vector<64x4xf32>, i32 -> vector<64x4xf32>
    %cst_329 = arith.constant 0.000000e+00 : f32
    %924 = vector.shape_cast %739 : vector<1x4xi1> to vector<1x4xi1>
    %925 = vector.broadcast %924 : vector<1x4xi1> to vector<64x4xi1>
    %926 = vector.broadcast %cst_329 : f32 to vector<64x4xf32>
    %927 = arith.select %925, %923, %926 : vector<64x4xi1>, vector<64x4xf32>
    %c3_i32_330 = arith.constant 3 : i32
    %928 = tpu.dynamic_rotate %898 by %c3_i32_330 dim 1 : vector<64x4xf32>, i32 -> vector<64x4xf32>
    %929 = arith.andi %735, %737 : vector<1x4xi1>
    %cst_331 = arith.constant 0.000000e+00 : f32
    %930 = vector.shape_cast %929 : vector<1x4xi1> to vector<1x4xi1>
    %931 = vector.broadcast %930 : vector<1x4xi1> to vector<64x4xi1>
    %932 = vector.broadcast %cst_331 : f32 to vector<64x4xf32>
    %933 = arith.select %931, %928, %932 : vector<64x4xi1>, vector<64x4xf32>
    %c2_i32_332 = arith.constant 2 : i32
    %934 = tpu.dynamic_rotate %898 by %c2_i32_332 dim 1 : vector<64x4xf32>, i32 -> vector<64x4xf32>
    %cst_333 = arith.constant 0.000000e+00 : f32
    %935 = vector.shape_cast %735 : vector<1x4xi1> to vector<1x4xi1>
    %936 = vector.broadcast %935 : vector<1x4xi1> to vector<64x4xi1>
    %937 = vector.broadcast %cst_333 : f32 to vector<64x4xf32>
    %938 = arith.select %936, %934, %937 : vector<64x4xi1>, vector<64x4xf32>
    %c1_i32_334 = arith.constant 1 : i32
    %939 = tpu.dynamic_rotate %898 by %c1_i32_334 dim 1 : vector<64x4xf32>, i32 -> vector<64x4xf32>
    %940 = arith.andi %735, %739 : vector<1x4xi1>
    %cst_335 = arith.constant 0.000000e+00 : f32
    %941 = vector.shape_cast %940 : vector<1x4xi1> to vector<1x4xi1>
    %942 = vector.broadcast %941 : vector<1x4xi1> to vector<64x4xi1>
    %943 = vector.broadcast %cst_335 : f32 to vector<64x4xf32>
    %944 = arith.select %942, %939, %943 : vector<64x4xi1>, vector<64x4xf32>
    %945 = tpu.concatenate %906, %911, %917, %922, %898, %927, %933, %938, %944 in 0 : vector<64x4xf32>, vector<64x4xf32>, vector<64x4xf32>, vector<64x4xf32>, vector<64x4xf32>, vector<64x4xf32>, vector<64x4xf32>, vector<64x4xf32>, vector<64x4xf32> -> vector<576x4xf32>
    %946 = arith.truncf %945 : vector<576x4xf32> to vector<576x4xbf16>
    %cst_336 = arith.constant dense<0.000000e+00> : vector<64x4xf32>
    %947 = tpu.matmul %899, %946, %cst_336 {dimension_numbers = #tpu.dot_dimension_numbers<[1], [0], [0], [1], [0, 0, 1, 1], [], []>} : vector<64x576xbf16>, vector<576x4xbf16>, vector<64x4xf32> -> vector<64x4xf32>
    %948 = vector.broadcast %900 : vector<64x1xf32> to vector<64x4xf32>
    %949 = arith.addf %947, %948 : vector<64x4xf32>
    %cst_337 = arith.constant 0.000000e+00 : f32
    %950 = vector.broadcast %cst_337 : f32 to vector<64x4xf32>
    %951 = arith.maximumf %949, %950 : vector<64x4xf32>
    %952 = tpu.iota {dimensions = array<i32: 1>} : vector<1x4xi32>
    %c3_i32_338 = arith.constant 3 : i32
    %953 = tpu.dynamic_rotate %951 by %c3_i32_338 dim 1 : vector<64x4xf32>, i32 -> vector<64x4xf32>
    %954 = arith.maximumf %951, %953 : vector<64x4xf32>
    %c2_i32_339 = arith.constant 2 : i32
    %955 = tpu.dynamic_rotate %954 by %c2_i32_339 dim 1 : vector<64x4xf32>, i32 -> vector<64x4xf32>
    %956 = arith.maximumf %954, %955 : vector<64x4xf32>
    %c3_i32_340 = arith.constant 3 : i32
    %957 = vector.broadcast %c3_i32_340 : i32 to vector<1x4xi32>
    %958 = arith.andi %952, %957 : vector<1x4xi32>
    %c1_i32_341 = arith.constant 1 : i32
    %959 = vector.broadcast %c1_i32_341 : i32 to vector<1x4xi32>
    %960 = arith.cmpi sge, %958, %959 : vector<1x4xi32>
    %c2_i32_342 = arith.constant 2 : i32
    %961 = vector.broadcast %c2_i32_342 : i32 to vector<1x4xi32>
    %962 = arith.cmpi slt, %958, %961 : vector<1x4xi32>
    %963 = arith.andi %960, %962 : vector<1x4xi1>
    %c3_i32_343 = arith.constant 3 : i32
    %964 = tpu.dynamic_rotate %956 by %c3_i32_343 dim 1 : vector<64x4xf32>, i32 -> vector<64x4xf32>
    %965 = vector.shape_cast %963 : vector<1x4xi1> to vector<1x4xi1>
    %966 = vector.broadcast %965 : vector<1x4xi1> to vector<64x4xi1>
    %967 = arith.select %966, %964, %956 : vector<64x4xi1>, vector<64x4xf32>
    %968 = vector.extract_strided_slice %967 {offsets = [0, 0], sizes = [64, 1], strides = [1, 1]} : vector<64x4xf32> to vector<64x1xf32>
    %969 = tpu.iota {dimensions = array<i32: 1>} : vector<1x1xi32>
    %c0_i32 = arith.constant 0 : i32
    %970 = vector.broadcast %c0_i32 : i32 to vector<1x1xi32>
    %971 = arith.andi %969, %970 : vector<1x1xi32>
    %c0_i32_344 = arith.constant 0 : i32
    %972 = vector.broadcast %c0_i32_344 : i32 to vector<1x1xi32>
    %973 = arith.shrsi %969, %972 : vector<1x1xi32>
    %c0_i32_345 = arith.constant 0 : i32
    %974 = vector.broadcast %c0_i32_345 : i32 to vector<1x1xi32>
    %975 = arith.andi %973, %974 : vector<1x1xi32>
    %c1_i32_346 = arith.constant 1 : i32
    %976 = vector.broadcast %c1_i32_346 : i32 to vector<1x1xi32>
    %977 = arith.cmpi sge, %975, %976 : vector<1x1xi32>
    %c0_i32_347 = arith.constant 0 : i32
    %978 = vector.broadcast %c0_i32_347 : i32 to vector<1x1xi32>
    %979 = arith.cmpi slt, %975, %978 : vector<1x1xi32>
    %c1_i32_348 = arith.constant 1 : i32
    %980 = vector.broadcast %c1_i32_348 : i32 to vector<1x1xi32>
    %981 = arith.cmpi sge, %971, %980 : vector<1x1xi32>
    %c0_i32_349 = arith.constant 0 : i32
    %982 = vector.broadcast %c0_i32_349 : i32 to vector<1x1xi32>
    %983 = arith.cmpi slt, %971, %982 : vector<1x1xi32>
    %c448 = arith.constant 448 : index
    %c0_350 = arith.constant 0 : index
    %984 = vector.load %arg1[%c448, %c0_350] : memref<512x576xbf16, #tpu.memory_space<vmem>>, vector<64x576xbf16>
    %c448_351 = arith.constant 448 : index
    %c0_352 = arith.constant 0 : index
    %985 = vector.load %arg2[%c448_351, %c0_352] : memref<512x1xf32, #tpu.memory_space<vmem>>, vector<64x1xf32>
    %986 = arith.andi %977, %981 : vector<1x1xi1>
    %cst_353 = arith.constant 0.000000e+00 : f32
    %987 = vector.shape_cast %986 : vector<1x1xi1> to vector<1x1xi1>
    %988 = vector.broadcast %987 : vector<1x1xi1> to vector<64x1xi1>
    %989 = vector.broadcast %cst_353 : f32 to vector<64x1xf32>
    %990 = arith.select %988, %968, %989 : vector<64x1xi1>, vector<64x1xf32>
    %cst_354 = arith.constant 0.000000e+00 : f32
    %991 = vector.shape_cast %977 : vector<1x1xi1> to vector<1x1xi1>
    %992 = vector.broadcast %991 : vector<1x1xi1> to vector<64x1xi1>
    %993 = vector.broadcast %cst_354 : f32 to vector<64x1xf32>
    %994 = arith.select %992, %968, %993 : vector<64x1xi1>, vector<64x1xf32>
    %995 = arith.andi %977, %983 : vector<1x1xi1>
    %cst_355 = arith.constant 0.000000e+00 : f32
    %996 = vector.shape_cast %995 : vector<1x1xi1> to vector<1x1xi1>
    %997 = vector.broadcast %996 : vector<1x1xi1> to vector<64x1xi1>
    %998 = vector.broadcast %cst_355 : f32 to vector<64x1xf32>
    %999 = arith.select %997, %968, %998 : vector<64x1xi1>, vector<64x1xf32>
    %cst_356 = arith.constant 0.000000e+00 : f32
    %1000 = vector.shape_cast %981 : vector<1x1xi1> to vector<1x1xi1>
    %1001 = vector.broadcast %1000 : vector<1x1xi1> to vector<64x1xi1>
    %1002 = vector.broadcast %cst_356 : f32 to vector<64x1xf32>
    %1003 = arith.select %1001, %968, %1002 : vector<64x1xi1>, vector<64x1xf32>
    %cst_357 = arith.constant 0.000000e+00 : f32
    %1004 = vector.shape_cast %983 : vector<1x1xi1> to vector<1x1xi1>
    %1005 = vector.broadcast %1004 : vector<1x1xi1> to vector<64x1xi1>
    %1006 = vector.broadcast %cst_357 : f32 to vector<64x1xf32>
    %1007 = arith.select %1005, %968, %1006 : vector<64x1xi1>, vector<64x1xf32>
    %1008 = arith.andi %979, %981 : vector<1x1xi1>
    %cst_358 = arith.constant 0.000000e+00 : f32
    %1009 = vector.shape_cast %1008 : vector<1x1xi1> to vector<1x1xi1>
    %1010 = vector.broadcast %1009 : vector<1x1xi1> to vector<64x1xi1>
    %1011 = vector.broadcast %cst_358 : f32 to vector<64x1xf32>
    %1012 = arith.select %1010, %968, %1011 : vector<64x1xi1>, vector<64x1xf32>
    %cst_359 = arith.constant 0.000000e+00 : f32
    %1013 = vector.shape_cast %979 : vector<1x1xi1> to vector<1x1xi1>
    %1014 = vector.broadcast %1013 : vector<1x1xi1> to vector<64x1xi1>
    %1015 = vector.broadcast %cst_359 : f32 to vector<64x1xf32>
    %1016 = arith.select %1014, %968, %1015 : vector<64x1xi1>, vector<64x1xf32>
    %1017 = arith.andi %979, %983 : vector<1x1xi1>
    %cst_360 = arith.constant 0.000000e+00 : f32
    %1018 = vector.shape_cast %1017 : vector<1x1xi1> to vector<1x1xi1>
    %1019 = vector.broadcast %1018 : vector<1x1xi1> to vector<64x1xi1>
    %1020 = vector.broadcast %cst_360 : f32 to vector<64x1xf32>
    %1021 = arith.select %1019, %968, %1020 : vector<64x1xi1>, vector<64x1xf32>
    %1022 = tpu.concatenate %990, %994, %999, %1003, %968, %1007, %1012, %1016, %1021 in 0 : vector<64x1xf32>, vector<64x1xf32>, vector<64x1xf32>, vector<64x1xf32>, vector<64x1xf32>, vector<64x1xf32>, vector<64x1xf32>, vector<64x1xf32>, vector<64x1xf32> -> vector<576x1xf32>
    %1023 = arith.truncf %1022 : vector<576x1xf32> to vector<576x1xbf16>
    %cst_361 = arith.constant dense<0.000000e+00> : vector<64x1xf32>
    %1024 = tpu.matmul %984, %1023, %cst_361 {dimension_numbers = #tpu.dot_dimension_numbers<[1], [0], [0], [1], [0, 0, 1, 1], [], []>} : vector<64x576xbf16>, vector<576x1xbf16>, vector<64x1xf32> -> vector<64x1xf32>
    %1025 = arith.addf %1024, %985 : vector<64x1xf32>
    %cst_362 = arith.constant 0.000000e+00 : f32
    %1026 = vector.broadcast %cst_362 : f32 to vector<64x1xf32>
    %1027 = arith.maximumf %1025, %1026 : vector<64x1xf32>
    %1028 = arith.truncf %68 : vector<8x256xf32> to vector<8x256xbf16>
    %cst_363 = arith.constant dense<0.000000e+00> : vector<8x8xf32>
    %1029 = tpu.matmul %1028, %1028, %cst_363 {dimension_numbers = #tpu.dot_dimension_numbers<[1], [1], [0], [0], [0, 0, 1, 0], [], []>} : vector<8x256xbf16>, vector<8x256xbf16>, vector<8x8xf32> -> vector<8x8xf32>
    %cst_364 = arith.constant 4.8828125E-4 : f32
    %1030 = vector.broadcast %cst_364 : f32 to vector<8x8xf32>
    %1031 = arith.mulf %1029, %1030 : vector<8x8xf32>
    %c0_365 = arith.constant 0 : index
    %c0_366 = arith.constant 0 : index
    %1032 = vector.load %arg3[%c0_365, %c0_366] : memref<8x8xf32, #tpu.memory_space<vmem>>, vector<8x8xf32>
    tpu.vector_store %arg3[%c0_365, %c0_366], %1031 {strides = array<i32>} : memref<8x8xf32, #tpu.memory_space<vmem>>, vector<8x8xf32>,
    %1033 = arith.truncf %307 : vector<16x64xf32> to vector<16x64xbf16>
    %cst_367 = arith.constant dense<0.000000e+00> : vector<16x16xf32>
    %1034 = tpu.matmul %1033, %1033, %cst_367 {dimension_numbers = #tpu.dot_dimension_numbers<[1], [1], [0], [0], [0, 0, 1, 0], [], []>} : vector<16x64xbf16>, vector<16x64xbf16>, vector<16x16xf32> -> vector<16x16xf32>
    %cst_368 = arith.constant 9.765625E-4 : f32
    %1035 = vector.broadcast %cst_368 : f32 to vector<16x16xf32>
    %1036 = arith.mulf %1034, %1035 : vector<16x16xf32>
    %c0_369 = arith.constant 0 : index
    %c0_370 = arith.constant 0 : index
    %1037 = vector.load %arg4[%c0_369, %c0_370] : memref<16x16xf32, #tpu.memory_space<vmem>>, vector<16x16xf32>
    tpu.vector_store %arg4[%c0_369, %c0_370], %1036 {strides = array<i32>} : memref<16x16xf32, #tpu.memory_space<vmem>>, vector<16x16xf32>,
    %1038 = arith.truncf %513 : vector<32x16xf32> to vector<32x16xbf16>
    %cst_371 = arith.constant dense<0.000000e+00> : vector<32x32xf32>
    %1039 = tpu.matmul %1038, %1038, %cst_371 {dimension_numbers = #tpu.dot_dimension_numbers<[1], [1], [0], [0], [0, 0, 1, 0], [], []>} : vector<32x16xbf16>, vector<32x16xbf16>, vector<32x32xf32> -> vector<32x32xf32>
    %cst_372 = arith.constant 0.001953125 : f32
    %1040 = vector.broadcast %cst_372 : f32 to vector<32x32xf32>
    %1041 = arith.mulf %1039, %1040 : vector<32x32xf32>
    %c0_373 = arith.constant 0 : index
    %c0_374 = arith.constant 0 : index
    %1042 = vector.load %arg5[%c0_373, %c0_374] : memref<32x32xf32, #tpu.memory_space<vmem>>, vector<32x32xf32>
    tpu.vector_store %arg5[%c0_373, %c0_374], %1041 {strides = array<i32>} : memref<32x32xf32, #tpu.memory_space<vmem>>, vector<32x32xf32>,
    %1043 = arith.truncf %792 : vector<64x4xf32> to vector<64x4xbf16>
    %cst_375 = arith.constant dense<0.000000e+00> : vector<64x64xf32>
    %1044 = tpu.matmul %1043, %1043, %cst_375 {dimension_numbers = #tpu.dot_dimension_numbers<[1], [1], [0], [0], [0, 0, 1, 0], [], []>} : vector<64x4xbf16>, vector<64x4xbf16>, vector<64x64xf32> -> vector<64x64xf32>
    %cst_376 = arith.constant 3.906250e-03 : f32
    %1045 = vector.broadcast %cst_376 : f32 to vector<64x64xf32>
    %1046 = arith.mulf %1044, %1045 : vector<64x64xf32>
    %c0_377 = arith.constant 0 : index
    %c0_378 = arith.constant 0 : index
    %1047 = vector.load %arg6[%c0_377, %c0_378] : memref<64x64xf32, #tpu.memory_space<vmem>>, vector<64x64xf32>
    tpu.vector_store %arg6[%c0_377, %c0_378], %1046 {strides = array<i32>} : memref<64x64xf32, #tpu.memory_space<vmem>>, vector<64x64xf32>,
    %1048 = arith.truncf %1027 : vector<64x1xf32> to vector<64x1xbf16>
    %cst_379 = arith.constant dense<0.000000e+00> : vector<64x64xf32>
    %1049 = tpu.matmul %1048, %1048, %cst_379 {dimension_numbers = #tpu.dot_dimension_numbers<[1], [1], [0], [0], [0, 0, 1, 0], [], []>} : vector<64x1xbf16>, vector<64x1xbf16>, vector<64x64xf32> -> vector<64x64xf32>
    %cst_380 = arith.constant 1.562500e-02 : f32
    %1050 = vector.broadcast %cst_380 : f32 to vector<64x64xf32>
    %1051 = arith.mulf %1049, %1050 : vector<64x64xf32>
    %c0_381 = arith.constant 0 : index
    %c0_382 = arith.constant 0 : index
    %1052 = vector.load %arg7[%c0_381, %c0_382] : memref<64x64xf32, #tpu.memory_space<vmem>>, vector<64x64xf32>
    tpu.vector_store %arg7[%c0_381, %c0_382], %1051 {strides = array<i32>} : memref<64x64xf32, #tpu.memory_space<vmem>>, vector<64x64xf32>,
    return
  }
}

</mosaic_0001>

<bundles_post_ra>
// kernel: squeeze.1
= control target key start
LH: loop header
LB: loop body
LE: loop exit
PB: predicated region body
PF: predicated region fallthrough
CT: control target
= control target key end

     0   :  { %2 = vsyncpa [#allocation1], 0  ;;  %s201_s6 = smov [#allocation0]   ;;  %s255_s0 = inlined_call_operand.hbm [shape: f32[1,3,16,16], index: 0, kind: input, shape index: {}]   ;;  %s256_s1 = inlined_call_operand.vmem [shape: f32[3,256], index: 1, kind: output, shape index: {}]  }
   0x1   :  { %s7_s7 = sshll.u32 %s201_s6, 4  ;;  %s177_s10 = scalar_lea.hbm %s255_s0, 768  ;;  %s8_s7 = int_to_ptr.vmem [resolvable:$true] %s7_s7 }
   0x2   :  { %p178_p0 = scmp.ne.s32.totalorder %s255_s0, %s177_s10  ;;  %p181_p1 = scmp.lt.u32.totalorder %s177_s10, %s255_s0 }
   0x4   :  { %p183_p2 = pnand %p181_p1, %p178_p0 }
   0x6   :  { %186 = shalt.err (!%p183_p2)
}
   0x7   :  { %s187_s15 = scalar_lea.vmem %s8_s7, 768  ;;  %p192_p4 = scmp.lt.s32.totalorder %s8_s7, %s8_s7 }
   0x8   :  { %p188_p3 = scmp.ne.s32.totalorder %s8_s7, %s187_s15  ;;  %p193_p5 = scmp.lt.s32.totalorder %s187_s15, %s187_s15 }
   0xa   :  { %p194_p6 = por %p193_p5, %p192_p4 }
   0xc   :  { %p195_p7 = pnand %p194_p6, %p188_p3 }
   0xe   :  { %198 = shalt.err (!%p195_p7)
}
   0xf   :  { %10 = dma.hbm_to_vmem [thread:$0]  %s255_s0, 768, %s8_s7, [#allocation1]  }
  0x10   :  { %199 = dma.done.wait [#allocation1], 768  }
  0x11   :  { %200 = vsyncadd [#allocation1], 4294966528  ;;  %s24_s0 = smov 3  ;;  %s27_s18 = smov 12  ;;  %vm29_vm0 = vcmask 1043458   ;;  %vm15_vm1 = vcmask 1045508  }
  0x12   :  { %s32_s19 = smov 48  ;;  %s62_s20 = smov 3  ;;  %v25_v0 = vld [vmem:[#allocation0 + $0x7] ss:$16 sm:%s24_s0]   ;;  %vm17_vm2 = vcmask 130048   ;;  %vm38_vm3 = vcmask 1048448  }
  0x13   :  { %s65_s21 = smov 12  ;;  %s70_s22 = smov 48  ;;  %v28_v1 = vld [vmem:[#allocation0 + $0x57] ss:$-24 sm:%s27_s18]   ;;  %v63_v4 = vld [vmem:[#allocation0 + $0x5] ss:$16 sm:%s62_s20]  }
  0x14   :  { %s43_s23 = smov 3  ;;  %s46_s24 = smov 12  ;;  %v33_v2 = vld [vmem:[#allocation0 - $0x21] ss:$16 sm:%s32_s19]   ;;  %v30_v3 = vsel %vm29_vm0, %v28_v1, %v25_v0  ;;  %v66_v5 = vld [vmem:[#allocation0 + $0x55] ss:$-24 sm:%s65_s21]  }
  0x15   :  { %s51_s25 = smov 48  ;;  %s81_s26 = smov 3  ;;  %v71_v6 = vld [vmem:[#allocation0 - $0x23] ss:$16 sm:%s70_s22]   ;;  %v35_v7 = vsel %vm15_vm1, %v33_v2, %v30_v3  ;;  %v68_v8 = vsel %vm29_vm0, %v66_v5, %v63_v4  ;;  %v44_v9 = vld [vmem:[#allocation0 + $0x6] ss:$16 sm:%s43_s23]  }
  0x16   :  { %s84_s27 = smov 12  ;;  %v47_v10 = vld [vmem:[#allocation0 + $0x56] ss:$-24 sm:%s46_s24]   ;;  %s202_s28 = smov 112   ;;  %v73_v12 = vsel %vm15_vm1, %v71_v6, %v68_v8  ;;  %v82_v14 = vld [vmem:[#allocation0 + $0x4] ss:$16 sm:%s81_s26]  }
  0x17   :  { %v52_v11 = vld [vmem:[#allocation0 - $0x22] ss:$16 sm:%s51_s25]   ;;  %36 = vrot.lane.b32.xlu0 %v35_v7, %s202_s28  ;;  %v49_v13 = vsel %vm29_vm0, %v47_v10, %v44_v9  ;;  %v85_v15 = vld [vmem:[#allocation0 + $0x54] ss:$-24 sm:%s84_s27]   ;;  %s89_s29 = smov 48  ;;  %s203_s30 = smov 80  }
  0x18   :  { %74 = vrot.lane.b32.xlu1 %v73_v12, %s203_s30  ;;  %v54_v16 = vsel %vm15_vm1, %v52_v11, %v49_v13  ;;  %v87_v17 = vsel %vm29_vm0, %v85_v15, %v82_v14  ;;  %v90_v18 = vld [vmem:[#allocation0 - $0x24] ss:$16 sm:%s89_s29]   ;;  %s100_s2 = smov 3  ;;  %s103_s3 = smov 12  ;;  %vm57_vm4 = vcmask 917248   ;;  %vm76_vm5 = vcmask 786048  }
  0x19   :  { %v92_v19 = vsel %vm15_vm1, %v90_v18, %v87_v17  ;;  %v101_v20 = vld [vmem:[#allocation0 + $0x3] ss:$16 sm:%s100_s2]   ;;  %s108_s4 = smov 48  ;;  %s119_s5 = smov 3  ;;  %vm95_vm6 = vcmask 654848   ;;  %vm114_vm7 = vcmask 523648  }
  0x1a   :  { %v104_v21 = vld [vmem:[#allocation0 + $0x53] ss:$-24 sm:%s103_s3]   ;;  %s122_s6 = smov 12  ;;  %s204_s7 = smov 96   ;;  %v120_v24 = vld [vmem:[#allocation0 + $0x2] ss:$16 sm:%s119_s5]  }
  0x1b   :  { %v106_v22 = vsel %vm29_vm0, %v104_v21, %v101_v20  ;;  %v109_v23 = vld [vmem:[#allocation0 - $0x25] ss:$16 sm:%s108_s4]   ;;  %55 = vrot.lane.b32.xlu0 %v54_v16, %s204_s7  ;;  %v123_v25 = vld [vmem:[#allocation0 + $0x52] ss:$-24 sm:%s122_s6]   ;;  %s127_s8 = smov 48  ;;  %s205_s9 = smov 64  }
  0x1c   :  { %93 = vrot.lane.b32.xlu1 %v92_v19, %s205_s9  ;;  %v111_v26 = vsel %vm15_vm1, %v109_v23, %v106_v22  ;;  %v125_v27 = vsel %vm29_vm0, %v123_v25, %v120_v24  ;;  %v128_v28 = vld [vmem:[#allocation0 - $0x26] ss:$16 sm:%s127_s8]   ;;  %s138_s10 = smov 3  ;;  %s141_s11 = smov 12  ;;  %vm133_vm8 = vcmask 392448   ;;  %vm152_vm9 = vcmask 261248  }
  0x1d   :  { %v130_v29 = vsel %vm15_vm1, %v128_v28, %v125_v27  ;;  %v139_v30 = vld [vmem:[#allocation0 + $0x1] ss:$16 sm:%s138_s10]   ;;  %s146_s12 = smov 48  ;;  %s13_s13 = smov 48 }
  0x1e   :  { %v142_v31 = vld [vmem:[#allocation0 + $0x51] ss:$-24 sm:%s141_s11]   ;;  %v12_v34 = vld [vmem:[#allocation0] ss:$8 sm:$0xf]   ;;  %s206_s14 = smov 48  }
  0x1f   :  { %v144_v32 = vsel %vm29_vm0, %v142_v31, %v139_v30  ;;  %v147_v33 = vld [vmem:[#allocation0 - $0x27] ss:$16 sm:%s146_s12]   ;;  %112 = vrot.lane.b32.xlu0 %v111_v26, %s206_s14  ;;  %v14_v35 = vld [vmem:[#allocation0] ss:$8 sm:%s13_s13]   ;;  %s207_s15 = smov 32   ;;  %s208_s16 = smov 16  }
  0x20   :  { %131 = vrot.lane.b32.xlu1 %v130_v29, %s207_s15  ;;  %v149_v36 = vsel %vm15_vm1, %v147_v33, %v144_v32  ;;  %v16_v37 = vsel %vm15_vm1, %v14_v35, %v12_v34 }
  0x21   :  { %18 = vst.msk [vmem:[#allocation2] ss:$8 sm:$0x3] %vm17_vm2, %v16_v37   ;;  %20 = vst.msk [vmem:[#allocation2 - $0xf] ss:$8 sm:$0xc] %vm17_vm2, %v16_v37  }
  0x22   :  { %22 = vst.msk [vmem:[#allocation2 - $0x1e] ss:$8 sm:$0x30] %vm17_vm2, %v16_v37  }
  0x23   :  { %150 = vrot.lane.b32.xlu0 %v149_v36, %s208_s16 }
  0x89   :  { %v37_v38 = vpop.permute.xlu0 %36  }
  0x8a   :  { %v75_v39 = vpop.permute.xlu1 %74   ;;  %39 = vst.msk [vmem:[#allocation2] sm:$0x7] %vm38_vm3, %v37_v38   ;;  %41 = vst.msk [vmem:[#allocation2 + $0x5] sm:$0x38] %vm38_vm3, %v37_v38  }
  0x8d   :  { %v56_v40 = vpop.permute.xlu0 %55  }
  0x8e   :  { %58 = vst.msk [vmem:[#allocation2] sm:$0x7] %vm57_vm4, %v56_v40   ;;  %60 = vst.msk [vmem:[#allocation2 + $0x5] sm:$0x38] %vm57_vm4, %v56_v40   ;;  %v94_v41 = vpop.permute.xlu1 %93  }
  0x8f   :  { %77 = vst.msk [vmem:[#allocation2] sm:$0x7] %vm76_vm5, %v75_v39   ;;  %79 = vst.msk [vmem:[#allocation2 + $0x5] sm:$0x38] %vm76_vm5, %v75_v39  }
  0x90   :  { %96 = vst.msk [vmem:[#allocation2] sm:$0x7] %vm95_vm6, %v94_v41   ;;  %98 = vst.msk [vmem:[#allocation2 + $0x5] sm:$0x38] %vm95_vm6, %v94_v41  }
  0x91   :  { %v113_v42 = vpop.permute.xlu0 %112  }
  0x92   :  { %115 = vst.msk [vmem:[#allocation2] sm:$0x7] %vm114_vm7, %v113_v42   ;;  %117 = vst.msk [vmem:[#allocation2 + $0x5] sm:$0x38] %vm114_vm7, %v113_v42   ;;  %v132_v43 = vpop.permute.xlu1 %131  }
  0x93   :  { %134 = vst.msk [vmem:[#allocation2] sm:$0x7] %vm133_vm8, %v132_v43   ;;  %136 = vst.msk [vmem:[#allocation2 + $0x5] sm:$0x38] %vm133_vm8, %v132_v43  }
  0x95   :  { %v151_v44 = vpop.permute.xlu0 %150  }
  0x96   :  { %153 = vst.msk [vmem:[#allocation2] sm:$0x7] %vm152_vm9, %v151_v44   ;;  %155 = vst.msk [vmem:[#allocation2 + $0x5] sm:$0x38] %vm152_vm9, %v151_v44  }
  0x9d   :  { %v159_v45 = vld [vmem:[#allocation2] sm:$0xf]  ;;  %v163_v46 = vld [vmem:[#allocation2 + $0x8] sm:$0xf] }
  0x9e   :  { %161 = vst [vmem:[%s256_s1] sm:$0xf] %v159_v45  ;;  %168 = vst [vmem:[%s256_s1 + $0x4] sm:$0xf] %v163_v46 }
  0x9f   :  { %167 = vsyncpa [#allocation1], 1 }

// kernel: capture_style_targets.1
= control target key start
LH: loop header
LB: loop body
LE: loop exit
PB: predicated region body
PF: predicated region fallthrough
CT: control target
= control target key end

     0   :  { %13 = vsyncpa [#allocation3], 0  ;;  %s11817_s0 = inlined_call_operand.vmem [shape: f32[8,256], index: 0, kind: input, shape index: {}]   ;;  %s11818_s1 = inlined_call_operand.vmem [shape: bf16[512,576], index: 1, kind: input, shape index: {}]   ;;  %s11819_s2 = inlined_call_operand.vmem [shape: f32[512,1], index: 2, kind: input, shape index: {}]   ;;  %s11820_s3 = inlined_call_operand.hbm [shape: f32[8,8], index: 3, kind: output, shape index: {0}]   ;;  %s11821_s4 = inlined_call_operand.hbm [shape: f32[16,16], index: 4, kind: output, shape index: {1}]   ;;  %s11822_s5 = inlined_call_operand.hbm [shape: f32[32,32], index: 5, kind: output, shape index: {2}]   ;;  %s11823_s6 = inlined_call_operand.hbm [shape: f32[64,64], index: 6, kind: output, shape index: {3}]   ;;  %s11824_s7 = inlined_call_operand.hbm [shape: f32[64,64], index: 7, kind: output, shape index: {4}]  }
   0x1   :  { %14 = vsyncpa [#allocation5], 0  ;;  %v9055_v0 = vld [vmem:[%s11817_s0] sm:$0xff]  ;;  %v9060_v1 = vld [vmem:[%s11817_s0 + $0x8] sm:$0xff]  ;;  %s8975_s28 = smov 15   ;;  %s8976_s29 = smov 17  }
   0x2   :  { %v7320_v2 = vpack.i.bf16 %v9060_v1, %v9055_v0  ;;  %s8977_s30 = smov 1   ;;  %s8978_s8 = smov 16   ;;  %v8983_v3 = vmov 0   ;;  %v43_v4 = vld [vmem:[%s11819_s2] sm:$0xff] }
   0x3   :  { %s8979_s9 = smov 127   ;;  %s8980_s0 = smov 113   ;;  %214 = vmatprep.mubr.bf16.mxu0 %v8983_v3  ;;  %7350 = vset.pattern.permute.xlu0 %v8983_v3 }
   0x4   :  { %7321 = vrot.lane.b32.xlu1 %v7320_v2, %s8975_s28  ;;  %7311 = vrot.lane.b32.xlu0 %v7320_v2, %s8976_s29  ;;  %s8981_s10 = smov 112   ;;  %s8982_s11 = smov 111  }
   0x5   :  { %347 = vmatprep.mubr.bf16.mxu1 %v8983_v3  ;;  %7451 = vset.pattern.permute.xlu1 %v8983_v3 }
   0x8   :  { %7326 = vrot.lane.b32.xlu1 %v7320_v2, %s8977_s30  ;;  %7316 = vrot.lane.b32.xlu0 %v7320_v2, %s8978_s8 }
   0xc   :  { %7331 = vrot.lane.b32.xlu0 %v7320_v2, %s8979_s9  ;;  %7336 = vrot.lane.b32.xlu1 %v7320_v2, %s8980_s0 }
  0x10   :  { %7341 = vrot.lane.b32.xlu0 %v7320_v2, %s8981_s10  ;;  %7346 = vrot.lane.b32.xlu1 %v7320_v2, %s8982_s11 }
  0x14   :  { %168 = vperm.xlu0 %7350, %v43_v4  }
  0x15   :  { %15 = vsyncpa [#allocation8], 0  ;;  %v25_v5 = vlaneseq  ;;  %s8985_s20 = smov 126   ;;  %s8986_s21 = smov 124  }
  0x16   :  { %s8987_s22 = smov 120   ;;  %s8988_s23 = smov 96  }
  0x17   :  { %v9079_v6 = vand.u32 127, %v25_v5  ;;  %s8989_s24 = smov 64   ;;  %s8991_s25 = smov 72  }
  0x18   :  { %s8992_s26 = smov 73   ;;  %s8993_s27 = smov 65  }
  0x19   :  { %v9082_v7 = vadd.s32 128, %v9079_v6  ;;  %v30_v9 = vshra.s32 %v9079_v6, 4  ;;  %v9092_v12 = vand.u32 15, %v9079_v6  ;;  %vm11827_vm5 = vcmp.lt.s32.totalorder %v9079_v6, 15 }
  0x1a   :  { %vm11828_vm6 = vcmp.lt.s32.totalorder %v9079_v6, 17  ;;  %vm11826_vm8 = vcmp.lt.s32.totalorder %v9079_v6, 1  ;;  %vm11825_vm9 = vcmp.lt.s32.totalorder %v9079_v6, 16  ;;  %vm11831_vm10 = vcmp.lt.s32.totalorder %v9079_v6, 127 }
  0x1b   :  { %v31_v8 = vshra.s32 %v9082_v7, 4  ;;  %v9087_v10 = vand.u32 15, %v9082_v7  ;;  %v9094_v13 = vand.u32 15, %v30_v9  ;;  %vm38_vm3 = vcmp.ge.s32.totalorder %v9092_v12, 1  ;;  %v225_v9 = vld [vmem:[%s11818_s1 + $0x28] sm:$0xf] }
  0x1c   :  { %vm40_vm12 = vcmp.lt.s32.totalorder %v9092_v12, 15  ;;  %vm11832_vm15 = vcmp.lt.s32.totalorder %v9079_v6, 113 }
  0x1d   :  { %v9089_v11 = vand.u32 15, %v31_v8  ;;  %vm39_vm1 = vcmp.ge.s32.totalorder %v9087_v10, 1  ;;  %vm34_vm2 = vcmp.ge.s32.totalorder %v9094_v13, 1  ;;  %vm41_vm7 = vcmp.lt.s32.totalorder %v9087_v10, 15 }
  0x1e   :  { %vm9118_vm11 = vmand %vm34_vm2, %vm38_vm3 }
  0x1f   :  { %vm35_vm0 = vcmp.ge.s32.totalorder %v9089_v11, 1 }
  0x20   :  { %vm9104_vm4 = vmand %vm35_vm0, %vm39_vm1 }
  0x21   :  { %vm9127_vm13 = vmpackc.low %vm35_vm0, %vm9104_vm4  ;;  %vm37_vm4 = vcmp.lt.s32.totalorder %v9089_v11, 15 }
  0x22   :  { %vm9139_vm14 = vmand %vm35_vm0, %vm41_vm7 }
  0x23   :  { %vm9157_vm0 = vmpackc.low %vm34_vm2, %vm9118_vm11 }
  0x24   :  { %vm9173_vm11 = vmpackc.low %vm39_vm1, %vm9139_vm14  ;;  %vm11833_vm14 = vcmp.lt.s32.totalorder %v9079_v6, 112 }
  0x76   :  { %v7322_v14 = vpop.permute.xlu1 %7321  ;;  %v7312_v15 = vpop.permute.xlu0 %7311 }
  0x77   :  { %v7324_v16 = vunpack.i.h.bf16 %v7322_v14  ;;  %v7323_v17 = vunpack.i.l.bf16 %v7322_v14  ;;  %v7314_v18 = vunpack.i.h.bf16 %v7312_v15  ;;  %v7313_v19 = vunpack.i.l.bf16 %v7312_v15 }
  0x79   :  { %v77_v29 = vsel %vm11827_vm5, %v7323_v17, %v7324_v16  ;;  %v49_v30 = vsel %vm11828_vm6, %v7313_v19, %v7314_v18  ;;  %v50_v34 = vsel %vm11828_vm6, %v7314_v18, %v7313_v19  ;;  %v78_v37 = vsel %vm11827_vm5, %v7324_v16, %v7323_v17 }
  0x7a   :  { %v7327_v21 = vpop.permute.xlu1 %7326  ;;  %v7317_v22 = vpop.permute.xlu0 %7316  ;;  %vm11834_vm6 = vcmp.lt.s32.totalorder %v9079_v6, 111 }
  0x7b   :  { %v7329_v24 = vunpack.i.h.bf16 %v7327_v21  ;;  %v7328_v25 = vunpack.i.l.bf16 %v7327_v21  ;;  %v7319_v26 = vunpack.i.h.bf16 %v7317_v22  ;;  %v7318_v27 = vunpack.i.l.bf16 %v7317_v22 }
  0x7d   :  { %v92_v32 = vsel %vm11826_vm8, %v7328_v25, %v7329_v24  ;;  %v64_v33 = vsel %vm11825_vm9, %v7318_v27, %v7319_v26  ;;  %v65_v35 = vsel %vm11825_vm9, %v7319_v26, %v7318_v27  ;;  %v93_v38 = vsel %vm11826_vm8, %v7329_v24, %v7328_v25  ;;  %vm79_vm9 = vmand %vm34_vm2, %vm40_vm12 }
  0x7e   :  { %v5897_v39 = vpack.c.bf16 %v64_v33, %v49_v30  ;;  %v7332_v40 = vpop.permute.xlu0 %7331  ;;  %v5900_v41 = vpack.c.bf16 %v65_v35, %v50_v34  ;;  %v7337_v42 = vpop.permute.xlu1 %7336  ;;  %v5903_v48 = vpack.c.bf16 %v92_v32, %v77_v29  ;;  %vm11829_vm8 = vmmov 1   ;;  %vm9193_vm5 = vmpackc.low %vm38_vm3, %vm79_vm9  ;;  %v226_v33 = vld [vmem:[%s11819_s2 + $0x10] sm:$0xff] }
  0x7f   :  { %v7334_v43 = vunpack.i.h.bf16 %v7332_v40  ;;  %v7333_v44 = vunpack.i.l.bf16 %v7332_v40  ;;  %v7339_v46 = vunpack.i.h.bf16 %v7337_v42  ;;  %v7338_v47 = vunpack.i.l.bf16 %v7337_v42  ;;  %vm9182_vm2 = vmpackc.low %vm41_vm7, %vm11829_vm8 }
  0x80   :  { %5898 = vmatprep.subr.msk.bf16.mxu0 %vm9127_vm13, %v5897_v39  ;;  %vm36_vm8 = vcmp.lt.s32.totalorder %v9094_v13, 15  ;;  %v5906_v55 = vpack.c.bf16 %v93_v38, %v78_v37  ;;  %vm121_vm9 = vmand %vm37_vm4, %vm39_vm1  ;;  %vm11861_vm1 = vmmov 1   ;;  %v42_v13 = vld [vmem:[%s11818_s1] sm:$0xf] }
  0x81   :  { %v106_v50 = vsel %vm11831_vm10, %v7334_v43, %v7333_v44  ;;  %5901 = vmatpush1.bf16.msk.msra.mxu0 %vm9157_vm0, %v5900_v41  ;;  %v105_v52 = vsel %vm11831_vm10, %v7333_v44, %v7334_v43  ;;  %v119_v53 = vsel %vm11832_vm15, %v7339_v46, %v7338_v47  ;;  %vm9214_vm10 = vmand %vm37_vm4, %vm41_vm7 }
  0x82   :  { %5904 = vmatprep.subr.msk.bf16.mxu0 %vm9173_vm11, %v5903_v48  ;;  %v7342_v54 = vpop.permute.xlu0 %7341  ;;  %v5909_v56 = vpack.c.bf16 %v106_v50, %v9060_v1  ;;  %v7347_v57 = vpop.permute.xlu1 %7346  ;;  %vm9222_vm15 = vmand %vm36_vm8, %vm40_vm12  ;;  %v5912_v5 = vpack.c.bf16 %v105_v52, %v9055_v0 }
  0x83   :  { %v7344_v58 = vunpack.i.h.bf16 %v7342_v54  ;;  %v7343_v59 = vunpack.i.l.bf16 %v7342_v54  ;;  %v7349_v60 = vunpack.i.h.bf16 %v7347_v57  ;;  %v7348_v61 = vunpack.i.l.bf16 %v7347_v57  ;;  %vm9235_vm7 = vmpackc.low %vm40_vm12, %vm11861_vm1 }
  0x84   :  { %vm120_vm12 = vmand %vm36_vm8, %vm38_vm3 }
  0x85   :  { %v134_v1 = vsel %vm11833_vm14, %v7344_v58, %v7343_v59  ;;  %5907 = vmatpush1.bf16.msk.msra.mxu0 %vm9193_vm5, %v5906_v55  ;;  %v147_v2 = vsel %vm11834_vm6, %v7349_v60, %v7348_v61  ;;  %v146_v8 = vsel %vm11834_vm6, %v7348_v61, %v7349_v60  ;;  %vm9246_vm14 = vmpackc.low %vm37_vm4, %vm121_vm9  ;;  %vm11866_vm6 = vcmp.lt.s32.totalorder %v9079_v6, 113 }
  0x86   :  { %5910 = vmatprep.subr.msk.bf16.mxu0 %vm9182_vm2, %v5909_v56  ;;  %v5915_v14 = vpack.c.bf16 %v134_v1, %v119_v53  ;;  %v155_v0 = vsel %vm9214_vm10, %v147_v2, 0.0  ;;  %v154_v15 = vsel %vm9222_vm15, %v146_v8, 0.0  ;;  %v118_v16 = vsel %vm11866_vm6, %v7338_v47, %v7339_v46  ;;  %vm9268_vm3 = vmpackc.low %vm36_vm8, %vm120_vm12 }
  0x87   :  { %vm11867_vm4 = vcmp.lt.s32.totalorder %v9079_v6, 112  ;;  %v165_v18 = vpack.c.bf16 %v155_v0, %v155_v0  ;;  %v164_v19 = vpack.c.bf16 %v154_v15, %v154_v15  ;;  %vm11836_vm9 = vcmask 1043456  }
  0x88   :  { %v133_v11 = vsel %vm11867_vm4, %v7343_v59, %v7344_v58  ;;  %vm11835_vm6 = vcmask 588800   ;;  %vm11870_vm8 = vcmp.lt.s32.totalorder %v9079_v6, 17  ;;  %vm11872_vm4 = vcmp.lt.s32.totalorder %v9079_v6, 16 }
  0x89   :  { %5913 = vmatpush1.bf16.msk.msra.mxu0 %vm9235_vm7, %v5912_v5  ;;  %v5918_v20 = vpack.c.bf16 %v133_v11, %v118_v16  ;;  %v177_v21 = vsel %vm11836_vm9, %v164_v19, 0  ;;  %vm11871_vm12 = vmmov %vm11870_vm8 }
  0x8a   :  { %5916 = vmatprep.subr.msk.bf16.mxu0 %vm9246_vm14, %v5915_v14 }
  0x8d   :  { %5919 = vmatpush1.bf16.msk.msra.mxu0 %vm9268_vm3, %v5918_v20 }
  0x8e   :  { %5920 = vmatprep.subr.msk.bf16.mxu0 %vm11836_vm9, %v165_v18  ;;  %vm11874_vm9 = vcmp.lt.s32.totalorder %v9079_v6, 15 }
  0x91   :  { %191 = vmatpush1.bf16.msra.mxu0 %v177_v21 }
  0x93   :  { %v169_v22 = vpop.permute.xlu0 %168 }
  0x94   :  { %5921 = vmatmul.mubr.msk.bf16.vlgmr.msra.gmra.mrb[0].mxu0 %vm11835_vm6, %v42_v13  ;;  %vm11873_vm6 = vmmov %vm11872_vm4 }
 0x167   :  { %v216_v23 = vpop.f32.mrb[0].mxu0 }
 0x168   :  { %v217_v24 = vadd.f32 %v216_v23, %v169_v22  ;;  %v218_v25 = vpop.f32.mrb[1].mxu0 }
 0x169   :  { %v219_v26 = vadd.f32 %v218_v25, %v169_v22  ;;  %v220_v27 = vpop.f32.mrb[2].mxu0 }
 0x16a   :  { %v9280_v29 = vmax.f32 %v217_v24, 0.0  ;;  %v221_v30 = vpop.f32.mrb[3].mxu0 }
 0x16b   :  { %v9282_v31 = vmax.f32 %v219_v26, 0.0 }
 0x16d   :  { %v7361_v32 = vpack.i.bf16 %v9282_v31, %v9280_v29 }
 0x16f   :  { %7362 = vrot.lane.b32.xlu0 %v7361_v32, %s8975_s28  ;;  %7352 = vrot.lane.b32.xlu1 %v7361_v32, %s8976_s29  ;;  %s8994_s28 = smov 71   ;;  %s8996_s29 = smov 121  }
 0x173   :  { %7372 = vrot.lane.b32.xlu0 %v7361_v32, %s8979_s9  ;;  %7357 = vrot.lane.b32.xlu1 %v7361_v32, %s8978_s8 }
 0x177   :  { %7382 = vrot.lane.b32.xlu0 %v7361_v32, %s8981_s10  ;;  %7367 = vrot.lane.b32.xlu1 %v7361_v32, %s8977_s30  ;;  %s8997_s30 = smov 119  }
 0x17b   :  { %303 = vperm.xlu0 %7350, %v226_v33   ;;  %7377 = vrot.lane.b32.xlu1 %v7361_v32, %s8980_s0 }
 0x17f   :  { %7387 = vrot.lane.b32.xlu1 %v7361_v32, %s8982_s11 }
 0x1e1   :  { %v7363_v34 = vpop.permute.xlu0 %7362  ;;  %v7353_v35 = vpop.permute.xlu1 %7352 }
 0x1e2   :  { %v7355_v37 = vunpack.i.h.bf16 %v7353_v35  ;;  %v7354_v38 = vunpack.i.l.bf16 %v7353_v35  ;;  %v7365_v43 = vunpack.i.h.bf16 %v7363_v34  ;;  %v7364_v44 = vunpack.i.l.bf16 %v7363_v34 }
 0x1e4   :  { %v231_v46 = vsel %vm11870_vm8, %v7354_v38, %v7355_v37  ;;  %v232_v47 = vsel %vm11871_vm12, %v7355_v37, %v7354_v38  ;;  %v247_v59 = vsel %vm11874_vm9, %v7364_v44, %v7365_v43  ;;  %vm11875_vm8 = vmmov %vm11874_vm9  ;;  %vm11876_vm12 = vcmp.lt.s32.totalorder %v9079_v6, 127 }
 0x1e5   :  { %v7373_v39 = vpop.permute.xlu0 %7372  ;;  %v7358_v40 = vpop.permute.xlu1 %7357  ;;  %v248_v61 = vsel %vm11875_vm8, %v7365_v43, %v7364_v44  ;;  %vm11880_vm9 = vcmp.lt.s32.totalorder %v9079_v6, 113  ;;  %vm11883_vm8 = vcmp.lt.s32.totalorder %v9079_v6, 111 }
 0x1e6   :  { %v7360_v41 = vunpack.i.h.bf16 %v7358_v40  ;;  %v7359_v42 = vunpack.i.l.bf16 %v7358_v40  ;;  %v7375_v48 = vunpack.i.h.bf16 %v7373_v39  ;;  %v7374_v50 = vunpack.i.l.bf16 %v7373_v39 }
 0x1e8   :  { %v239_v52 = vsel %vm11872_vm4, %v7359_v42, %v7360_v41  ;;  %v240_v53 = vsel %vm11873_vm6, %v7360_v41, %v7359_v42  ;;  %v264_v1 = vsel %vm11876_vm12, %v7375_v48, %v7374_v50  ;;  %vm11877_vm6 = vcmp.lt.s32.totalorder %v9079_v6, 1 }
 0x1e9   :  { %v7368_v54 = vpop.permute.xlu1 %7367  ;;  %v5923_v55 = vpack.c.bf16 %v239_v52, %v231_v46  ;;  %v5926_v56 = vpack.c.bf16 %v240_v53, %v232_v47  ;;  %v7383_v60 = vpop.permute.xlu0 %7382  ;;  %vm11878_vm4 = vmmov %vm11877_vm6  ;;  %v5935_v19 = vpack.c.bf16 %v264_v1, %v9282_v31  ;;  %v375_v1 = vand.u32 3, %v9082_v7 }
 0x1ea   :  { %v7370_v57 = vunpack.i.h.bf16 %v7368_v54  ;;  %v7369_v58 = vunpack.i.l.bf16 %v7368_v54  ;;  %v7385_v28 = vunpack.i.h.bf16 %v7383_v60  ;;  %v7384_v15 = vunpack.i.l.bf16 %v7383_v60 }
 0x1eb   :  { %5924 = vmatprep.subr.msk.bf16.mxu1 %vm9127_vm13, %v5923_v55  ;;  %vm11879_vm13 = vmmov %vm11876_vm12 }
 0x1ec   :  { %v255_v2 = vsel %vm11877_vm6, %v7369_v58, %v7370_v57  ;;  %v256_v5 = vsel %vm11878_vm4, %v7370_v57, %v7369_v58  ;;  %5927 = vmatpush1.bf16.msk.msra.mxu1 %vm9157_vm0, %v5926_v56  ;;  %v263_v18 = vsel %vm11879_vm13, %v7374_v50, %v7375_v48  ;;  %vm11881_vm0 = vcmp.lt.s32.totalorder %v9079_v6, 112 }
 0x1ed   :  { %v7378_v8 = vpop.permute.xlu1 %7377  ;;  %v5929_v14 = vpack.c.bf16 %v255_v2, %v247_v59  ;;  %v5932_v0 = vpack.c.bf16 %v256_v5, %v248_v61  ;;  %v280_v21 = vsel %vm11881_vm0, %v7385_v28, %v7384_v15  ;;  %v5938_v45 = vpack.c.bf16 %v263_v18, %v9280_v29  ;;  %vm11892_vm6 = vmmov %vm11881_vm0 }
 0x1ee   :  { %v7380_v16 = vunpack.i.h.bf16 %v7378_v8  ;;  %v7379_v11 = vunpack.i.l.bf16 %v7378_v8  ;;  %v9370_v61 = vand.u32 3, %v9079_v6  ;;  %v9389_v18 = vand.u32 7, %v9079_v6 }
 0x1ef   :  { %5930 = vmatprep.subr.msk.bf16.mxu1 %vm9173_vm11, %v5929_v14  ;;  %vm11882_vm11 = vmmov %vm11880_vm9 }
 0x1f0   :  { %v272_v20 = vsel %vm11880_vm9, %v7380_v16, %v7379_v11  ;;  %5933 = vmatpush1.bf16.msk.msra.mxu1 %vm9193_vm5, %v5932_v0  ;;  %v271_v23 = vsel %vm11882_vm11, %v7379_v11, %v7380_v16  ;;  %vm11884_vm5 = vmmov %vm11883_vm8  ;;  %vm11837_vm4 = vcmp.ge.s32.totalorder %v9370_v61, 1  ;;  %vm377_vm9 = vcmp.ge.s32.totalorder %v375_v1, 1 }
 0x1f1   :  { %v7388_v36 = vpop.permute.xlu1 %7387  ;;  %5936 = vmatprep.subr.msk.bf16.mxu1 %vm9182_vm2, %v5935_v19  ;;  %v5941_v24 = vpack.c.bf16 %v280_v21, %v272_v20  ;;  %vm11885_vm2 = vmmov %vm11881_vm0  ;;  %v395_v19 = vand.u32 7, %v9082_v7 }
 0x1f2   :  { %v7390_v13 = vunpack.i.h.bf16 %v7388_v36  ;;  %v7389_v22 = vunpack.i.l.bf16 %v7388_v36  ;;  %v279_v51 = vsel %vm11885_vm2, %v7384_v15, %v7385_v28 }
 0x1f3   :  { %v5944_v30 = vpack.c.bf16 %v279_v51, %v271_v23 }
 0x1f4   :  { %v288_v25 = vsel %vm11883_vm8, %v7390_v13, %v7389_v22  ;;  %5939 = vmatpush1.bf16.msk.msra.mxu1 %vm9235_vm7, %v5938_v45  ;;  %v287_v49 = vsel %vm11884_vm5, %v7389_v22, %v7390_v13  ;;  %vm11886_vm7 = vcmask 1043456  }
 0x1f5   :  { %5942 = vmatprep.subr.msk.bf16.mxu1 %vm9246_vm14, %v5941_v24  ;;  %v290_v26 = vsel %vm9214_vm10, %v288_v25, 0.0  ;;  %v289_v27 = vsel %vm9222_vm15, %v287_v49, 0.0  ;;  %vm11887_vm12 = vmmov %vm11886_vm7  ;;  %vm11888_vm10 = vcmask 588800  }
 0x1f6   :  { %v300_v32 = vpack.c.bf16 %v290_v26, %v290_v26  ;;  %v299_v33 = vpack.c.bf16 %v289_v27, %v289_v27  ;;  %vm11889_vm15 = vmmov %vm11879_vm13 }
 0x1f7   :  { %vm11890_vm14 = vmmov %vm11879_vm13  ;;  %vm378_vm13 = vcmp.lt.s32.totalorder %v9370_v61, 2 }
 0x1f8   :  { %5945 = vmatpush1.bf16.msk.msra.mxu1 %vm9268_vm3, %v5944_v30  ;;  %v310_v4 = vsel %vm11887_vm12, %v299_v33, 0  ;;  %vm11891_vm3 = vmmov %vm11881_vm0  ;;  %vm379_vm0 = vcmp.lt.s32.totalorder %v375_v1, 2  ;;  %vm398_vm12 = vcmp.lt.s32.totalorder %v9389_v18, 4 }
 0x1f9   :  { %5946 = vmatprep.subr.msk.bf16.mxu1 %vm11886_vm7, %v300_v32  ;;  %vm9377_vm11 = vmand %vm11837_vm4, %vm378_vm13  ;;  %vm396_vm7 = vcmp.ge.s32.totalorder %v9389_v18, 2  ;;  %vm415_vm13 = vcmp.ge.s32.totalorder %v9092_v12, 4 }
 0x1fa   :  { %v304_v62 = vpop.permute.xlu0 %303  ;;  %vm381_vm8 = vmand %vm377_vm9, %vm379_vm0  ;;  %vm417_vm9 = vcmp.lt.s32.totalorder %v9092_v12, 8  ;;  %vm416_vm0 = vcmp.ge.s32.totalorder %v9087_v10, 4 }
 0x1fb   :  { %vm11895_vm5 = vmmov %vm11890_vm14 }
 0x1fc   :  { %324 = vmatpush1.bf16.msra.mxu1 %v310_v4  ;;  %vm11896_vm2 = vmmov %vm11895_vm5 }
 0x1fd   :  { %822 = vmatprep.subr.bf16.mxu1 %v8983_v3 }
 0x1ff   :  { %5947 = vmatmul.mubr.msk.bf16.vlgmr.msra.gmra.mrb[0].mxu1 %vm11888_vm10, %v225_v9  ;;  %vm397_vm10 = vcmp.ge.s32.totalorder %v395_v19, 2  ;;  %v435_v9 = vand.u32 31, %v9082_v7 }
 0x2d2   :  { %v349_v63 = vpop.f32.mrb[0].mxu1 }
 0x2d3   :  { %v350_v34 = vadd.f32 %v349_v63, %v304_v62  ;;  %v351_v35 = vpop.f32.mrb[1].mxu1 }
 0x2d4   :  { %v352_v37 = vadd.f32 %v351_v35, %v304_v62  ;;  %v353_v17 = vpop.f32.mrb[2].mxu1 }
 0x2d5   :  { %v356_v38 = vmax.f32 %v350_v34, 0.0  ;;  %v354_v39 = vpop.f32.mrb[3].mxu1 }
 0x2d6   :  { %v357_v40 = vmax.f32 %v352_v37, 0.0 }
 0x2d8   :  { %v7391_v41 = vpack.i.bf16 %v357_v40, %v356_v38 }
 0x2da   :  { %7392 = vrot.lane.b32.xlu1 %v7391_v41, %s8979_s9  ;;  %v455_v41 = vand.u32 63, %v9079_v6 }
 0x34c   :  { %v7393_v42 = vpop.permute.xlu1 %7392 }
 0x34d   :  { %v7395_v43 = vunpack.i.h.bf16 %v7393_v42  ;;  %v7394_v44 = vunpack.i.l.bf16 %v7393_v42  ;;  %v456_v42 = vand.u32 63, %v9082_v7 }
 0x34f   :  { %v362_v46 = vsel %vm11889_vm15, %v7394_v44, %v7395_v43  ;;  %v363_v47 = vsel %vm11890_vm14, %v7395_v43, %v7394_v44  ;;  %vm399_vm15 = vcmp.lt.s32.totalorder %v395_v19, 4  ;;  %vm9394_vm14 = vmand %vm396_vm7, %vm398_vm12 }
 0x350   :  { %v364_v48 = vmax.f32 %v356_v38, %v362_v46  ;;  %v365_v50 = vmax.f32 %v357_v40, %v363_v47 }
 0x352   :  { %v7396_v52 = vpack.i.bf16 %v365_v50, %v364_v48 }
 0x354   :  { %7397 = vrot.lane.b32.xlu0 %v7396_v52, %s8981_s10 }
 0x3c6   :  { %v7398_v53 = vpop.permute.xlu0 %7397 }
 0x3c7   :  { %v7400_v54 = vunpack.i.h.bf16 %v7398_v53  ;;  %v7399_v55 = vunpack.i.l.bf16 %v7398_v53 }
 0x3c9   :  { %v370_v56 = vsel %vm11891_vm3, %v7399_v55, %v7400_v54  ;;  %v371_v57 = vsel %vm11892_vm6, %v7400_v54, %v7399_v55  ;;  %vm406_vm3 = vcmp.lt.s32.totalorder %v9079_v6, 126  ;;  %vm401_vm6 = vmand %vm397_vm10, %vm399_vm15  ;;  %vm437_vm15 = vcmp.ge.s32.totalorder %v435_v9, 8 }
 0x3ca   :  { %v372_v58 = vmax.f32 %v364_v48, %v370_v56  ;;  %v373_v59 = vmax.f32 %v365_v50, %v371_v57  ;;  %v476_v55 = vand.u32 127, %v9082_v7 }
 0x3cc   :  { %v7401_v60 = vpack.i.bf16 %v373_v59, %v372_v58 }
 0x3ce   :  { %7402 = vrot.lane.b32.xlu1 %v7401_v60, %s8979_s9 }
 0x440   :  { %v7403_v2 = vpop.permute.xlu1 %7402 }
 0x441   :  { %v7405_v8 = vunpack.i.h.bf16 %v7403_v2  ;;  %v7404_v14 = vunpack.i.l.bf16 %v7403_v2 }
 0x443   :  { %v386_v0 = vsel %vm11895_vm5, %v7404_v14, %v7405_v8  ;;  %v387_v28 = vsel %vm11896_vm2, %v7405_v8, %v7404_v14  ;;  %vm9406_vm5 = vmand %vm415_vm13, %vm417_vm9  ;;  %vm425_vm2 = vcmp.lt.s32.totalorder %v9079_v6, 124  ;;  %vm446_vm13 = vcmp.lt.s32.totalorder %v9079_v6, 120 }
 0x444   :  { %v392_v15 = vsel %vm9377_vm11, %v386_v0, %v372_v58  ;;  %v393_v16 = vsel %vm381_vm8, %v387_v28, %v373_v59  ;;  %vm418_vm8 = vcmp.lt.s32.totalorder %v9087_v10, 8  ;;  %v434_v10 = vand.u32 31, %v9079_v6 }
 0x445   :  { %v7406_v11 = vpack.i.bf16 %v393_v16, %v392_v15  ;;  %vm420_vm7 = vmand %vm416_vm0, %vm418_vm8  ;;  %vm457_vm0 = vcmp.ge.s32.totalorder %v455_v41, 16  ;;  %vm459_vm8 = vcmp.lt.s32.totalorder %v455_v41, 32  ;;  %v496_v14 = vand.u32 255, %v9079_v6 }
 0x446   :  { %vm436_vm12 = vcmp.ge.s32.totalorder %v434_v10, 8  ;;  %vm438_vm10 = vcmp.lt.s32.totalorder %v434_v10, 16 }
 0x447   :  { %7407 = vrot.lane.b32.xlu0 %v7406_v11, %s8985_s20 }
 0x4b9   :  { %v7408_v20 = vpop.permute.xlu0 %7407 }
 0x4ba   :  { %v7410_v21 = vunpack.i.h.bf16 %v7408_v20  ;;  %v7409_v13 = vunpack.i.l.bf16 %v7408_v20  ;;  %v517_v20 = vshra.s32 %v9079_v6, 3 }
 0x4bc   :  { %v407_v22 = vsel %vm406_vm3, %v7409_v13, %v7410_v21  ;;  %v408_v45 = vsel %vm406_vm3, %v7410_v21, %v7409_v13  ;;  %vm439_vm3 = vcmp.lt.s32.totalorder %v435_v9, 16  ;;  %v518_v21 = vshra.s32 %v9082_v7, 3 }
 0x4bd   :  { %v413_v23 = vsel %vm9394_vm14, %v407_v22, %v392_v15  ;;  %v414_v24 = vsel %vm401_vm6, %v408_v45, %v393_v16  ;;  %vm9416_vm6 = vmand %vm436_vm12, %vm438_vm10  ;;  %v519_v13 = vand.u32 3, %v517_v20 }
 0x4be   :  { %v7411_v25 = vpack.i.bf16 %v414_v24, %v413_v23  ;;  %vm441_vm9 = vmand %vm437_vm15, %vm439_vm3  ;;  %vm11905_vm15 = vcmp.lt.s32.totalorder %v9079_v6, 112  ;;  %v520_v22 = vand.u32 3, %v518_v21 }
 0x4bf   :  { %vm9430_vm12 = vmand %vm457_vm0, %vm459_vm8  ;;  %vm479_vm0 = vcmp.lt.s32.totalorder %v9079_v6, 64  ;;  %vm478_vm8 = vcmp.ge.s32.totalorder %v476_v55, 32 }
 0x4c0   :  { %7412 = vrot.lane.b32.xlu1 %v7411_v25, %s8986_s21  ;;  %vm11906_vm3 = vmmov %vm11905_vm15 }
 0x532   :  { %v7413_v49 = vpop.permute.xlu1 %7412 }
 0x533   :  { %v7415_v26 = vunpack.i.h.bf16 %v7413_v49  ;;  %v7414_v27 = vunpack.i.l.bf16 %v7413_v49 }
 0x535   :  { %v426_v30 = vsel %vm425_vm2, %v7414_v27, %v7415_v26  ;;  %v427_v32 = vsel %vm425_vm2, %v7415_v26, %v7414_v27  ;;  %vm458_vm2 = vcmp.ge.s32.totalorder %v456_v42, 16 }
 0x536   :  { %v432_v33 = vsel %vm9406_vm5, %v426_v30, %v413_v23  ;;  %v433_v12 = vsel %vm420_vm7, %v427_v32, %v414_v24  ;;  %vm460_vm7 = vcmp.lt.s32.totalorder %v456_v42, 32  ;;  %v9463_v30 = vand.u32 7, %v517_v20 }
 0x537   :  { %v7416_v4 = vpack.i.bf16 %v433_v12, %v432_v33  ;;  %vm462_vm10 = vmand %vm458_vm2, %vm460_vm7  ;;  %vm480_vm2 = vcmp.lt.s32.totalorder %v476_v55, 64  ;;  %vm11838_vm7 = vcmp.lt.s32.totalorder %v9079_v6, 96  ;;  %v540_v32 = vand.u32 7, %v518_v21  ;;  %v8697_v21 = vld [vmem:[%s11818_s1 + $0x50] ss:$20 sps:$4 sm:$0xff]  }
 0x539   :  { %7417 = vrot.lane.b32.xlu0 %v7416_v4, %s8987_s22 }
 0x5ab   :  { %v7418_v62 = vpop.permute.xlu0 %7417 }
 0x5ac   :  { %v7420_v34 = vunpack.i.h.bf16 %v7418_v62  ;;  %v7419_v35 = vunpack.i.l.bf16 %v7418_v62 }
 0x5ae   :  { %v447_v37 = vsel %vm446_vm13, %v7419_v35, %v7420_v34  ;;  %v448_v17 = vsel %vm446_vm13, %v7420_v34, %v7419_v35 }
 0x5af   :  { %v453_v38 = vsel %vm9416_vm6, %v447_v37, %v432_v33  ;;  %v454_v39 = vsel %vm441_vm9, %v448_v17, %v433_v12  ;;  %vm477_vm9 = vcmp.ge.s32.totalorder %v9079_v6, 32  ;;  %v559_v37 = vand.u32 15, %v517_v20 }
 0x5b0   :  { %v7421_v40 = vpack.i.bf16 %v454_v39, %v453_v38 }
 0x5b2   :  { %7422 = vrot.lane.b32.xlu1 %v7421_v40, %s8981_s10 }
 0x624   :  { %v7423_v43 = vpop.permute.xlu1 %7422 }
 0x625   :  { %v7425_v46 = vunpack.i.h.bf16 %v7423_v43  ;;  %v7424_v47 = vunpack.i.l.bf16 %v7423_v43 }
 0x627   :  { %v467_v48 = vsel %vm11905_vm15, %v7424_v47, %v7425_v46  ;;  %v468_v50 = vsel %vm11906_vm3, %v7425_v46, %v7424_v47  ;;  %vm481_vm15 = vmand %vm477_vm9, %vm479_vm0  ;;  %vm498_vm3 = vcmp.ge.s32.totalorder %v496_v14, 64  ;;  %vm521_vm9 = vcmp.ge.s32.totalorder %v519_v13, 1 }
 0x628   :  { %v473_v52 = vsel %vm9430_vm12, %v467_v48, %v453_v38  ;;  %v474_v53 = vsel %vm462_vm10, %v468_v50, %v454_v39  ;;  %vm482_vm10 = vmand %vm478_vm8, %vm480_vm2  ;;  %vm523_vm8 = vcmp.lt.s32.totalorder %v519_v13, 2  ;;  %vm522_vm2 = vcmp.ge.s32.totalorder %v520_v22, 1  ;;  %v578_v50 = vld [vmem:[%s11819_s2 + $0x28] sm:$0xff] }
 0x629   :  { %v7426_v54 = vpack.i.bf16 %v474_v53, %v473_v52  ;;  %v8990_v46 = vmov 0.0  }
 0x62a   :  { %7085 = vmatprep.subr.bf16.mxu0 %v8990_v46 }
 0x62b   :  { %7427 = vrot.lane.b32.xlu0 %v7426_v54, %s8988_s23 }
 0x69d   :  { %v7428_v56 = vpop.permute.xlu0 %7427 }
 0x69e   :  { %v7430_v57 = vunpack.i.h.bf16 %v7428_v56  ;;  %v7429_v58 = vunpack.i.l.bf16 %v7428_v56 }
 0x6a0   :  { %v489_v59 = vsel %vm11838_vm7, %v7430_v57, %v7429_v58  ;;  %v488_v60 = vsel %vm11838_vm7, %v7429_v58, %v7430_v57  ;;  %vm561_vm7 = vcmp.lt.s32.totalorder %v559_v37, 8 }
 0x6a1   :  { %v494_v1 = vsel %vm481_vm15, %v488_v60, %v473_v52  ;;  %v495_v2 = vsel %vm482_vm10, %v489_v59, %v474_v53  ;;  %vm524_vm15 = vcmp.lt.s32.totalorder %v520_v22, 2  ;;  %vm525_vm10 = vmand %vm521_vm9, %vm523_vm8  ;;  %vm542_vm9 = vcmp.ge.s32.totalorder %v540_v32, 2  ;;  %v577_v52 = vld [vmem:[%s11819_s2 + $0x20] sm:$0xff] }
 0x6a2   :  { %v7431_v8 = vpack.i.bf16 %v495_v2, %v494_v1  ;;  %vm526_vm4 = vmand %vm522_vm2, %vm524_vm15  ;;  %vm544_vm8 = vcmp.lt.s32.totalorder %v540_v32, 4 }
 0x6a3   :  { %vm546_vm15 = vmand %vm542_vm9, %vm544_vm8  ;;  %vm579_vm9 = vcmask 1048064   ;;  %vm571_vm8 = vcmp.ge.s32.totalorder %v9463_v30, 1 }
 0x6a4   :  { %7432 = vrot.lane.b32.xlu1 %v7431_v8, %s8989_s24 }
 0x716   :  { %v7433_v0 = vpop.permute.xlu1 %7432 }
 0x717   :  { %v7435_v28 = vunpack.i.h.bf16 %v7433_v0  ;;  %v7434_v15 = vunpack.i.l.bf16 %v7433_v0 }
 0x719   :  { %v509_v16 = vsel %vm479_vm0, %v7434_v15, %v7435_v28  ;;  %vm541_vm0 = vcmp.ge.s32.totalorder %v9463_v30, 2 }
 0x71a   :  { %v515_v11 = vsel %vm498_vm3, %v509_v16, %v494_v1  ;;  %vm543_vm3 = vcmp.lt.s32.totalorder %v9463_v30, 4 }
 0x71b   :  { %v7436_v19 = vpack.i.bf16 %v495_v2, %v515_v11  ;;  %vm545_vm2 = vmand %vm541_vm0, %vm543_vm3  ;;  %vm11909_vm3 = vcmp.lt.s32.totalorder %v9079_v6, 96 }
 0x71d   :  { %7437 = vrot.lane.b32.xlu0 %v7436_v19, %s8987_s22 }
 0x78f   :  { %v7438_v45 = vpop.permute.xlu0 %7437 }
 0x790   :  { %v7440_v23 = vunpack.i.h.bf16 %v7438_v45  ;;  %v7439_v24 = vunpack.i.l.bf16 %v7438_v45 }
 0x792   :  { %v531_v25 = vsel %vm446_vm13, %v7439_v24, %v7440_v23  ;;  %v532_v49 = vsel %vm446_vm13, %v7440_v23, %v7439_v24  ;;  %vm11907_vm13 = vcmp.lt.s32.totalorder %v9079_v6, 112 }
 0x793   :  { %v537_v26 = vsel %vm525_vm10, %v531_v25, %v515_v11  ;;  %v538_v27 = vsel %vm526_vm4, %v532_v49, %v495_v2  ;;  %vm11908_vm4 = vmmov %vm11907_vm13  ;;  %vm560_vm10 = vcmp.ge.s32.totalorder %v559_v37, 4 }
 0x794   :  { %v7441_v7 = vpack.i.bf16 %v538_v27, %v537_v26  ;;  %vm562_vm0 = vmand %vm560_vm10, %vm561_vm7  ;;  %vm11839_vm7 = vmmov 0  }
 0x795   :  { %7095 = vmatprep.mubr.msk.bf16.mxu0 %vm11839_vm7, %v8990_v46 }
 0x796   :  { %7442 = vrot.lane.b32.xlu1 %v7441_v7, %s8981_s10 }
 0x808   :  { %v7443_v33 = vpop.permute.xlu1 %7442 }
 0x809   :  { %v7445_v12 = vunpack.i.h.bf16 %v7443_v33  ;;  %v7444_v4 = vunpack.i.l.bf16 %v7443_v33 }
 0x80b   :  { %v551_v10 = vsel %vm11907_vm13, %v7444_v4, %v7445_v12  ;;  %v552_v9 = vsel %vm11908_vm4, %v7445_v12, %v7444_v4  ;;  %vm11840_vm13 = vcmp.lt.s32.totalorder %v9389_v18, 7 }
 0x80c   :  { %v557_v62 = vsel %vm545_vm2, %v551_v10, %v537_v26  ;;  %v558_v34 = vsel %vm546_vm15, %v552_v9, %v538_v27  ;;  %vm573_vm2 = vcmp.ge.s32.totalorder %v9389_v18, 1  ;;  %vm9514_vm10 = vmand %vm571_vm8, %vm11840_vm13 }
 0x80d   :  { %v7446_v35 = vpack.i.bf16 %v558_v34, %v557_v62  ;;  %vm9501_vm15 = vmand %vm571_vm8, %vm573_vm2 }
 0x80e   :  { %vm5949_vm4 = vmpackc.low %vm571_vm8, %vm9501_vm15 }
 0x80f   :  { %7447 = vrot.lane.b32.xlu0 %v7446_v35, %s8988_s23 }
 0x881   :  { %v7448_v17 = vpop.permute.xlu0 %7447 }
 0x882   :  { %v7450_v38 = vunpack.i.h.bf16 %v7448_v17  ;;  %v7449_v39 = vunpack.i.l.bf16 %v7448_v17 }
 0x884   :  { %v567_v40 = vsel %vm11909_vm3, %v7449_v39, %v7450_v38  ;;  %vm572_vm3 = vcmp.lt.s32.totalorder %v9463_v30, 7 }
 0x885   :  { %v570_v41 = vsel %vm562_vm0, %v567_v40, %v557_v62  ;;  %vm5952_vm0 = vmpackc.low %vm573_vm2, %vm9514_vm10  ;;  %v711_v40 = vld [vmem:[%s11819_s2 + $0x38] sm:$0xff] }
 0x886   :  { %580 = vrot.lane.b32.xlu1 %v570_v41, %s8989_s24  ;;  %vm9532_vm7 = vmand %vm572_vm3, %vm573_vm2 }
 0x8f8   :  { %v581_v42 = vpop.permute.xlu1 %580 }
 0x8f9   :  { %v582_v43 = vsel %vm579_vm9, %v581_v42, %v570_v41  ;;  %v8698_v42 = vld [vmem:[%s11818_s1 + $0x7c] ss:$20 sps:$4 sm:$0xff]  }
 0x8fa   :  { %583 = vrot.lane.b32.xlu0 %v582_v43, %s8989_s24 }
 0x96c   :  { %v584_v47 = vpop.permute.xlu0 %583 }
 0x96d   :  { %v585_v48 = vsel %vm579_vm9, %v584_v47, %v570_v41 }
 0x96e   :  { %596 = vrot.lane.b32.xlu0 %v585_v48, %s8991_s25  ;;  %590 = vrot.lane.b32.xlu1 %v585_v48, %s8992_s26 }
 0x972   :  { %609 = vrot.lane.b32.xlu0 %v585_v48, %s8993_s27  ;;  %603 = vrot.lane.b32.xlu1 %v585_v48, %s8994_s28 }
 0x976   :  { %622 = vrot.lane.b32.xlu0 %v585_v48, %s8996_s29  ;;  %615 = vrot.lane.b32.xlu1 %v585_v48, %s8979_s9 }
 0x97a   :  { %635 = vrot.lane.b32.xlu0 %v585_v48, %s8997_s30  ;;  %628 = vrot.lane.b32.xlu1 %v585_v48, %s8987_s22 }
 0x97e   :  { %651 = vperm.xlu0 %7350, %v578_v50   ;;  %646 = vperm.xlu1 %7451, %v577_v52  }
 0x9e0   :  { %v597_v54 = vpop.permute.xlu0 %596  ;;  %v591_v55 = vpop.permute.xlu1 %590 }
 0x9e1   :  { %v5950_v56 = vpack.c.bf16 %v597_v54, %v591_v55 }
 0x9e3   :  { %7086 = vmatpush3.bf16.msk.msra.mxu0 %vm5949_vm4, %v5950_v56  ;;  %vm5955_vm4 = vmpackc.low %vm11840_vm13, %vm11861_vm1 }
 0x9e4   :  { %v610_v58 = vpop.permute.xlu0 %609  ;;  %v604_v59 = vpop.permute.xlu1 %603  ;;  %7087 = vmatprep.subr.bf16.mxu0 %v8990_v46  ;;  %vm5958_vm1 = vmpackc.low %vm572_vm3, %vm9532_vm7 }
 0x9e5   :  { %v5953_v60 = vpack.c.bf16 %v610_v58, %v604_v59 }
 0x9e7   :  { %7088 = vmatpush3.bf16.msk.msra.mxu0 %vm5952_vm0, %v5953_v60  ;;  %vm9540_vm0 = vmand %vm572_vm3, %vm11840_vm13  ;;  %vm11918_vm13 = vcmask 1043456  }
 0x9e8   :  { %v623_v1 = vpop.permute.xlu0 %622  ;;  %v616_v2 = vpop.permute.xlu1 %615  ;;  %7089 = vmatprep.subr.bf16.mxu0 %v8990_v46 }
 0x9e9   :  { %v5956_v8 = vpack.c.bf16 %v616_v2, %v570_v41  ;;  %v710_v41 = vld [vmem:[%s11819_s2 + $0x30] sm:$0xff] }
 0x9eb   :  { %7090 = vmatpush3.bf16.msk.msra.mxu0 %vm5955_vm4, %v5956_v8  ;;  %vm11919_vm4 = vcmask 588800  }
 0x9ec   :  { %v636_v28 = vpop.permute.xlu0 %635  ;;  %v629_v15 = vpop.permute.xlu1 %628  ;;  %7091 = vmatprep.subr.bf16.mxu0 %v8990_v46 }
 0x9ed   :  { %v638_v16 = vsel %vm9540_vm0, %v636_v28, 0.0  ;;  %v5959_v11 = vpack.c.bf16 %v629_v15, %v623_v1 }
 0x9ee   :  { %v643_v19 = vpack.c.bf16 %v638_v16, %v638_v16 }
 0x9ef   :  { %7092 = vmatpush3.bf16.msk.msra.mxu0 %vm5958_vm1, %v5959_v11  ;;  %vm5964_vm1 = vmpackc.low %vm9501_vm15, %vm9501_vm15 }
 0x9f0   :  { %7093 = vmatprep.subr.bf16.mxu0 %v8990_v46  ;;  %v663_v20 = vsel %vm11918_vm13, %v643_v19, 0  ;;  %vm818_vm13 = vcmask 130048   ;;  %vm5970_vm15 = vmpackc.low %vm9514_vm10, %vm9514_vm10  ;;  %vm11920_vm10 = vcmp.lt.s32.totalorder %v9389_v18, 7 }
 0x9f1   :  { %5988 = vmatprep.mubr.msk.bf16.mxu1 %vm818_vm13, %v8698_v42 }
 0x9f3   :  { %7094 = vmatpush3.bf16.msra.mxu0 %v663_v20 }
 0x9f4   :  { %1238 = vmatprep.subr.bf16.mxu0 %v8983_v3 }
 0x9f6   :  { %7096 = vmatmul.mubr.msk.bf16.vlgmr.msra.gmra.mrb[4].mxu0 %vm11919_vm4, %v8697_v21  ;;  %vm5967_vm4 = vmpackc.low %vm571_vm8, %vm571_vm8 }
 0x9f7   :  { %vm5973_vm8 = vmpackc.low %vm573_vm2, %vm573_vm2 }
 0x9f8   :  { %vm5979_vm2 = vmpackc.low %vm9532_vm7, %vm9532_vm7 }
 0x9fd   :  { %v647_v13 = vpop.permute.xlu1 %646  ;;  %v652_v24 = vpop.permute.xlu0 %651 }
 0xac9   :  { %v699_v22 = vpop.f32.mrb[4].mxu0 }
 0xaca   :  { %v700_v45 = vadd.f32 %v699_v22, %v647_v13  ;;  %v7097_v23 = vpop.f32.mrb[5].mxu0 }
 0xacb   :  { %v702_v25 = vpop.f32.mrb[6].mxu0 }
 0xacc   :  { %v703_v49 = vadd.f32 %v702_v25, %v652_v24  ;;  %v7098_v26 = vpop.f32.mrb[7].mxu0  ;;  %v9558_v27 = vmax.f32 %v700_v45, 0.0 }
 0xace   :  { %v707_v7 = vmax.f32 %v703_v49, 0.0 }
 0xad0   :  { %v7452_v32 = vpack.i.bf16 %v707_v7, %v9558_v27  ;;  %v9604_v57 = vpack.c.bf16 %v707_v7, %v9558_v27 }
 0xad2   :  { %7453 = vrot.lane.b32.xlu1 %v7452_v32, %s8989_s24 }
 0xb44   :  { %v7454_v33 = vpop.permute.xlu1 %7453 }
 0xb45   :  { %v7456_v12 = vunpack.i.h.bf16 %v7454_v33  ;;  %v7455_v4 = vunpack.i.l.bf16 %v7454_v33 }
 0xb47   :  { %v714_v10 = vsel %vm579_vm9, %v7455_v4, %v9558_v27  ;;  %v717_v9 = vsel %vm579_vm9, %v7456_v12, %v707_v7 }
 0xb48   :  { %v7457_v62 = vpack.i.bf16 %v717_v9, %v714_v10 }
 0xb4a   :  { %7458 = vrot.lane.b32.xlu0 %v7457_v62, %s8989_s24 }
 0xbbc   :  { %v7459_v34 = vpop.permute.xlu0 %7458 }
 0xbbd   :  { %v7461_v35 = vunpack.i.h.bf16 %v7459_v34  ;;  %v7460_v37 = vunpack.i.l.bf16 %v7459_v34 }
 0xbbf   :  { %v723_v17 = vsel %vm579_vm9, %v7461_v35, %v707_v7  ;;  %v722_v38 = vsel %vm579_vm9, %v7460_v37, %v9558_v27  ;;  %v8700_v27 = vld [vmem:[%s11818_s1 + $0x78] ss:$20 sps:$4 sm:$0xff]  }
 0xbc0   :  { %v7467_v39 = vpack.i.bf16 %v723_v17, %v722_v38 }
 0xbc2   :  { %7468 = vrot.lane.b32.xlu0 %v7467_v39, %s8991_s25  ;;  %7463 = vrot.lane.b32.xlu1 %v7467_v39, %s8992_s26 }
 0xbc6   :  { %7478 = vrot.lane.b32.xlu0 %v7467_v39, %s8993_s27  ;;  %7473 = vrot.lane.b32.xlu1 %v7467_v39, %s8994_s28 }
 0xbca   :  { %7488 = vrot.lane.b32.xlu0 %v7467_v39, %s8996_s29  ;;  %7483 = vrot.lane.b32.xlu1 %v7467_v39, %s8979_s9  ;;  %s9001_s29 = smov 125  }
 0xbce   :  { %7498 = vrot.lane.b32.xlu0 %v7467_v39, %s8997_s30  ;;  %7493 = vrot.lane.b32.xlu1 %v7467_v39, %s8987_s22  ;;  %s9002_s30 = smov 123  }
 0xbd2   :  { %806 = vperm.xlu0 %7350, %v711_v40   ;;  %801 = vperm.xlu1 %7451, %v710_v41  }
 0xc34   :  { %v7469_v43 = vpop.permute.xlu0 %7468  ;;  %v7464_v47 = vpop.permute.xlu1 %7463 }
 0xc35   :  { %v7466_v48 = vunpack.i.h.bf16 %v7464_v47  ;;  %v7465_v50 = vunpack.i.l.bf16 %v7464_v47  ;;  %v7471_v52 = vunpack.i.h.bf16 %v7469_v43  ;;  %v7470_v54 = vunpack.i.l.bf16 %v7469_v43 }
 0xc37   :  { %v5965_v55 = vpack.c.bf16 %v7466_v48, %v7465_v50  ;;  %v5968_v58 = vpack.c.bf16 %v7471_v52, %v7470_v54 }
 0xc38   :  { %v7474_v56 = vpop.permute.xlu1 %7473  ;;  %v7479_v1 = vpop.permute.xlu0 %7478 }
 0xc39   :  { %5966 = vmatpush1.bf16.msk.msra.mxu1 %vm5964_vm1, %v5965_v55  ;;  %v7476_v59 = vunpack.i.h.bf16 %v7474_v56  ;;  %v7475_v60 = vunpack.i.l.bf16 %v7474_v56  ;;  %v7481_v53 = vunpack.i.h.bf16 %v7479_v1  ;;  %v7480_v2 = vunpack.i.l.bf16 %v7479_v1  ;;  %vm5976_vm1 = vmpackc.low %vm11920_vm10, %vm11920_vm10 }
 0xc3a   :  { %824 = vmatprep.subr.bf16.mxu1 %v8983_v3  ;;  %vm11921_vm10 = vcmp.ge.s32.totalorder %v9370_v61, 1 }
 0xc3b   :  { %v5971_v8 = vpack.c.bf16 %v7476_v59, %v7475_v60  ;;  %v5974_v28 = vpack.c.bf16 %v7481_v53, %v7480_v2 }
 0xc3c   :  { %v7484_v15 = vpop.permute.xlu1 %7483  ;;  %v7489_v19 = vpop.permute.xlu0 %7488 }
 0xc3d   :  { %5969 = vmatpush1.bf16.msk.msra.mxu1 %vm5967_vm4, %v5968_v58  ;;  %v7486_v16 = vunpack.i.h.bf16 %v7484_v15  ;;  %v7485_v11 = vunpack.i.l.bf16 %v7484_v15  ;;  %v7491_v20 = vunpack.i.h.bf16 %v7489_v19  ;;  %v7490_v21 = vunpack.i.l.bf16 %v7489_v19  ;;  %vm5982_vm4 = vmpackc.low %vm572_vm3, %vm572_vm3 }
 0xc3e   :  { %826 = vmatprep.subr.bf16.mxu1 %v8983_v3 }
 0xc3f   :  { %v5977_v13 = vpack.c.bf16 %v7486_v16, %v7485_v11  ;;  %v5980_v45 = vpack.c.bf16 %v7491_v20, %v7490_v21 }
 0xc40   :  { %v7494_v22 = vpop.permute.xlu1 %7493  ;;  %v7499_v25 = vpop.permute.xlu0 %7498 }
 0xc41   :  { %5972 = vmatpush1.bf16.msk.msra.mxu1 %vm5970_vm15, %v5971_v8  ;;  %v7496_v23 = vunpack.i.h.bf16 %v7494_v22  ;;  %v7495_v24 = vunpack.i.l.bf16 %v7494_v22  ;;  %v7501_v18 = vunpack.i.h.bf16 %v7499_v25  ;;  %v7500_v49 = vunpack.i.l.bf16 %v7499_v25  ;;  %vm5985_vm15 = vmpackc.low %vm9540_vm0, %vm9540_vm0 }
 0xc42   :  { %828 = vmatprep.subr.bf16.mxu1 %v8983_v3 }
 0xc43   :  { %v5983_v26 = vpack.c.bf16 %v7496_v23, %v7495_v24  ;;  %v5986_v14 = vpack.c.bf16 %v7501_v18, %v7500_v49 }
 0xc45   :  { %5975 = vmatpush1.bf16.msk.msra.mxu1 %vm5973_vm8, %v5974_v28 }
 0xc46   :  { %830 = vmatprep.subr.bf16.mxu1 %v8983_v3 }
 0xc49   :  { %831 = vmatpush1.bf16.msra.mxu1 %v9604_v57 }
 0xc4a   :  { %832 = vmatprep.subr.bf16.mxu1 %v8983_v3 }
 0xc4d   :  { %5978 = vmatpush1.bf16.msk.msra.mxu1 %vm5976_vm1, %v5977_v13 }
 0xc4e   :  { %834 = vmatprep.subr.bf16.mxu1 %v8983_v3 }
 0xc51   :  { %5981 = vmatpush1.bf16.msk.msra.mxu1 %vm5979_vm2, %v5980_v45  ;;  %v802_v30 = vpop.permute.xlu1 %801  ;;  %v807_v12 = vpop.permute.xlu0 %806 }
 0xc52   :  { %836 = vmatprep.subr.bf16.mxu1 %v8983_v3 }
 0xc55   :  { %5984 = vmatpush1.bf16.msk.msra.mxu1 %vm5982_vm4, %v5983_v26  ;;  %vm1077_vm4 = vcmp.lt.s32.totalorder %v9370_v61, 3  ;;  %v8704_v61 = vld [vmem:[%s11818_s1 + $0xcc] ss:$20 sps:$4 sm:$0xff]  }
 0xc56   :  { %838 = vmatprep.subr.bf16.mxu1 %v8983_v3 }
 0xc59   :  { %5987 = vmatpush1.bf16.msk.msra.mxu1 %vm5985_vm15, %v5986_v14 }
 0xc5c   :  { %855 = vmatmul.mubr.bf16.vlgmr.msra.gmra.mrb[4].mxu1 %v8700_v27 }
 0xd2f   :  { %v856_v7 = vpop.f32.mrb[4].mxu1 }
 0xd30   :  { %v857_v32 = vadd.f32 %v856_v7, %v802_v30  ;;  %v858_v33 = vpop.f32.mrb[5].mxu1 }
 0xd31   :  { %v859_v4 = vpop.f32.mrb[6].mxu1 }
 0xd32   :  { %v860_v10 = vadd.f32 %v859_v4, %v807_v12  ;;  %v861_v9 = vpop.f32.mrb[7].mxu1  ;;  %v863_v0 = vmax.f32 %v857_v32, 0.0 }
 0xd34   :  { %v864_v62 = vmax.f32 %v860_v10, 0.0 }
 0xd36   :  { %v7502_v34 = vpack.i.bf16 %v864_v62, %v863_v0 }
 0xd38   :  { %7503 = vrot.lane.b32.xlu1 %v7502_v34, %s8989_s24 }
 0xdaa   :  { %v7504_v35 = vpop.permute.xlu1 %7503 }
 0xdab   :  { %v7506_v37 = vunpack.i.h.bf16 %v7504_v35  ;;  %v7505_v17 = vunpack.i.l.bf16 %v7504_v35 }
 0xdad   :  { %v867_v38 = vsel %vm579_vm9, %v7505_v17, %v863_v0  ;;  %v870_v39 = vsel %vm579_vm9, %v7506_v37, %v864_v62 }
 0xdae   :  { %v7507_v40 = vpack.i.bf16 %v870_v39, %v867_v38 }
 0xdb0   :  { %7508 = vrot.lane.b32.xlu0 %v7507_v40, %s8989_s24 }
 0xe22   :  { %v7509_v41 = vpop.permute.xlu0 %7508 }
 0xe23   :  { %v7511_v42 = vunpack.i.h.bf16 %v7509_v41  ;;  %v7510_v43 = vunpack.i.l.bf16 %v7509_v41 }
 0xe25   :  { %v875_v47 = vsel %vm579_vm9, %v7510_v43, %v863_v0  ;;  %v876_v48 = vsel %vm579_vm9, %v7511_v42, %v864_v62 }
 0xe26   :  { %v7512_v50 = vpack.i.bf16 %v876_v48, %v875_v47 }
 0xe28   :  { %7513 = vrot.lane.b32.xlu1 %v7512_v50, %s8979_s9 }
 0xe9a   :  { %v7514_v52 = vpop.permute.xlu1 %7513 }
 0xe9b   :  { %v7516_v54 = vunpack.i.h.bf16 %v7514_v52  ;;  %v7515_v55 = vunpack.i.l.bf16 %v7514_v52 }
 0xe9d   :  { %v886_v56 = vmax.f32 %v864_v62, %v7516_v54  ;;  %v885_v58 = vmax.f32 %v863_v0, %v7515_v55 }
 0xe9f   :  { %v7517_v59 = vpack.i.bf16 %v886_v56, %v885_v58 }
 0xea1   :  { %7518 = vrot.lane.b32.xlu0 %v7517_v59, %s8989_s24 }
 0xf13   :  { %v7519_v60 = vpop.permute.xlu0 %7518 }
 0xf14   :  { %v7521_v1 = vunpack.i.h.bf16 %v7519_v60  ;;  %v7520_v53 = vunpack.i.l.bf16 %v7519_v60 }
 0xf16   :  { %v889_v2 = vsel %vm579_vm9, %v7520_v53, %v885_v58  ;;  %v892_v8 = vsel %vm579_vm9, %v7521_v1, %v886_v56 }
 0xf17   :  { %v7522_v28 = vpack.i.bf16 %v892_v8, %v889_v2 }
 0xf19   :  { %7523 = vrot.lane.b32.xlu1 %v7522_v28, %s8989_s24 }
 0xf8b   :  { %v7524_v15 = vpop.permute.xlu1 %7523 }
 0xf8c   :  { %v7526_v16 = vunpack.i.h.bf16 %v7524_v15  ;;  %v7525_v11 = vunpack.i.l.bf16 %v7524_v15 }
 0xf8e   :  { %v897_v19 = vsel %vm579_vm9, %v7525_v11, %v885_v58  ;;  %v898_v20 = vsel %vm579_vm9, %v7526_v16, %v886_v56 }
 0xf8f   :  { %v7527_v21 = vpack.i.bf16 %v898_v20, %v897_v19 }
 0xf91   :  { %7528 = vrot.lane.b32.xlu0 %v7527_v21, %s8987_s22 }
0x1003   :  { %v7529_v13 = vpop.permute.xlu0 %7528 }
0x1004   :  { %v7531_v22 = vunpack.i.h.bf16 %v7529_v13  ;;  %v7530_v45 = vunpack.i.l.bf16 %v7529_v13 }
0x1006   :  { %v908_v23 = vmax.f32 %v886_v56, %v7531_v22  ;;  %v907_v24 = vmax.f32 %v885_v58, %v7530_v45 }
0x1008   :  { %v7532_v25 = vpack.i.bf16 %v908_v23, %v907_v24 }
0x100a   :  { %7533 = vrot.lane.b32.xlu1 %v7532_v25, %s8989_s24 }
0x107c   :  { %v7534_v18 = vpop.permute.xlu1 %7533 }
0x107d   :  { %v7536_v49 = vunpack.i.h.bf16 %v7534_v18  ;;  %v7535_v26 = vunpack.i.l.bf16 %v7534_v18 }
0x107f   :  { %v911_v14 = vsel %vm579_vm9, %v7535_v26, %v907_v24  ;;  %v914_v27 = vsel %vm579_vm9, %v7536_v49, %v908_v23 }
0x1080   :  { %v7537_v30 = vpack.i.bf16 %v914_v27, %v911_v14 }
0x1082   :  { %7538 = vrot.lane.b32.xlu0 %v7537_v30, %s8989_s24 }
0x10f4   :  { %v7539_v7 = vpop.permute.xlu0 %7538 }
0x10f5   :  { %v7541_v32 = vunpack.i.h.bf16 %v7539_v7  ;;  %v7540_v33 = vunpack.i.l.bf16 %v7539_v7 }
0x10f7   :  { %v919_v12 = vsel %vm579_vm9, %v7540_v33, %v907_v24  ;;  %v920_v4 = vsel %vm579_vm9, %v7541_v32, %v908_v23 }
0x10f8   :  { %v7542_v10 = vpack.i.bf16 %v920_v4, %v919_v12 }
0x10fa   :  { %7543 = vrot.lane.b32.xlu1 %v7542_v10, %s8979_s9 }
0x116c   :  { %v7544_v9 = vpop.permute.xlu1 %7543 }
0x116d   :  { %v7546_v0 = vunpack.i.h.bf16 %v7544_v9  ;;  %v7545_v62 = vunpack.i.l.bf16 %v7544_v9 }
0x116f   :  { %v929_v34 = vsel %vm9377_vm11, %v7545_v62, %v907_v24  ;;  %v930_v35 = vsel %vm9377_vm11, %v7546_v0, %v908_v23 }
0x1170   :  { %v7547_v37 = vpack.i.bf16 %v930_v35, %v929_v34 }
0x1172   :  { %7548 = vrot.lane.b32.xlu0 %v7547_v37, %s8989_s24 }
0x11e4   :  { %v7549_v17 = vpop.permute.xlu0 %7548 }
0x11e5   :  { %v7551_v38 = vunpack.i.h.bf16 %v7549_v17  ;;  %v7550_v39 = vunpack.i.l.bf16 %v7549_v17 }
0x11e7   :  { %v933_v40 = vsel %vm579_vm9, %v7550_v39, %v929_v34  ;;  %v936_v41 = vsel %vm579_vm9, %v7551_v38, %v930_v35 }
0x11e8   :  { %v7552_v42 = vpack.i.bf16 %v936_v41, %v933_v40 }
0x11ea   :  { %7553 = vrot.lane.b32.xlu1 %v7552_v42, %s8989_s24 }
0x125c   :  { %v7554_v43 = vpop.permute.xlu1 %7553 }
0x125d   :  { %v7556_v47 = vunpack.i.h.bf16 %v7554_v43  ;;  %v7555_v48 = vunpack.i.l.bf16 %v7554_v43 }
0x125f   :  { %v941_v50 = vsel %vm579_vm9, %v7555_v48, %v929_v34  ;;  %v942_v52 = vsel %vm579_vm9, %v7556_v47, %v930_v35 }
0x1260   :  { %v7557_v54 = vpack.i.bf16 %v942_v52, %v941_v50 }
0x1262   :  { %7558 = vrot.lane.b32.xlu0 %v7557_v54, %s8985_s20 }
0x12d4   :  { %v7559_v55 = vpop.permute.xlu0 %7558 }
0x12d5   :  { %v7561_v56 = vunpack.i.h.bf16 %v7559_v55  ;;  %v7560_v58 = vunpack.i.l.bf16 %v7559_v55 }
0x12d7   :  { %v951_v59 = vsel %vm9394_vm14, %v7560_v58, %v929_v34  ;;  %v952_v60 = vsel %vm9394_vm14, %v7561_v56, %v930_v35 }
0x12d8   :  { %v7562_v1 = vpack.i.bf16 %v952_v60, %v951_v59 }
0x12da   :  { %7563 = vrot.lane.b32.xlu1 %v7562_v1, %s8989_s24 }
0x134c   :  { %v7564_v53 = vpop.permute.xlu1 %7563 }
0x134d   :  { %v7566_v2 = vunpack.i.h.bf16 %v7564_v53  ;;  %v7565_v8 = vunpack.i.l.bf16 %v7564_v53 }
0x134f   :  { %v955_v28 = vsel %vm579_vm9, %v7565_v8, %v951_v59  ;;  %v958_v15 = vsel %vm579_vm9, %v7566_v2, %v952_v60 }
0x1350   :  { %v7567_v16 = vpack.i.bf16 %v958_v15, %v955_v28 }
0x1352   :  { %7568 = vrot.lane.b32.xlu0 %v7567_v16, %s8989_s24 }
0x13c4   :  { %v7569_v11 = vpop.permute.xlu0 %7568 }
0x13c5   :  { %v7571_v19 = vunpack.i.h.bf16 %v7569_v11  ;;  %v7570_v20 = vunpack.i.l.bf16 %v7569_v11 }
0x13c7   :  { %v963_v21 = vsel %vm579_vm9, %v7570_v20, %v951_v59  ;;  %v964_v13 = vsel %vm579_vm9, %v7571_v19, %v952_v60 }
0x13c8   :  { %v7572_v22 = vpack.i.bf16 %v964_v13, %v963_v21 }
0x13ca   :  { %7573 = vrot.lane.b32.xlu1 %v7572_v22, %s8986_s21 }
0x143c   :  { %v7574_v45 = vpop.permute.xlu1 %7573 }
0x143d   :  { %v7576_v23 = vunpack.i.h.bf16 %v7574_v45  ;;  %v7575_v24 = vunpack.i.l.bf16 %v7574_v45  ;;  %v1019_v45 = vshra.s32 %v9079_v6, 2 }
0x143f   :  { %v973_v25 = vsel %vm9406_vm5, %v7575_v24, %v951_v59  ;;  %v974_v18 = vsel %vm9406_vm5, %v7576_v23, %v952_v60  ;;  %v9703_v23 = vand.u32 3, %v1019_v45 }
0x1440   :  { %v7577_v49 = vpack.i.bf16 %v974_v18, %v973_v25 }
0x1442   :  { %7578 = vrot.lane.b32.xlu0 %v7577_v49, %s8989_s24 }
0x14b4   :  { %v7579_v26 = vpop.permute.xlu0 %7578 }
0x14b5   :  { %v7581_v14 = vunpack.i.h.bf16 %v7579_v26  ;;  %v7580_v27 = vunpack.i.l.bf16 %v7579_v26 }
0x14b7   :  { %v977_v30 = vsel %vm579_vm9, %v7580_v27, %v973_v25  ;;  %v980_v7 = vsel %vm579_vm9, %v7581_v14, %v974_v18 }
0x14b8   :  { %v7582_v32 = vpack.i.bf16 %v980_v7, %v977_v30 }
0x14ba   :  { %7583 = vrot.lane.b32.xlu1 %v7582_v32, %s8989_s24 }
0x152c   :  { %v7584_v33 = vpop.permute.xlu1 %7583 }
0x152d   :  { %v7586_v12 = vunpack.i.h.bf16 %v7584_v33  ;;  %v7585_v4 = vunpack.i.l.bf16 %v7584_v33 }
0x152f   :  { %v985_v10 = vsel %vm579_vm9, %v7585_v4, %v973_v25  ;;  %v986_v9 = vsel %vm579_vm9, %v7586_v12, %v974_v18 }
0x1530   :  { %v7587_v0 = vpack.i.bf16 %v986_v9, %v985_v10 }
0x1532   :  { %7588 = vrot.lane.b32.xlu0 %v7587_v0, %s8987_s22 }
0x15a4   :  { %v7589_v62 = vpop.permute.xlu0 %7588 }
0x15a5   :  { %v7591_v34 = vunpack.i.h.bf16 %v7589_v62  ;;  %v7590_v35 = vunpack.i.l.bf16 %v7589_v62 }
0x15a7   :  { %v995_v37 = vsel %vm9416_vm6, %v7590_v35, %v973_v25  ;;  %v996_v17 = vsel %vm9416_vm6, %v7591_v34, %v974_v18  ;;  %vm1021_vm6 = vcmp.ge.s32.totalorder %v9703_v23, 1  ;;  %v1048_v35 = vand.u32 7, %v1019_v45 }
0x15a8   :  { %v7592_v38 = vpack.i.bf16 %v996_v17, %v995_v37  ;;  %vm1099_vm1 = vmand %vm1021_vm6, %vm11921_vm10 }
0x15a9   :  { %vm1049_vm3 = vcmp.ge.s32.totalorder %v1048_v35, 2  ;;  %vm1050_vm0 = vcmp.lt.s32.totalorder %v1048_v35, 4  ;;  %vm9760_vm2 = vmpackc.low %vm1099_vm1, %vm1099_vm1 }
0x15aa   :  { %7593 = vrot.lane.b32.xlu1 %v7592_v38, %s8989_s24  ;;  %vm1051_vm8 = vmand %vm1049_vm3, %vm1050_vm0  ;;  %vm1076_vm0 = vcmp.lt.s32.totalorder %v9703_v23, 3 }
0x15ab   :  { %vm9771_vm15 = vmpackc.low %vm1021_vm6, %vm1021_vm6 }
0x161c   :  { %v7594_v39 = vpop.permute.xlu1 %7593 }
0x161d   :  { %v7596_v40 = vunpack.i.h.bf16 %v7594_v39  ;;  %v7595_v41 = vunpack.i.l.bf16 %v7594_v39 }
0x161f   :  { %v999_v42 = vsel %vm579_vm9, %v7595_v41, %v995_v37  ;;  %v1002_v43 = vsel %vm579_vm9, %v7596_v40, %v996_v17 }
0x1620   :  { %v7597_v47 = vpack.i.bf16 %v1002_v43, %v999_v42 }
0x1622   :  { %7598 = vrot.lane.b32.xlu0 %v7597_v47, %s8989_s24 }
0x1694   :  { %v7599_v48 = vpop.permute.xlu0 %7598 }
0x1695   :  { %v7601_v50 = vunpack.i.h.bf16 %v7599_v48  ;;  %v7600_v52 = vunpack.i.l.bf16 %v7599_v48 }
0x1697   :  { %v1007_v54 = vsel %vm579_vm9, %v7600_v52, %v995_v37  ;;  %v1008_v63 = vsel %vm579_vm9, %v7601_v50, %v996_v17 }
0x1698   :  { %v7602_v55 = vpack.i.bf16 %v1008_v63, %v1007_v54 }
0x169a   :  { %7603 = vrot.lane.b32.xlu1 %v7602_v55, %s8981_s10  ;;  %s8998_s10 = smov 116  }
0x170c   :  { %v7604_v56 = vpop.permute.xlu1 %7603 }
0x170d   :  { %v7606_v58 = vunpack.i.h.bf16 %v7604_v56  ;;  %v7605_v59 = vunpack.i.l.bf16 %v7604_v56 }
0x170f   :  { %v1017_v60 = vsel %vm9430_vm12, %v7605_v59, %v995_v37  ;;  %v1018_v1 = vsel %vm9430_vm12, %v7606_v58, %v996_v17  ;;  %vm1022_vm12 = vcmp.lt.s32.totalorder %v9703_v23, 2  ;;  %v8706_v23 = vld [vmem:[%s11818_s1 + $0xc8] ss:$20 sps:$4 sm:$0xff]  }
0x1710   :  { %v7607_v53 = vpack.i.bf16 %v1018_v1, %v1017_v60  ;;  %vm1023_vm7 = vmand %vm1021_vm6, %vm1022_vm12 }
0x1711   :  { %vm1122_vm12 = vmand %vm1021_vm6, %vm1077_vm4 }
0x1712   :  { %7608 = vrot.lane.b32.xlu0 %v7607_v53, %s8989_s24  ;;  %v1085_v53 = vld [vmem:[%s11819_s2 + $0x58] sm:$0xff]  ;;  %vm11928_vm6 = vmmov %vm11921_vm10 }
0x1713   :  { %vm9792_vm3 = vmpackc.low %vm11928_vm6, %vm11928_vm6 }
0x1714   :  { %vm11933_vm10 = vmmov %vm11928_vm6 }
0x1715   :  { %vm1153_vm1 = vmand %vm1076_vm0, %vm11933_vm10 }
0x1716   :  { %vm9827_vm6 = vmpackc.low %vm1076_vm0, %vm1076_vm0 }
0x1717   :  { %vm1174_vm10 = vmand %vm1076_vm0, %vm1077_vm4 }
0x1784   :  { %v7609_v2 = vpop.permute.xlu0 %7608 }
0x1785   :  { %v7611_v8 = vunpack.i.h.bf16 %v7609_v2  ;;  %v7610_v28 = vunpack.i.l.bf16 %v7609_v2  ;;  %v1084_v2 = vld [vmem:[%s11819_s2 + $0x50] sm:$0xff] }
0x1787   :  { %v1026_v15 = vsel %vm579_vm9, %v7610_v28, %v1017_v60  ;;  %v1029_v16 = vsel %vm579_vm9, %v7611_v8, %v1018_v1  ;;  %v8701_v8 = vld [vmem:[%s11818_s1 + $0xa4] ss:$20 sps:$4 sm:$0xff]  }
0x1788   :  { %v7612_v11 = vpack.i.bf16 %v1029_v16, %v1026_v15  ;;  %6017 = vmatprep.mubr.msk.bf16.mxu0 %vm818_vm13, %v8701_v8 }
0x178a   :  { %7613 = vrot.lane.b32.xlu1 %v7612_v11, %s8989_s24 }
0x17fc   :  { %v7614_v19 = vpop.permute.xlu1 %7613 }
0x17fd   :  { %v7616_v20 = vunpack.i.h.bf16 %v7614_v19  ;;  %v7615_v21 = vunpack.i.l.bf16 %v7614_v19 }
0x17ff   :  { %v1034_v13 = vsel %vm579_vm9, %v7615_v21, %v1017_v60  ;;  %v1035_v44 = vsel %vm579_vm9, %v7616_v20, %v1018_v1 }
0x1800   :  { %v7617_v22 = vpack.i.bf16 %v1035_v44, %v1034_v13 }
0x1802   :  { %7618 = vrot.lane.b32.xlu0 %v7617_v22, %s8986_s21 }
0x1874   :  { %v7619_v24 = vpop.permute.xlu0 %7618 }
0x1875   :  { %v7621_v25 = vunpack.i.h.bf16 %v7619_v24  ;;  %v7620_v18 = vunpack.i.l.bf16 %v7619_v24 }
0x1877   :  { %v1046_v49 = vsel %vm1023_vm7, %v7620_v18, %v1017_v60  ;;  %v1047_v26 = vsel %vm1023_vm7, %v7621_v25, %v1018_v1  ;;  %v1083_v60 = vld [vmem:[%s11819_s2 + $0x48] sm:$0xff]  ;;  %v1082_v1 = vld [vmem:[%s11819_s2 + $0x40] sm:$0xff]  ;;  %vm9782_vm7 = vmpackc.low %vm1122_vm12, %vm1122_vm12 }
0x1878   :  { %v7622_v14 = vpack.i.bf16 %v1047_v26, %v1046_v49  ;;  %vm9817_vm12 = vmpackc.low %vm1153_vm1, %vm1153_vm1 }
0x1879   :  { %vm9837_vm1 = vmpackc.low %vm1174_vm10, %vm1174_vm10 }
0x187a   :  { %7623 = vrot.lane.b32.xlu1 %v7622_v14, %s8989_s24 }
0x18ec   :  { %v7624_v27 = vpop.permute.xlu1 %7623 }
0x18ed   :  { %v7626_v30 = vunpack.i.h.bf16 %v7624_v27  ;;  %v7625_v7 = vunpack.i.l.bf16 %v7624_v27 }
0x18ef   :  { %v1054_v32 = vsel %vm579_vm9, %v7625_v7, %v1046_v49  ;;  %v1057_v33 = vsel %vm579_vm9, %v7626_v30, %v1047_v26  ;;  %v8730_v30 = vld [vmem:[%s11818_s1 + $0x1b8] ss:$20 sps:$4 sm:$0xff]  }
0x18f0   :  { %v7627_v12 = vpack.i.bf16 %v1057_v33, %v1054_v32 }
0x18f2   :  { %7628 = vrot.lane.b32.xlu0 %v7627_v12, %s8989_s24  ;;  %s9000_s24 = smov 115  }
0x1964   :  { %v7629_v4 = vpop.permute.xlu0 %7628 }
0x1965   :  { %v7631_v10 = vunpack.i.h.bf16 %v7629_v4  ;;  %v7630_v9 = vunpack.i.l.bf16 %v7629_v4 }
0x1967   :  { %v1062_v0 = vsel %vm579_vm9, %v7630_v9, %v1046_v49  ;;  %v1063_v62 = vsel %vm579_vm9, %v7631_v10, %v1047_v26  ;;  %vm1086_vm9 = vcmask 1047680  }
0x1968   :  { %v7632_v34 = vpack.i.bf16 %v1063_v62, %v1062_v0 }
0x196a   :  { %7633 = vrot.lane.b32.xlu1 %v7632_v34, %s8987_s22  ;;  %s8999_s22 = smov 117  }
0x19dc   :  { %v7634_v37 = vpop.permute.xlu1 %7633 }
0x19dd   :  { %v7636_v17 = vunpack.i.h.bf16 %v7634_v37  ;;  %v7635_v38 = vunpack.i.l.bf16 %v7634_v37 }
0x19df   :  { %v9716_v39 = vsel %vm1051_vm8, %v7635_v38, %v1046_v49  ;;  %v9718_v40 = vsel %vm1051_vm8, %v7636_v17, %v1047_v26  ;;  %vm9806_vm8 = vmpackc.low %vm1077_vm4, %vm1077_vm4  ;;  %vm1527_vm4 = vcmask 261120  }
0x19e0   :  { %v7637_v41 = vpack.i.bf16 %v9718_v40, %v9716_v39  ;;  %v1189_v4 = vpack.c.bf16 %v9718_v40, %v9716_v39 }
0x19e2   :  { %7638 = vrot.lane.b32.xlu0 %v7637_v41, %s8978_s8  ;;  %v8727_v41 = vld [vmem:[%s11818_s1 + $0x1c0] ss:$20 sps:$4 sm:$0xff]  }
0x1a54   :  { %v7639_v42 = vpop.permute.xlu0 %7638 }
0x1a55   :  { %v7641_v43 = vunpack.i.h.bf16 %v7639_v42  ;;  %v7640_v47 = vunpack.i.l.bf16 %v7639_v42 }
0x1a57   :  { %v1089_v48 = vsel %vm1086_vm9, %v7640_v47, %v9716_v39  ;;  %v1092_v50 = vsel %vm1086_vm9, %v7641_v43, %v9718_v40 }
0x1a58   :  { %v7642_v52 = vpack.i.bf16 %v1092_v50, %v1089_v48 }
0x1a5a   :  { %7643 = vrot.lane.b32.xlu1 %v7642_v52, %s8978_s8  ;;  %v8703_v52 = vld [vmem:[%s11818_s1 + $0xa0] ss:$20 sps:$4 sm:$0xff]  }
0x1acc   :  { %v7644_v54 = vpop.permute.xlu1 %7643 }
0x1acd   :  { %v7646_v63 = vunpack.i.h.bf16 %v7644_v54  ;;  %v7645_v55 = vunpack.i.l.bf16 %v7644_v54 }
0x1acf   :  { %v1098_v56 = vsel %vm1086_vm9, %v7646_v63, %v9718_v40  ;;  %v1097_v58 = vsel %vm1086_vm9, %v7645_v55, %v9716_v39 }
0x1ad0   :  { %v7652_v59 = vpack.i.bf16 %v1098_v56, %v1097_v58 }
0x1ad2   :  { %7653 = vrot.lane.b32.xlu1 %v7652_v59, %s8998_s10  ;;  %7648 = vrot.lane.b32.xlu0 %v7652_v59, %s8999_s22 }
0x1ad6   :  { %7663 = vrot.lane.b32.xlu1 %v7652_v59, %s8980_s0  ;;  %7658 = vrot.lane.b32.xlu0 %v7652_v59, %s9000_s24 }
0x1ada   :  { %7673 = vrot.lane.b32.xlu1 %v7652_v59, %s9001_s29  ;;  %7668 = vrot.lane.b32.xlu0 %v7652_v59, %s8979_s9 }
0x1ade   :  { %7683 = vrot.lane.b32.xlu1 %v7652_v59, %s9002_s30  ;;  %7678 = vrot.lane.b32.xlu0 %v7652_v59, %s8986_s21 }
0x1ae2   :  { %1201 = vperm.xlu1 %7451, %v1083_v60   ;;  %1196 = vperm.xlu0 %7350, %v1082_v1  }
0x1ae6   :  { %1211 = vperm.xlu1 %7451, %v1085_v53   ;;  %1206 = vperm.xlu0 %7350, %v1084_v2  }
0x1b44   :  { %v7654_v28 = vpop.permute.xlu1 %7653  ;;  %v7649_v15 = vpop.permute.xlu0 %7648 }
0x1b45   :  { %v7651_v16 = vunpack.i.h.bf16 %v7649_v15  ;;  %v7650_v11 = vunpack.i.l.bf16 %v7649_v15  ;;  %v7656_v20 = vunpack.i.h.bf16 %v7654_v28  ;;  %v7655_v21 = vunpack.i.l.bf16 %v7654_v28 }
0x1b47   :  { %v5994_v13 = vpack.c.bf16 %v7651_v16, %v7650_v11  ;;  %v5997_v45 = vpack.c.bf16 %v7656_v20, %v7655_v21 }
0x1b48   :  { %v7659_v44 = vpop.permute.xlu0 %7658  ;;  %v7664_v18 = vpop.permute.xlu1 %7663 }
0x1b49   :  { %5995 = vmatpush1.bf16.msk.msra.mxu0 %vm9760_vm2, %v5994_v13  ;;  %v7661_v24 = vunpack.i.h.bf16 %v7659_v44  ;;  %v7660_v25 = vunpack.i.l.bf16 %v7659_v44  ;;  %v7666_v26 = vunpack.i.h.bf16 %v7664_v18  ;;  %v7665_v14 = vunpack.i.l.bf16 %v7664_v18 }
0x1b4a   :  { %1240 = vmatprep.subr.bf16.mxu0 %v8983_v3 }
0x1b4b   :  { %v6000_v27 = vpack.c.bf16 %v7661_v24, %v7660_v25  ;;  %v6003_v7 = vpack.c.bf16 %v7666_v26, %v7665_v14 }
0x1b4c   :  { %v7669_v32 = vpop.permute.xlu0 %7668  ;;  %v7674_v10 = vpop.permute.xlu1 %7673 }
0x1b4d   :  { %5998 = vmatpush1.bf16.msk.msra.mxu0 %vm9771_vm15, %v5997_v45  ;;  %v7671_v33 = vunpack.i.h.bf16 %v7669_v32  ;;  %v7670_v12 = vunpack.i.l.bf16 %v7669_v32  ;;  %v7676_v0 = vunpack.i.h.bf16 %v7674_v10  ;;  %v7675_v62 = vunpack.i.l.bf16 %v7674_v10 }
0x1b4e   :  { %1242 = vmatprep.subr.bf16.mxu0 %v8983_v3 }
0x1b4f   :  { %v6006_v34 = vpack.c.bf16 %v7671_v33, %v7670_v12  ;;  %v6009_v17 = vpack.c.bf16 %v7676_v0, %v7675_v62 }
0x1b50   :  { %v7679_v35 = vpop.permute.xlu0 %7678  ;;  %v7684_v40 = vpop.permute.xlu1 %7683 }
0x1b51   :  { %6001 = vmatpush1.bf16.msk.msra.mxu0 %vm9782_vm7, %v6000_v27  ;;  %v7681_v38 = vunpack.i.h.bf16 %v7679_v35  ;;  %v7680_v39 = vunpack.i.l.bf16 %v7679_v35  ;;  %v7686_v42 = vunpack.i.h.bf16 %v7684_v40  ;;  %v7685_v43 = vunpack.i.l.bf16 %v7684_v40 }
0x1b52   :  { %1244 = vmatprep.subr.bf16.mxu0 %v8983_v3 }
0x1b53   :  { %v6012_v47 = vpack.c.bf16 %v7681_v38, %v7680_v39  ;;  %v6015_v50 = vpack.c.bf16 %v7686_v42, %v7685_v43 }
0x1b55   :  { %6004 = vmatpush1.bf16.msk.msra.mxu0 %vm9792_vm3, %v6003_v7 }
0x1b56   :  { %1246 = vmatprep.subr.bf16.mxu0 %v8983_v3 }
0x1b59   :  { %1247 = vmatpush1.bf16.msra.mxu0 %v1189_v4 }
0x1b5a   :  { %1248 = vmatprep.subr.bf16.mxu0 %v8983_v3 }
0x1b5d   :  { %6007 = vmatpush1.bf16.msk.msra.mxu0 %vm9806_vm8, %v6006_v34 }
0x1b5e   :  { %1250 = vmatprep.subr.bf16.mxu0 %v8983_v3 }
0x1b61   :  { %6010 = vmatpush1.bf16.msk.msra.mxu0 %vm9817_vm12, %v6009_v17  ;;  %v1197_v54 = vpop.permute.xlu0 %1196  ;;  %v1202_v58 = vpop.permute.xlu1 %1201 }
0x1b62   :  { %1252 = vmatprep.subr.bf16.mxu0 %v8983_v3 }
0x1b65   :  { %6013 = vmatpush1.bf16.msk.msra.mxu0 %vm9827_vm6, %v6012_v47  ;;  %v1207_v15 = vpop.permute.xlu0 %1206  ;;  %v1212_v21 = vpop.permute.xlu1 %1211 }
0x1b66   :  { %1254 = vmatprep.subr.bf16.mxu0 %v8983_v3 }
0x1b69   :  { %6016 = vmatpush1.bf16.msk.msra.mxu0 %vm9837_vm1, %v6015_v50 }
0x1b6c   :  { %1271 = vmatmul.mubr.bf16.vlgmr.msra.gmra.mrb[8].mxu0 %v8703_v52 }
0x1b6d   :  { %6018 = vmatprep.mubr.msk.bf16.mxu0 %vm818_vm13, %v8704_v61 }
0x1b74   :  { %1279 = vmatmul.mubr.bf16.gmra.mrb[12].mxu0 %v8706_v23 }
0x1c3f   :  { %v1272_v63 = vpop.f32.mrb[8].mxu0 }
0x1c40   :  { %v1273_v55 = vadd.f32 %v1272_v63, %v1197_v54  ;;  %v1274_v56 = vpop.f32.mrb[9].mxu0  ;;  %v8709_v54 = vld [vmem:[%s11818_s1 + $0xf4] ss:$20 sps:$4 sm:$0xff]   ;;  %v8710_v63 = vld [vmem:[%s11818_s1 + $0xf8] ss:$20 sps:$4 sm:$0xff]  }
0x1c41   :  { %v1275_v59 = vpop.f32.mrb[10].mxu0  ;;  %1566 = vmatprep.mubr.bf16.mxu1 %v8709_v54  ;;  %7103 = vmatprep.mubr.msk.bf16.mxu0 %vm1527_vm4, %v8710_v63  ;;  %v1301_v56 = vld [vmem:[%s11819_s2 + $0x70] sm:$0xff] }
0x1c42   :  { %v1276_v60 = vadd.f32 %v1275_v59, %v1202_v58  ;;  %v1277_v1 = vpop.f32.mrb[11].mxu0  ;;  %v1287_v53 = vmax.f32 %v1273_v55, 0.0  ;;  %v1299_v55 = vld [vmem:[%s11819_s2 + $0x60] sm:$0xff]  ;;  %v1300_v58 = vld [vmem:[%s11819_s2 + $0x68] sm:$0xff]  ;;  %v1302_v59 = vld [vmem:[%s11819_s2 + $0x78] sm:$0xff] }
0x1c44   :  { %v1288_v2 = vmax.f32 %v1276_v60, 0.0 }
0x1c46   :  { %v7687_v8 = vpack.i.bf16 %v1288_v2, %v1287_v53  ;;  %v9854_v28 = vpack.c.bf16 %v1288_v2, %v1287_v53 }
0x1c47   :  { %v1280_v16 = vpop.f32.mrb[12].mxu0 }
0x1c48   :  { %v1281_v11 = vadd.f32 %v1280_v16, %v1207_v15  ;;  %v1282_v20 = vpop.f32.mrb[13].mxu0  ;;  %7688 = vrot.lane.b32.xlu0 %v7687_v8, %s8978_s8  ;;  %6652 = vmatprep.subr.bf16.mxu1 %v9854_v28 }
0x1c49   :  { %v1283_v13 = vpop.f32.mrb[14].mxu0 }
0x1c4a   :  { %v1284_v44 = vadd.f32 %v1283_v13, %v1212_v21  ;;  %v1285_v45 = vpop.f32.mrb[15].mxu0  ;;  %v9858_v24 = vmax.f32 %v1281_v11, 0.0 }
0x1c4c   :  { %v9860_v25 = vmax.f32 %v1284_v44, 0.0 }
0x1c4e   :  { %v7692_v18 = vpack.i.bf16 %v9860_v25, %v9858_v24  ;;  %v9916_v15 = vpack.c.bf16 %v9860_v25, %v9858_v24 }
0x1c50   :  { %7693 = vrot.lane.b32.xlu1 %v7692_v18, %s8978_s8 }
0x1cba   :  { %v7689_v26 = vpop.permute.xlu0 %7688 }
0x1cbb   :  { %v7691_v14 = vunpack.i.h.bf16 %v7689_v26  ;;  %v7690_v27 = vunpack.i.l.bf16 %v7689_v26 }
0x1cbd   :  { %v1305_v7 = vsel %vm1086_vm9, %v7690_v27, %v1287_v53  ;;  %v1308_v32 = vsel %vm1086_vm9, %v7691_v14, %v1288_v2 }
0x1cbe   :  { %v7697_v33 = vpack.i.bf16 %v1308_v32, %v1305_v7 }
0x1cc0   :  { %7698 = vrot.lane.b32.xlu0 %v7697_v33, %s8978_s8 }
0x1cc2   :  { %v7694_v12 = vpop.permute.xlu1 %7693 }
0x1cc3   :  { %v7696_v4 = vunpack.i.h.bf16 %v7694_v12  ;;  %v7695_v10 = vunpack.i.l.bf16 %v7694_v12 }
0x1cc5   :  { %v1314_v0 = vsel %vm1086_vm9, %v7696_v4, %v9860_v25  ;;  %v1311_v62 = vsel %vm1086_vm9, %v7695_v10, %v9858_v24 }
0x1cc6   :  { %v7702_v34 = vpack.i.bf16 %v1314_v0, %v1311_v62 }
0x1cc8   :  { %7703 = vrot.lane.b32.xlu1 %v7702_v34, %s8978_s8 }
0x1d32   :  { %v7699_v35 = vpop.permute.xlu0 %7698 }
0x1d33   :  { %v7701_v17 = vunpack.i.h.bf16 %v7699_v35  ;;  %v7700_v38 = vunpack.i.l.bf16 %v7699_v35 }
0x1d35   :  { %v1324_v39 = vsel %vm1086_vm9, %v7701_v17, %v1288_v2  ;;  %v1323_v40 = vsel %vm1086_vm9, %v7700_v38, %v1287_v53 }
0x1d36   :  { %v7707_v42 = vpack.i.bf16 %v1324_v39, %v1323_v40 }
0x1d38   :  { %7708 = vrot.lane.b32.xlu0 %v7707_v42, %s8999_s22 }
0x1d3a   :  { %v7704_v43 = vpop.permute.xlu1 %7703 }
0x1d3b   :  { %v7706_v47 = vunpack.i.h.bf16 %v7704_v43  ;;  %v7705_v50 = vunpack.i.l.bf16 %v7704_v43 }
0x1d3c   :  { %7713 = vrot.lane.b32.xlu0 %v7707_v42, %s8979_s9 }
0x1d3d   :  { %v1326_v52 = vsel %vm1086_vm9, %v7706_v47, %v9860_v25  ;;  %v1325_v61 = vsel %vm1086_vm9, %v7705_v50, %v9858_v24 }
0x1d3e   :  { %v7717_v23 = vpack.i.bf16 %v1326_v52, %v1325_v61 }
0x1d40   :  { %7718 = vrot.lane.b32.xlu1 %v7717_v23, %s8999_s22  ;;  %7728 = vrot.lane.b32.xlu0 %v7717_v23, %s8979_s9 }
0x1d44   :  { %7723 = vrot.lane.b32.xlu1 %v7707_v42, %s8998_s10  ;;  %7733 = vrot.lane.b32.xlu0 %v7707_v42, %s9001_s29 }
0x1d48   :  { %7738 = vrot.lane.b32.xlu1 %v7717_v23, %s8998_s10  ;;  %7748 = vrot.lane.b32.xlu0 %v7717_v23, %s9001_s29 }
0x1d4c   :  { %7743 = vrot.lane.b32.xlu1 %v7707_v42, %s9000_s24  ;;  %7753 = vrot.lane.b32.xlu0 %v7707_v42, %s8986_s21 }
0x1d50   :  { %7758 = vrot.lane.b32.xlu1 %v7717_v23, %s9000_s24  ;;  %7768 = vrot.lane.b32.xlu0 %v7717_v23, %s8986_s21 }
0x1d54   :  { %7763 = vrot.lane.b32.xlu1 %v7707_v42, %s8980_s0  ;;  %7778 = vrot.lane.b32.xlu0 %v7707_v42, %s9002_s30 }
0x1d58   :  { %7773 = vrot.lane.b32.xlu1 %v7717_v23, %s8980_s0  ;;  %1479 = vperm.xlu0 %7350, %v1299_v55  }
0x1d5c   :  { %7783 = vrot.lane.b32.xlu1 %v7717_v23, %s9002_s30  ;;  %1489 = vperm.xlu0 %7350, %v1301_v56  }
0x1d60   :  { %1484 = vperm.xlu1 %7451, %v1300_v58  }
0x1d64   :  { %1494 = vperm.xlu1 %7451, %v1302_v59  }
0x1daa   :  { %v7709_v60 = vpop.permute.xlu0 %7708 }
0x1dab   :  { %v7711_v1 = vunpack.i.h.bf16 %v7709_v60  ;;  %v7710_v53 = vunpack.i.l.bf16 %v7709_v60 }
0x1dad   :  { %v6026_v2 = vpack.c.bf16 %v7711_v1, %v7710_v53 }
0x1dae   :  { %v7714_v8 = vpop.permute.xlu0 %7713 }
0x1daf   :  { %6653 = vmatpush3.bf16.msk.msra.mxu1 %vm9760_vm2, %v6026_v2  ;;  %v7716_v16 = vunpack.i.h.bf16 %v7714_v8  ;;  %v7715_v11 = vunpack.i.l.bf16 %v7714_v8 }
0x1db0   :  { %6654 = vmatprep.subr.bf16.mxu1 %v9916_v15 }
0x1db1   :  { %v6050_v18 = vpack.c.bf16 %v7716_v16, %v7715_v11 }
0x1db2   :  { %v7719_v20 = vpop.permute.xlu1 %7718  ;;  %v7729_v21 = vpop.permute.xlu0 %7728 }
0x1db3   :  { %v7721_v13 = vunpack.i.h.bf16 %v7719_v20  ;;  %v7720_v44 = vunpack.i.l.bf16 %v7719_v20  ;;  %v7731_v26 = vunpack.i.h.bf16 %v7729_v21  ;;  %v7730_v14 = vunpack.i.l.bf16 %v7729_v21 }
0x1db5   :  { %v6029_v45 = vpack.c.bf16 %v7721_v13, %v7720_v44  ;;  %v6053_v33 = vpack.c.bf16 %v7731_v26, %v7730_v14 }
0x1db6   :  { %v7724_v27 = vpop.permute.xlu1 %7723  ;;  %v7734_v7 = vpop.permute.xlu0 %7733 }
0x1db7   :  { %v7726_v32 = vunpack.i.h.bf16 %v7724_v27  ;;  %v7725_v24 = vunpack.i.l.bf16 %v7724_v27  ;;  %6655 = vmatpush3.bf16.msk.msra.mxu1 %vm9760_vm2, %v6029_v45  ;;  %v7736_v12 = vunpack.i.h.bf16 %v7734_v7  ;;  %v7735_v4 = vunpack.i.l.bf16 %v7734_v7  ;;  %v8707_v7 = vld [vmem:[%s11818_s1 + $0xf0] ss:$20 sps:$4 sm:$0xff]  }
0x1db8   :  { %6656 = vmatprep.subr.msk.bf16.mxu1 %vm9806_vm8, %v6050_v18 }
0x1db9   :  { %v6032_v25 = vpack.c.bf16 %v7726_v32, %v7725_v24  ;;  %v6056_v17 = vpack.c.bf16 %v7736_v12, %v7735_v4  ;;  %v8711_v12 = vld [vmem:[%s11818_s1 + $0x120] ss:$20 sps:$4 sm:$0xff]   ;;  %v8714_v4 = vld [vmem:[%s11818_s1 + $0x118] ss:$20 sps:$4 sm:$0xff]  }
0x1dba   :  { %v7739_v10 = vpop.permute.xlu1 %7738  ;;  %v7749_v0 = vpop.permute.xlu0 %7748 }
0x1dbb   :  { %v7741_v62 = vunpack.i.h.bf16 %v7739_v10  ;;  %v7740_v34 = vunpack.i.l.bf16 %v7739_v10  ;;  %6657 = vmatpush3.bf16.msk.msra.mxu1 %vm9771_vm15, %v6032_v25  ;;  %v7751_v38 = vunpack.i.h.bf16 %v7749_v0  ;;  %v7750_v39 = vunpack.i.l.bf16 %v7749_v0  ;;  %v8712_v25 = vld [vmem:[%s11818_s1 + $0x11c] ss:$20 sps:$4 sm:$0xff]  }
0x1dbc   :  { %6658 = vmatprep.subr.msk.bf16.mxu1 %vm9806_vm8, %v6053_v33 }
0x1dbd   :  { %v6035_v35 = vpack.c.bf16 %v7741_v62, %v7740_v34  ;;  %v6059_v52 = vpack.c.bf16 %v7751_v38, %v7750_v39 }
0x1dbe   :  { %v7744_v40 = vpop.permute.xlu1 %7743  ;;  %v7754_v42 = vpop.permute.xlu0 %7753 }
0x1dbf   :  { %v7746_v43 = vunpack.i.h.bf16 %v7744_v40  ;;  %v7745_v47 = vunpack.i.l.bf16 %v7744_v40  ;;  %6659 = vmatpush3.bf16.msk.msra.mxu1 %vm9771_vm15, %v6035_v35  ;;  %v7756_v61 = vunpack.i.h.bf16 %v7754_v42  ;;  %v7755_v23 = vunpack.i.l.bf16 %v7754_v42 }
0x1dc0   :  { %6660 = vmatprep.subr.msk.bf16.mxu1 %vm9817_vm12, %v6056_v17 }
0x1dc1   :  { %v6038_v50 = vpack.c.bf16 %v7746_v43, %v7745_v47  ;;  %v6062_v59 = vpack.c.bf16 %v7756_v61, %v7755_v23 }
0x1dc2   :  { %v7759_v54 = vpop.permute.xlu1 %7758  ;;  %v7769_v63 = vpop.permute.xlu0 %7768 }
0x1dc3   :  { %v7761_v55 = vunpack.i.h.bf16 %v7759_v54  ;;  %v7760_v56 = vunpack.i.l.bf16 %v7759_v54  ;;  %6661 = vmatpush3.bf16.msk.msra.mxu1 %vm9782_vm7, %v6038_v50  ;;  %v7771_v60 = vunpack.i.h.bf16 %v7769_v63  ;;  %v7770_v1 = vunpack.i.l.bf16 %v7769_v63 }
0x1dc4   :  { %6662 = vmatprep.subr.msk.bf16.mxu1 %vm9817_vm12, %v6059_v52 }
0x1dc5   :  { %v6041_v58 = vpack.c.bf16 %v7761_v55, %v7760_v56  ;;  %v6065_v44 = vpack.c.bf16 %v7771_v60, %v7770_v1 }
0x1dc6   :  { %v7764_v53 = vpop.permute.xlu1 %7763  ;;  %v7779_v2 = vpop.permute.xlu0 %7778 }
0x1dc7   :  { %v7766_v8 = vunpack.i.h.bf16 %v7764_v53  ;;  %v7765_v16 = vunpack.i.l.bf16 %v7764_v53  ;;  %v7781_v11 = vunpack.i.h.bf16 %v7779_v2  ;;  %v7780_v20 = vunpack.i.l.bf16 %v7779_v2  ;;  %6663 = vmatpush3.bf16.msk.msra.mxu1 %vm9782_vm7, %v6041_v58 }
0x1dc8   :  { %6664 = vmatprep.subr.msk.bf16.mxu1 %vm9827_vm6, %v6062_v59 }
0x1dc9   :  { %v6044_v21 = vpack.c.bf16 %v7766_v8, %v7765_v16  ;;  %v6068_v13 = vpack.c.bf16 %v7781_v11, %v7780_v20 }
0x1dca   :  { %v7774_v45 = vpop.permute.xlu1 %7773 }
0x1dcb   :  { %v7776_v18 = vunpack.i.h.bf16 %v7774_v45  ;;  %v7775_v26 = vunpack.i.l.bf16 %v7774_v45  ;;  %6665 = vmatpush3.bf16.msk.msra.mxu1 %vm9792_vm3, %v6044_v21  ;;  %7099 = vmatprep.subr.msk.bf16.mxu0 %vm9837_vm1, %v6068_v13 }
0x1dcc   :  { %6666 = vmatprep.subr.msk.bf16.mxu1 %vm9827_vm6, %v6065_v44  ;;  %7100 = vmatpush3.bf16.msk.msra.mxu0 %vm9837_vm1, %v6068_v13 }
0x1dcd   :  { %v6047_v14 = vpack.c.bf16 %v7776_v18, %v7775_v26 }
0x1dce   :  { %v7784_v27 = vpop.permute.xlu1 %7783 }
0x1dcf   :  { %v7786_v32 = vunpack.i.h.bf16 %v7784_v27  ;;  %v7785_v24 = vunpack.i.l.bf16 %v7784_v27  ;;  %6667 = vmatpush3.bf16.msk.msra.mxu1 %vm9792_vm3, %v6047_v14 }
0x1dd1   :  { %v6071_v33 = vpack.c.bf16 %v7786_v32, %v7785_v24 }
0x1dd2   :  { %1567 = vmatmul.mubr.bf16.vlgmr.msra.gmra.mrb[8].mxu1 %v8707_v7 }
0x1dd3   :  { %7101 = vmatprep.subr.msk.bf16.mxu0 %vm9837_vm1, %v6071_v33  ;;  %1574 = vmatprep.mubr.bf16.mxu1 %v8712_v25 }
0x1dd4   :  { %7102 = vmatpush3.bf16.msk.msra.mxu0 %vm9837_vm1, %v6071_v33 }
0x1dd7   :  { %7104 = vmatmul.mubr.msk.bf16.vlgmr.msra.gmra.mrb[16].mxu0 %vm1527_vm4, %v8711_v12  ;;  %v1480_v35 = vpop.permute.xlu0 %1479 }
0x1dda   :  { %1575 = vmatmul.mubr.bf16.gmra.mrb[12].mxu1 %v8714_v4 }
0x1ddb   :  { %v1490_v58 = vpop.permute.xlu0 %1489 }
0x1ddf   :  { %v1485_v40 = vpop.permute.xlu1 %1484 }
0x1de3   :  { %v1495_v8 = vpop.permute.xlu1 %1494 }
0x1ea5   :  { %v6668_v10 = vpop.f32.mrb[8].mxu1 }
0x1ea6   :  { %v6669_v0 = vpop.f32.mrb[9].mxu1 }
0x1ea7   :  { %v6670_v62 = vadd.f32 %v6669_v0, %v6668_v10  ;;  %v6671_v34 = vpop.f32.mrb[10].mxu1 }
0x1ea8   :  { %v6672_v17 = vpop.f32.mrb[11].mxu1 }
0x1ea9   :  { %v6673_v38 = vadd.f32 %v6672_v17, %v6671_v34  ;;  %v1569_v39 = vadd.f32 %v6670_v62, %v1480_v35 }
0x1eaa   :  { %v7105_v42 = vpop.f32.mrb[16].mxu0 }
0x1eab   :  { %v1617_v43 = vpop.f32.mrb[17].mxu0  ;;  %v1572_v47 = vadd.f32 %v6673_v38, %v1485_v40 }
0x1eac   :  { %v1618_v50 = vadd.f32 %v1617_v43, %v1569_v39  ;;  %v7106_v52 = vpop.f32.mrb[18].mxu0 }
0x1ead   :  { %v6674_v61 = vpop.f32.mrb[12].mxu1  ;;  %v1620_v23 = vpop.f32.mrb[19].mxu0 }
0x1eae   :  { %v1621_v54 = vadd.f32 %v1620_v23, %v1572_v47  ;;  %v6675_v63 = vpop.f32.mrb[13].mxu1  ;;  %v1632_v59 = vmax.f32 %v1618_v50, 0.0  ;;  %v1644_v23 = vld [vmem:[%s11819_s2 + $0x80] sm:$0xff] }
0x1eaf   :  { %v6676_v55 = vadd.f32 %v6675_v63, %v6674_v61  ;;  %v6677_v56 = vpop.f32.mrb[14].mxu1  ;;  %v8717_v61 = vld [vmem:[%s11818_s1 + $0x144] ss:$20 sps:$4 sm:$0xff]   ;;  %v1645_v63 = vld [vmem:[%s11819_s2 + $0x88] sm:$0xff] }
0x1eb0   :  { %v1633_v60 = vmax.f32 %v1621_v54, 0.0  ;;  %v6678_v1 = vpop.f32.mrb[15].mxu1  ;;  %1910 = vmatprep.mubr.bf16.mxu1 %v8717_v61  ;;  %v1646_v54 = vld [vmem:[%s11819_s2 + $0x90] sm:$0xff] }
0x1eb1   :  { %v1577_v53 = vadd.f32 %v6676_v55, %v1490_v58  ;;  %v6679_v2 = vadd.f32 %v6678_v1, %v6677_v56  ;;  %v1647_v55 = vld [vmem:[%s11819_s2 + $0x98] sm:$0xff] }
0x1eb2   :  { %v7787_v16 = vpack.i.bf16 %v1633_v60, %v1632_v59  ;;  %v1812_v11 = vpack.c.bf16 %v1633_v60, %v1632_v59 }
0x1eb3   :  { %v1626_v20 = vadd.f32 %v7105_v42, %v1577_v53  ;;  %v1580_v21 = vadd.f32 %v6679_v2, %v1495_v8 }
0x1eb4   :  { %7788 = vrot.lane.b32.xlu0 %v7787_v16, %s8978_s8  ;;  %6684 = vmatprep.subr.bf16.mxu1 %v1812_v11 }
0x1eb5   :  { %v1629_v13 = vadd.f32 %v7106_v52, %v1580_v21  ;;  %v9969_v44 = vmax.f32 %v1626_v20, 0.0 }
0x1eb7   :  { %v1635_v45 = vmax.f32 %v1629_v13, 0.0 }
0x1eb9   :  { %v7792_v18 = vpack.i.bf16 %v1635_v45, %v9969_v44  ;;  %v1813_v53 = vpack.c.bf16 %v1635_v45, %v9969_v44 }
0x1ebb   :  { %7793 = vrot.lane.b32.xlu1 %v7792_v18, %s8978_s8 }
0x1f26   :  { %v7789_v26 = vpop.permute.xlu0 %7788 }
0x1f27   :  { %v7791_v14 = vunpack.i.h.bf16 %v7789_v26  ;;  %v7790_v27 = vunpack.i.l.bf16 %v7789_v26 }
0x1f29   :  { %v1653_v7 = vsel %vm1086_vm9, %v7791_v14, %v1633_v60  ;;  %v1650_v32 = vsel %vm1086_vm9, %v7790_v27, %v1632_v59 }
0x1f2a   :  { %v7797_v24 = vpack.i.bf16 %v1653_v7, %v1650_v32 }
0x1f2c   :  { %7798 = vrot.lane.b32.xlu0 %v7797_v24, %s8978_s8 }
0x1f2d   :  { %v7794_v25 = vpop.permute.xlu1 %7793 }
0x1f2e   :  { %v7796_v33 = vunpack.i.h.bf16 %v7794_v25  ;;  %v7795_v12 = vunpack.i.l.bf16 %v7794_v25 }
0x1f30   :  { %v1659_v4 = vsel %vm1086_vm9, %v7796_v33, %v1635_v45  ;;  %v1656_v10 = vsel %vm1086_vm9, %v7795_v12, %v9969_v44 }
0x1f31   :  { %v7802_v0 = vpack.i.bf16 %v1659_v4, %v1656_v10 }
0x1f33   :  { %7803 = vrot.lane.b32.xlu1 %v7802_v0, %s8978_s8 }
0x1f9e   :  { %v7799_v62 = vpop.permute.xlu0 %7798 }
0x1f9f   :  { %v7801_v34 = vunpack.i.h.bf16 %v7799_v62  ;;  %v7800_v35 = vunpack.i.l.bf16 %v7799_v62 }
0x1fa1   :  { %v1669_v17 = vsel %vm1086_vm9, %v7801_v34, %v1633_v60  ;;  %v1668_v38 = vsel %vm1086_vm9, %v7800_v35, %v1632_v59 }
0x1fa2   :  { %v7807_v39 = vpack.i.bf16 %v1669_v17, %v1668_v38 }
0x1fa4   :  { %7808 = vrot.lane.b32.xlu0 %v7807_v39, %s8999_s22 }
0x1fa5   :  { %v7804_v40 = vpop.permute.xlu1 %7803 }
0x1fa6   :  { %v7806_v42 = vunpack.i.h.bf16 %v7804_v40  ;;  %v7805_v43 = vunpack.i.l.bf16 %v7804_v40 }
0x1fa8   :  { %v1671_v47 = vsel %vm1086_vm9, %v7806_v42, %v1635_v45  ;;  %v1670_v50 = vsel %vm1086_vm9, %v7805_v43, %v9969_v44  ;;  %7813 = vrot.lane.b32.xlu0 %v7807_v39, %s8979_s9 }
0x1fa9   :  { %v7817_v52 = vpack.i.bf16 %v1671_v47, %v1670_v50 }
0x1fab   :  { %7818 = vrot.lane.b32.xlu1 %v7817_v52, %s8999_s22 }
0x1fac   :  { %7828 = vrot.lane.b32.xlu0 %v7817_v52, %s8979_s9 }
0x1faf   :  { %7823 = vrot.lane.b32.xlu1 %v7807_v39, %s8998_s10 }
0x1fb0   :  { %7833 = vrot.lane.b32.xlu0 %v7807_v39, %s9001_s29 }
0x1fb3   :  { %7838 = vrot.lane.b32.xlu1 %v7817_v52, %s8998_s10 }
0x1fb4   :  { %7848 = vrot.lane.b32.xlu0 %v7817_v52, %s9001_s29 }
0x1fb7   :  { %7843 = vrot.lane.b32.xlu1 %v7807_v39, %s9000_s24 }
0x1fb8   :  { %7853 = vrot.lane.b32.xlu0 %v7807_v39, %s8986_s21 }
0x1fbb   :  { %7858 = vrot.lane.b32.xlu1 %v7817_v52, %s9000_s24 }
0x1fbc   :  { %7868 = vrot.lane.b32.xlu0 %v7817_v52, %s8986_s21 }
0x1fbf   :  { %7863 = vrot.lane.b32.xlu1 %v7807_v39, %s8980_s0 }
0x1fc0   :  { %7878 = vrot.lane.b32.xlu0 %v7807_v39, %s9002_s30 }
0x1fc3   :  { %7873 = vrot.lane.b32.xlu1 %v7817_v52, %s8980_s0 }
0x1fc4   :  { %1824 = vperm.xlu0 %7350, %v1644_v23  }
0x1fc7   :  { %7883 = vrot.lane.b32.xlu1 %v7817_v52, %s9002_s30 }
0x1fc8   :  { %1834 = vperm.xlu0 %7350, %v1646_v54  }
0x1fcb   :  { %1829 = vperm.xlu1 %7451, %v1645_v63  }
0x1fcf   :  { %1839 = vperm.xlu1 %7451, %v1647_v55  }
0x2016   :  { %v7809_v56 = vpop.permute.xlu0 %7808 }
0x2017   :  { %v7811_v58 = vunpack.i.h.bf16 %v7809_v56  ;;  %v7810_v59 = vunpack.i.l.bf16 %v7809_v56 }
0x2019   :  { %v6082_v60 = vpack.c.bf16 %v7811_v58, %v7810_v59 }
0x201a   :  { %v7814_v1 = vpop.permute.xlu0 %7813 }
0x201b   :  { %6685 = vmatpush3.bf16.msk.msra.mxu1 %vm9760_vm2, %v6082_v60  ;;  %v7816_v2 = vunpack.i.h.bf16 %v7814_v1  ;;  %v7815_v8 = vunpack.i.l.bf16 %v7814_v1 }
0x201c   :  { %6686 = vmatprep.subr.bf16.mxu1 %v1813_v53 }
0x201d   :  { %v7819_v16 = vpop.permute.xlu1 %7818  ;;  %v6106_v18 = vpack.c.bf16 %v7816_v2, %v7815_v8 }
0x201e   :  { %v7821_v11 = vunpack.i.h.bf16 %v7819_v16  ;;  %v7820_v20 = vunpack.i.l.bf16 %v7819_v16  ;;  %v7829_v21 = vpop.permute.xlu0 %7828 }
0x201f   :  { %v7831_v26 = vunpack.i.h.bf16 %v7829_v21  ;;  %v7830_v14 = vunpack.i.l.bf16 %v7829_v21 }
0x2020   :  { %v6085_v13 = vpack.c.bf16 %v7821_v11, %v7820_v20 }
0x2021   :  { %v7824_v27 = vpop.permute.xlu1 %7823  ;;  %v6109_v45 = vpack.c.bf16 %v7831_v26, %v7830_v14 }
0x2022   :  { %v7826_v7 = vunpack.i.h.bf16 %v7824_v27  ;;  %v7825_v32 = vunpack.i.l.bf16 %v7824_v27  ;;  %v7834_v24 = vpop.permute.xlu0 %7833  ;;  %6687 = vmatpush3.bf16.msk.msra.mxu1 %vm9760_vm2, %v6085_v13 }
0x2023   :  { %6688 = vmatprep.subr.msk.bf16.mxu1 %vm9806_vm8, %v6106_v18  ;;  %v7836_v25 = vunpack.i.h.bf16 %v7834_v24  ;;  %v7835_v33 = vunpack.i.l.bf16 %v7834_v24 }
0x2024   :  { %v6088_v44 = vpack.c.bf16 %v7826_v7, %v7825_v32  ;;  %v8715_v7 = vld [vmem:[%s11818_s1 + $0x140] ss:$20 sps:$4 sm:$0xff]  }
0x2025   :  { %v7839_v12 = vpop.permute.xlu1 %7838  ;;  %v6112_v34 = vpack.c.bf16 %v7836_v25, %v7835_v33  ;;  %v8720_v25 = vld [vmem:[%s11818_s1 + $0x168] ss:$20 sps:$4 sm:$0xff]  }
0x2026   :  { %v7841_v4 = vunpack.i.h.bf16 %v7839_v12  ;;  %v7840_v10 = vunpack.i.l.bf16 %v7839_v12  ;;  %v7849_v0 = vpop.permute.xlu0 %7848  ;;  %6689 = vmatpush3.bf16.msk.msra.mxu1 %vm9771_vm15, %v6088_v44  ;;  %v8718_v44 = vld [vmem:[%s11818_s1 + $0x16c] ss:$20 sps:$4 sm:$0xff]   ;;  %v8721_v33 = vld [vmem:[%s11818_s1 + $0x148] ss:$20 sps:$4 sm:$0xff]   ;;  %v8722_v12 = vld [vmem:[%s11818_s1 + $0x170] ss:$20 sps:$4 sm:$0xff]  }
0x2027   :  { %6690 = vmatprep.subr.msk.bf16.mxu1 %vm9806_vm8, %v6109_v45  ;;  %v7851_v35 = vunpack.i.h.bf16 %v7849_v0  ;;  %v7850_v17 = vunpack.i.l.bf16 %v7849_v0 }
0x2028   :  { %v6091_v62 = vpack.c.bf16 %v7841_v4, %v7840_v10 }
0x2029   :  { %v7844_v38 = vpop.permute.xlu1 %7843  ;;  %v6115_v47 = vpack.c.bf16 %v7851_v35, %v7850_v17 }
0x202a   :  { %v7846_v39 = vunpack.i.h.bf16 %v7844_v38  ;;  %v7845_v40 = vunpack.i.l.bf16 %v7844_v38  ;;  %v7854_v42 = vpop.permute.xlu0 %7853  ;;  %6691 = vmatpush3.bf16.msk.msra.mxu1 %vm9771_vm15, %v6091_v62 }
0x202b   :  { %6692 = vmatprep.subr.msk.bf16.mxu1 %vm9817_vm12, %v6112_v34  ;;  %v7856_v50 = vunpack.i.h.bf16 %v7854_v42  ;;  %v7855_v52 = vunpack.i.l.bf16 %v7854_v42 }
0x202c   :  { %v6094_v43 = vpack.c.bf16 %v7846_v39, %v7845_v40 }
0x202d   :  { %v7859_v61 = vpop.permute.xlu1 %7858  ;;  %v6118_v56 = vpack.c.bf16 %v7856_v50, %v7855_v52 }
0x202e   :  { %v7861_v23 = vunpack.i.h.bf16 %v7859_v61  ;;  %v7860_v54 = vunpack.i.l.bf16 %v7859_v61  ;;  %v7869_v63 = vpop.permute.xlu0 %7868  ;;  %6693 = vmatpush3.bf16.msk.msra.mxu1 %vm9782_vm7, %v6094_v43 }
0x202f   :  { %6694 = vmatprep.subr.msk.bf16.mxu1 %vm9817_vm12, %v6115_v47  ;;  %v7871_v58 = vunpack.i.h.bf16 %v7869_v63  ;;  %v7870_v59 = vunpack.i.l.bf16 %v7869_v63 }
0x2030   :  { %v6097_v55 = vpack.c.bf16 %v7861_v23, %v7860_v54 }
0x2031   :  { %v7864_v60 = vpop.permute.xlu1 %7863  ;;  %v6121_v16 = vpack.c.bf16 %v7871_v58, %v7870_v59 }
0x2032   :  { %v7866_v1 = vunpack.i.h.bf16 %v7864_v60  ;;  %v7865_v53 = vunpack.i.l.bf16 %v7864_v60  ;;  %v7879_v2 = vpop.permute.xlu0 %7878  ;;  %6695 = vmatpush3.bf16.msk.msra.mxu1 %vm9782_vm7, %v6097_v55 }
0x2033   :  { %6696 = vmatprep.subr.msk.bf16.mxu1 %vm9827_vm6, %v6118_v56  ;;  %v7881_v11 = vunpack.i.h.bf16 %v7879_v2  ;;  %v7880_v20 = vunpack.i.l.bf16 %v7879_v2 }
0x2034   :  { %v6100_v8 = vpack.c.bf16 %v7866_v1, %v7865_v53 }
0x2035   :  { %v7874_v21 = vpop.permute.xlu1 %7873  ;;  %v6124_v14 = vpack.c.bf16 %v7881_v11, %v7880_v20 }
0x2036   :  { %v7876_v13 = vunpack.i.h.bf16 %v7874_v21  ;;  %v7875_v18 = vunpack.i.l.bf16 %v7874_v21  ;;  %6697 = vmatpush3.bf16.msk.msra.mxu1 %vm9792_vm3, %v6100_v8 }
0x2037   :  { %6698 = vmatprep.subr.msk.bf16.mxu1 %vm9827_vm6, %v6121_v16 }
0x2038   :  { %v6103_v26 = vpack.c.bf16 %v7876_v13, %v7875_v18 }
0x2039   :  { %v7884_v27 = vpop.permute.xlu1 %7883 }
0x203a   :  { %v7886_v32 = vunpack.i.h.bf16 %v7884_v27  ;;  %v7885_v24 = vunpack.i.l.bf16 %v7884_v27  ;;  %6699 = vmatpush3.bf16.msk.msra.mxu1 %vm9792_vm3, %v6103_v26 }
0x203b   :  { %7107 = vmatprep.subr.msk.bf16.mxu1 %vm9837_vm1, %v6124_v14 }
0x203c   :  { %v6127_v45 = vpack.c.bf16 %v7886_v32, %v7885_v24 }
0x203d   :  { %1911 = vmatmul.mubr.bf16.vlgmr.msra.gmra.mrb[16].mxu1 %v8715_v7 }
0x203e   :  { %7108 = vmatpush3.bf16.msk.msra.mxu1 %vm9837_vm1, %v6124_v14  ;;  %1918 = vmatprep.mubr.bf16.mxu1 %v8718_v44 }
0x203f   :  { %7109 = vmatprep.subr.msk.bf16.mxu1 %vm9837_vm1, %v6127_v45 }
0x2042   :  { %7110 = vmatpush3.bf16.msk.msra.mxu1 %vm9837_vm1, %v6127_v45 }
0x2043   :  { %v1825_v17 = vpop.permute.xlu0 %1824 }
0x2045   :  { %1919 = vmatmul.mubr.bf16.gmra.mrb[20].mxu1 %v8720_v25 }
0x2046   :  { %7111 = vmatprep.mubr.msk.bf16.mxu1 %vm1527_vm4, %v8721_v33 }
0x2047   :  { %v1835_v52 = vpop.permute.xlu0 %1834 }
0x204a   :  { %v1830_v40 = vpop.permute.xlu1 %1829 }
0x204d   :  { %7112 = vmatmul.mubr.msk.bf16.vlgmr.msra.gmra.mrb[24].mxu1 %vm1527_vm4, %v8722_v12 }
0x204e   :  { %v1840_v23 = vpop.permute.xlu1 %1839 }
0x2110   :  { %v6700_v4 = vpop.f32.mrb[16].mxu1 }
0x2111   :  { %v6701_v10 = vpop.f32.mrb[17].mxu1 }
0x2112   :  { %v6702_v0 = vadd.f32 %v6701_v10, %v6700_v4  ;;  %v6703_v62 = vpop.f32.mrb[18].mxu1 }
0x2113   :  { %v6704_v34 = vpop.f32.mrb[19].mxu1 }
0x2114   :  { %v6705_v35 = vadd.f32 %v6704_v34, %v6703_v62  ;;  %v1913_v63 = vadd.f32 %v6702_v0, %v1825_v17 }
0x2116   :  { %v1916_v1 = vadd.f32 %v6705_v35, %v1830_v40 }
0x2118   :  { %v6706_v38 = vpop.f32.mrb[20].mxu1 }
0x2119   :  { %v6707_v39 = vpop.f32.mrb[21].mxu1 }
0x211a   :  { %v6708_v42 = vadd.f32 %v6707_v39, %v6706_v38  ;;  %v6709_v43 = vpop.f32.mrb[22].mxu1 }
0x211b   :  { %v6710_v47 = vpop.f32.mrb[23].mxu1 }
0x211c   :  { %v6711_v50 = vadd.f32 %v6710_v47, %v6709_v43  ;;  %v1921_v61 = vadd.f32 %v6708_v42, %v1835_v52  ;;  %v8725_v52 = vld [vmem:[%s11818_s1 + $0x194] ss:$20 sps:$4 sm:$0xff]  }
0x211d   :  { %2254 = vmatprep.mubr.bf16.mxu0 %v8725_v52 }
0x211e   :  { %v1924_v58 = vadd.f32 %v6711_v50, %v1840_v23  ;;  %v1989_v23 = vld [vmem:[%s11819_s2 + $0xa8] sm:$0xff] }
0x2120   :  { %v7113_v54 = vpop.f32.mrb[24].mxu1 }
0x2121   :  { %v1970_v55 = vadd.f32 %v7113_v54, %v1921_v61  ;;  %v1961_v56 = vpop.f32.mrb[25].mxu1  ;;  %v8726_v61 = vld [vmem:[%s11818_s1 + $0x198] ss:$20 sps:$4 sm:$0xff]   ;;  %v1988_v54 = vld [vmem:[%s11819_s2 + $0xa0] sm:$0xff] }
0x2122   :  { %v1962_v59 = vadd.f32 %v1961_v56, %v1913_v63  ;;  %v7114_v60 = vpop.f32.mrb[26].mxu1  ;;  %7119 = vmatprep.mubr.msk.bf16.mxu1 %vm1527_vm4, %v8726_v61  ;;  %v1991_v63 = vld [vmem:[%s11819_s2 + $0xb8] sm:$0xff] }
0x2123   :  { %v1973_v53 = vadd.f32 %v7114_v60, %v1924_v58  ;;  %v1964_v2 = vpop.f32.mrb[27].mxu1  ;;  %v10070_v16 = vmax.f32 %v1970_v55, 0.0  ;;  %v1990_v55 = vld [vmem:[%s11819_s2 + $0xb0] sm:$0xff] }
0x2124   :  { %v1965_v8 = vadd.f32 %v1964_v2, %v1916_v1  ;;  %v1976_v20 = vmax.f32 %v1962_v59, 0.0 }
0x2125   :  { %v10072_v11 = vmax.f32 %v1973_v53, 0.0 }
0x2126   :  { %v1977_v21 = vmax.f32 %v1965_v8, 0.0 }
0x2127   :  { %v7892_v13 = vpack.i.bf16 %v10072_v11, %v10070_v16 }
0x2128   :  { %v7887_v18 = vpack.i.bf16 %v1977_v21, %v1976_v20  ;;  %v2156_v26 = vpack.c.bf16 %v1977_v21, %v1976_v20 }
0x2129   :  { %7893 = vrot.lane.b32.xlu1 %v7892_v13, %s8978_s8 }
0x212a   :  { %7888 = vrot.lane.b32.xlu0 %v7887_v18, %s8978_s8  ;;  %6716 = vmatprep.subr.bf16.mxu0 %v2156_v26 }
0x219b   :  { %v7894_v14 = vpop.permute.xlu1 %7893 }
0x219c   :  { %v7896_v27 = vunpack.i.h.bf16 %v7894_v14  ;;  %v7895_v7 = vunpack.i.l.bf16 %v7894_v14  ;;  %v7889_v32 = vpop.permute.xlu0 %7888 }
0x219d   :  { %v7891_v24 = vunpack.i.h.bf16 %v7889_v32  ;;  %v7890_v44 = vunpack.i.l.bf16 %v7889_v32 }
0x219e   :  { %v2003_v45 = vsel %vm1086_vm9, %v7896_v27, %v10072_v11  ;;  %v2000_v25 = vsel %vm1086_vm9, %v7895_v7, %v10070_v16 }
0x219f   :  { %v1997_v33 = vsel %vm1086_vm9, %v7891_v24, %v1977_v21  ;;  %v1994_v12 = vsel %vm1086_vm9, %v7890_v44, %v1976_v20  ;;  %v7902_v4 = vpack.i.bf16 %v2003_v45, %v2000_v25 }
0x21a0   :  { %v7897_v10 = vpack.i.bf16 %v1997_v33, %v1994_v12 }
0x21a1   :  { %7903 = vrot.lane.b32.xlu1 %v7902_v4, %s8978_s8 }
0x21a2   :  { %7898 = vrot.lane.b32.xlu0 %v7897_v10, %s8978_s8 }
0x2213   :  { %v7904_v0 = vpop.permute.xlu1 %7903 }
0x2214   :  { %v7906_v62 = vunpack.i.h.bf16 %v7904_v0  ;;  %v7905_v34 = vunpack.i.l.bf16 %v7904_v0  ;;  %v7899_v35 = vpop.permute.xlu0 %7898 }
0x2215   :  { %v7901_v17 = vunpack.i.h.bf16 %v7899_v35  ;;  %v7900_v38 = vunpack.i.l.bf16 %v7899_v35 }
0x2216   :  { %v2015_v39 = vsel %vm1086_vm9, %v7906_v62, %v10072_v11  ;;  %v2014_v40 = vsel %vm1086_vm9, %v7905_v34, %v10070_v16 }
0x2217   :  { %v2013_v42 = vsel %vm1086_vm9, %v7901_v17, %v1977_v21  ;;  %v2012_v43 = vsel %vm1086_vm9, %v7900_v38, %v1976_v20  ;;  %v7912_v47 = vpack.i.bf16 %v2015_v39, %v2014_v40  ;;  %v2157_v21 = vpack.c.bf16 %v10072_v11, %v10070_v16 }
0x2218   :  { %v7907_v50 = vpack.i.bf16 %v2013_v42, %v2012_v43 }
0x2219   :  { %7913 = vrot.lane.b32.xlu1 %v7912_v47, %s8999_s22 }
0x221a   :  { %7908 = vrot.lane.b32.xlu0 %v7907_v50, %s8999_s22 }
0x221d   :  { %7928 = vrot.lane.b32.xlu1 %v7907_v50, %s8998_s10 }
0x221e   :  { %7918 = vrot.lane.b32.xlu0 %v7907_v50, %s8979_s9 }
0x2221   :  { %7933 = vrot.lane.b32.xlu1 %v7912_v47, %s8998_s10 }
0x2222   :  { %7923 = vrot.lane.b32.xlu0 %v7912_v47, %s8979_s9 }
0x2225   :  { %7948 = vrot.lane.b32.xlu1 %v7907_v50, %s9000_s24 }
0x2226   :  { %7938 = vrot.lane.b32.xlu0 %v7907_v50, %s9001_s29 }
0x2229   :  { %7953 = vrot.lane.b32.xlu1 %v7912_v47, %s9000_s24 }
0x222a   :  { %7943 = vrot.lane.b32.xlu0 %v7912_v47, %s9001_s29 }
0x222d   :  { %7968 = vrot.lane.b32.xlu1 %v7907_v50, %s8980_s0 }
0x222e   :  { %7958 = vrot.lane.b32.xlu0 %v7907_v50, %s8986_s21 }
0x2231   :  { %7973 = vrot.lane.b32.xlu1 %v7912_v47, %s8980_s0 }
0x2232   :  { %7963 = vrot.lane.b32.xlu0 %v7912_v47, %s8986_s21 }
0x2235   :  { %7983 = vrot.lane.b32.xlu1 %v7912_v47, %s9002_s30 }
0x2236   :  { %7978 = vrot.lane.b32.xlu0 %v7907_v50, %s9002_s30 }
0x2239   :  { %2173 = vperm.xlu1 %7451, %v1989_v23  }
0x223a   :  { %2168 = vperm.xlu0 %7350, %v1988_v54  }
0x223d   :  { %2183 = vperm.xlu1 %7451, %v1991_v63  }
0x223e   :  { %2178 = vperm.xlu0 %7350, %v1990_v55  }
0x228b   :  { %v7914_v56 = vpop.permute.xlu1 %7913 }
0x228c   :  { %v7909_v58 = vpop.permute.xlu0 %7908  ;;  %v7916_v1 = vunpack.i.h.bf16 %v7914_v56  ;;  %v7915_v53 = vunpack.i.l.bf16 %v7914_v56 }
0x228d   :  { %v7911_v59 = vunpack.i.h.bf16 %v7909_v58  ;;  %v7910_v60 = vunpack.i.l.bf16 %v7909_v58 }
0x228e   :  { %v6141_v26 = vpack.c.bf16 %v7916_v1, %v7915_v53 }
0x228f   :  { %v6138_v2 = vpack.c.bf16 %v7911_v59, %v7910_v60  ;;  %v7929_v8 = vpop.permute.xlu1 %7928 }
0x2290   :  { %v7919_v20 = vpop.permute.xlu0 %7918  ;;  %v7931_v14 = vunpack.i.h.bf16 %v7929_v8  ;;  %v7930_v27 = vunpack.i.l.bf16 %v7929_v8 }
0x2291   :  { %v7921_v13 = vunpack.i.h.bf16 %v7919_v20  ;;  %v7920_v18 = vunpack.i.l.bf16 %v7919_v20  ;;  %6717 = vmatpush3.bf16.msk.msra.mxu0 %vm9760_vm2, %v6138_v2 }
0x2292   :  { %6718 = vmatprep.subr.bf16.mxu0 %v2157_v21  ;;  %v6144_v16 = vpack.c.bf16 %v7931_v14, %v7930_v27  ;;  %v8723_v27 = vld [vmem:[%s11818_s1 + $0x190] ss:$20 sps:$4 sm:$0xff]  }
0x2293   :  { %v6162_v7 = vpack.c.bf16 %v7921_v13, %v7920_v18  ;;  %v7934_v32 = vpop.permute.xlu1 %7933 }
0x2294   :  { %v7924_v24 = vpop.permute.xlu0 %7923  ;;  %v7936_v11 = vunpack.i.h.bf16 %v7934_v32  ;;  %v7935_v25 = vunpack.i.l.bf16 %v7934_v32  ;;  %v8728_v32 = vld [vmem:[%s11818_s1 + $0x1bc] ss:$20 sps:$4 sm:$0xff]  }
0x2295   :  { %v7926_v44 = vunpack.i.h.bf16 %v7924_v24  ;;  %v7925_v45 = vunpack.i.l.bf16 %v7924_v24  ;;  %6719 = vmatpush3.bf16.msk.msra.mxu0 %vm9760_vm2, %v6141_v26 }
0x2296   :  { %6720 = vmatprep.subr.msk.bf16.mxu0 %vm9806_vm8, %v6162_v7  ;;  %v6147_v62 = vpack.c.bf16 %v7936_v11, %v7935_v25 }
0x2297   :  { %v6165_v33 = vpack.c.bf16 %v7926_v44, %v7925_v45  ;;  %v7949_v12 = vpop.permute.xlu1 %7948 }
0x2298   :  { %v7939_v4 = vpop.permute.xlu0 %7938  ;;  %v7951_v19 = vunpack.i.h.bf16 %v7949_v12  ;;  %v7950_v34 = vunpack.i.l.bf16 %v7949_v12 }
0x2299   :  { %v7941_v10 = vunpack.i.h.bf16 %v7939_v4  ;;  %v7940_v0 = vunpack.i.l.bf16 %v7939_v4  ;;  %6721 = vmatpush3.bf16.msk.msra.mxu0 %vm9771_vm15, %v6144_v16 }
0x229a   :  { %6722 = vmatprep.subr.msk.bf16.mxu0 %vm9806_vm8, %v6165_v33  ;;  %v6150_v42 = vpack.c.bf16 %v7951_v19, %v7950_v34 }
0x229b   :  { %v6168_v35 = vpack.c.bf16 %v7941_v10, %v7940_v0  ;;  %v7954_v17 = vpop.permute.xlu1 %7953 }
0x229c   :  { %v7944_v38 = vpop.permute.xlu0 %7943  ;;  %v7956_v43 = vunpack.i.h.bf16 %v7954_v17  ;;  %v7955_v47 = vunpack.i.l.bf16 %v7954_v17 }
0x229d   :  { %v7946_v39 = vunpack.i.h.bf16 %v7944_v38  ;;  %v7945_v40 = vunpack.i.l.bf16 %v7944_v38  ;;  %6723 = vmatpush3.bf16.msk.msra.mxu0 %vm9771_vm15, %v6147_v62 }
0x229e   :  { %6724 = vmatprep.subr.msk.bf16.mxu0 %vm9817_vm12, %v6168_v35  ;;  %v6153_v54 = vpack.c.bf16 %v7956_v43, %v7955_v47 }
0x229f   :  { %v6171_v50 = vpack.c.bf16 %v7946_v39, %v7945_v40  ;;  %v7969_v9 = vpop.permute.xlu1 %7968 }
0x22a0   :  { %v7959_v52 = vpop.permute.xlu0 %7958  ;;  %v7971_v22 = vunpack.i.h.bf16 %v7969_v9  ;;  %v7970_v63 = vunpack.i.l.bf16 %v7969_v9 }
0x22a1   :  { %v7961_v61 = vunpack.i.h.bf16 %v7959_v52  ;;  %v7960_v23 = vunpack.i.l.bf16 %v7959_v52  ;;  %6725 = vmatpush3.bf16.msk.msra.mxu0 %vm9782_vm7, %v6150_v42 }
0x22a2   :  { %6726 = vmatprep.subr.msk.bf16.mxu0 %vm9817_vm12, %v6171_v50  ;;  %v6156_v1 = vpack.c.bf16 %v7971_v22, %v7970_v63 }
0x22a3   :  { %v6174_v55 = vpack.c.bf16 %v7961_v61, %v7960_v23  ;;  %v7974_v56 = vpop.permute.xlu1 %7973 }
0x22a4   :  { %v7964_v58 = vpop.permute.xlu0 %7963  ;;  %v7976_v53 = vunpack.i.h.bf16 %v7974_v56  ;;  %v7975_v2 = vunpack.i.l.bf16 %v7974_v56 }
0x22a5   :  { %v7966_v59 = vunpack.i.h.bf16 %v7964_v58  ;;  %v7965_v60 = vunpack.i.l.bf16 %v7964_v58  ;;  %6727 = vmatpush3.bf16.msk.msra.mxu0 %vm9782_vm7, %v6153_v54 }
0x22a6   :  { %6728 = vmatprep.subr.msk.bf16.mxu0 %vm9827_vm6, %v6174_v55  ;;  %v6159_v49 = vpack.c.bf16 %v7976_v53, %v7975_v2 }
0x22a7   :  { %v6177_v8 = vpack.c.bf16 %v7966_v59, %v7965_v60  ;;  %v7984_v37 = vpop.permute.xlu1 %7983 }
0x22a8   :  { %v7979_v20 = vpop.permute.xlu0 %7978  ;;  %v7986_v21 = vunpack.i.h.bf16 %v7984_v37  ;;  %v7985_v13 = vunpack.i.l.bf16 %v7984_v37 }
0x22a9   :  { %v7981_v18 = vunpack.i.h.bf16 %v7979_v20  ;;  %v7980_v26 = vunpack.i.l.bf16 %v7979_v20  ;;  %6729 = vmatpush3.bf16.msk.msra.mxu0 %vm9792_vm3, %v6156_v1 }
0x22aa   :  { %6730 = vmatprep.subr.msk.bf16.mxu0 %vm9827_vm6, %v6177_v8  ;;  %v6183_v7 = vpack.c.bf16 %v7986_v21, %v7985_v13 }
0x22ab   :  { %v6180_v14 = vpack.c.bf16 %v7981_v18, %v7980_v26 }
0x22ad   :  { %6731 = vmatpush3.bf16.msk.msra.mxu0 %vm9792_vm3, %v6159_v49  ;;  %7115 = vmatprep.subr.msk.bf16.mxu1 %vm9837_vm1, %v6180_v14 }
0x22ae   :  { %7116 = vmatpush3.bf16.msk.msra.mxu1 %vm9837_vm1, %v6180_v14 }
0x22af   :  { %7117 = vmatprep.subr.msk.bf16.mxu1 %vm9837_vm1, %v6183_v7 }
0x22b0   :  { %2255 = vmatmul.mubr.bf16.vlgmr.msra.gmra.mrb[20].mxu0 %v8723_v27 }
0x22b1   :  { %2262 = vmatprep.mubr.bf16.mxu0 %v8728_v32 }
0x22b2   :  { %7118 = vmatpush3.bf16.msk.msra.mxu1 %vm9837_vm1, %v6183_v7 }
0x22b5   :  { %7120 = vmatmul.mubr.msk.bf16.vlgmr.msra.gmra.mrb[28].mxu1 %vm1527_vm4, %v8727_v41 }
0x22b8   :  { %2263 = vmatmul.mubr.bf16.gmra.mrb[24].mxu0 %v8730_v30  ;;  %v2174_v4 = vpop.permute.xlu1 %2173 }
0x22b9   :  { %v2169_v11 = vpop.permute.xlu0 %2168 }
0x22bc   :  { %v2184_v61 = vpop.permute.xlu1 %2183 }
0x22bd   :  { %v2179_v42 = vpop.permute.xlu0 %2178 }
0x2383   :  { %v6732_v24 = vpop.f32.mrb[20].mxu0 }
0x2384   :  { %v6733_v44 = vpop.f32.mrb[21].mxu0 }
0x2385   :  { %v6734_v45 = vadd.f32 %v6733_v44, %v6732_v24  ;;  %v6735_v16 = vpop.f32.mrb[22].mxu0 }
0x2386   :  { %v6736_v25 = vpop.f32.mrb[23].mxu0 }
0x2387   :  { %v6737_v33 = vadd.f32 %v6736_v25, %v6735_v16  ;;  %v2257_v12 = vadd.f32 %v6734_v45, %v2169_v11 }
0x2388   :  { %v7121_v10 = vpop.f32.mrb[28].mxu1 }
0x2389   :  { %v2305_v0 = vpop.f32.mrb[29].mxu1  ;;  %v2260_v48 = vadd.f32 %v6737_v33, %v2174_v4 }
0x238a   :  { %v2306_v62 = vadd.f32 %v2305_v0, %v2257_v12  ;;  %v7122_v19 = vpop.f32.mrb[30].mxu1 }
0x238b   :  { %v6738_v34 = vpop.f32.mrb[24].mxu0  ;;  %v2308_v35 = vpop.f32.mrb[31].mxu1 }
0x238c   :  { %v2309_v17 = vadd.f32 %v2308_v35, %v2260_v48  ;;  %v6739_v38 = vpop.f32.mrb[25].mxu0  ;;  %v2320_v43 = vmax.f32 %v2306_v62, 0.0 }
0x238d   :  { %v6740_v39 = vadd.f32 %v6739_v38, %v6738_v34  ;;  %v6741_v40 = vpop.f32.mrb[26].mxu0 }
0x238e   :  { %v2321_v47 = vmax.f32 %v2309_v17, 0.0  ;;  %v6742_v50 = vpop.f32.mrb[27].mxu0 }
0x238f   :  { %v2265_v9 = vadd.f32 %v6740_v39, %v2179_v42  ;;  %v6743_v52 = vadd.f32 %v6742_v50, %v6741_v40 }
0x2390   :  { %v7987_v23 = vpack.i.bf16 %v2321_v47, %v2320_v43 }
0x2391   :  { %v2314_v54 = vadd.f32 %v7121_v10, %v2265_v9  ;;  %v2268_v22 = vadd.f32 %v6743_v52, %v2184_v61 }
0x2392   :  { %7988 = vrot.lane.b32.xlu0 %v7987_v23, %s8978_s8 }
0x2393   :  { %v2317_v63 = vadd.f32 %v7122_v19, %v2268_v22  ;;  %v2322_v55 = vmax.f32 %v2314_v54, 0.0 }
0x2395   :  { %v2323_v56 = vmax.f32 %v2317_v63, 0.0 }
0x2397   :  { %v7992_v58 = vpack.i.bf16 %v2323_v56, %v2322_v55 }
0x2399   :  { %7993 = vrot.lane.b32.xlu1 %v7992_v58, %s8978_s8 }
0x2404   :  { %v7989_v59 = vpop.permute.xlu0 %7988 }
0x2405   :  { %v7991_v60 = vunpack.i.h.bf16 %v7989_v59  ;;  %v7990_v1 = vunpack.i.l.bf16 %v7989_v59 }
0x2407   :  { %v2329_v53 = vsel %vm1086_vm9, %v7991_v60, %v2321_v47  ;;  %v2326_v2 = vsel %vm1086_vm9, %v7990_v1, %v2320_v43 }
0x2408   :  { %v7997_v8 = vpack.i.bf16 %v2329_v53, %v2326_v2 }
0x240a   :  { %7998 = vrot.lane.b32.xlu0 %v7997_v8, %s8978_s8 }
0x240b   :  { %v7994_v37 = vpop.permute.xlu1 %7993 }
0x240c   :  { %v7996_v20 = vunpack.i.h.bf16 %v7994_v37  ;;  %v7995_v21 = vunpack.i.l.bf16 %v7994_v37 }
0x240e   :  { %v2335_v13 = vsel %vm1086_vm9, %v7996_v20, %v2323_v56  ;;  %v2332_v18 = vsel %vm1086_vm9, %v7995_v21, %v2322_v55 }
0x240f   :  { %v8002_v26 = vpack.i.bf16 %v2335_v13, %v2332_v18 }
0x2411   :  { %8003 = vrot.lane.b32.xlu1 %v8002_v26, %s8978_s8 }
0x247c   :  { %v7999_v49 = vpop.permute.xlu0 %7998 }
0x247d   :  { %v8001_v14 = vunpack.i.h.bf16 %v7999_v49  ;;  %v8000_v27 = vunpack.i.l.bf16 %v7999_v49 }
0x247f   :  { %v2345_v7 = vsel %vm1086_vm9, %v8001_v14, %v2321_v47  ;;  %v2344_v32 = vsel %vm1086_vm9, %v8000_v27, %v2320_v43 }
0x2480   :  { %v8007_v41 = vpack.i.bf16 %v2345_v7, %v2344_v32 }
0x2482   :  { %8008 = vrot.lane.b32.xlu0 %v8007_v41, %s8979_s9 }
0x2483   :  { %v8004_v30 = vpop.permute.xlu1 %8003 }
0x2484   :  { %v8006_v24 = vunpack.i.h.bf16 %v8004_v30  ;;  %v8005_v44 = vunpack.i.l.bf16 %v8004_v30 }
0x2486   :  { %v2347_v45 = vsel %vm1086_vm9, %v8006_v24, %v2323_v56  ;;  %v2346_v16 = vsel %vm1086_vm9, %v8005_v44, %v2322_v55 }
0x2487   :  { %v8012_v11 = vpack.i.bf16 %v2347_v45, %v2346_v16 }
0x2489   :  { %8013 = vrot.lane.b32.xlu1 %v8012_v11, %s8979_s9 }
0x24f4   :  { %v8009_v25 = vpop.permute.xlu0 %8008 }
0x24f5   :  { %v8011_v33 = vunpack.i.h.bf16 %v8009_v25  ;;  %v8010_v12 = vunpack.i.l.bf16 %v8009_v25 }
0x24f7   :  { %v2365_v4 = vmax.f32 %v2321_v47, %v8011_v33  ;;  %v2364_v10 = vmax.f32 %v2320_v43, %v8010_v12 }
0x24f9   :  { %v8017_v0 = vpack.i.bf16 %v2365_v4, %v2364_v10 }
0x24fb   :  { %v8014_v48 = vpop.permute.xlu1 %8013  ;;  %8018 = vrot.lane.b32.xlu0 %v8017_v0, %s8978_s8 }
0x24fc   :  { %v8016_v62 = vunpack.i.h.bf16 %v8014_v48  ;;  %v8015_v19 = vunpack.i.l.bf16 %v8014_v48 }
0x24fe   :  { %v2367_v34 = vmax.f32 %v2323_v56, %v8016_v62  ;;  %v2366_v35 = vmax.f32 %v2322_v55, %v8015_v19 }
0x2500   :  { %v8022_v17 = vpack.i.bf16 %v2367_v34, %v2366_v35 }
0x2502   :  { %8023 = vrot.lane.b32.xlu1 %v8022_v17, %s8978_s8 }
0x256d   :  { %v8019_v38 = vpop.permute.xlu0 %8018 }
0x256e   :  { %v8021_v39 = vunpack.i.h.bf16 %v8019_v38  ;;  %v8020_v40 = vunpack.i.l.bf16 %v8019_v38 }
0x2570   :  { %v2373_v42 = vsel %vm1086_vm9, %v8021_v39, %v2365_v4  ;;  %v2370_v50 = vsel %vm1086_vm9, %v8020_v40, %v2364_v10 }
0x2571   :  { %v8027_v47 = vpack.i.bf16 %v2373_v42, %v2370_v50 }
0x2573   :  { %8028 = vrot.lane.b32.xlu0 %v8027_v47, %s8978_s8 }
0x2574   :  { %v8024_v43 = vpop.permute.xlu1 %8023 }
0x2575   :  { %v8026_v9 = vunpack.i.h.bf16 %v8024_v43  ;;  %v8025_v52 = vunpack.i.l.bf16 %v8024_v43 }
0x2577   :  { %v2379_v61 = vsel %vm1086_vm9, %v8026_v9, %v2367_v34  ;;  %v2376_v23 = vsel %vm1086_vm9, %v8025_v52, %v2366_v35 }
0x2578   :  { %v8032_v54 = vpack.i.bf16 %v2379_v61, %v2376_v23 }
0x257a   :  { %8033 = vrot.lane.b32.xlu1 %v8032_v54, %s8978_s8 }
0x25e5   :  { %v8029_v22 = vpop.permute.xlu0 %8028 }
0x25e6   :  { %v8031_v63 = vunpack.i.h.bf16 %v8029_v22  ;;  %v8030_v55 = vunpack.i.l.bf16 %v8029_v22 }
0x25e8   :  { %v2389_v56 = vsel %vm1086_vm9, %v8031_v63, %v2365_v4  ;;  %v2388_v58 = vsel %vm1086_vm9, %v8030_v55, %v2364_v10 }
0x25e9   :  { %v8037_v59 = vpack.i.bf16 %v2389_v56, %v2388_v58 }
0x25eb   :  { %8038 = vrot.lane.b32.xlu0 %v8037_v59, %s8986_s21 }
0x25ec   :  { %v8034_v60 = vpop.permute.xlu1 %8033 }
0x25ed   :  { %v8036_v1 = vunpack.i.h.bf16 %v8034_v60  ;;  %v8035_v53 = vunpack.i.l.bf16 %v8034_v60 }
0x25ef   :  { %v2391_v2 = vsel %vm1086_vm9, %v8036_v1, %v2367_v34  ;;  %v2390_v8 = vsel %vm1086_vm9, %v8035_v53, %v2366_v35 }
0x25f0   :  { %v8042_v37 = vpack.i.bf16 %v2391_v2, %v2390_v8 }
0x25f2   :  { %8043 = vrot.lane.b32.xlu1 %v8042_v37, %s8986_s21 }
0x265d   :  { %v8039_v20 = vpop.permute.xlu0 %8038 }
0x265e   :  { %v8041_v21 = vunpack.i.h.bf16 %v8039_v20  ;;  %v8040_v13 = vunpack.i.l.bf16 %v8039_v20 }
0x2660   :  { %v2409_v18 = vmax.f32 %v2365_v4, %v8041_v21  ;;  %v2408_v26 = vmax.f32 %v2364_v10, %v8040_v13 }
0x2662   :  { %v8047_v49 = vpack.i.bf16 %v2409_v18, %v2408_v26 }
0x2664   :  { %v8044_v14 = vpop.permute.xlu1 %8043  ;;  %8048 = vrot.lane.b32.xlu0 %v8047_v49, %s8978_s8 }
0x2665   :  { %v8046_v27 = vunpack.i.h.bf16 %v8044_v14  ;;  %v8045_v7 = vunpack.i.l.bf16 %v8044_v14 }
0x2667   :  { %v2411_v32 = vmax.f32 %v2367_v34, %v8046_v27  ;;  %v2410_v41 = vmax.f32 %v2366_v35, %v8045_v7 }
0x2669   :  { %v8052_v30 = vpack.i.bf16 %v2411_v32, %v2410_v41 }
0x266b   :  { %8053 = vrot.lane.b32.xlu1 %v8052_v30, %s8978_s8 }
0x26d6   :  { %v8049_v24 = vpop.permute.xlu0 %8048 }
0x26d7   :  { %v8051_v44 = vunpack.i.h.bf16 %v8049_v24  ;;  %v8050_v45 = vunpack.i.l.bf16 %v8049_v24 }
0x26d9   :  { %v2417_v16 = vsel %vm1086_vm9, %v8051_v44, %v2409_v18  ;;  %v2414_v11 = vsel %vm1086_vm9, %v8050_v45, %v2408_v26 }
0x26da   :  { %v8057_v25 = vpack.i.bf16 %v2417_v16, %v2414_v11 }
0x26dc   :  { %8058 = vrot.lane.b32.xlu0 %v8057_v25, %s8978_s8 }
0x26dd   :  { %v8054_v33 = vpop.permute.xlu1 %8053 }
0x26de   :  { %v8056_v12 = vunpack.i.h.bf16 %v8054_v33  ;;  %v8055_v4 = vunpack.i.l.bf16 %v8054_v33 }
0x26e0   :  { %v2423_v10 = vsel %vm1086_vm9, %v8056_v12, %v2411_v32  ;;  %v2420_v0 = vsel %vm1086_vm9, %v8055_v4, %v2410_v41 }
0x26e1   :  { %v8062_v48 = vpack.i.bf16 %v2423_v10, %v2420_v0 }
0x26e3   :  { %8063 = vrot.lane.b32.xlu1 %v8062_v48, %s8978_s8 }
0x274e   :  { %v8059_v62 = vpop.permute.xlu0 %8058 }
0x274f   :  { %v8061_v19 = vunpack.i.h.bf16 %v8059_v62  ;;  %v8060_v34 = vunpack.i.l.bf16 %v8059_v62 }
0x2751   :  { %v2433_v35 = vsel %vm1086_vm9, %v8061_v19, %v2409_v18  ;;  %v2432_v17 = vsel %vm1086_vm9, %v8060_v34, %v2408_v26 }
0x2752   :  { %v8067_v38 = vpack.i.bf16 %v2433_v35, %v2432_v17 }
0x2754   :  { %8068 = vrot.lane.b32.xlu0 %v8067_v38, %s8979_s9 }
0x2755   :  { %v8064_v39 = vpop.permute.xlu1 %8063 }
0x2756   :  { %v8066_v40 = vunpack.i.h.bf16 %v8064_v39  ;;  %v8065_v42 = vunpack.i.l.bf16 %v8064_v39 }
0x2758   :  { %v2435_v50 = vsel %vm1086_vm9, %v8066_v40, %v2411_v32  ;;  %v2434_v47 = vsel %vm1086_vm9, %v8065_v42, %v2410_v41 }
0x2759   :  { %v8072_v43 = vpack.i.bf16 %v2435_v50, %v2434_v47 }
0x275b   :  { %8073 = vrot.lane.b32.xlu1 %v8072_v43, %s8979_s9 }
0x27c6   :  { %v8069_v9 = vpop.permute.xlu0 %8068 }
0x27c7   :  { %v8071_v52 = vunpack.i.h.bf16 %v8069_v9  ;;  %v8070_v61 = vunpack.i.l.bf16 %v8069_v9 }
0x27c9   :  { %v2453_v23 = vsel %vm9377_vm11, %v8071_v52, %v2409_v18  ;;  %v2452_v54 = vsel %vm9377_vm11, %v8070_v61, %v2408_v26 }
0x27ca   :  { %v8077_v22 = vpack.i.bf16 %v2453_v23, %v2452_v54 }
0x27cc   :  { %8078 = vrot.lane.b32.xlu0 %v8077_v22, %s8978_s8 }
0x27cd   :  { %v8074_v63 = vpop.permute.xlu1 %8073 }
0x27ce   :  { %v8076_v55 = vunpack.i.h.bf16 %v8074_v63  ;;  %v8075_v56 = vunpack.i.l.bf16 %v8074_v63 }
0x27d0   :  { %v2455_v58 = vsel %vm9377_vm11, %v8076_v55, %v2411_v32  ;;  %v2454_v59 = vsel %vm9377_vm11, %v8075_v56, %v2410_v41 }
0x27d1   :  { %v8082_v60 = vpack.i.bf16 %v2455_v58, %v2454_v59 }
0x27d3   :  { %8083 = vrot.lane.b32.xlu1 %v8082_v60, %s8978_s8 }
0x283e   :  { %v8079_v1 = vpop.permute.xlu0 %8078 }
0x283f   :  { %v8081_v53 = vunpack.i.h.bf16 %v8079_v1  ;;  %v8080_v2 = vunpack.i.l.bf16 %v8079_v1 }
0x2841   :  { %v2461_v8 = vsel %vm1086_vm9, %v8081_v53, %v2453_v23  ;;  %v2458_v37 = vsel %vm1086_vm9, %v8080_v2, %v2452_v54 }
0x2842   :  { %v8087_v20 = vpack.i.bf16 %v2461_v8, %v2458_v37 }
0x2844   :  { %8088 = vrot.lane.b32.xlu0 %v8087_v20, %s8978_s8 }
0x2845   :  { %v8084_v21 = vpop.permute.xlu1 %8083 }
0x2846   :  { %v8086_v13 = vunpack.i.h.bf16 %v8084_v21  ;;  %v8085_v18 = vunpack.i.l.bf16 %v8084_v21 }
0x2848   :  { %v2467_v26 = vsel %vm1086_vm9, %v8086_v13, %v2455_v58  ;;  %v2464_v49 = vsel %vm1086_vm9, %v8085_v18, %v2454_v59 }
0x2849   :  { %v8092_v14 = vpack.i.bf16 %v2467_v26, %v2464_v49 }
0x284b   :  { %8093 = vrot.lane.b32.xlu1 %v8092_v14, %s8978_s8 }
0x28b6   :  { %v8089_v27 = vpop.permute.xlu0 %8088 }
0x28b7   :  { %v8091_v7 = vunpack.i.h.bf16 %v8089_v27  ;;  %v8090_v32 = vunpack.i.l.bf16 %v8089_v27 }
0x28b9   :  { %v2477_v41 = vsel %vm1086_vm9, %v8091_v7, %v2453_v23  ;;  %v2476_v30 = vsel %vm1086_vm9, %v8090_v32, %v2452_v54 }
0x28ba   :  { %v8097_v24 = vpack.i.bf16 %v2477_v41, %v2476_v30 }
0x28bc   :  { %8098 = vrot.lane.b32.xlu0 %v8097_v24, %s8985_s20 }
0x28bd   :  { %v8094_v44 = vpop.permute.xlu1 %8093 }
0x28be   :  { %v8096_v45 = vunpack.i.h.bf16 %v8094_v44  ;;  %v8095_v16 = vunpack.i.l.bf16 %v8094_v44 }
0x28c0   :  { %v2479_v11 = vsel %vm1086_vm9, %v8096_v45, %v2455_v58  ;;  %v2478_v25 = vsel %vm1086_vm9, %v8095_v16, %v2454_v59 }
0x28c1   :  { %v8102_v33 = vpack.i.bf16 %v2479_v11, %v2478_v25 }
0x28c3   :  { %8103 = vrot.lane.b32.xlu1 %v8102_v33, %s8985_s20 }
0x292e   :  { %v8099_v12 = vpop.permute.xlu0 %8098 }
0x292f   :  { %v8101_v4 = vunpack.i.h.bf16 %v8099_v12  ;;  %v8100_v10 = vunpack.i.l.bf16 %v8099_v12 }
0x2931   :  { %v2497_v0 = vsel %vm9394_vm14, %v8101_v4, %v2453_v23  ;;  %v2496_v48 = vsel %vm9394_vm14, %v8100_v10, %v2452_v54 }
0x2932   :  { %v8107_v62 = vpack.i.bf16 %v2497_v0, %v2496_v48 }
0x2934   :  { %8108 = vrot.lane.b32.xlu0 %v8107_v62, %s8978_s8 }
0x2935   :  { %v8104_v19 = vpop.permute.xlu1 %8103 }
0x2936   :  { %v8106_v34 = vunpack.i.h.bf16 %v8104_v19  ;;  %v8105_v35 = vunpack.i.l.bf16 %v8104_v19 }
0x2938   :  { %v2499_v17 = vsel %vm9394_vm14, %v8106_v34, %v2455_v58  ;;  %v2498_v38 = vsel %vm9394_vm14, %v8105_v35, %v2454_v59 }
0x2939   :  { %v8112_v39 = vpack.i.bf16 %v2499_v17, %v2498_v38 }
0x293b   :  { %8113 = vrot.lane.b32.xlu1 %v8112_v39, %s8978_s8 }
0x29a6   :  { %v8109_v40 = vpop.permute.xlu0 %8108 }
0x29a7   :  { %v8111_v42 = vunpack.i.h.bf16 %v8109_v40  ;;  %v8110_v50 = vunpack.i.l.bf16 %v8109_v40 }
0x29a9   :  { %v2505_v47 = vsel %vm1086_vm9, %v8111_v42, %v2497_v0  ;;  %v2502_v43 = vsel %vm1086_vm9, %v8110_v50, %v2496_v48 }
0x29aa   :  { %v8117_v9 = vpack.i.bf16 %v2505_v47, %v2502_v43 }
0x29ac   :  { %8118 = vrot.lane.b32.xlu0 %v8117_v9, %s8978_s8  ;;  %v2544_v9 = vshra.s32 %v9079_v6, 1 }
0x29ad   :  { %v8114_v52 = vpop.permute.xlu1 %8113 }
0x29ae   :  { %v8116_v61 = vunpack.i.h.bf16 %v8114_v52  ;;  %v8115_v23 = vunpack.i.l.bf16 %v8114_v52  ;;  %v2545_v52 = vand.u32 3, %v2544_v9 }
0x29b0   :  { %v2511_v54 = vsel %vm1086_vm9, %v8116_v61, %v2499_v17  ;;  %v2508_v36 = vsel %vm1086_vm9, %v8115_v23, %v2498_v38  ;;  %vm2546_vm14 = vcmp.ge.s32.totalorder %v2545_v52, 1 }
0x29b1   :  { %v8122_v22 = vpack.i.bf16 %v2511_v54, %v2508_v36 }
0x29b3   :  { %8123 = vrot.lane.b32.xlu1 %v8122_v22, %s8978_s8 }
0x2a1e   :  { %v8119_v63 = vpop.permute.xlu0 %8118 }
0x2a1f   :  { %v8121_v55 = vunpack.i.h.bf16 %v8119_v63  ;;  %v8120_v56 = vunpack.i.l.bf16 %v8119_v63 }
0x2a21   :  { %v2521_v58 = vsel %vm1086_vm9, %v8121_v55, %v2497_v0  ;;  %v2520_v59 = vsel %vm1086_vm9, %v8120_v56, %v2496_v48 }
0x2a22   :  { %v8127_v60 = vpack.i.bf16 %v2521_v58, %v2520_v59 }
0x2a24   :  { %8128 = vrot.lane.b32.xlu0 %v8127_v60, %s8986_s21 }
0x2a25   :  { %v8124_v1 = vpop.permute.xlu1 %8123 }
0x2a26   :  { %v8126_v53 = vunpack.i.h.bf16 %v8124_v1  ;;  %v8125_v2 = vunpack.i.l.bf16 %v8124_v1 }
0x2a28   :  { %v2523_v8 = vsel %vm1086_vm9, %v8126_v53, %v2499_v17  ;;  %v2522_v37 = vsel %vm1086_vm9, %v8125_v2, %v2498_v38 }
0x2a29   :  { %v8132_v20 = vpack.i.bf16 %v2523_v8, %v2522_v37 }
0x2a2b   :  { %8133 = vrot.lane.b32.xlu1 %v8132_v20, %s8986_s21 }
0x2a96   :  { %v8129_v21 = vpop.permute.xlu0 %8128 }
0x2a97   :  { %v8131_v13 = vunpack.i.h.bf16 %v8129_v21  ;;  %v8130_v18 = vunpack.i.l.bf16 %v8129_v21 }
0x2a99   :  { %v2541_v26 = vsel %vm9406_vm5, %v8131_v13, %v2497_v0  ;;  %v2540_v49 = vsel %vm9406_vm5, %v8130_v18, %v2496_v48 }
0x2a9a   :  { %v8137_v14 = vpack.i.bf16 %v2541_v26, %v2540_v49 }
0x2a9c   :  { %8138 = vrot.lane.b32.xlu0 %v8137_v14, %s8978_s8 }
0x2a9d   :  { %v8134_v27 = vpop.permute.xlu1 %8133 }
0x2a9e   :  { %v8136_v7 = vunpack.i.h.bf16 %v8134_v27  ;;  %v8135_v32 = vunpack.i.l.bf16 %v8134_v27 }
0x2aa0   :  { %v2543_v41 = vsel %vm9406_vm5, %v8136_v7, %v2499_v17  ;;  %v2542_v30 = vsel %vm9406_vm5, %v8135_v32, %v2498_v38  ;;  %vm2547_vm5 = vcmp.lt.s32.totalorder %v2545_v52, 2 }
0x2aa1   :  { %v8142_v24 = vpack.i.bf16 %v2543_v41, %v2542_v30  ;;  %vm2548_vm2 = vmand %vm2546_vm14, %vm2547_vm5 }
0x2aa3   :  { %8143 = vrot.lane.b32.xlu1 %v8142_v24, %s8978_s8 }
0x2b0e   :  { %v8139_v44 = vpop.permute.xlu0 %8138 }
0x2b0f   :  { %v8141_v45 = vunpack.i.h.bf16 %v8139_v44  ;;  %v8140_v16 = vunpack.i.l.bf16 %v8139_v44 }
0x2b11   :  { %v2554_v11 = vsel %vm1086_vm9, %v8141_v45, %v2541_v26  ;;  %v2551_v25 = vsel %vm1086_vm9, %v8140_v16, %v2540_v49 }
0x2b12   :  { %v8147_v33 = vpack.i.bf16 %v2554_v11, %v2551_v25 }
0x2b14   :  { %8148 = vrot.lane.b32.xlu0 %v8147_v33, %s8978_s8 }
0x2b15   :  { %v8144_v12 = vpop.permute.xlu1 %8143 }
0x2b16   :  { %v8146_v4 = vunpack.i.h.bf16 %v8144_v12  ;;  %v8145_v10 = vunpack.i.l.bf16 %v8144_v12 }
0x2b18   :  { %v2560_v0 = vsel %vm1086_vm9, %v8146_v4, %v2543_v41  ;;  %v2557_v51 = vsel %vm1086_vm9, %v8145_v10, %v2542_v30  ;;  %v2617_v10 = vld [vmem:[%s11819_s2 + $0xc0] sm:$0xff] }
0x2b19   :  { %v8152_v48 = vpack.i.bf16 %v2560_v0, %v2557_v51  ;;  %v2619_v0 = vld [vmem:[%s11819_s2 + $0xd0] sm:$0xff]  ;;  %v2618_v51 = vld [vmem:[%s11819_s2 + $0xc8] sm:$0xff] }
0x2b1b   :  { %8153 = vrot.lane.b32.xlu1 %v8152_v48, %s8978_s8  ;;  %s9003_s8 = smov 4   ;;  %v2621_v48 = vld [vmem:[%s11819_s2 + $0xe0] sm:$0xff] }
0x2b86   :  { %v8149_v62 = vpop.permute.xlu0 %8148 }
0x2b87   :  { %v8151_v19 = vunpack.i.h.bf16 %v8149_v62  ;;  %v8150_v34 = vunpack.i.l.bf16 %v8149_v62  ;;  %v2620_v62 = vld [vmem:[%s11819_s2 + $0xd8] sm:$0xff] }
0x2b89   :  { %v2570_v35 = vsel %vm1086_vm9, %v8151_v19, %v2541_v26  ;;  %v2569_v17 = vsel %vm1086_vm9, %v8150_v34, %v2540_v49  ;;  %v2623_v19 = vld [vmem:[%s11819_s2 + $0xf0] sm:$0xff]  ;;  %v8733_v34 = vld [vmem:[%s11818_s1 + $0x1e4] ss:$20 sps:$4 sm:$0xff]  }
0x2b8a   :  { %v8157_v38 = vpack.i.bf16 %v2570_v35, %v2569_v17  ;;  %v2622_v35 = vld [vmem:[%s11819_s2 + $0xe8] sm:$0xff]  ;;  %2904 = vmatprep.mubr.bf16.mxu0 %v8733_v34 }
0x2b8b   :  { %v8734_v17 = vld [vmem:[%s11818_s1 + $0x1e8] ss:$20 sps:$4 sm:$0xff]  }
0x2b8c   :  { %8158 = vrot.lane.b32.xlu0 %v8157_v38, %s8985_s20  ;;  %v2624_v38 = vld [vmem:[%s11819_s2 + $0xf8] sm:$0xff]  ;;  %7127 = vmatprep.mubr.msk.bf16.mxu1 %vm1527_vm4, %v8734_v17 }
0x2b8d   :  { %v8154_v39 = vpop.permute.xlu1 %8153 }
0x2b8e   :  { %v8156_v40 = vunpack.i.h.bf16 %v8154_v39  ;;  %v8155_v42 = vunpack.i.l.bf16 %v8154_v39  ;;  %v2595_v39 = vand.u32 1, %v9079_v6 }
0x2b90   :  { %v2572_v50 = vsel %vm1086_vm9, %v8156_v40, %v2543_v41  ;;  %v2571_v47 = vsel %vm1086_vm9, %v8155_v42, %v2542_v30  ;;  %vm2625_vm9 = vcmask 1047584   ;;  %v2596_v40 = vand.u32 1, %v2544_v9 }
0x2b91   :  { %v8162_v43 = vpack.i.bf16 %v2572_v50, %v2571_v47  ;;  %vm10351_vm7 = vcmp.ge.s32.totalorder %v2595_v39, 1  ;;  %vm10362_vm12 = vcmp.lt.s32.totalorder %v2595_v39, 1 }
0x2b92   :  { %vm2597_vm15 = vcmp.ge.s32.totalorder %v2596_v40, 1  ;;  %vm2598_vm8 = vcmp.lt.s32.totalorder %v2596_v40, 1  ;;  %vm10376_vm10 = vmpackc.low %vm10362_vm12, %vm10362_vm12 }
0x2b93   :  { %8163 = vrot.lane.b32.xlu1 %v8162_v43, %s8985_s20  ;;  %vm2650_vm3 = vmand %vm2597_vm15, %vm10351_vm7 }
0x2b94   :  { %vm10358_vm0 = vmpackc.low %vm2650_vm3, %vm2650_vm3 }
0x2b95   :  { %vm2735_vm6 = vmand %vm2598_vm8, %vm10362_vm12 }
0x2b96   :  { %vm10380_vm1 = vmpackc.low %vm2735_vm6, %vm2735_vm6 }
0x2b97   :  { %vm10388_vm14 = vmpackc.low %vm2597_vm15, %vm2597_vm15 }
0x2b98   :  { %vm2722_vm5 = vmand %vm2598_vm8, %vm10351_vm7 }
0x2b99   :  { %vm10408_vm3 = vmpackc.low %vm2722_vm5, %vm2722_vm5 }
0x2b9a   :  { %vm10450_vm6 = vmpackc.low %vm10351_vm7, %vm10351_vm7  ;;  %vm3410_vm7 = vcmask 523264  }
0x2bfe   :  { %v8159_v61 = vpop.permute.xlu0 %8158 }
0x2bff   :  { %v8161_v23 = vunpack.i.h.bf16 %v8159_v61  ;;  %v8160_v54 = vunpack.i.l.bf16 %v8159_v61 }
0x2c01   :  { %v2592_v36 = vsel %vm2548_vm2, %v8161_v23, %v2541_v26  ;;  %v2591_v22 = vsel %vm2548_vm2, %v8160_v54, %v2540_v49 }
0x2c02   :  { %v8167_v63 = vpack.i.bf16 %v2592_v36, %v2591_v22  ;;  %v2750_v55 = vpack.c.bf16 %v2592_v36, %v2591_v22 }
0x2c04   :  { %8168 = vrot.lane.b32.xlu0 %v8167_v63, %s9003_s8  ;;  %6748 = vmatprep.subr.bf16.mxu0 %v2750_v55  ;;  %v5473_v55 = vpack.c.bf16 %v9282_v31, %v9282_v31  ;;  %v8814_v31 = vld [vmem:[%s11818_s1 + $0x3f0] ss:$20 sps:$4 sm:$0xff]  }
0x2c05   :  { %v8164_v56 = vpop.permute.xlu1 %8163 }
0x2c06   :  { %v8166_v58 = vunpack.i.h.bf16 %v8164_v56  ;;  %v8165_v59 = vunpack.i.l.bf16 %v8164_v56 }
0x2c08   :  { %v10290_v60 = vsel %vm2548_vm2, %v8166_v58, %v2543_v41  ;;  %v10292_v1 = vsel %vm2548_vm2, %v8165_v59, %v2542_v30  ;;  %vm2691_vm2 = vmand %vm2597_vm15, %vm10362_vm12  ;;  %v8826_v59 = vld [vmem:[%s11818_s1 + $0x440] ss:$20 sps:$4 sm:$0xff]  }
0x2c09   :  { %v8172_v53 = vpack.i.bf16 %v10290_v60, %v10292_v1  ;;  %v2751_v23 = vpack.c.bf16 %v10290_v60, %v10292_v1  ;;  %vm10419_vm15 = vmpackc.low %vm2691_vm2, %vm2691_vm2 }
0x2c0a   :  { %vm10438_vm12 = vmpackc.low %vm2598_vm8, %vm2598_vm8  ;;  %vm5515_vm8 = vcmask 64512  }
0x2c0b   :  { %8173 = vrot.lane.b32.xlu1 %v8172_v53, %s9003_s8 }
0x2c76   :  { %v8169_v2 = vpop.permute.xlu0 %8168 }
0x2c77   :  { %v8171_v8 = vunpack.i.h.bf16 %v8169_v2  ;;  %v8170_v37 = vunpack.i.l.bf16 %v8169_v2 }
0x2c79   :  { %v2631_v20 = vsel %vm2625_vm9, %v8171_v8, %v2592_v36  ;;  %v2628_v21 = vsel %vm2625_vm9, %v8170_v37, %v2591_v22  ;;  %v8813_v37 = vld [vmem:[%s11818_s1 + $0x3e8] ss:$20 sps:$4 sm:$0xff]  }
0x2c7a   :  { %v8177_v13 = vpack.i.bf16 %v2631_v20, %v2628_v21 }
0x2c7c   :  { %8178 = vrot.lane.b32.xlu0 %v8177_v13, %s9003_s8 }
0x2c7d   :  { %v8174_v18 = vpop.permute.xlu1 %8173 }
0x2c7e   :  { %v8176_v26 = vunpack.i.h.bf16 %v8174_v18  ;;  %v8175_v49 = vunpack.i.l.bf16 %v8174_v18 }
0x2c80   :  { %v2637_v14 = vsel %vm2625_vm9, %v8176_v26, %v10290_v60  ;;  %v2634_v27 = vsel %vm2625_vm9, %v8175_v49, %v10292_v1 }
0x2c81   :  { %v8182_v7 = vpack.i.bf16 %v2637_v14, %v2634_v27 }
0x2c83   :  { %8183 = vrot.lane.b32.xlu1 %v8182_v7, %s9003_s8 }
0x2cee   :  { %v8179_v32 = vpop.permute.xlu0 %8178 }
0x2cef   :  { %v8181_v41 = vunpack.i.h.bf16 %v8179_v32  ;;  %v8180_v30 = vunpack.i.l.bf16 %v8179_v32  ;;  %v8735_v32 = vld [vmem:[%s11818_s1 + $0x210] ss:$20 sps:$4 sm:$0xff]  }
0x2cf1   :  { %v2647_v24 = vsel %vm2625_vm9, %v8181_v41, %v2592_v36  ;;  %v2646_v44 = vsel %vm2625_vm9, %v8180_v30, %v2591_v22  ;;  %v8742_v30 = vld [vmem:[%s11818_s1 + $0x238] ss:$20 sps:$4 sm:$0xff]  }
0x2cf2   :  { %v8187_v45 = vpack.i.bf16 %v2647_v24, %v2646_v44  ;;  %v8743_v44 = vld [vmem:[%s11818_s1 + $0x260] ss:$20 sps:$4 sm:$0xff]   ;;  %v9004_v24 = vmov 0.0|0.0  }
0x2cf4   :  { %8188 = vrot.lane.b32.xlu0 %v8187_v45, %s8979_s9 }
0x2cf5   :  { %v8184_v16 = vpop.permute.xlu1 %8183 }
0x2cf6   :  { %v8186_v11 = vunpack.i.h.bf16 %v8184_v16  ;;  %v8185_v25 = vunpack.i.l.bf16 %v8184_v16  ;;  %v8731_v16 = vld [vmem:[%s11818_s1 + $0x1e0] ss:$20 sps:$4 sm:$0xff]  }
0x2cf8   :  { %v2649_v33 = vsel %vm2625_vm9, %v8186_v11, %v10290_v60  ;;  %v2648_v12 = vsel %vm2625_vm9, %v8185_v25, %v10292_v1  ;;  %8198 = vrot.lane.b32.xlu0 %v8187_v45, %s8985_s20  ;;  %v8736_v11 = vld [vmem:[%s11818_s1 + $0x20c] ss:$20 sps:$4 sm:$0xff]   ;;  %v8738_v25 = vld [vmem:[%s11818_s1 + $0x208] ss:$20 sps:$4 sm:$0xff]  }
0x2cf9   :  { %v8192_v4 = vpack.i.bf16 %v2649_v33, %v2648_v12  ;;  %v8739_v33 = vld [vmem:[%s11818_s1 + $0x234] ss:$20 sps:$4 sm:$0xff]   ;;  %v8741_v12 = vld [vmem:[%s11818_s1 + $0x230] ss:$20 sps:$4 sm:$0xff]  }
0x2cfb   :  { %8193 = vrot.lane.b32.xlu1 %v8192_v4, %s8979_s9 }
0x2cfc   :  { %8208 = vrot.lane.b32.xlu0 %v8187_v45, %s9001_s29  ;;  %v8809_v45 = vld [vmem:[%s11818_s1 + $0x3ec] ss:$20 sps:$4 sm:$0xff]  }
0x2cff   :  { %8203 = vrot.lane.b32.xlu1 %v8192_v4, %s8985_s20 }
0x2d00   :  { %2762 = vperm.xlu0 %7350, %v2617_v10   ;;  %v8746_v10 = vld [vmem:[%s11818_s1 + $0x258] ss:$20 sps:$4 sm:$0xff]  }
0x2d03   :  { %8213 = vrot.lane.b32.xlu1 %v8192_v4, %s9001_s29  ;;  %v8744_v4 = vld [vmem:[%s11818_s1 + $0x25c] ss:$20 sps:$4 sm:$0xff]  }
0x2d04   :  { %2772 = vperm.xlu0 %7350, %v2619_v0  }
0x2d07   :  { %2767 = vperm.xlu1 %7451, %v2618_v51  }
0x2d08   :  { %2782 = vperm.xlu0 %7350, %v2621_v48  }
0x2d0b   :  { %2777 = vperm.xlu1 %7451, %v2620_v62  }
0x2d0c   :  { %2792 = vperm.xlu0 %7350, %v2623_v19  }
0x2d0f   :  { %2787 = vperm.xlu1 %7451, %v2622_v35  }
0x2d13   :  { %2797 = vperm.xlu1 %7451, %v2624_v38  }
0x2d66   :  { %v8189_v50 = vpop.permute.xlu0 %8188 }
0x2d67   :  { %v8191_v47 = vunpack.i.h.bf16 %v8189_v50  ;;  %v8190_v43 = vunpack.i.l.bf16 %v8189_v50 }
0x2d69   :  { %v6200_v61 = vpack.c.bf16 %v8191_v47, %v8190_v43 }
0x2d6a   :  { %v8199_v9 = vpop.permute.xlu0 %8198 }
0x2d6b   :  { %6749 = vmatpush3.bf16.msk.msra.mxu0 %vm10358_vm0, %v6200_v61  ;;  %v8201_v60 = vunpack.i.h.bf16 %v8199_v9  ;;  %v8200_v1 = vunpack.i.l.bf16 %v8199_v9 }
0x2d6c   :  { %6750 = vmatprep.subr.bf16.mxu0 %v2751_v23 }
0x2d6d   :  { %v8194_v54 = vpop.permute.xlu1 %8193  ;;  %v6206_v20 = vpack.c.bf16 %v8201_v60, %v8200_v1 }
0x2d6e   :  { %v8196_v36 = vunpack.i.h.bf16 %v8194_v54  ;;  %v8195_v22 = vunpack.i.l.bf16 %v8194_v54  ;;  %v8209_v63 = vpop.permute.xlu0 %8208 }
0x2d6f   :  { %v8211_v56 = vunpack.i.h.bf16 %v8209_v63  ;;  %v8210_v58 = vunpack.i.l.bf16 %v8209_v63 }
0x2d70   :  { %v6203_v53 = vpack.c.bf16 %v8196_v36, %v8195_v22 }
0x2d71   :  { %v6212_v2 = vpack.c.bf16 %v8211_v56, %v8210_v58  ;;  %v8204_v8 = vpop.permute.xlu1 %8203 }
0x2d72   :  { %6751 = vmatpush3.bf16.msk.msra.mxu0 %vm10358_vm0, %v6203_v53  ;;  %v8206_v21 = vunpack.i.h.bf16 %v8204_v8  ;;  %v8205_v13 = vunpack.i.l.bf16 %v8204_v8 }
0x2d73   :  { %6752 = vmatprep.subr.msk.bf16.mxu0 %vm10376_vm10, %v6200_v61  ;;  %7123 = vmatprep.subr.msk.bf16.mxu1 %vm10380_vm1, %v6212_v2 }
0x2d74   :  { %7124 = vmatpush3.bf16.msk.msra.mxu1 %vm10380_vm1, %v6212_v2  ;;  %v6209_v27 = vpack.c.bf16 %v8206_v21, %v8205_v13 }
0x2d75   :  { %v8214_v18 = vpop.permute.xlu1 %8213 }
0x2d76   :  { %v8216_v26 = vunpack.i.h.bf16 %v8214_v18  ;;  %v8215_v49 = vunpack.i.l.bf16 %v8214_v18  ;;  %6753 = vmatpush3.bf16.msk.msra.mxu0 %vm10388_vm14, %v6206_v20 }
0x2d77   :  { %6754 = vmatprep.subr.msk.bf16.mxu0 %vm10376_vm10, %v6203_v53 }
0x2d78   :  { %v6215_v7 = vpack.c.bf16 %v8216_v26, %v8215_v49 }
0x2d7a   :  { %6755 = vmatpush3.bf16.msk.msra.mxu0 %vm10388_vm14, %v6209_v27  ;;  %7125 = vmatprep.subr.msk.bf16.mxu1 %vm10380_vm1, %v6215_v7 }
0x2d7b   :  { %6756 = vmatprep.subr.msk.bf16.mxu0 %vm10408_vm3, %v6200_v61  ;;  %7126 = vmatpush3.bf16.msk.msra.mxu1 %vm10380_vm1, %v6215_v7 }
0x2d7e   :  { %6757 = vmatpush3.bf16.msk.msra.mxu0 %vm10419_vm15, %v6212_v2  ;;  %7128 = vmatmul.mubr.msk.bf16.vlgmr.msra.gmra.mrb[32].mxu1 %vm1527_vm4, %v8735_v32 }
0x2d7f   :  { %6758 = vmatprep.subr.msk.bf16.mxu0 %vm10408_vm3, %v6203_v53  ;;  %7131 = vmatprep.mubr.msk.bf16.mxu1 %vm1527_vm4, %v8742_v30  ;;  %v2763_v50 = vpop.permute.xlu0 %2762 }
0x2d82   :  { %6759 = vmatpush3.bf16.msk.msra.mxu0 %vm10419_vm15, %v6215_v7 }
0x2d83   :  { %6760 = vmatprep.subr.msk.bf16.mxu0 %vm10438_vm12, %v6206_v20  ;;  %v2773_v1 = vpop.permute.xlu0 %2772 }
0x2d86   :  { %6761 = vmatpush3.bf16.msk.msra.mxu0 %vm10450_vm6, %v6212_v2  ;;  %7132 = vmatmul.mubr.msk.bf16.gmra.mrb[36].mxu1 %vm1527_vm4, %v8743_v44  ;;  %v2768_v6 = vpop.permute.xlu1 %2767 }
0x2d87   :  { %6762 = vmatprep.subr.msk.bf16.mxu0 %vm10438_vm12, %v6209_v27 }
0x2d8a   :  { %6763 = vmatpush3.bf16.msk.msra.mxu0 %vm10450_vm6, %v6215_v7  ;;  %v2778_v21 = vpop.permute.xlu1 %2777 }
0x2d8d   :  { %2905 = vmatmul.mubr.bf16.vlgmr.msra.gmra.mrb[28].mxu0 %v8731_v16  ;;  %v2783_v16 = vpop.permute.xlu0 %2782 }
0x2d8e   :  { %2912 = vmatprep.mubr.bf16.mxu0 %v8736_v11 }
0x2d95   :  { %2913 = vmatmul.mubr.bf16.gmra.mrb[32].mxu0 %v8738_v25 }
0x2d96   :  { %2920 = vmatprep.mubr.bf16.mxu0 %v8739_v33 }
0x2d9d   :  { %2921 = vmatmul.mubr.bf16.gmra.mrb[36].mxu0 %v8741_v12 }
0x2d9e   :  { %2928 = vmatprep.mubr.bf16.mxu0 %v8744_v4  ;;  %v2788_v4 = vpop.permute.xlu1 %2787 }
0x2da5   :  { %2929 = vmatmul.mubr.bf16.gmra.mrb[40].mxu0 %v8746_v10 }
0x2e51   :  { %v7129_v0 = vpop.f32.mrb[32].mxu1 }
0x2e52   :  { %v2971_v51 = vpop.f32.mrb[33].mxu1 }
0x2e53   :  { %v7130_v48 = vpop.f32.mrb[34].mxu1 }
0x2e54   :  { %v2974_v62 = vpop.f32.mrb[35].mxu1 }
0x2e59   :  { %v7133_v19 = vpop.f32.mrb[36].mxu1 }
0x2e5a   :  { %v2987_v34 = vpop.f32.mrb[37].mxu1 }
0x2e5b   :  { %v7134_v35 = vpop.f32.mrb[38].mxu1 }
0x2e5c   :  { %v2990_v17 = vpop.f32.mrb[39].mxu1 }
0x2e60   :  { %v6764_v38 = vpop.f32.mrb[28].mxu0 }
0x2e61   :  { %v6765_v39 = vpop.f32.mrb[29].mxu0 }
0x2e62   :  { %v6766_v40 = vadd.f32 %v6765_v39, %v6764_v38  ;;  %v6767_v42 = vpop.f32.mrb[30].mxu0 }
0x2e63   :  { %v6768_v47 = vpop.f32.mrb[31].mxu0 }
0x2e64   :  { %v6769_v43 = vadd.f32 %v6768_v47, %v6767_v42  ;;  %v2907_v61 = vadd.f32 %v6766_v40, %v2763_v50  ;;  %v2793_v50 = vpop.permute.xlu0 %2792 }
0x2e66   :  { %v2972_v9 = vadd.f32 %v2971_v51, %v2907_v61  ;;  %v2910_v23 = vadd.f32 %v6769_v43, %v2768_v6 }
0x2e68   :  { %v2975_v54 = vadd.f32 %v2974_v62, %v2910_v23  ;;  %v6770_v36 = vpop.f32.mrb[32].mxu0  ;;  %v10484_v63 = vmax.f32 %v2972_v9, 0.0 }
0x2e69   :  { %v6771_v22 = vpop.f32.mrb[33].mxu0 }
0x2e6a   :  { %v10486_v56 = vmax.f32 %v2975_v54, 0.0  ;;  %v6772_v58 = vadd.f32 %v6771_v22, %v6770_v36  ;;  %v6773_v60 = vpop.f32.mrb[34].mxu0 }
0x2e6b   :  { %v6774_v53 = vpop.f32.mrb[35].mxu0 }
0x2e6c   :  { %v2915_v2 = vadd.f32 %v6772_v58, %v2773_v1  ;;  %v6775_v8 = vadd.f32 %v6774_v53, %v6773_v60  ;;  %v8217_v20 = vpack.i.bf16 %v10486_v56, %v10484_v63 }
0x2e6e   :  { %v2980_v13 = vadd.f32 %v7129_v0, %v2915_v2  ;;  %v2918_v18 = vadd.f32 %v6775_v8, %v2778_v21  ;;  %8218 = vrot.lane.b32.xlu0 %v8217_v20, %s9003_s8 }
0x2e70   :  { %v2983_v26 = vadd.f32 %v7130_v48, %v2918_v18  ;;  %v6776_v49 = vpop.f32.mrb[36].mxu0  ;;  %v10491_v7 = vmax.f32 %v2980_v13, 0.0 }
0x2e71   :  { %v6777_v27 = vpop.f32.mrb[37].mxu0 }
0x2e72   :  { %v10493_v32 = vmax.f32 %v2983_v26, 0.0  ;;  %v6778_v30 = vadd.f32 %v6777_v27, %v6776_v49  ;;  %v6779_v44 = vpop.f32.mrb[38].mxu0 }
0x2e73   :  { %v6780_v11 = vpop.f32.mrb[39].mxu0 }
0x2e74   :  { %v6781_v25 = vadd.f32 %v6780_v11, %v6779_v44  ;;  %v2923_v33 = vadd.f32 %v6778_v30, %v2783_v16  ;;  %v8222_v12 = vpack.i.bf16 %v10493_v32, %v10491_v7 }
0x2e76   :  { %v2988_v10 = vadd.f32 %v2987_v34, %v2923_v33  ;;  %8223 = vrot.lane.b32.xlu1 %v8222_v12, %s9003_s8  ;;  %v2926_v0 = vadd.f32 %v6781_v25, %v2788_v4  ;;  %v2798_v34 = vpop.permute.xlu1 %2797 }
0x2e78   :  { %v2991_v51 = vadd.f32 %v2990_v17, %v2926_v0  ;;  %v6782_v48 = vpop.f32.mrb[40].mxu0  ;;  %v10498_v38 = vmax.f32 %v2988_v10, 0.0 }
0x2e79   :  { %v6783_v62 = vpop.f32.mrb[41].mxu0 }
0x2e7a   :  { %v10500_v39 = vmax.f32 %v2991_v51, 0.0  ;;  %v6784_v40 = vadd.f32 %v6783_v62, %v6782_v48  ;;  %v6785_v42 = vpop.f32.mrb[42].mxu0 }
0x2e7b   :  { %v6786_v47 = vpop.f32.mrb[43].mxu0 }
0x2e7c   :  { %v2931_v43 = vadd.f32 %v6784_v40, %v2793_v50  ;;  %v6787_v61 = vadd.f32 %v6786_v47, %v6785_v42  ;;  %v8227_v6 = vpack.i.bf16 %v10500_v39, %v10498_v38 }
0x2e7e   :  { %v2996_v9 = vadd.f32 %v7133_v19, %v2931_v43  ;;  %v2934_v23 = vadd.f32 %v6787_v61, %v2798_v34  ;;  %8228 = vrot.lane.b32.xlu0 %v8227_v6, %s9003_s8 }
0x2e80   :  { %v2999_v17 = vadd.f32 %v7134_v35, %v2934_v23  ;;  %v10505_v54 = vmax.f32 %v2996_v9, 0.0 }
0x2e82   :  { %v10507_v36 = vmax.f32 %v2999_v17, 0.0 }
0x2e84   :  { %v8232_v22 = vpack.i.bf16 %v10507_v36, %v10505_v54 }
0x2e86   :  { %8233 = vrot.lane.b32.xlu1 %v8232_v22, %s9003_s8 }
0x2ee0   :  { %v8219_v58 = vpop.permute.xlu0 %8218 }
0x2ee1   :  { %v8221_v60 = vunpack.i.h.bf16 %v8219_v58  ;;  %v8220_v1 = vunpack.i.l.bf16 %v8219_v58 }
0x2ee3   :  { %v3047_v53 = vsel %vm2625_vm9, %v8221_v60, %v10486_v56  ;;  %v3044_v19 = vsel %vm2625_vm9, %v8220_v1, %v10484_v63 }
0x2ee4   :  { %v8237_v2 = vpack.i.bf16 %v3047_v53, %v3044_v19 }
0x2ee6   :  { %8238 = vrot.lane.b32.xlu0 %v8237_v2, %s9003_s8 }
0x2ee8   :  { %v8224_v35 = vpop.permute.xlu1 %8223 }
0x2ee9   :  { %v8226_v8 = vunpack.i.h.bf16 %v8224_v35  ;;  %v8225_v20 = vunpack.i.l.bf16 %v8224_v35 }
0x2eeb   :  { %v3053_v21 = vsel %vm2625_vm9, %v8226_v8, %v10493_v32  ;;  %v3050_v13 = vsel %vm2625_vm9, %v8225_v20, %v10491_v7  ;;  %v3035_v20 = vld [vmem:[%s11819_s2 + $0x108] sm:$0xff] }
0x2eec   :  { %v8242_v18 = vpack.i.bf16 %v3053_v21, %v3050_v13  ;;  %v3034_v21 = vld [vmem:[%s11819_s2 + $0x100] sm:$0xff] }
0x2eed   :  { %v8749_v13 = vld [vmem:[%s11818_s1 + $0x284] ss:$20 sps:$4 sm:$0xff]  }
0x2eee   :  { %8243 = vrot.lane.b32.xlu1 %v8242_v18, %s9003_s8  ;;  %3455 = vmatprep.mubr.bf16.mxu1 %v8749_v13  ;;  %v8752_v18 = vld [vmem:[%s11818_s1 + $0x28c] ss:$20 sps:$4 sm:$0xff]  }
0x2eef   :  { %3520 = vmatprep.mubr.bf16.mxu0 %v8752_v18 }
0x2ef0   :  { %v8229_v26 = vpop.permute.xlu0 %8228 }
0x2ef1   :  { %v8231_v49 = vunpack.i.h.bf16 %v8229_v26  ;;  %v8230_v27 = vunpack.i.l.bf16 %v8229_v26  ;;  %v3037_v26 = vld [vmem:[%s11819_s2 + $0x118] sm:$0xff] }
0x2ef3   :  { %v3059_v30 = vsel %vm2625_vm9, %v8231_v49, %v10500_v39  ;;  %v3056_v44 = vsel %vm2625_vm9, %v8230_v27, %v10498_v38  ;;  %v3036_v49 = vld [vmem:[%s11819_s2 + $0x110] sm:$0xff]  ;;  %v3039_v27 = vld [vmem:[%s11819_s2 + $0x128] sm:$0xff] }
0x2ef4   :  { %v8247_v16 = vpack.i.bf16 %v3059_v30, %v3056_v44  ;;  %v3038_v30 = vld [vmem:[%s11819_s2 + $0x120] sm:$0xff]  ;;  %v3041_v44 = vld [vmem:[%s11819_s2 + $0x138] sm:$0xff] }
0x2ef6   :  { %8248 = vrot.lane.b32.xlu0 %v8247_v16, %s9003_s8  ;;  %v3040_v16 = vld [vmem:[%s11819_s2 + $0x130] sm:$0xff] }
0x2ef8   :  { %v8234_v11 = vpop.permute.xlu1 %8233 }
0x2ef9   :  { %v8236_v25 = vunpack.i.h.bf16 %v8234_v11  ;;  %v8235_v33 = vunpack.i.l.bf16 %v8234_v11 }
0x2efb   :  { %v3065_v12 = vsel %vm2625_vm9, %v8236_v25, %v10507_v36  ;;  %v3062_v4 = vsel %vm2625_vm9, %v8235_v33, %v10505_v54 }
0x2efc   :  { %v8252_v10 = vpack.i.bf16 %v3065_v12, %v3062_v4 }
0x2efe   :  { %8253 = vrot.lane.b32.xlu1 %v8252_v10, %s9003_s8 }
0x2f58   :  { %v8239_v0 = vpop.permute.xlu0 %8238 }
0x2f59   :  { %v8241_v51 = vunpack.i.h.bf16 %v8239_v0  ;;  %v8240_v48 = vunpack.i.l.bf16 %v8239_v0 }
0x2f5b   :  { %v3083_v62 = vsel %vm2625_vm9, %v8241_v51, %v10486_v56  ;;  %v3082_v40 = vsel %vm2625_vm9, %v8240_v48, %v10484_v63  ;;  %v10594_v48 = vpack.c.bf16 %v10486_v56, %v10484_v63 }
0x2f5c   :  { %v8262_v42 = vpack.i.bf16 %v3083_v62, %v3082_v40 }
0x2f5e   :  { %8263 = vrot.lane.b32.xlu1 %v8262_v42, %s8979_s9  ;;  %8258 = vrot.lane.b32.xlu0 %v8262_v42, %s9001_s29 }
0x2f60   :  { %v8244_v50 = vpop.permute.xlu1 %8243 }
0x2f61   :  { %v8246_v47 = vunpack.i.h.bf16 %v8244_v50  ;;  %v8245_v43 = vunpack.i.l.bf16 %v8244_v50 }
0x2f63   :  { %v3085_v61 = vsel %vm2625_vm9, %v8246_v47, %v10493_v32  ;;  %v3084_v6 = vsel %vm2625_vm9, %v8245_v43, %v10491_v7 }
0x2f64   :  { %v8272_v34 = vpack.i.bf16 %v3085_v61, %v3084_v6  ;;  %v10608_v61 = vpack.c.bf16 %v10493_v32, %v10491_v7 }
0x2f66   :  { %8273 = vrot.lane.b32.xlu1 %v8272_v34, %s8979_s9  ;;  %8268 = vrot.lane.b32.xlu0 %v8272_v34, %s9001_s29 }
0x2f68   :  { %v8249_v9 = vpop.permute.xlu0 %8248 }
0x2f69   :  { %v8251_v23 = vunpack.i.h.bf16 %v8249_v9  ;;  %v8250_v17 = vunpack.i.l.bf16 %v8249_v9 }
0x2f6b   :  { %v3087_v22 = vsel %vm2625_vm9, %v8251_v23, %v10500_v39  ;;  %v3086_v58 = vsel %vm2625_vm9, %v8250_v17, %v10498_v38 }
0x2f6c   :  { %v8282_v60 = vpack.i.bf16 %v3087_v22, %v3086_v58  ;;  %v10622_v58 = vpack.c.bf16 %v10500_v39, %v10498_v38 }
0x2f6e   :  { %8283 = vrot.lane.b32.xlu1 %v8282_v60, %s8979_s9  ;;  %8278 = vrot.lane.b32.xlu0 %v8282_v60, %s9001_s29 }
0x2f70   :  { %v8254_v1 = vpop.permute.xlu1 %8253 }
0x2f71   :  { %v8256_v53 = vunpack.i.h.bf16 %v8254_v1  ;;  %v8255_v19 = vunpack.i.l.bf16 %v8254_v1 }
0x2f73   :  { %v3089_v2 = vsel %vm2625_vm9, %v8256_v53, %v10507_v36  ;;  %v3088_v35 = vsel %vm2625_vm9, %v8255_v19, %v10505_v54 }
0x2f74   :  { %v8292_v8 = vpack.i.bf16 %v3089_v2, %v3088_v35 }
0x2f76   :  { %8293 = vrot.lane.b32.xlu1 %v8292_v8, %s8979_s9  ;;  %8288 = vrot.lane.b32.xlu0 %v8292_v8, %s9001_s29 }
0x2f7a   :  { %8303 = vrot.lane.b32.xlu1 %v8272_v34, %s8985_s20  ;;  %8298 = vrot.lane.b32.xlu0 %v8262_v42, %s8985_s20 }
0x2f7e   :  { %8313 = vrot.lane.b32.xlu1 %v8292_v8, %s8985_s20  ;;  %8308 = vrot.lane.b32.xlu0 %v8282_v60, %s8985_s20 }
0x2f82   :  { %3277 = vperm.xlu1 %7451, %v3035_v20   ;;  %3272 = vperm.xlu0 %7350, %v3034_v21   ;;  %v10636_v21 = vpack.c.bf16 %v10507_v36, %v10505_v54 }
0x2f86   :  { %3287 = vperm.xlu1 %7451, %v3037_v26   ;;  %3282 = vperm.xlu0 %7350, %v3036_v49  }
0x2f8a   :  { %3297 = vperm.xlu1 %7451, %v3039_v27   ;;  %3292 = vperm.xlu0 %7350, %v3038_v30  }
0x2f8e   :  { %3307 = vperm.xlu1 %7451, %v3041_v44   ;;  %3302 = vperm.xlu0 %7350, %v3040_v16  }
0x2fd0   :  { %v8264_v11 = vpop.permute.xlu1 %8263  ;;  %v8259_v25 = vpop.permute.xlu0 %8258 }
0x2fd1   :  { %v8266_v33 = vunpack.i.h.bf16 %v8264_v11  ;;  %v8265_v12 = vunpack.i.l.bf16 %v8264_v11  ;;  %v8261_v4 = vunpack.i.h.bf16 %v8259_v25  ;;  %v8260_v10 = vunpack.i.l.bf16 %v8259_v25 }
0x2fd3   :  { %v6272_v0 = vpack.c.bf16 %v8266_v33, %v8265_v12  ;;  %v10590_v51 = vpack.c.bf16 %v8261_v4, %v8260_v10  ;;  %v8747_v4 = vld [vmem:[%s11818_s1 + $0x280] ss:$20 sps:$4 sm:$0xff]   ;;  %v8750_v10 = vld [vmem:[%s11818_s1 + $0x288] ss:$20 sps:$4 sm:$0xff]  }
0x2fd5   :  { %6794 = vmatprep.subr.msk.bf16.mxu1 %vm10419_vm15, %v10590_v51  ;;  %6834 = vmatprep.subr.msk.bf16.mxu0 %vm10408_vm3, %v6272_v0 }
0x2fd6   :  { %6795 = vmatpush3.bf16.msk.msra.mxu1 %vm10358_vm0, %v6272_v0  ;;  %6835 = vmatpush3.bf16.msra.mxu0 %v10594_v48 }
0x2fd8   :  { %v8274_v62 = vpop.permute.xlu1 %8273  ;;  %v8269_v40 = vpop.permute.xlu0 %8268 }
0x2fd9   :  { %v8276_v42 = vunpack.i.h.bf16 %v8274_v62  ;;  %v8275_v50 = vunpack.i.l.bf16 %v8274_v62  ;;  %v8271_v47 = vunpack.i.h.bf16 %v8269_v40  ;;  %v8270_v43 = vunpack.i.l.bf16 %v8269_v40  ;;  %v8756_v62 = vld [vmem:[%s11818_s1 + $0x2b4] ss:$20 sps:$4 sm:$0xff]  }
0x2fda   :  { %v8755_v40 = vld [vmem:[%s11818_s1 + $0x2a8] ss:$20 sps:$4 sm:$0xff]  }
0x2fdb   :  { %v6275_v63 = vpack.c.bf16 %v8276_v42, %v8275_v50  ;;  %v10604_v56 = vpack.c.bf16 %v8271_v47, %v8270_v43  ;;  %v8758_v42 = vld [vmem:[%s11818_s1 + $0x2b0] ss:$20 sps:$4 sm:$0xff]   ;;  %v8764_v43 = vld [vmem:[%s11818_s1 + $0x2d8] ss:$20 sps:$4 sm:$0xff]  }
0x2fdc   :  { %v8762_v50 = vld [vmem:[%s11818_s1 + $0x2dc] ss:$20 sps:$4 sm:$0xff]  }
0x2fdd   :  { %6796 = vmatprep.subr.msk.bf16.mxu1 %vm10419_vm15, %v10604_v56  ;;  %6836 = vmatprep.subr.msk.bf16.mxu0 %vm10408_vm3, %v6275_v63  ;;  %v8761_v47 = vld [vmem:[%s11818_s1 + $0x2d0] ss:$20 sps:$4 sm:$0xff]  }
0x2fde   :  { %6797 = vmatpush3.bf16.msk.msra.mxu1 %vm10358_vm0, %v6275_v63  ;;  %6837 = vmatpush3.bf16.msra.mxu0 %v10608_v61 }
0x2fe0   :  { %v8284_v6 = vpop.permute.xlu1 %8283  ;;  %v8279_v34 = vpop.permute.xlu0 %8278 }
0x2fe1   :  { %v8286_v9 = vunpack.i.h.bf16 %v8284_v6  ;;  %v8285_v23 = vunpack.i.l.bf16 %v8284_v6  ;;  %v8281_v17 = vunpack.i.h.bf16 %v8279_v34  ;;  %v8280_v22 = vunpack.i.l.bf16 %v8279_v34  ;;  %v8767_v6 = vld [vmem:[%s11818_s1 + $0x2f8] ss:$20 sps:$4 sm:$0xff]   ;;  %v8770_v34 = vld [vmem:[%s11818_s1 + $0x300] ss:$20 sps:$4 sm:$0xff]  }
0x2fe3   :  { %v6278_v7 = vpack.c.bf16 %v8286_v9, %v8285_v23  ;;  %v10618_v32 = vpack.c.bf16 %v8281_v17, %v8280_v22  ;;  %v8771_v9 = vld [vmem:[%s11818_s1 + $0x290] ss:$20 sps:$4 sm:$0xff]   ;;  %v8772_v23 = vld [vmem:[%s11818_s1 + $0x2b8] ss:$20 sps:$4 sm:$0xff]   ;;  %v8773_v17 = vld [vmem:[%s11818_s1 + $0x2e0] ss:$20 sps:$4 sm:$0xff]  }
0x2fe4   :  { %v8774_v22 = vld [vmem:[%s11818_s1 + $0x308] ss:$20 sps:$4 sm:$0xff]  }
0x2fe5   :  { %6798 = vmatprep.subr.msk.bf16.mxu1 %vm10419_vm15, %v10618_v32  ;;  %6838 = vmatprep.subr.msk.bf16.mxu0 %vm10408_vm3, %v6278_v7 }
0x2fe6   :  { %6799 = vmatpush3.bf16.msk.msra.mxu1 %vm10358_vm0, %v6278_v7  ;;  %6839 = vmatpush3.bf16.msra.mxu0 %v10622_v58 }
0x2fe8   :  { %v8294_v60 = vpop.permute.xlu1 %8293  ;;  %v8289_v1 = vpop.permute.xlu0 %8288 }
0x2fe9   :  { %v8296_v53 = vunpack.i.h.bf16 %v8294_v60  ;;  %v8295_v19 = vunpack.i.l.bf16 %v8294_v60  ;;  %v8291_v2 = vunpack.i.h.bf16 %v8289_v1  ;;  %v8290_v35 = vunpack.i.l.bf16 %v8289_v1 }
0x2feb   :  { %v6281_v38 = vpack.c.bf16 %v8296_v53, %v8295_v19  ;;  %v10632_v39 = vpack.c.bf16 %v8291_v2, %v8290_v35 }
0x2fec   :  { %v8304_v8 = vpop.permute.xlu1 %8303  ;;  %v8299_v20 = vpop.permute.xlu0 %8298 }
0x2fed   :  { %v8306_v13 = vunpack.i.h.bf16 %v8304_v8  ;;  %v8305_v18 = vunpack.i.l.bf16 %v8304_v8  ;;  %v8301_v26 = vunpack.i.h.bf16 %v8299_v20  ;;  %v8300_v49 = vunpack.i.l.bf16 %v8299_v20  ;;  %6800 = vmatprep.subr.msk.bf16.mxu1 %vm10419_vm15, %v10632_v39  ;;  %6840 = vmatprep.subr.msk.bf16.mxu0 %vm10408_vm3, %v6281_v38 }
0x2fee   :  { %6801 = vmatpush3.bf16.msk.msra.mxu1 %vm10358_vm0, %v6281_v38  ;;  %6841 = vmatpush3.bf16.msra.mxu0 %v10636_v21 }
0x2fef   :  { %v6284_v27 = vpack.c.bf16 %v8301_v26, %v8300_v49  ;;  %6802 = vmatprep.subr.msk.bf16.mxu1 %vm10450_vm6, %v10590_v51  ;;  %v6287_v36 = vpack.c.bf16 %v8306_v13, %v8305_v18 }
0x2ff0   :  { %v8309_v54 = vpop.permute.xlu0 %8308  ;;  %v8314_v16 = vpop.permute.xlu1 %8313 }
0x2ff1   :  { %v8311_v30 = vunpack.i.h.bf16 %v8309_v54  ;;  %v8310_v44 = vunpack.i.l.bf16 %v8309_v54  ;;  %6842 = vmatprep.subr.msk.bf16.mxu0 %vm10438_vm12, %v6284_v27  ;;  %v8316_v11 = vunpack.i.h.bf16 %v8314_v16  ;;  %v8315_v25 = vunpack.i.l.bf16 %v8314_v16 }
0x2ff2   :  { %6803 = vmatpush3.bf16.msk.msra.mxu1 %vm10388_vm14, %v6284_v27  ;;  %6843 = vmatpush3.bf16.msk.msra.mxu0 %vm10376_vm10, %v6272_v0  ;;  %v8753_v0 = vld [vmem:[%s11818_s1 + $0x2ac] ss:$20 sps:$4 sm:$0xff]  }
0x2ff3   :  { %6804 = vmatprep.subr.msk.bf16.mxu1 %vm10450_vm6, %v10604_v56  ;;  %6844 = vmatprep.subr.msk.bf16.mxu0 %vm10438_vm12, %v6287_v36  ;;  %v6290_v33 = vpack.c.bf16 %v8311_v30, %v8310_v44  ;;  %v6293_v12 = vpack.c.bf16 %v8316_v11, %v8315_v25 }
0x2ff6   :  { %6805 = vmatpush3.bf16.msk.msra.mxu1 %vm10388_vm14, %v6287_v36  ;;  %6845 = vmatpush3.bf16.msk.msra.mxu0 %vm10376_vm10, %v6275_v63  ;;  %v8765_v63 = vld [vmem:[%s11818_s1 + $0x2fc] ss:$20 sps:$4 sm:$0xff]  }
0x2ff7   :  { %6806 = vmatprep.subr.msk.bf16.mxu1 %vm10450_vm6, %v10618_v32  ;;  %6846 = vmatprep.subr.msk.bf16.mxu0 %vm10438_vm12, %v6290_v33 }
0x2ffa   :  { %6807 = vmatpush3.bf16.msk.msra.mxu1 %vm10388_vm14, %v6290_v33  ;;  %6847 = vmatpush3.bf16.msk.msra.mxu0 %vm10376_vm10, %v6278_v7 }
0x2ffb   :  { %6808 = vmatprep.subr.msk.bf16.mxu1 %vm10450_vm6, %v10632_v39  ;;  %6848 = vmatprep.subr.msk.bf16.mxu0 %vm10438_vm12, %v6293_v12 }
0x2ffe   :  { %6809 = vmatpush3.bf16.msk.msra.mxu1 %vm10388_vm14, %v6293_v12  ;;  %6849 = vmatpush3.bf16.msk.msra.mxu0 %vm10376_vm10, %v6281_v38 }
0x2fff   :  { %7135 = vmatprep.subr.msk.bf16.mxu1 %vm10380_vm1, %v10590_v51 }
0x3001   :  { %3456 = vmatmul.mubr.bf16.vlgmr.msra.gmra.mrb[40].mxu1 %v8747_v4  ;;  %3521 = vmatmul.mubr.bf16.vlgmr.msra.gmra.mrb[44].mxu0 %v8750_v10  ;;  %v3273_v7 = vpop.permute.xlu0 %3272  ;;  %v3278_v26 = vpop.permute.xlu1 %3277 }
0x3002   :  { %7136 = vmatpush3.bf16.msk.msra.mxu1 %vm10380_vm1, %v10590_v51  ;;  %3463 = vmatprep.mubr.bf16.mxu1 %v8753_v0  ;;  %v8759_v51 = vld [vmem:[%s11818_s1 + $0x2d4] ss:$20 sps:$4 sm:$0xff]  }
0x3003   :  { %7137 = vmatprep.subr.msk.bf16.mxu1 %vm10380_vm1, %v10604_v56  ;;  %3528 = vmatprep.mubr.bf16.mxu0 %v8756_v62 }
0x3005   :  { %v3283_v54 = vpop.permute.xlu0 %3282 }
0x3006   :  { %7138 = vmatpush3.bf16.msk.msra.mxu1 %vm10380_vm1, %v10604_v56  ;;  %v8768_v56 = vld [vmem:[%s11818_s1 + $0x304] ss:$20 sps:$4 sm:$0xff]  }
0x3007   :  { %7139 = vmatprep.subr.msk.bf16.mxu1 %vm10380_vm1, %v10618_v32 }
0x3009   :  { %3464 = vmatmul.mubr.bf16.gmra.mrb[44].mxu1 %v8755_v40  ;;  %3529 = vmatmul.mubr.bf16.gmra.mrb[48].mxu0 %v8758_v42 }
0x300a   :  { %7140 = vmatpush3.bf16.msk.msra.mxu1 %vm10380_vm1, %v10618_v32  ;;  %3471 = vmatprep.mubr.bf16.mxu1 %v8759_v51  ;;  %v3288_v51 = vpop.permute.xlu1 %3287 }
0x300b   :  { %7141 = vmatprep.subr.msk.bf16.mxu1 %vm10380_vm1, %v10632_v39  ;;  %3536 = vmatprep.mubr.bf16.mxu0 %v8762_v50 }
0x300e   :  { %7142 = vmatpush3.bf16.msk.msra.mxu1 %vm10380_vm1, %v10632_v39 }
0x3011   :  { %3472 = vmatmul.mubr.bf16.gmra.mrb[48].mxu1 %v8761_v47  ;;  %3537 = vmatmul.mubr.bf16.gmra.mrb[52].mxu0 %v8764_v43  ;;  %v3293_v43 = vpop.permute.xlu0 %3292 }
0x3012   :  { %3479 = vmatprep.mubr.bf16.mxu1 %v8765_v63  ;;  %3544 = vmatprep.mubr.bf16.mxu0 %v8768_v56 }
0x3019   :  { %3480 = vmatmul.mubr.bf16.gmra.mrb[52].mxu1 %v8767_v6  ;;  %3545 = vmatmul.mubr.bf16.gmra.mrb[56].mxu0 %v8770_v34 }
0x301a   :  { %7143 = vmatprep.mubr.msk.bf16.mxu1 %vm3410_vm7, %v8771_v9 }
0x3021   :  { %7144 = vmatmul.mubr.msk.bf16.vlgmr.msra.gmra.mrb[56].mxu1 %vm3410_vm7, %v8772_v23 }
0x3022   :  { %7147 = vmatprep.mubr.msk.bf16.mxu1 %vm3410_vm7, %v8773_v17 }
0x3029   :  { %7148 = vmatmul.mubr.msk.bf16.gmra.mrb[60].mxu1 %vm3410_vm7, %v8774_v22 }
0x30d4   :  { %v6810_v32 = vpop.f32.mrb[40].mxu1  ;;  %v6850_v60 = vpop.f32.mrb[44].mxu0 }
0x30d5   :  { %v6811_v1 = vpop.f32.mrb[41].mxu1  ;;  %v6851_v53 = vpop.f32.mrb[45].mxu0 }
0x30d6   :  { %v6812_v19 = vadd.f32 %v6811_v1, %v6810_v32  ;;  %v6813_v2 = vpop.f32.mrb[42].mxu1  ;;  %v6852_v35 = vadd.f32 %v6851_v53, %v6850_v60  ;;  %v6853_v38 = vpop.f32.mrb[46].mxu0 }
0x30d7   :  { %v6814_v39 = vpop.f32.mrb[43].mxu1  ;;  %v6854_v8 = vpop.f32.mrb[47].mxu0 }
0x30d8   :  { %v3458_v20 = vadd.f32 %v6812_v19, %v3273_v7  ;;  %v6815_v13 = vadd.f32 %v6814_v39, %v6813_v2  ;;  %v6855_v18 = vadd.f32 %v6854_v8, %v6853_v38  ;;  %v3298_v2 = vpop.permute.xlu1 %3297  ;;  %v3303_v39 = vpop.permute.xlu0 %3302 }
0x30da   :  { %v3461_v49 = vadd.f32 %v6815_v13, %v3278_v26  ;;  %v3523_v27 = vadd.f32 %v6852_v35, %v3458_v20 }
0x30dc   :  { %v6816_v36 = vpop.f32.mrb[44].mxu1  ;;  %v6856_v30 = vpop.f32.mrb[48].mxu0  ;;  %v3526_v44 = vadd.f32 %v6855_v18, %v3461_v49 }
0x30dd   :  { %v6817_v16 = vpop.f32.mrb[45].mxu1  ;;  %v6857_v11 = vpop.f32.mrb[49].mxu0 }
0x30de   :  { %v6818_v25 = vadd.f32 %v6817_v16, %v6816_v36  ;;  %v6819_v33 = vpop.f32.mrb[46].mxu1  ;;  %v6858_v12 = vadd.f32 %v6857_v11, %v6856_v30  ;;  %v6859_v4 = vpop.f32.mrb[50].mxu0 }
0x30df   :  { %v6820_v10 = vpop.f32.mrb[47].mxu1  ;;  %v6860_v0 = vpop.f32.mrb[51].mxu0 }
0x30e0   :  { %v3466_v62 = vadd.f32 %v6818_v25, %v3283_v54  ;;  %v6821_v40 = vadd.f32 %v6820_v10, %v6819_v33  ;;  %v6861_v42 = vadd.f32 %v6860_v0, %v6859_v4  ;;  %v3308_v4 = vpop.permute.xlu1 %3307 }
0x30e2   :  { %v3469_v50 = vadd.f32 %v6821_v40, %v3288_v51  ;;  %v3531_v47 = vadd.f32 %v6858_v12, %v3466_v62 }
0x30e4   :  { %v6822_v63 = vpop.f32.mrb[48].mxu1  ;;  %v6862_v56 = vpop.f32.mrb[52].mxu0  ;;  %v3534_v6 = vadd.f32 %v6861_v42, %v3469_v50 }
0x30e5   :  { %v6823_v34 = vpop.f32.mrb[49].mxu1  ;;  %v6863_v9 = vpop.f32.mrb[53].mxu0 }
0x30e6   :  { %v6824_v23 = vadd.f32 %v6823_v34, %v6822_v63  ;;  %v6825_v17 = vpop.f32.mrb[50].mxu1  ;;  %v6864_v22 = vadd.f32 %v6863_v9, %v6862_v56  ;;  %v6865_v7 = vpop.f32.mrb[54].mxu0 }
0x30e7   :  { %v6826_v32 = vpop.f32.mrb[51].mxu1  ;;  %v6866_v60 = vpop.f32.mrb[55].mxu0 }
0x30e8   :  { %v3474_v1 = vadd.f32 %v6824_v23, %v3293_v43  ;;  %v6827_v53 = vadd.f32 %v6826_v32, %v6825_v17  ;;  %v6867_v19 = vadd.f32 %v6866_v60, %v6865_v7 }
0x30ea   :  { %v3477_v35 = vadd.f32 %v6827_v53, %v3298_v2  ;;  %v3539_v38 = vadd.f32 %v6864_v22, %v3474_v1 }
0x30ec   :  { %v6828_v8 = vpop.f32.mrb[52].mxu1  ;;  %v6868_v20 = vpop.f32.mrb[56].mxu0  ;;  %v3542_v13 = vadd.f32 %v6867_v19, %v3477_v35 }
0x30ed   :  { %v6829_v18 = vpop.f32.mrb[53].mxu1  ;;  %v6869_v26 = vpop.f32.mrb[57].mxu0 }
0x30ee   :  { %v6830_v49 = vadd.f32 %v6829_v18, %v6828_v8  ;;  %v6831_v54 = vpop.f32.mrb[54].mxu1  ;;  %v6870_v36 = vadd.f32 %v6869_v26, %v6868_v20  ;;  %v6871_v30 = vpop.f32.mrb[58].mxu0 }
0x30ef   :  { %v6832_v16 = vpop.f32.mrb[55].mxu1  ;;  %v6872_v11 = vpop.f32.mrb[59].mxu0 }
0x30f0   :  { %v3482_v25 = vadd.f32 %v6830_v49, %v3303_v39  ;;  %v6833_v33 = vadd.f32 %v6832_v16, %v6831_v54  ;;  %v6873_v12 = vadd.f32 %v6872_v11, %v6871_v30 }
0x30f2   :  { %v3485_v10 = vadd.f32 %v6833_v33, %v3308_v4  ;;  %v3547_v0 = vadd.f32 %v6870_v36, %v3482_v25 }
0x30f4   :  { %v7145_v62 = vpop.f32.mrb[56].mxu1  ;;  %v3550_v40 = vadd.f32 %v6873_v12, %v3485_v10 }
0x30f5   :  { %v3596_v42 = vadd.f32 %v7145_v62, %v3531_v47  ;;  %v3587_v51 = vpop.f32.mrb[57].mxu1 }
0x30f6   :  { %v3588_v50 = vadd.f32 %v3587_v51, %v3523_v27  ;;  %v7146_v43 = vpop.f32.mrb[58].mxu1 }
0x30f7   :  { %v3599_v63 = vadd.f32 %v7146_v43, %v3534_v6  ;;  %v3590_v56 = vpop.f32.mrb[59].mxu1  ;;  %v10764_v9 = vmax.f32 %v3596_v42, 0.0 }
0x30f8   :  { %v3591_v34 = vadd.f32 %v3590_v56, %v3526_v44  ;;  %v10768_v17 = vmax.f32 %v3588_v50, 0.0 }
0x30f9   :  { %v10766_v23 = vmax.f32 %v3599_v63, 0.0 }
0x30fa   :  { %v10770_v22 = vmax.f32 %v3591_v34, 0.0 }
0x30fb   :  { %v8322_v7 = vpack.i.bf16 %v10766_v23, %v10764_v9 }
0x30fc   :  { %v7149_v32 = vpop.f32.mrb[60].mxu1  ;;  %v8317_v47 = vpack.i.bf16 %v10770_v22, %v10768_v17 }
0x30fd   :  { %v3612_v27 = vadd.f32 %v7149_v32, %v3547_v0  ;;  %v3603_v60 = vpop.f32.mrb[61].mxu1  ;;  %8323 = vrot.lane.b32.xlu1 %v8322_v7, %s9003_s8 }
0x30fe   :  { %v3604_v44 = vadd.f32 %v3603_v60, %v3539_v38  ;;  %v7150_v6 = vpop.f32.mrb[62].mxu1  ;;  %8318 = vrot.lane.b32.xlu0 %v8317_v47, %s9003_s8 }
0x30ff   :  { %v3615_v1 = vadd.f32 %v7150_v6, %v3550_v40  ;;  %v3606_v53 = vpop.f32.mrb[63].mxu1  ;;  %v10778_v2 = vmax.f32 %v3612_v27, 0.0 }
0x3100   :  { %v3607_v19 = vadd.f32 %v3606_v53, %v3542_v13  ;;  %v10782_v39 = vmax.f32 %v3604_v44, 0.0 }
0x3101   :  { %v10780_v35 = vmax.f32 %v3615_v1, 0.0 }
0x3102   :  { %v10784_v8 = vmax.f32 %v3607_v19, 0.0 }
0x3103   :  { %v8332_v20 = vpack.i.bf16 %v10780_v35, %v10778_v2 }
0x3104   :  { %v8327_v38 = vpack.i.bf16 %v10784_v8, %v10782_v39 }
0x3105   :  { %8333 = vrot.lane.b32.xlu1 %v8332_v20, %s9003_s8 }
0x3106   :  { %8328 = vrot.lane.b32.xlu0 %v8327_v38, %s9003_s8 }
0x316f   :  { %v8324_v18 = vpop.permute.xlu1 %8323 }
0x3170   :  { %v8326_v13 = vunpack.i.h.bf16 %v8324_v18  ;;  %v8325_v26 = vunpack.i.l.bf16 %v8324_v18  ;;  %v8319_v49 = vpop.permute.xlu0 %8318 }
0x3171   :  { %v8321_v54 = vunpack.i.h.bf16 %v8319_v49  ;;  %v8320_v36 = vunpack.i.l.bf16 %v8319_v49 }
0x3172   :  { %v3669_v30 = vsel %vm2625_vm9, %v8326_v13, %v10766_v23  ;;  %v3666_v16 = vsel %vm2625_vm9, %v8325_v26, %v10764_v9 }
0x3173   :  { %v8342_v11 = vpack.i.bf16 %v3669_v30, %v3666_v16  ;;  %v3663_v25 = vsel %vm2625_vm9, %v8321_v54, %v10770_v22  ;;  %v3660_v33 = vsel %vm2625_vm9, %v8320_v36, %v10768_v17 }
0x3174   :  { %v8337_v12 = vpack.i.bf16 %v3663_v25, %v3660_v33 }
0x3175   :  { %8343 = vrot.lane.b32.xlu1 %v8342_v11, %s9003_s8 }
0x3176   :  { %8338 = vrot.lane.b32.xlu0 %v8337_v12, %s9003_s8 }
0x3177   :  { %v8334_v4 = vpop.permute.xlu1 %8333 }
0x3178   :  { %v8336_v10 = vunpack.i.h.bf16 %v8334_v4  ;;  %v8335_v0 = vunpack.i.l.bf16 %v8334_v4  ;;  %v8329_v62 = vpop.permute.xlu0 %8328  ;;  %v3651_v4 = vld [vmem:[%s11819_s2 + $0x148] sm:$0xff] }
0x3179   :  { %v8331_v40 = vunpack.i.h.bf16 %v8329_v62  ;;  %v8330_v42 = vunpack.i.l.bf16 %v8329_v62  ;;  %v8780_v62 = vld [vmem:[%s11818_s1 + $0x32c] ss:$20 sps:$4 sm:$0xff]  }
0x317a   :  { %v3681_v51 = vsel %vm2625_vm9, %v8336_v10, %v10780_v35  ;;  %v3678_v50 = vsel %vm2625_vm9, %v8335_v0, %v10778_v2  ;;  %v3650_v10 = vld [vmem:[%s11819_s2 + $0x140] sm:$0xff]  ;;  %4135 = vmatprep.mubr.bf16.mxu1 %v8780_v62 }
0x317b   :  { %v8352_v43 = vpack.i.bf16 %v3681_v51, %v3678_v50  ;;  %v3675_v63 = vsel %vm2625_vm9, %v8331_v40, %v10784_v8  ;;  %v3672_v56 = vsel %vm2625_vm9, %v8330_v42, %v10782_v39  ;;  %v8777_v0 = vld [vmem:[%s11818_s1 + $0x324] ss:$20 sps:$4 sm:$0xff]   ;;  %v3652_v42 = vld [vmem:[%s11819_s2 + $0x150] sm:$0xff]  ;;  %v3655_v51 = vld [vmem:[%s11819_s2 + $0x168] sm:$0xff] }
0x317c   :  { %v8347_v34 = vpack.i.bf16 %v3675_v63, %v3672_v56  ;;  %4070 = vmatprep.mubr.bf16.mxu0 %v8777_v0  ;;  %v3653_v40 = vld [vmem:[%s11819_s2 + $0x158] sm:$0xff]  ;;  %v3654_v50 = vld [vmem:[%s11819_s2 + $0x160] sm:$0xff]  ;;  %v3656_v63 = vld [vmem:[%s11819_s2 + $0x170] sm:$0xff] }
0x317d   :  { %8353 = vrot.lane.b32.xlu1 %v8352_v43, %s9003_s8  ;;  %v3657_v43 = vld [vmem:[%s11819_s2 + $0x178] sm:$0xff] }
0x317e   :  { %8348 = vrot.lane.b32.xlu0 %v8347_v34, %s9003_s8 }
0x31e7   :  { %v8344_v7 = vpop.permute.xlu1 %8343 }
0x31e8   :  { %v8339_v32 = vpop.permute.xlu0 %8338  ;;  %v8346_v47 = vunpack.i.h.bf16 %v8344_v7  ;;  %v8345_v27 = vunpack.i.l.bf16 %v8344_v7 }
0x31e9   :  { %v8341_v60 = vunpack.i.h.bf16 %v8339_v32  ;;  %v8340_v44 = vunpack.i.l.bf16 %v8339_v32 }
0x31ea   :  { %v3701_v19 = vsel %vm2625_vm9, %v8346_v47, %v10766_v23  ;;  %v3700_v20 = vsel %vm2625_vm9, %v8345_v27, %v10764_v9 }
0x31eb   :  { %v3699_v6 = vsel %vm2625_vm9, %v8341_v60, %v10770_v22  ;;  %v3698_v1 = vsel %vm2625_vm9, %v8340_v44, %v10768_v17  ;;  %v8372_v13 = vpack.i.bf16 %v3701_v19, %v3700_v20 }
0x31ec   :  { %v8367_v53 = vpack.i.bf16 %v3699_v6, %v3698_v1 }
0x31ee   :  { %8368 = vrot.lane.b32.xlu1 %v8367_v53, %s8979_s9  ;;  %8358 = vrot.lane.b32.xlu0 %v8367_v53, %s9001_s29 }
0x31ef   :  { %v8354_v38 = vpop.permute.xlu1 %8353 }
0x31f0   :  { %v8349_v18 = vpop.permute.xlu0 %8348  ;;  %v8356_v26 = vunpack.i.h.bf16 %v8354_v38  ;;  %v8355_v49 = vunpack.i.l.bf16 %v8354_v38 }
0x31f1   :  { %v8351_v54 = vunpack.i.h.bf16 %v8349_v18  ;;  %v8350_v36 = vunpack.i.l.bf16 %v8349_v18 }
0x31f2   :  { %8373 = vrot.lane.b32.xlu1 %v8372_v13, %s8979_s9  ;;  %8363 = vrot.lane.b32.xlu0 %v8372_v13, %s9001_s29  ;;  %v3705_v25 = vsel %vm2625_vm9, %v8356_v26, %v10780_v35  ;;  %v3704_v33 = vsel %vm2625_vm9, %v8355_v49, %v10778_v2 }
0x31f3   :  { %v3703_v30 = vsel %vm2625_vm9, %v8351_v54, %v10784_v8  ;;  %v3702_v16 = vsel %vm2625_vm9, %v8350_v36, %v10782_v39  ;;  %v8392_v12 = vpack.i.bf16 %v3705_v25, %v3704_v33 }
0x31f4   :  { %v8387_v11 = vpack.i.bf16 %v3703_v30, %v3702_v16 }
0x31f6   :  { %8388 = vrot.lane.b32.xlu1 %v8387_v11, %s8979_s9  ;;  %8378 = vrot.lane.b32.xlu0 %v8387_v11, %s9001_s29 }
0x31fa   :  { %8393 = vrot.lane.b32.xlu1 %v8392_v12, %s8979_s9  ;;  %8383 = vrot.lane.b32.xlu0 %v8392_v12, %s9001_s29 }
0x31fe   :  { %8403 = vrot.lane.b32.xlu1 %v8372_v13, %s8985_s20  ;;  %8398 = vrot.lane.b32.xlu0 %v8367_v53, %s8985_s20  ;;  %v3866_v53 = vpack.c.bf16 %v10770_v22, %v10768_v17  ;;  %v3867_v22 = vpack.c.bf16 %v10766_v23, %v10764_v9  ;;  %v3868_v23 = vpack.c.bf16 %v10784_v8, %v10782_v39 }
0x31ff   :  { %v3869_v8 = vpack.c.bf16 %v10780_v35, %v10778_v2 }
0x3202   :  { %8413 = vrot.lane.b32.xlu1 %v8392_v12, %s8985_s20  ;;  %8408 = vrot.lane.b32.xlu0 %v8387_v11, %s8985_s20 }
0x3206   :  { %3893 = vperm.xlu1 %7451, %v3651_v4   ;;  %3888 = vperm.xlu0 %7350, %v3650_v10  }
0x320a   :  { %3903 = vperm.xlu1 %7451, %v3653_v40   ;;  %3898 = vperm.xlu0 %7350, %v3652_v42  }
0x320e   :  { %3913 = vperm.xlu1 %7451, %v3655_v51   ;;  %3908 = vperm.xlu0 %7350, %v3654_v50  }
0x3212   :  { %3923 = vperm.xlu1 %7451, %v3657_v43   ;;  %3918 = vperm.xlu0 %7350, %v3656_v63  }
0x3260   :  { %v8369_v56 = vpop.permute.xlu1 %8368  ;;  %v8359_v34 = vpop.permute.xlu0 %8358 }
0x3261   :  { %v8371_v7 = vunpack.i.h.bf16 %v8369_v56  ;;  %v8370_v32 = vunpack.i.l.bf16 %v8369_v56  ;;  %v8361_v47 = vunpack.i.h.bf16 %v8359_v34  ;;  %v8360_v27 = vunpack.i.l.bf16 %v8359_v34 }
0x3263   :  { %v6392_v60 = vpack.c.bf16 %v8371_v7, %v8370_v32  ;;  %v10870_v44 = vpack.c.bf16 %v8361_v47, %v8360_v27 }
0x3264   :  { %v8374_v6 = vpop.permute.xlu1 %8373  ;;  %v8364_v1 = vpop.permute.xlu0 %8363 }
0x3265   :  { %v8376_v19 = vunpack.i.h.bf16 %v8374_v6  ;;  %v8375_v20 = vunpack.i.l.bf16 %v8374_v6  ;;  %v8366_v38 = vunpack.i.h.bf16 %v8364_v1  ;;  %v8365_v18 = vunpack.i.l.bf16 %v8364_v1  ;;  %6882 = vmatprep.subr.msk.bf16.mxu0 %vm10419_vm15, %v10870_v44  ;;  %6922 = vmatprep.subr.msk.bf16.mxu1 %vm10408_vm3, %v6392_v60  ;;  %v8775_v1 = vld [vmem:[%s11818_s1 + $0x320] ss:$20 sps:$4 sm:$0xff]  }
0x3266   :  { %6883 = vmatpush3.bf16.msk.msra.mxu0 %vm10358_vm0, %v6392_v60  ;;  %6923 = vmatpush3.bf16.msra.mxu1 %v3866_v53  ;;  %v8778_v53 = vld [vmem:[%s11818_s1 + $0x328] ss:$20 sps:$4 sm:$0xff]  }
0x3267   :  { %v6395_v13 = vpack.c.bf16 %v8376_v19, %v8375_v20  ;;  %v10881_v26 = vpack.c.bf16 %v8366_v38, %v8365_v18  ;;  %v8781_v19 = vld [vmem:[%s11818_s1 + $0x34c] ss:$20 sps:$4 sm:$0xff]   ;;  %v8784_v20 = vld [vmem:[%s11818_s1 + $0x354] ss:$20 sps:$4 sm:$0xff]   ;;  %v8786_v18 = vld [vmem:[%s11818_s1 + $0x350] ss:$20 sps:$4 sm:$0xff]  }
0x3268   :  { %v8389_v49 = vpop.permute.xlu1 %8388  ;;  %v8379_v17 = vpop.permute.xlu0 %8378  ;;  %v8783_v38 = vld [vmem:[%s11818_s1 + $0x348] ss:$20 sps:$4 sm:$0xff]  }
0x3269   :  { %v8391_v54 = vunpack.i.h.bf16 %v8389_v49  ;;  %v8390_v36 = vunpack.i.l.bf16 %v8389_v49  ;;  %v8381_v30 = vunpack.i.h.bf16 %v8379_v17  ;;  %v8380_v16 = vunpack.i.l.bf16 %v8379_v17  ;;  %6884 = vmatprep.subr.msk.bf16.mxu0 %vm10419_vm15, %v10881_v26  ;;  %6924 = vmatprep.subr.msk.bf16.mxu1 %vm10408_vm3, %v6395_v13  ;;  %v8792_v49 = vld [vmem:[%s11818_s1 + $0x378] ss:$20 sps:$4 sm:$0xff]   ;;  %v8793_v17 = vld [vmem:[%s11818_s1 + $0x39c] ss:$20 sps:$4 sm:$0xff]  }
0x326a   :  { %6885 = vmatpush3.bf16.msk.msra.mxu0 %vm10358_vm0, %v6395_v13  ;;  %6925 = vmatpush3.bf16.msra.mxu1 %v3867_v22  ;;  %v8796_v22 = vld [vmem:[%s11818_s1 + $0x3a4] ss:$20 sps:$4 sm:$0xff]  }
0x326b   :  { %v6398_v11 = vpack.c.bf16 %v8391_v54, %v8390_v36  ;;  %v10892_v25 = vpack.c.bf16 %v8381_v30, %v8380_v16  ;;  %v8795_v54 = vld [vmem:[%s11818_s1 + $0x398] ss:$20 sps:$4 sm:$0xff]   ;;  %v8798_v36 = vld [vmem:[%s11818_s1 + $0x3a0] ss:$20 sps:$4 sm:$0xff]   ;;  %v8799_v30 = vld [vmem:[%s11818_s1 + $0x330] ss:$20 sps:$4 sm:$0xff]  }
0x326c   :  { %v8394_v33 = vpop.permute.xlu1 %8393  ;;  %v8384_v9 = vpop.permute.xlu0 %8383  ;;  %v8800_v16 = vld [vmem:[%s11818_s1 + $0x358] ss:$20 sps:$4 sm:$0xff]  }
0x326d   :  { %v8396_v12 = vunpack.i.h.bf16 %v8394_v33  ;;  %v8395_v4 = vunpack.i.l.bf16 %v8394_v33  ;;  %v8386_v10 = vunpack.i.h.bf16 %v8384_v9  ;;  %v8385_v0 = vunpack.i.l.bf16 %v8384_v9  ;;  %6886 = vmatprep.subr.msk.bf16.mxu0 %vm10419_vm15, %v10892_v25  ;;  %6926 = vmatprep.subr.msk.bf16.mxu1 %vm10408_vm3, %v6398_v11 }
0x326e   :  { %6887 = vmatpush3.bf16.msk.msra.mxu0 %vm10358_vm0, %v6398_v11  ;;  %6927 = vmatpush3.bf16.msra.mxu1 %v3868_v23 }
0x326f   :  { %v6401_v62 = vpack.c.bf16 %v8396_v12, %v8395_v4  ;;  %v10903_v40 = vpack.c.bf16 %v8386_v10, %v8385_v0 }
0x3270   :  { %v8404_v42 = vpop.permute.xlu1 %8403  ;;  %v8399_v39 = vpop.permute.xlu0 %8398 }
0x3271   :  { %v8406_v51 = vunpack.i.h.bf16 %v8404_v42  ;;  %v8405_v50 = vunpack.i.l.bf16 %v8404_v42  ;;  %v8401_v43 = vunpack.i.h.bf16 %v8399_v39  ;;  %v8400_v63 = vunpack.i.l.bf16 %v8399_v39  ;;  %6888 = vmatprep.subr.msk.bf16.mxu0 %vm10419_vm15, %v10903_v40  ;;  %6928 = vmatprep.subr.msk.bf16.mxu1 %vm10408_vm3, %v6401_v62 }
0x3272   :  { %6889 = vmatpush3.bf16.msk.msra.mxu0 %vm10358_vm0, %v6401_v62  ;;  %6929 = vmatpush3.bf16.msra.mxu1 %v3869_v8 }
0x3273   :  { %v6404_v56 = vpack.c.bf16 %v8401_v43, %v8400_v63  ;;  %6890 = vmatprep.subr.msk.bf16.mxu0 %vm10450_vm6, %v10870_v44  ;;  %v6407_v35 = vpack.c.bf16 %v8406_v51, %v8405_v50 }
0x3274   :  { %v8409_v2 = vpop.permute.xlu0 %8408  ;;  %v8414_v32 = vpop.permute.xlu1 %8413 }
0x3275   :  { %v8411_v34 = vunpack.i.h.bf16 %v8409_v2  ;;  %v8410_v7 = vunpack.i.l.bf16 %v8409_v2  ;;  %6930 = vmatprep.subr.msk.bf16.mxu1 %vm10438_vm12, %v6404_v56  ;;  %v8416_v47 = vunpack.i.h.bf16 %v8414_v32  ;;  %v8415_v27 = vunpack.i.l.bf16 %v8414_v32 }
0x3276   :  { %6891 = vmatpush3.bf16.msk.msra.mxu0 %vm10388_vm14, %v6404_v56  ;;  %6931 = vmatpush3.bf16.msk.msra.mxu1 %vm10376_vm10, %v6392_v60 }
0x3277   :  { %6892 = vmatprep.subr.msk.bf16.mxu0 %vm10450_vm6, %v10881_v26  ;;  %6932 = vmatprep.subr.msk.bf16.mxu1 %vm10438_vm12, %v6407_v35  ;;  %v6410_v6 = vpack.c.bf16 %v8411_v34, %v8410_v7  ;;  %v6413_v60 = vpack.c.bf16 %v8416_v47, %v8415_v27 }
0x327a   :  { %6893 = vmatpush3.bf16.msk.msra.mxu0 %vm10388_vm14, %v6407_v35  ;;  %6933 = vmatpush3.bf16.msk.msra.mxu1 %vm10376_vm10, %v6395_v13  ;;  %v8790_v13 = vld [vmem:[%s11818_s1 + $0x37c] ss:$20 sps:$4 sm:$0xff]  }
0x327b   :  { %6894 = vmatprep.subr.msk.bf16.mxu0 %vm10450_vm6, %v10892_v25  ;;  %6934 = vmatprep.subr.msk.bf16.mxu1 %vm10438_vm12, %v6410_v6 }
0x327e   :  { %6895 = vmatpush3.bf16.msk.msra.mxu0 %vm10388_vm14, %v6410_v6  ;;  %6935 = vmatpush3.bf16.msk.msra.mxu1 %vm10376_vm10, %v6398_v11  ;;  %v8801_v11 = vld [vmem:[%s11818_s1 + $0x380] ss:$20 sps:$4 sm:$0xff]  }
0x327f   :  { %6896 = vmatprep.subr.msk.bf16.mxu0 %vm10450_vm6, %v10903_v40  ;;  %6936 = vmatprep.subr.msk.bf16.mxu1 %vm10438_vm12, %v6413_v60 }
0x3282   :  { %6897 = vmatpush3.bf16.msk.msra.mxu0 %vm10388_vm14, %v6413_v60  ;;  %6937 = vmatpush3.bf16.msk.msra.mxu1 %vm10376_vm10, %v6401_v62 }
0x3283   :  { %7151 = vmatprep.subr.msk.bf16.mxu0 %vm10380_vm1, %v10870_v44 }
0x3285   :  { %4071 = vmatmul.mubr.bf16.vlgmr.msra.gmra.mrb[60].mxu0 %v8775_v1  ;;  %4136 = vmatmul.mubr.bf16.vlgmr.msra.gmra.mrb[64].mxu1 %v8778_v53  ;;  %v3889_v33 = vpop.permute.xlu0 %3888  ;;  %v3894_v43 = vpop.permute.xlu1 %3893 }
0x3286   :  { %7152 = vmatpush3.bf16.msk.msra.mxu0 %vm10380_vm1, %v10870_v44  ;;  %4078 = vmatprep.mubr.bf16.mxu0 %v8781_v19  ;;  %v8787_v44 = vld [vmem:[%s11818_s1 + $0x374] ss:$20 sps:$4 sm:$0xff]  }
0x3287   :  { %7153 = vmatprep.subr.msk.bf16.mxu0 %vm10380_vm1, %v10881_v26  ;;  %4143 = vmatprep.mubr.bf16.mxu1 %v8784_v20 }
0x3289   :  { %v3899_v2 = vpop.permute.xlu0 %3898 }
0x328a   :  { %7154 = vmatpush3.bf16.msk.msra.mxu0 %vm10380_vm1, %v10881_v26  ;;  %v8789_v26 = vld [vmem:[%s11818_s1 + $0x370] ss:$20 sps:$4 sm:$0xff]  }
0x328b   :  { %7155 = vmatprep.subr.msk.bf16.mxu0 %vm10380_vm1, %v10892_v25 }
0x328d   :  { %4079 = vmatmul.mubr.bf16.gmra.mrb[64].mxu0 %v8783_v38  ;;  %4144 = vmatmul.mubr.bf16.gmra.mrb[68].mxu1 %v8786_v18 }
0x328e   :  { %7156 = vmatpush3.bf16.msk.msra.mxu0 %vm10380_vm1, %v10892_v25  ;;  %4086 = vmatprep.mubr.bf16.mxu0 %v8787_v44  ;;  %v8802_v25 = vld [vmem:[%s11818_s1 + $0x3a8] ss:$20 sps:$4 sm:$0xff]   ;;  %v3904_v44 = vpop.permute.xlu1 %3903 }
0x328f   :  { %7157 = vmatprep.subr.msk.bf16.mxu0 %vm10380_vm1, %v10903_v40  ;;  %4151 = vmatprep.mubr.bf16.mxu1 %v8790_v13 }
0x3292   :  { %7158 = vmatpush3.bf16.msk.msra.mxu0 %vm10380_vm1, %v10903_v40 }
0x3295   :  { %4087 = vmatmul.mubr.bf16.gmra.mrb[68].mxu0 %v8789_v26  ;;  %4152 = vmatmul.mubr.bf16.gmra.mrb[72].mxu1 %v8792_v49  ;;  %v3909_v49 = vpop.permute.xlu0 %3908 }
0x3296   :  { %4094 = vmatprep.mubr.bf16.mxu0 %v8793_v17  ;;  %4159 = vmatprep.mubr.bf16.mxu1 %v8796_v22 }
0x329d   :  { %4095 = vmatmul.mubr.bf16.gmra.mrb[72].mxu0 %v8795_v54  ;;  %4160 = vmatmul.mubr.bf16.gmra.mrb[76].mxu1 %v8798_v36 }
0x329e   :  { %7159 = vmatprep.mubr.msk.bf16.mxu0 %vm3410_vm7, %v8799_v30 }
0x32a5   :  { %7160 = vmatmul.mubr.msk.bf16.vlgmr.msra.gmra.mrb[76].mxu0 %vm3410_vm7, %v8800_v16 }
0x32a6   :  { %7163 = vmatprep.mubr.msk.bf16.mxu0 %vm3410_vm7, %v8801_v11 }
0x32ad   :  { %7164 = vmatmul.mubr.msk.bf16.gmra.mrb[80].mxu0 %vm3410_vm7, %v8802_v25 }
0x3358   :  { %v6898_v9 = vpop.f32.mrb[60].mxu0  ;;  %v6938_v23 = vpop.f32.mrb[64].mxu1 }
0x3359   :  { %v6899_v12 = vpop.f32.mrb[61].mxu0  ;;  %v6939_v4 = vpop.f32.mrb[65].mxu1 }
0x335a   :  { %v6900_v10 = vadd.f32 %v6899_v12, %v6898_v9  ;;  %v6901_v0 = vpop.f32.mrb[62].mxu0  ;;  %v6940_v62 = vadd.f32 %v6939_v4, %v6938_v23  ;;  %v6941_v40 = vpop.f32.mrb[66].mxu1 }
0x335b   :  { %v6902_v42 = vpop.f32.mrb[63].mxu0  ;;  %v6942_v39 = vpop.f32.mrb[67].mxu1 }
0x335c   :  { %v4073_v8 = vadd.f32 %v6900_v10, %v3889_v33  ;;  %v6903_v51 = vadd.f32 %v6902_v42, %v6901_v0  ;;  %v6943_v50 = vadd.f32 %v6942_v39, %v6941_v40  ;;  %v3914_v0 = vpop.permute.xlu1 %3913  ;;  %v3919_v42 = vpop.permute.xlu0 %3918 }
0x335e   :  { %v4076_v63 = vadd.f32 %v6903_v51, %v3894_v43  ;;  %v4138_v56 = vadd.f32 %v6940_v62, %v4073_v8 }
0x3360   :  { %v6904_v35 = vpop.f32.mrb[64].mxu0  ;;  %v6944_v34 = vpop.f32.mrb[68].mxu1  ;;  %v4141_v7 = vadd.f32 %v6943_v50, %v4076_v63 }
0x3361   :  { %v6905_v32 = vpop.f32.mrb[65].mxu0  ;;  %v6945_v47 = vpop.f32.mrb[69].mxu1 }
0x3362   :  { %v6906_v27 = vadd.f32 %v6905_v32, %v6904_v35  ;;  %v6907_v6 = vpop.f32.mrb[66].mxu0  ;;  %v6946_v60 = vadd.f32 %v6945_v47, %v6944_v34  ;;  %v6947_v1 = vpop.f32.mrb[70].mxu1 }
0x3363   :  { %v6908_v53 = vpop.f32.mrb[67].mxu0  ;;  %v6948_v19 = vpop.f32.mrb[71].mxu1 }
0x3364   :  { %v4081_v20 = vadd.f32 %v6906_v27, %v3899_v2  ;;  %v6909_v38 = vadd.f32 %v6908_v53, %v6907_v6  ;;  %v6949_v18 = vadd.f32 %v6948_v19, %v6947_v1  ;;  %v3924_v1 = vpop.permute.xlu1 %3923 }
0x3366   :  { %v4084_v13 = vadd.f32 %v6909_v38, %v3904_v44  ;;  %v4146_v26 = vadd.f32 %v6946_v60, %v4081_v20 }
0x3368   :  { %v6910_v17 = vpop.f32.mrb[68].mxu0  ;;  %v6950_v22 = vpop.f32.mrb[72].mxu1  ;;  %v4149_v54 = vadd.f32 %v6949_v18, %v4084_v13 }
0x3369   :  { %v6911_v36 = vpop.f32.mrb[69].mxu0  ;;  %v6951_v30 = vpop.f32.mrb[73].mxu1 }
0x336a   :  { %v6912_v16 = vadd.f32 %v6911_v36, %v6910_v17  ;;  %v6913_v11 = vpop.f32.mrb[70].mxu0  ;;  %v6952_v25 = vadd.f32 %v6951_v30, %v6950_v22  ;;  %v6953_v33 = vpop.f32.mrb[74].mxu1 }
0x336b   :  { %v6914_v9 = vpop.f32.mrb[71].mxu0  ;;  %v6954_v23 = vpop.f32.mrb[75].mxu1 }
0x336c   :  { %v4089_v12 = vadd.f32 %v6912_v16, %v3909_v49  ;;  %v6915_v4 = vadd.f32 %v6914_v9, %v6913_v11  ;;  %v6955_v10 = vadd.f32 %v6954_v23, %v6953_v33 }
0x336e   :  { %v4092_v62 = vadd.f32 %v6915_v4, %v3914_v0  ;;  %v4154_v40 = vadd.f32 %v6952_v25, %v4089_v12 }
0x3370   :  { %v6916_v39 = vpop.f32.mrb[72].mxu0  ;;  %v6956_v8 = vpop.f32.mrb[76].mxu1  ;;  %v4157_v51 = vadd.f32 %v6955_v10, %v4092_v62 }
0x3371   :  { %v6917_v50 = vpop.f32.mrb[73].mxu0  ;;  %v6957_v43 = vpop.f32.mrb[77].mxu1 }
0x3372   :  { %v6918_v63 = vadd.f32 %v6917_v50, %v6916_v39  ;;  %v6919_v2 = vpop.f32.mrb[74].mxu0  ;;  %v6958_v35 = vadd.f32 %v6957_v43, %v6956_v8  ;;  %v6959_v34 = vpop.f32.mrb[78].mxu1 }
0x3373   :  { %v6920_v32 = vpop.f32.mrb[75].mxu0  ;;  %v6960_v47 = vpop.f32.mrb[79].mxu1 }
0x3374   :  { %v4097_v27 = vadd.f32 %v6918_v63, %v3919_v42  ;;  %v6921_v6 = vadd.f32 %v6920_v32, %v6919_v2  ;;  %v6961_v60 = vadd.f32 %v6960_v47, %v6959_v34 }
0x3376   :  { %v4100_v53 = vadd.f32 %v6921_v6, %v3924_v1  ;;  %v4162_v19 = vadd.f32 %v6958_v35, %v4097_v27 }
0x3378   :  { %v7161_v20 = vpop.f32.mrb[76].mxu0  ;;  %v4165_v38 = vadd.f32 %v6961_v60, %v4100_v53 }
0x3379   :  { %v4211_v18 = vadd.f32 %v7161_v20, %v4146_v26  ;;  %v4202_v44 = vpop.f32.mrb[77].mxu0 }
0x337a   :  { %v4203_v13 = vadd.f32 %v4202_v44, %v4138_v56  ;;  %v7162_v49 = vpop.f32.mrb[78].mxu0 }
0x337b   :  { %v4214_v17 = vadd.f32 %v7162_v49, %v4149_v54  ;;  %v4205_v22 = vpop.f32.mrb[79].mxu0  ;;  %v11032_v30 = vmax.f32 %v4211_v18, 0.0 }
0x337c   :  { %v4206_v36 = vadd.f32 %v4205_v22, %v4141_v7  ;;  %v11036_v11 = vmax.f32 %v4203_v13, 0.0 }
0x337d   :  { %v11034_v16 = vmax.f32 %v4214_v17, 0.0 }
0x337e   :  { %v11038_v25 = vmax.f32 %v4206_v36, 0.0 }
0x337f   :  { %v8422_v33 = vpack.i.bf16 %v11034_v16, %v11032_v30 }
0x3380   :  { %v7165_v9 = vpop.f32.mrb[80].mxu0  ;;  %v8417_v26 = vpack.i.bf16 %v11038_v25, %v11036_v11 }
0x3381   :  { %v4227_v56 = vadd.f32 %v7165_v9, %v4162_v19  ;;  %v4218_v23 = vpop.f32.mrb[81].mxu0  ;;  %8423 = vrot.lane.b32.xlu1 %v8422_v33, %s9003_s8 }
0x3382   :  { %v4219_v7 = vadd.f32 %v4218_v23, %v4154_v40  ;;  %v7166_v54 = vpop.f32.mrb[82].mxu0  ;;  %8418 = vrot.lane.b32.xlu0 %v8417_v26, %s9003_s8 }
0x3383   :  { %v4230_v12 = vadd.f32 %v7166_v54, %v4165_v38  ;;  %v4221_v4 = vpop.f32.mrb[83].mxu0  ;;  %v11046_v0 = vmax.f32 %v4227_v56, 0.0 }
0x3384   :  { %v4222_v10 = vadd.f32 %v4221_v4, %v4157_v51  ;;  %v11050_v42 = vmax.f32 %v4219_v7, 0.0 }
0x3385   :  { %v11048_v62 = vmax.f32 %v4230_v12, 0.0 }
0x3386   :  { %v11052_v39 = vmax.f32 %v4222_v10, 0.0 }
0x3387   :  { %v8432_v8 = vpack.i.bf16 %v11048_v62, %v11046_v0 }
0x3388   :  { %v8427_v40 = vpack.i.bf16 %v11052_v39, %v11050_v42 }
0x3389   :  { %8433 = vrot.lane.b32.xlu1 %v8432_v8, %s9003_s8 }
0x338a   :  { %8428 = vrot.lane.b32.xlu0 %v8427_v40, %s9003_s8 }
0x33f3   :  { %v8424_v50 = vpop.permute.xlu1 %8423 }
0x33f4   :  { %v8426_v51 = vunpack.i.h.bf16 %v8424_v50  ;;  %v8425_v43 = vunpack.i.l.bf16 %v8424_v50  ;;  %v8419_v63 = vpop.permute.xlu0 %8418 }
0x33f5   :  { %v8421_v2 = vunpack.i.h.bf16 %v8419_v63  ;;  %v8420_v35 = vunpack.i.l.bf16 %v8419_v63 }
0x33f6   :  { %v4284_v34 = vsel %vm2625_vm9, %v8426_v51, %v11034_v16  ;;  %v4281_v32 = vsel %vm2625_vm9, %v8425_v43, %v11032_v30 }
0x33f7   :  { %v8442_v47 = vpack.i.bf16 %v4284_v34, %v4281_v32  ;;  %v4278_v27 = vsel %vm2625_vm9, %v8421_v2, %v11038_v25  ;;  %v4275_v6 = vsel %vm2625_vm9, %v8420_v35, %v11036_v11 }
0x33f8   :  { %v8437_v60 = vpack.i.bf16 %v4278_v27, %v4275_v6 }
0x33f9   :  { %8443 = vrot.lane.b32.xlu1 %v8442_v47, %s9003_s8 }
0x33fa   :  { %8438 = vrot.lane.b32.xlu0 %v8437_v60, %s9003_s8 }
0x33fb   :  { %v8434_v1 = vpop.permute.xlu1 %8433 }
0x33fc   :  { %v8436_v53 = vunpack.i.h.bf16 %v8434_v1  ;;  %v8435_v19 = vunpack.i.l.bf16 %v8434_v1  ;;  %v8429_v20 = vpop.permute.xlu0 %8428  ;;  %v4266_v1 = vld [vmem:[%s11819_s2 + $0x188] sm:$0xff] }
0x33fd   :  { %v8431_v38 = vunpack.i.h.bf16 %v8429_v20  ;;  %v8430_v18 = vunpack.i.l.bf16 %v8429_v20  ;;  %v8808_v20 = vld [vmem:[%s11818_s1 + $0x3cc] ss:$20 sps:$4 sm:$0xff]  }
0x33fe   :  { %v4296_v44 = vsel %vm2625_vm9, %v8436_v53, %v11048_v62  ;;  %v4293_v13 = vsel %vm2625_vm9, %v8435_v19, %v11046_v0  ;;  %v4265_v53 = vld [vmem:[%s11819_s2 + $0x180] sm:$0xff]  ;;  %4750 = vmatprep.mubr.bf16.mxu0 %v8808_v20 }
0x33ff   :  { %v8452_v49 = vpack.i.bf16 %v4296_v44, %v4293_v13  ;;  %v4290_v17 = vsel %vm2625_vm9, %v8431_v38, %v11052_v39  ;;  %v4287_v22 = vsel %vm2625_vm9, %v8430_v18, %v11050_v42  ;;  %v8805_v19 = vld [vmem:[%s11818_s1 + $0x3c4] ss:$20 sps:$4 sm:$0xff]   ;;  %v4267_v18 = vld [vmem:[%s11819_s2 + $0x190] sm:$0xff]  ;;  %v4270_v44 = vld [vmem:[%s11819_s2 + $0x1a8] sm:$0xff] }
0x3400   :  { %v8447_v36 = vpack.i.bf16 %v4290_v17, %v4287_v22  ;;  %4685 = vmatprep.mubr.bf16.mxu1 %v8805_v19  ;;  %v4268_v38 = vld [vmem:[%s11819_s2 + $0x198] sm:$0xff]  ;;  %v4269_v13 = vld [vmem:[%s11819_s2 + $0x1a0] sm:$0xff]  ;;  %v4271_v17 = vld [vmem:[%s11819_s2 + $0x1b0] sm:$0xff] }
0x3401   :  { %8453 = vrot.lane.b32.xlu1 %v8452_v49, %s9003_s8  ;;  %v4272_v49 = vld [vmem:[%s11819_s2 + $0x1b8] sm:$0xff] }
0x3402   :  { %8448 = vrot.lane.b32.xlu0 %v8447_v36, %s9003_s8 }
0x346b   :  { %v8444_v33 = vpop.permute.xlu1 %8443 }
0x346c   :  { %v8439_v9 = vpop.permute.xlu0 %8438  ;;  %v8446_v26 = vunpack.i.h.bf16 %v8444_v33  ;;  %v8445_v56 = vunpack.i.l.bf16 %v8444_v33 }
0x346d   :  { %v8441_v23 = vunpack.i.h.bf16 %v8439_v9  ;;  %v8440_v7 = vunpack.i.l.bf16 %v8439_v9 }
0x346e   :  { %v4316_v10 = vsel %vm2625_vm9, %v8446_v26, %v11034_v16  ;;  %v4315_v8 = vsel %vm2625_vm9, %v8445_v56, %v11032_v30 }
0x346f   :  { %v4314_v54 = vsel %vm2625_vm9, %v8441_v23, %v11038_v25  ;;  %v4313_v12 = vsel %vm2625_vm9, %v8440_v7, %v11036_v11  ;;  %v8472_v51 = vpack.i.bf16 %v4316_v10, %v4315_v8 }
0x3470   :  { %v8467_v4 = vpack.i.bf16 %v4314_v54, %v4313_v12 }
0x3472   :  { %8468 = vrot.lane.b32.xlu1 %v8467_v4, %s8979_s9  ;;  %8458 = vrot.lane.b32.xlu0 %v8467_v4, %s9001_s29 }
0x3473   :  { %v8454_v40 = vpop.permute.xlu1 %8453 }
0x3474   :  { %v8449_v50 = vpop.permute.xlu0 %8448  ;;  %v8456_v43 = vunpack.i.h.bf16 %v8454_v40  ;;  %v8455_v63 = vunpack.i.l.bf16 %v8454_v40 }
0x3475   :  { %v8451_v2 = vunpack.i.h.bf16 %v8449_v50  ;;  %v8450_v35 = vunpack.i.l.bf16 %v8449_v50 }
0x3476   :  { %8473 = vrot.lane.b32.xlu1 %v8472_v51, %s8979_s9  ;;  %8463 = vrot.lane.b32.xlu0 %v8472_v51, %s9001_s29  ;;  %v4320_v27 = vsel %vm2625_vm9, %v8456_v43, %v11048_v62  ;;  %v4319_v6 = vsel %vm2625_vm9, %v8455_v63, %v11046_v0 }
0x3477   :  { %v4318_v34 = vsel %vm2625_vm9, %v8451_v2, %v11052_v39  ;;  %v4317_v32 = vsel %vm2625_vm9, %v8450_v35, %v11050_v42  ;;  %v8492_v60 = vpack.i.bf16 %v4320_v27, %v4319_v6 }
0x3478   :  { %v8487_v47 = vpack.i.bf16 %v4318_v34, %v4317_v32 }
0x347a   :  { %8488 = vrot.lane.b32.xlu1 %v8487_v47, %s8979_s9  ;;  %8478 = vrot.lane.b32.xlu0 %v8487_v47, %s9001_s29 }
0x347e   :  { %8493 = vrot.lane.b32.xlu1 %v8492_v60, %s8979_s9  ;;  %8483 = vrot.lane.b32.xlu0 %v8492_v60, %s9001_s29 }
0x3482   :  { %8503 = vrot.lane.b32.xlu1 %v8472_v51, %s8985_s20  ;;  %8498 = vrot.lane.b32.xlu0 %v8467_v4, %s8985_s20  ;;  %v4481_v4 = vpack.c.bf16 %v11038_v25, %v11036_v11  ;;  %v4482_v25 = vpack.c.bf16 %v11034_v16, %v11032_v30  ;;  %v4483_v16 = vpack.c.bf16 %v11052_v39, %v11050_v42 }
0x3483   :  { %v4484_v39 = vpack.c.bf16 %v11048_v62, %v11046_v0 }
0x3486   :  { %8513 = vrot.lane.b32.xlu1 %v8492_v60, %s8985_s20  ;;  %8508 = vrot.lane.b32.xlu0 %v8487_v47, %s8985_s20 }
0x348a   :  { %4508 = vperm.xlu1 %7451, %v4266_v1   ;;  %4503 = vperm.xlu0 %7350, %v4265_v53  }
0x348e   :  { %4518 = vperm.xlu1 %7451, %v4268_v38   ;;  %4513 = vperm.xlu0 %7350, %v4267_v18  }
0x3492   :  { %4528 = vperm.xlu1 %7451, %v4270_v44   ;;  %4523 = vperm.xlu0 %7350, %v4269_v13  }
0x3496   :  { %4538 = vperm.xlu1 %7451, %v4272_v49   ;;  %4533 = vperm.xlu0 %7350, %v4271_v17  }
0x34e4   :  { %v8469_v22 = vpop.permute.xlu1 %8468  ;;  %v8459_v36 = vpop.permute.xlu0 %8458 }
0x34e5   :  { %v8471_v33 = vunpack.i.h.bf16 %v8469_v22  ;;  %v8470_v9 = vunpack.i.l.bf16 %v8469_v22  ;;  %v8461_v26 = vunpack.i.h.bf16 %v8459_v36  ;;  %v8460_v56 = vunpack.i.l.bf16 %v8459_v36 }
0x34e7   :  { %v6512_v23 = vpack.c.bf16 %v8471_v33, %v8470_v9  ;;  %v11138_v7 = vpack.c.bf16 %v8461_v26, %v8460_v56  ;;  %v8803_v56 = vld [vmem:[%s11818_s1 + $0x3c0] ss:$20 sps:$4 sm:$0xff]  }
0x34e8   :  { %v8474_v54 = vpop.permute.xlu1 %8473  ;;  %v8464_v12 = vpop.permute.xlu0 %8463 }
0x34e9   :  { %v8476_v10 = vunpack.i.h.bf16 %v8474_v54  ;;  %v8475_v8 = vunpack.i.l.bf16 %v8474_v54  ;;  %v8466_v40 = vunpack.i.h.bf16 %v8464_v12  ;;  %v8465_v50 = vunpack.i.l.bf16 %v8464_v12  ;;  %6970 = vmatprep.subr.msk.bf16.mxu1 %vm10419_vm15, %v11138_v7  ;;  %7010 = vmatprep.subr.msk.bf16.mxu0 %vm10408_vm3, %v6512_v23  ;;  %v8811_v54 = vld [vmem:[%s11818_s1 + $0x3f4] ss:$20 sps:$4 sm:$0xff]   ;;  %v8817_v12 = vld [vmem:[%s11818_s1 + $0x41c] ss:$20 sps:$4 sm:$0xff]  }
0x34ea   :  { %6971 = vmatpush3.bf16.msk.msra.mxu1 %vm10358_vm0, %v6512_v23  ;;  %7011 = vmatpush3.bf16.msra.mxu0 %v4481_v4  ;;  %v8819_v4 = vld [vmem:[%s11818_s1 + $0x410] ss:$20 sps:$4 sm:$0xff]  }
0x34eb   :  { %v6515_v51 = vpack.c.bf16 %v8476_v10, %v8475_v8  ;;  %v11149_v43 = vpack.c.bf16 %v8466_v40, %v8465_v50  ;;  %v8820_v10 = vld [vmem:[%s11818_s1 + $0x418] ss:$20 sps:$4 sm:$0xff]   ;;  %v8821_v8 = vld [vmem:[%s11818_s1 + $0x43c] ss:$20 sps:$4 sm:$0xff]  }
0x34ec   :  { %v8489_v63 = vpop.permute.xlu1 %8488  ;;  %v8479_v11 = vpop.permute.xlu0 %8478  ;;  %v8823_v40 = vld [vmem:[%s11818_s1 + $0x444] ss:$20 sps:$4 sm:$0xff]  }
0x34ed   :  { %v8491_v2 = vunpack.i.h.bf16 %v8489_v63  ;;  %v8490_v35 = vunpack.i.l.bf16 %v8489_v63  ;;  %v8481_v34 = vunpack.i.h.bf16 %v8479_v11  ;;  %v8480_v32 = vunpack.i.l.bf16 %v8479_v11  ;;  %6972 = vmatprep.subr.msk.bf16.mxu1 %vm10419_vm15, %v11149_v43  ;;  %7012 = vmatprep.subr.msk.bf16.mxu0 %vm10408_vm3, %v6515_v51  ;;  %v8825_v50 = vld [vmem:[%s11818_s1 + $0x438] ss:$20 sps:$4 sm:$0xff]  }
0x34ee   :  { %6973 = vmatpush3.bf16.msk.msra.mxu1 %vm10358_vm0, %v6515_v51  ;;  %7013 = vmatpush3.bf16.msra.mxu0 %v4482_v25  ;;  %v8829_v63 = vld [vmem:[%s11818_s1 + $0x3f8] ss:$20 sps:$4 sm:$0xff]   ;;  %v8831_v25 = vld [vmem:[%s11818_s1 + $0x420] ss:$20 sps:$4 sm:$0xff]  }
0x34ef   :  { %v6518_v47 = vpack.c.bf16 %v8491_v2, %v8490_v35  ;;  %v11160_v27 = vpack.c.bf16 %v8481_v34, %v8480_v32  ;;  %v8830_v11 = vld [vmem:[%s11818_s1 + $0x498] ss:$20 sps:$4 sm:$0xff]   ;;  %v8832_v2 = vld [vmem:[%s11818_s1 + $0x4c0] ss:$20 sps:$4 sm:$0xff]   ;;  %v5472_v35 = vpack.c.bf16 %v9280_v29, %v9280_v29  ;;  %v8833_v34 = vld [vmem:[%s11818_s1 + $0x448] ss:$20 sps:$4 sm:$0xff]  }
0x34f0   :  { %v8494_v6 = vpop.permute.xlu1 %8493  ;;  %v8484_v30 = vpop.permute.xlu0 %8483  ;;  %v8834_v29 = vld [vmem:[%s11818_s1 + $0x4e8] ss:$20 sps:$4 sm:$0xff]   ;;  %v5518_v32 = vsel %vm3410_vm7, %v9604_v57, 0 }
0x34f1   :  { %v8496_v60 = vunpack.i.h.bf16 %v8494_v6  ;;  %v8495_v1 = vunpack.i.l.bf16 %v8494_v6  ;;  %v8486_v53 = vunpack.i.h.bf16 %v8484_v30  ;;  %v8485_v19 = vunpack.i.l.bf16 %v8484_v30  ;;  %6974 = vmatprep.subr.msk.bf16.mxu1 %vm10419_vm15, %v11160_v27  ;;  %7014 = vmatprep.subr.msk.bf16.mxu0 %vm10408_vm3, %v6518_v47 }
0x34f2   :  { %6975 = vmatpush3.bf16.msk.msra.mxu1 %vm10358_vm0, %v6518_v47  ;;  %7015 = vmatpush3.bf16.msra.mxu0 %v4483_v16 }
0x34f3   :  { %v6521_v20 = vpack.c.bf16 %v8496_v60, %v8495_v1  ;;  %v11171_v38 = vpack.c.bf16 %v8486_v53, %v8485_v19 }
0x34f4   :  { %v8504_v18 = vpop.permute.xlu1 %8503  ;;  %v8499_v42 = vpop.permute.xlu0 %8498 }
0x34f5   :  { %v8506_v44 = vunpack.i.h.bf16 %v8504_v18  ;;  %v8505_v13 = vunpack.i.l.bf16 %v8504_v18  ;;  %v8501_v49 = vunpack.i.h.bf16 %v8499_v42  ;;  %v8500_v17 = vunpack.i.l.bf16 %v8499_v42  ;;  %6976 = vmatprep.subr.msk.bf16.mxu1 %vm10419_vm15, %v11171_v38  ;;  %7016 = vmatprep.subr.msk.bf16.mxu0 %vm10408_vm3, %v6521_v20 }
0x34f6   :  { %6977 = vmatpush3.bf16.msk.msra.mxu1 %vm10358_vm0, %v6521_v20  ;;  %7017 = vmatpush3.bf16.msra.mxu0 %v4484_v39  ;;  %vm11960_vm0 = vmmov 0  }
0x34f7   :  { %v6524_v22 = vpack.c.bf16 %v8501_v49, %v8500_v17  ;;  %6978 = vmatprep.subr.msk.bf16.mxu1 %vm10450_vm6, %v11138_v7  ;;  %v6527_v62 = vpack.c.bf16 %v8506_v44, %v8505_v13 }
0x34f8   :  { %v8509_v0 = vpop.permute.xlu0 %8508  ;;  %v8514_v41 = vpop.permute.xlu1 %8513 }
0x34f9   :  { %v8511_v36 = vunpack.i.h.bf16 %v8509_v0  ;;  %v8510_v33 = vunpack.i.l.bf16 %v8509_v0  ;;  %7018 = vmatprep.subr.msk.bf16.mxu0 %vm10438_vm12, %v6524_v22  ;;  %v8516_v52 = vunpack.i.h.bf16 %v8514_v41  ;;  %v8515_v14 = vunpack.i.l.bf16 %v8514_v41 }
0x34fa   :  { %6979 = vmatpush3.bf16.msk.msra.mxu1 %vm10388_vm14, %v6524_v22  ;;  %7019 = vmatpush3.bf16.msk.msra.mxu0 %vm10376_vm10, %v6512_v23  ;;  %v8806_v23 = vld [vmem:[%s11818_s1 + $0x3c8] ss:$20 sps:$4 sm:$0xff]  }
0x34fb   :  { %6980 = vmatprep.subr.msk.bf16.mxu1 %vm10450_vm6, %v11149_v43  ;;  %7020 = vmatprep.subr.msk.bf16.mxu0 %vm10438_vm12, %v6527_v62  ;;  %v6530_v9 = vpack.c.bf16 %v8511_v36, %v8510_v33  ;;  %v6533_v26 = vpack.c.bf16 %v8516_v52, %v8515_v14 }
0x34fe   :  { %6981 = vmatpush3.bf16.msk.msra.mxu1 %vm10388_vm14, %v6527_v62  ;;  %7021 = vmatpush3.bf16.msk.msra.mxu0 %vm10376_vm10, %v6515_v51  ;;  %v8827_v51 = vld [vmem:[%s11818_s1 + $0x3d0] ss:$20 sps:$4 sm:$0xff]  }
0x34ff   :  { %6982 = vmatprep.subr.msk.bf16.mxu1 %vm10450_vm6, %v11160_v27  ;;  %7022 = vmatprep.subr.msk.bf16.mxu0 %vm10438_vm12, %v6530_v9 }
0x3502   :  { %6983 = vmatpush3.bf16.msk.msra.mxu1 %vm10388_vm14, %v6530_v9  ;;  %7023 = vmatpush3.bf16.msk.msra.mxu0 %vm10376_vm10, %v6518_v47  ;;  %v5566_v47 = vsel %vm818_vm13, %v9854_v28, 0 }
0x3503   :  { %6984 = vmatprep.subr.msk.bf16.mxu1 %vm10450_vm6, %v11171_v38  ;;  %7024 = vmatprep.subr.msk.bf16.mxu0 %vm10438_vm12, %v6533_v26 }
0x3506   :  { %6985 = vmatpush3.bf16.msk.msra.mxu1 %vm10388_vm14, %v6533_v26  ;;  %7025 = vmatpush3.bf16.msk.msra.mxu0 %vm10376_vm10, %v6521_v20 }
0x3507   :  { %7167 = vmatprep.subr.msk.bf16.mxu1 %vm10380_vm1, %v11138_v7  ;;  %7183 = vmatprep.subr.bf16.mxu0 %v9004_v24 }
0x3509   :  { %4686 = vmatmul.mubr.bf16.vlgmr.msra.gmra.mrb[80].mxu1 %v8803_v56  ;;  %4751 = vmatmul.mubr.bf16.vlgmr.msra.gmra.mrb[84].mxu0 %v8806_v23  ;;  %v4509_v39 = vpop.permute.xlu1 %4508 }
0x350a   :  { %7168 = vmatpush3.bf16.msk.msra.mxu1 %vm10380_vm1, %v11138_v7  ;;  %7184 = vmatpush3.bf16.msra.mxu0 %v9004_v24  ;;  %v8815_v7 = vld [vmem:[%s11818_s1 + $0x414] ss:$20 sps:$4 sm:$0xff]  }
0x350b   :  { %7169 = vmatprep.subr.msk.bf16.mxu1 %vm10380_vm1, %v11149_v43  ;;  %5474 = vmatprep.subr.bf16.mxu0 %v5473_v55 }
0x350c   :  { %4693 = vmatprep.mubr.bf16.mxu1 %v8809_v45  ;;  %4758 = vmatprep.mubr.bf16.mxu0 %v8811_v54 }
0x350e   :  { %7170 = vmatpush3.bf16.msk.msra.mxu1 %vm10380_vm1, %v11149_v43  ;;  %v8828_v43 = vld [vmem:[%s11818_s1 + $0x470] ss:$20 sps:$4 sm:$0xff]  }
0x350f   :  { %7171 = vmatprep.subr.msk.bf16.mxu1 %vm10380_vm1, %v11160_v27 }
0x3511   :  { %4694 = vmatmul.mubr.bf16.gmra.mrb[84].mxu1 %v8813_v37  ;;  %4759 = vmatmul.mubr.bf16.gmra.mrb[88].mxu0 %v8814_v31 }
0x3512   :  { %7172 = vmatpush3.bf16.msk.msra.mxu1 %vm10380_vm1, %v11160_v27  ;;  %4701 = vmatprep.mubr.bf16.mxu1 %v8815_v7  ;;  %v5569_v27 = vsel %vm818_vm13, %v9916_v15, 0 }
0x3513   :  { %7173 = vmatprep.subr.msk.bf16.mxu1 %vm10380_vm1, %v11171_v38  ;;  %4766 = vmatprep.mubr.bf16.mxu0 %v8817_v12 }
0x3516   :  { %7174 = vmatpush3.bf16.msk.msra.mxu1 %vm10380_vm1, %v11171_v38 }
0x3517   :  { %5269 = vmatprep.subr.bf16.mxu1 %v8983_v3 }
0x3519   :  { %4702 = vmatmul.mubr.bf16.gmra.mrb[88].mxu1 %v8819_v4  ;;  %4767 = vmatmul.mubr.bf16.gmra.mrb[92].mxu0 %v8820_v10 }
0x351a   :  { %4709 = vmatprep.mubr.bf16.mxu1 %v8821_v8  ;;  %4774 = vmatprep.mubr.bf16.mxu0 %v8823_v40 }
0x3521   :  { %4710 = vmatmul.mubr.bf16.gmra.mrb[92].mxu1 %v8825_v50  ;;  %4775 = vmatmul.mubr.bf16.gmra.mrb[96].mxu0 %v8826_v59 }
0x3522   :  { %7175 = vmatprep.mubr.msk.bf16.mxu1 %vm3410_vm7, %v8827_v51  ;;  %7185 = vmatprep.mubr.msk.bf16.mxu0 %vm3410_vm7, %v8828_v43 }
0x3529   :  { %7176 = vmatmul.mubr.msk.bf16.vlgmr.msra.gmra.mrb[96].mxu1 %vm3410_vm7, %v8829_v63  ;;  %7186 = vmatmul.mubr.msk.bf16.vlgmr.msra.gmra.mrb[100].mxu0 %vm3410_vm7, %v8830_v11 }
0x352a   :  { %5475 = vmatpush1.bf16.xpose.msra.mxu0 %v5472_v35  ;;  %7179 = vmatprep.mubr.msk.bf16.mxu1 %vm3410_vm7, %v8831_v25 }
0x352b   :  { %7189 = vmatprep.mubr.msk.bf16.mxu0 %vm3410_vm7, %v8832_v2  ;;  %7193 = vmatprep.subr.bf16.mxu0 %v8990_v46 }
0x352c   :  { %5270 = vmatpush1.bf16.msra.mxu1 %v9004_v24  ;;  %v4519_v24 = vpop.permute.xlu1 %4518 }
0x352d   :  { %5334 = vmatprep.subr.bf16.mxu1 %v8983_v3 }
0x3530   :  { %v4529_v25 = vpop.permute.xlu1 %4528 }
0x3531   :  { %7180 = vmatmul.mubr.msk.bf16.gmra.mrb[100].mxu1 %vm3410_vm7, %v8833_v34  ;;  %7190 = vmatmul.mubr.msk.bf16.gmra.mrb[104].mxu0 %vm3410_vm7, %v8834_v29 }
0x3532   :  { %5506 = vmatprep.mubr.bf16.mxu0 %v5473_v55 }
0x3539   :  { %5507 = vmatmul.mubr.bf16.vlgmr.msra.gmra.mrb[108].mxu0 %v5472_v35 }
0x353a   :  { %7194 = vmatpush3.bf16.xpose.msra.mxu0 %v5518_v32  ;;  %7195 = vmatprep.mubr.msk.bf16.mxu0 %vm11960_vm0, %v8990_v46  ;;  %v4504_v46 = vpop.permute.xlu0 %4503 }
0x353b   :  { %7263 = vmatprep.subr.msk.bf16.mxu0 %vm818_vm13, %v9854_v28 }
0x353e   :  { %v4514_v49 = vpop.permute.xlu0 %4513 }
0x3541   :  { %7196 = vmatmul.mubr.msk.bf16.vlgmr.msra.gmra.mrb[112].mxu0 %vm3410_vm7, %v9604_v57 }
0x3542   :  { %7200 = vmatpush3.bf16.xpose.msra.mxu0 %v5566_v47  ;;  %7203 = vmatprep.mubr.msk.bf16.mxu0 %vm818_vm13, %v9854_v28  ;;  %v4524_v55 = vpop.permute.xlu0 %4523 }
0x3543   :  { %7264 = vmatprep.subr.msk.bf16.mxu0 %vm818_vm13, %v9916_v15 }
0x3546   :  { %v4534_v34 = vpop.permute.xlu0 %4533 }
0x354a   :  { %7202 = vmatpush3.bf16.xpose.msra.mxu0 %v5569_v27 }
0x3551   :  { %7204 = vmatmul.mubr.msk.bf16.vlgmr.msra.gmra.mrb[116].mxu0 %vm818_vm13, %v9916_v15 }
0x35dc   :  { %v6986_v6 = vpop.f32.mrb[80].mxu1  ;;  %v7026_v57 = vpop.f32.mrb[84].mxu0 }
0x35dd   :  { %v6987_v30 = vpop.f32.mrb[81].mxu1  ;;  %v7027_v16 = vpop.f32.mrb[85].mxu0 }
0x35de   :  { %v6988_v60 = vadd.f32 %v6987_v30, %v6986_v6  ;;  %v6989_v1 = vpop.f32.mrb[82].mxu1  ;;  %v7028_v53 = vadd.f32 %v7027_v16, %v7026_v57  ;;  %v7029_v19 = vpop.f32.mrb[86].mxu0 }
0x35df   :  { %v6990_v28 = vpop.f32.mrb[83].mxu1  ;;  %v7030_v20 = vpop.f32.mrb[87].mxu0 }
0x35e0   :  { %v4688_v38 = vadd.f32 %v6988_v60, %v4504_v46  ;;  %v6991_v18 = vadd.f32 %v6990_v28, %v6989_v1  ;;  %v7031_v42 = vadd.f32 %v7030_v20, %v7029_v19  ;;  %v4539_v20 = vpop.permute.xlu1 %4538 }
0x35e2   :  { %v4691_v44 = vadd.f32 %v6991_v18, %v4509_v39  ;;  %v4753_v13 = vadd.f32 %v7028_v53, %v4688_v38 }
0x35e4   :  { %v6992_v17 = vpop.f32.mrb[84].mxu1  ;;  %v7032_v15 = vpop.f32.mrb[88].mxu0  ;;  %v11341_v22 = vadd.f32 %v7031_v42, %v4691_v44 }
0x35e5   :  { %v6993_v0 = vpop.f32.mrb[85].mxu1  ;;  %v7033_v62 = vpop.f32.mrb[89].mxu0 }
0x35e6   :  { %v6994_v36 = vadd.f32 %v6993_v0, %v6992_v17  ;;  %v6995_v33 = vpop.f32.mrb[86].mxu1  ;;  %v7034_v41 = vadd.f32 %v7033_v62, %v7032_v15  ;;  %v7035_v52 = vpop.f32.mrb[90].mxu0 }
0x35e7   :  { %v6996_v14 = vpop.f32.mrb[87].mxu1  ;;  %v7036_v9 = vpop.f32.mrb[91].mxu0 }
0x35e8   :  { %v4696_v26 = vadd.f32 %v6994_v36, %v4514_v49  ;;  %v6997_v56 = vadd.f32 %v6996_v14, %v6995_v33  ;;  %v7037_v23 = vadd.f32 %v7036_v9, %v7035_v52 }
0x35ea   :  { %v4699_v45 = vadd.f32 %v6997_v56, %v4519_v24  ;;  %v4761_v54 = vadd.f32 %v7034_v41, %v4696_v26 }
0x35ec   :  { %v6998_v37 = vpop.f32.mrb[88].mxu1  ;;  %v7038_v31 = vpop.f32.mrb[92].mxu0  ;;  %v4764_v7 = vadd.f32 %v7037_v23, %v4699_v45 }
0x35ed   :  { %v6999_v12 = vpop.f32.mrb[89].mxu1  ;;  %v7039_v4 = vpop.f32.mrb[93].mxu0 }
0x35ee   :  { %v7000_v10 = vadd.f32 %v6999_v12, %v6998_v37  ;;  %v7001_v8 = vpop.f32.mrb[90].mxu1  ;;  %v7040_v40 = vadd.f32 %v7039_v4, %v7038_v31  ;;  %v7041_v50 = vpop.f32.mrb[94].mxu0 }
0x35ef   :  { %v7002_v59 = vpop.f32.mrb[91].mxu1  ;;  %v7042_v51 = vpop.f32.mrb[95].mxu0 }
0x35f0   :  { %v4704_v43 = vadd.f32 %v7000_v10, %v4524_v55  ;;  %v7003_v63 = vadd.f32 %v7002_v59, %v7001_v8  ;;  %v7043_v11 = vadd.f32 %v7042_v51, %v7041_v50 }
0x35f2   :  { %v4707_v2 = vadd.f32 %v7003_v63, %v4529_v25  ;;  %v4769_v35 = vadd.f32 %v7040_v40, %v4704_v43 }
0x35f4   :  { %v7004_v29 = vpop.f32.mrb[92].mxu1  ;;  %v7044_v32 = vpop.f32.mrb[96].mxu0  ;;  %v4772_v47 = vadd.f32 %v7043_v11, %v4707_v2 }
0x35f5   :  { %v7005_v27 = vpop.f32.mrb[93].mxu1  ;;  %v7045_v46 = vpop.f32.mrb[97].mxu0 }
0x35f6   :  { %v7006_v6 = vadd.f32 %v7005_v27, %v7004_v29  ;;  %v7007_v57 = vpop.f32.mrb[94].mxu1  ;;  %v7046_v30 = vadd.f32 %v7045_v46, %v7044_v32  ;;  %v7047_v16 = vpop.f32.mrb[98].mxu0 }
0x35f7   :  { %v7008_v60 = vpop.f32.mrb[95].mxu1  ;;  %v7048_v1 = vpop.f32.mrb[99].mxu0 }
0x35f8   :  { %v4712_v53 = vadd.f32 %v7006_v6, %v4534_v34  ;;  %v7009_v19 = vadd.f32 %v7008_v60, %v7007_v57  ;;  %v7049_v28 = vadd.f32 %v7048_v1, %v7047_v16 }
0x35fa   :  { %v4715_v38 = vadd.f32 %v7009_v19, %v4539_v20  ;;  %v4777_v18 = vadd.f32 %v7046_v30, %v4712_v53 }
0x35fc   :  { %v7177_v42 = vpop.f32.mrb[96].mxu1  ;;  %v11343_v39 = vpop.f32.mrb[100].mxu0  ;;  %v4780_v44 = vadd.f32 %v7049_v28, %v4715_v38 }
0x35fd   :  { %v4826_v49 = vadd.f32 %v7177_v42, %v4761_v54  ;;  %v4817_v17 = vpop.f32.mrb[97].mxu1  ;;  %v11345_v15 = vpop.f32.mrb[101].mxu0 }
0x35fe   :  { %v4818_v0 = vadd.f32 %v4817_v17, %v4753_v13  ;;  %v7178_v62 = vpop.f32.mrb[98].mxu1  ;;  %v11347_v36 = vpop.f32.mrb[102].mxu0 }
0x35ff   :  { %v4829_v33 = vadd.f32 %v7178_v62, %v4764_v7  ;;  %v4820_v41 = vpop.f32.mrb[99].mxu1  ;;  %v11349_v52 = vpop.f32.mrb[103].mxu0  ;;  %v11352_v9 = vmax.f32 %v4826_v49, 0.0 }
0x3600   :  { %v4821_v14 = vadd.f32 %v4820_v41, %v11341_v22  ;;  %v11356_v56 = vmax.f32 %v4818_v0, 0.0 }
0x3601   :  { %v11354_v26 = vmax.f32 %v4829_v33, 0.0 }
0x3602   :  { %v11358_v23 = vmax.f32 %v4821_v14, 0.0 }
0x3603   :  { %v8522_v13 = vpack.i.bf16 %v11354_v26, %v11352_v9 }
0x3604   :  { %v7181_v24 = vpop.f32.mrb[100].mxu1  ;;  %v8517_v45 = vpack.i.bf16 %v11358_v23, %v11356_v56  ;;  %v11364_v54 = vpop.f32.mrb[104].mxu0 }
0x3605   :  { %v4842_v55 = vadd.f32 %v7181_v24, %v4777_v18  ;;  %v4833_v37 = vpop.f32.mrb[101].mxu1  ;;  %8523 = vrot.lane.b32.xlu1 %v8522_v13, %s9003_s8  ;;  %v11367_v22 = vpop.f32.mrb[105].mxu0 }
0x3606   :  { %v4834_v31 = vadd.f32 %v4833_v37, %v4769_v35  ;;  %v7182_v7 = vpop.f32.mrb[102].mxu1  ;;  %8518 = vrot.lane.b32.xlu0 %v8517_v45, %s9003_s8  ;;  %v11370_v12 = vpop.f32.mrb[106].mxu0 }
0x3607   :  { %v4845_v4 = vadd.f32 %v7182_v7, %v4780_v44  ;;  %v4836_v10 = vpop.f32.mrb[103].mxu1  ;;  %v11372_v8 = vpop.f32.mrb[107].mxu0  ;;  %v11374_v50 = vmax.f32 %v4842_v55, 0.0 }
0x3608   :  { %v4837_v40 = vadd.f32 %v4836_v10, %v4772_v47  ;;  %v11378_v51 = vmax.f32 %v4834_v31, 0.0 }
0x3609   :  { %v11376_v59 = vmax.f32 %v4845_v4, 0.0 }
0x360a   :  { %v11380_v43 = vmax.f32 %v4837_v40, 0.0 }
0x360b   :  { %v8532_v63 = vpack.i.bf16 %v11376_v59, %v11374_v50 }
0x360c   :  { %v5508_v11 = vpop.f32.mrb[108].mxu0  ;;  %v8527_v25 = vpack.i.bf16 %v11380_v43, %v11378_v51 }
0x360d   :  { %v5514_v2 = vmul.f32 0.00048828125, %v5508_v11  ;;  %8533 = vrot.lane.b32.xlu1 %v8532_v63, %s9003_s8  ;;  %v5510_v35 = vpop.f32.mrb[109].mxu0 }
0x360e   :  { %8528 = vrot.lane.b32.xlu0 %v8527_v25, %s9003_s8  ;;  %v5511_v34 = vpop.f32.mrb[110].mxu0 }
0x360f   :  { %v5512_v29 = vpop.f32.mrb[111].mxu0  ;;  %5516 = vst.msk [vmem:[#allocation2] sm:$0xff] %vm5515_vm8, %v5514_v2 }
0x3614   :  { %v5554_v32 = vpop.f32.mrb[112].mxu0 }
0x3615   :  { %v5561_v47 = vmul.f32 0.0009765625, %v5554_v32  ;;  %v7197_v27 = vpop.f32.mrb[113].mxu0 }
0x3616   :  { %v5557_v46 = vpop.f32.mrb[114].mxu0 }
0x3617   :  { %5563 = vst.msk [vmem:[#allocation4] sm:$0xff] %vm818_vm13, %v5561_v47  ;;  %v5562_v6 = vmul.f32 0.0009765625, %v5557_v46  ;;  %v7198_v57 = vpop.f32.mrb[115].mxu0 }
0x3619   :  { %5564 = vst.msk [vmem:[#allocation4 + $0x8] sm:$0xff] %vm818_vm13, %v5562_v6  ;;  %vm5628_vm13 = vcmask 31744  }
0x361a   :  { %v5630_v5 = vsel %vm5628_vm13, %v10594_v48, 0 }
0x3624   :  { %v7205_v30 = vpop.f32.mrb[116].mxu0 }
0x3625   :  { %v5622_v16 = vmul.f32 0.001953125, %v7205_v30  ;;  %v5605_v60 = vpop.f32.mrb[117].mxu0 }
0x3626   :  { %v5620_v1 = vmul.f32 0.001953125, %v5605_v60  ;;  %v7206_v53 = vpop.f32.mrb[118].mxu0 }
0x3627   :  { %5626 = vst.msk [vmem:[#allocation6 + $0x10] sm:$0xff] %vm1527_vm4, %v5622_v16  ;;  %v5623_v19 = vmul.f32 0.001953125, %v7206_v53  ;;  %v5608_v28 = vpop.f32.mrb[119].mxu0 }
0x3628   :  { %5624 = vst.msk [vmem:[#allocation6] sm:$0xff] %vm1527_vm4, %v5620_v1  ;;  %v5621_v20 = vmul.f32 0.001953125, %v5608_v28 }
0x3629   :  { %5627 = vst.msk [vmem:[#allocation6 + $0x18] sm:$0xff] %vm1527_vm4, %v5623_v19 }
0x362a   :  { %5625 = vst.msk [vmem:[#allocation6 + $0x8] sm:$0xff] %vm1527_vm4, %v5621_v20 }
0x3677   :  { %v8524_v38 = vpop.permute.xlu1 %8523 }
0x3678   :  { %v8526_v18 = vunpack.i.h.bf16 %v8524_v38  ;;  %v8525_v42 = vunpack.i.l.bf16 %v8524_v38  ;;  %v8519_v44 = vpop.permute.xlu0 %8518 }
0x3679   :  { %v8521_v49 = vunpack.i.h.bf16 %v8519_v44  ;;  %v8520_v17 = vunpack.i.l.bf16 %v8519_v44 }
0x367a   :  { %v4867_v0 = vsel %vm2625_vm9, %v8526_v18, %v11354_v26  ;;  %v4864_v62 = vsel %vm2625_vm9, %v8525_v42, %v11352_v9 }
0x367b   :  { %v8542_v33 = vpack.i.bf16 %v4867_v0, %v4864_v62  ;;  %v4861_v41 = vsel %vm2625_vm9, %v8521_v49, %v11358_v23  ;;  %v4858_v14 = vsel %vm2625_vm9, %v8520_v17, %v11356_v56 }
0x367c   :  { %v8537_v13 = vpack.i.bf16 %v4861_v41, %v4858_v14 }
0x367d   :  { %8543 = vrot.lane.b32.xlu1 %v8542_v33, %s9003_s8 }
0x367e   :  { %8538 = vrot.lane.b32.xlu0 %v8537_v13, %s9003_s8 }
0x367f   :  { %v8534_v24 = vpop.permute.xlu1 %8533 }
0x3680   :  { %v8536_v45 = vunpack.i.h.bf16 %v8534_v24  ;;  %v8535_v55 = vunpack.i.l.bf16 %v8534_v24  ;;  %v8529_v37 = vpop.permute.xlu0 %8528 }
0x3681   :  { %v8531_v31 = vunpack.i.h.bf16 %v8529_v37  ;;  %v8530_v7 = vunpack.i.l.bf16 %v8529_v37 }
0x3682   :  { %v4879_v4 = vsel %vm2625_vm9, %v8536_v45, %v11376_v59  ;;  %v4876_v10 = vsel %vm2625_vm9, %v8535_v55, %v11374_v50 }
0x3683   :  { %v8552_v40 = vpack.i.bf16 %v4879_v4, %v4876_v10  ;;  %v4873_v63 = vsel %vm2625_vm9, %v8531_v31, %v11380_v43  ;;  %v4870_v11 = vsel %vm2625_vm9, %v8530_v7, %v11378_v51 }
0x3684   :  { %v8547_v25 = vpack.i.bf16 %v4873_v63, %v4870_v11 }
0x3685   :  { %8553 = vrot.lane.b32.xlu1 %v8552_v40, %s9003_s8 }
0x3686   :  { %8548 = vrot.lane.b32.xlu0 %v8547_v25, %s9003_s8 }
0x36ef   :  { %v8544_v2 = vpop.permute.xlu1 %8543 }
0x36f0   :  { %v8546_v35 = vunpack.i.h.bf16 %v8544_v2  ;;  %v8545_v34 = vunpack.i.l.bf16 %v8544_v2  ;;  %v8539_v29 = vpop.permute.xlu0 %8538 }
0x36f1   :  { %v8541_v32 = vunpack.i.h.bf16 %v8539_v29  ;;  %v8540_v47 = vunpack.i.l.bf16 %v8539_v29 }
0x36f2   :  { %v4899_v27 = vsel %vm2625_vm9, %v8546_v35, %v11354_v26  ;;  %v4898_v46 = vsel %vm2625_vm9, %v8545_v34, %v11352_v9 }
0x36f3   :  { %v8562_v6 = vpack.i.bf16 %v4899_v27, %v4898_v46  ;;  %v4897_v57 = vsel %vm2625_vm9, %v8541_v32, %v11358_v23  ;;  %v4896_v30 = vsel %vm2625_vm9, %v8540_v47, %v11356_v56 }
0x36f4   :  { %v8557_v16 = vpack.i.bf16 %v4897_v57, %v4896_v30 }
0x36f5   :  { %8563 = vrot.lane.b32.xlu1 %v8562_v6, %s8979_s9 }
0x36f6   :  { %8558 = vrot.lane.b32.xlu0 %v8557_v16, %s8979_s9 }
0x36f7   :  { %v8554_v60 = vpop.permute.xlu1 %8553 }
0x36f8   :  { %v8556_v1 = vunpack.i.h.bf16 %v8554_v60  ;;  %v8555_v53 = vunpack.i.l.bf16 %v8554_v60  ;;  %v8549_v19 = vpop.permute.xlu0 %8548 }
0x36f9   :  { %v8551_v28 = vunpack.i.h.bf16 %v8549_v19  ;;  %v8550_v20 = vunpack.i.l.bf16 %v8549_v19 }
0x36fa   :  { %v4903_v38 = vsel %vm2625_vm9, %v8556_v1, %v11376_v59  ;;  %v4902_v18 = vsel %vm2625_vm9, %v8555_v53, %v11374_v50 }
0x36fb   :  { %v8572_v42 = vpack.i.bf16 %v4903_v38, %v4902_v18  ;;  %v4901_v44 = vsel %vm2625_vm9, %v8551_v28, %v11380_v43  ;;  %v4900_v49 = vsel %vm2625_vm9, %v8550_v20, %v11378_v51 }
0x36fc   :  { %v8567_v17 = vpack.i.bf16 %v4901_v44, %v4900_v49 }
0x36fd   :  { %8573 = vrot.lane.b32.xlu1 %v8572_v42, %s8979_s9 }
0x36fe   :  { %8568 = vrot.lane.b32.xlu0 %v8567_v17, %s8979_s9 }
0x3767   :  { %v8564_v0 = vpop.permute.xlu1 %8563 }
0x3768   :  { %v8566_v62 = vunpack.i.h.bf16 %v8564_v0  ;;  %v8565_v33 = vunpack.i.l.bf16 %v8564_v0  ;;  %v8559_v41 = vpop.permute.xlu0 %8558 }
0x3769   :  { %v8561_v14 = vunpack.i.h.bf16 %v8559_v41  ;;  %v8560_v13 = vunpack.i.l.bf16 %v8559_v41 }
0x376a   :  { %v11435_v24 = vmax.f32 %v11354_v26, %v8566_v62  ;;  %v11438_v45 = vmax.f32 %v11352_v9, %v8565_v33 }
0x376b   :  { %v11441_v55 = vmax.f32 %v11358_v23, %v8561_v14  ;;  %v11444_v37 = vmax.f32 %v11356_v56, %v8560_v13 }
0x376c   :  { %v8582_v31 = vpack.i.bf16 %v11435_v24, %v11438_v45 }
0x376d   :  { %v8577_v7 = vpack.i.bf16 %v11441_v55, %v11444_v37 }
0x376e   :  { %8583 = vrot.lane.b32.xlu1 %v8582_v31, %s9003_s8 }
0x376f   :  { %v8574_v4 = vpop.permute.xlu1 %8573  ;;  %8578 = vrot.lane.b32.xlu0 %v8577_v7, %s9003_s8 }
0x3770   :  { %v8576_v26 = vunpack.i.h.bf16 %v8574_v4  ;;  %v8575_v9 = vunpack.i.l.bf16 %v8574_v4  ;;  %v8569_v10 = vpop.permute.xlu0 %8568 }
0x3771   :  { %v8571_v40 = vunpack.i.h.bf16 %v8569_v10  ;;  %v8570_v23 = vunpack.i.l.bf16 %v8569_v10 }
0x3772   :  { %v11453_v63 = vmax.f32 %v11376_v59, %v8576_v26  ;;  %v11456_v56 = vmax.f32 %v11374_v50, %v8575_v9 }
0x3773   :  { %v11459_v11 = vmax.f32 %v11380_v43, %v8571_v40  ;;  %v11462_v25 = vmax.f32 %v11378_v51, %v8570_v23 }
0x3774   :  { %v8592_v2 = vpack.i.bf16 %v11453_v63, %v11456_v56 }
0x3775   :  { %v8587_v35 = vpack.i.bf16 %v11459_v11, %v11462_v25 }
0x3776   :  { %8593 = vrot.lane.b32.xlu1 %v8592_v2, %s9003_s8 }
0x3777   :  { %8588 = vrot.lane.b32.xlu0 %v8587_v35, %s9003_s8 }
0x37e0   :  { %v8584_v59 = vpop.permute.xlu1 %8583 }
0x37e1   :  { %v8586_v34 = vunpack.i.h.bf16 %v8584_v59  ;;  %v8585_v50 = vunpack.i.l.bf16 %v8584_v59  ;;  %v8579_v29 = vpop.permute.xlu0 %8578 }
0x37e2   :  { %v8581_v32 = vunpack.i.h.bf16 %v8579_v29  ;;  %v8580_v43 = vunpack.i.l.bf16 %v8579_v29 }
0x37e3   :  { %v4955_v51 = vsel %vm2625_vm9, %v8586_v34, %v11435_v24  ;;  %v4952_v47 = vsel %vm2625_vm9, %v8585_v50, %v11438_v45 }
0x37e4   :  { %v8602_v27 = vpack.i.bf16 %v4955_v51, %v4952_v47  ;;  %v4949_v46 = vsel %vm2625_vm9, %v8581_v32, %v11441_v55  ;;  %v4946_v6 = vsel %vm2625_vm9, %v8580_v43, %v11444_v37 }
0x37e5   :  { %v8597_v57 = vpack.i.bf16 %v4949_v46, %v4946_v6 }
0x37e6   :  { %8603 = vrot.lane.b32.xlu1 %v8602_v27, %s9003_s8 }
0x37e7   :  { %8598 = vrot.lane.b32.xlu0 %v8597_v57, %s9003_s8 }
0x37e8   :  { %v8594_v30 = vpop.permute.xlu1 %8593 }
0x37e9   :  { %v8596_v16 = vunpack.i.h.bf16 %v8594_v30  ;;  %v8595_v60 = vunpack.i.l.bf16 %v8594_v30  ;;  %v8589_v1 = vpop.permute.xlu0 %8588 }
0x37ea   :  { %v8591_v53 = vunpack.i.h.bf16 %v8589_v1  ;;  %v8590_v19 = vunpack.i.l.bf16 %v8589_v1 }
0x37eb   :  { %v4967_v28 = vsel %vm2625_vm9, %v8596_v16, %v11453_v63  ;;  %v4964_v20 = vsel %vm2625_vm9, %v8595_v60, %v11456_v56 }
0x37ec   :  { %v8612_v38 = vpack.i.bf16 %v4967_v28, %v4964_v20  ;;  %v4961_v18 = vsel %vm2625_vm9, %v8591_v53, %v11459_v11  ;;  %v4958_v42 = vsel %vm2625_vm9, %v8590_v19, %v11462_v25 }
0x37ed   :  { %v8607_v44 = vpack.i.bf16 %v4961_v18, %v4958_v42 }
0x37ee   :  { %8613 = vrot.lane.b32.xlu1 %v8612_v38, %s9003_s8 }
0x37ef   :  { %8608 = vrot.lane.b32.xlu0 %v8607_v44, %s9003_s8 }
0x3858   :  { %v8604_v49 = vpop.permute.xlu1 %8603 }
0x3859   :  { %v8606_v17 = vunpack.i.h.bf16 %v8604_v49  ;;  %v8605_v0 = vunpack.i.l.bf16 %v8604_v49  ;;  %v8599_v62 = vpop.permute.xlu0 %8598 }
0x385a   :  { %v8601_v33 = vunpack.i.h.bf16 %v8599_v62  ;;  %v8600_v41 = vunpack.i.l.bf16 %v8599_v62 }
0x385b   :  { %v4987_v14 = vsel %vm2625_vm9, %v8606_v17, %v11435_v24  ;;  %v4986_v13 = vsel %vm2625_vm9, %v8605_v0, %v11438_v45 }
0x385c   :  { %v8622_v31 = vpack.i.bf16 %v4987_v14, %v4986_v13  ;;  %v4985_v7 = vsel %vm2625_vm9, %v8601_v33, %v11441_v55  ;;  %v4984_v4 = vsel %vm2625_vm9, %v8600_v41, %v11444_v37 }
0x385d   :  { %v8617_v26 = vpack.i.bf16 %v4985_v7, %v4984_v4  ;;  %v8835_v4 = vld [vmem:[%s11818_s1 + $0x460] ss:$20 sps:$4 sm:$0xff]  }
0x385e   :  { %8623 = vrot.lane.b32.xlu1 %v8622_v31, %s8985_s20 }
0x385f   :  { %8618 = vrot.lane.b32.xlu0 %v8617_v26, %s8985_s20  ;;  %v8837_v26 = vld [vmem:[%s11818_s1 + $0x464] ss:$20 sps:$4 sm:$0xff]  }
0x3860   :  { %v8614_v9 = vpop.permute.xlu1 %8613  ;;  %5301 = vmatprep.mubr.bf16.mxu1 %v8837_v26  ;;  %v8849_v26 = vld [vmem:[%s11818_s1 + $0x46c] ss:$20 sps:$4 sm:$0xff]  }
0x3861   :  { %v8616_v10 = vunpack.i.h.bf16 %v8614_v9  ;;  %v8615_v40 = vunpack.i.l.bf16 %v8614_v9  ;;  %v8609_v23 = vpop.permute.xlu0 %8608  ;;  %v8838_v9 = vld [vmem:[%s11818_s1 + $0x48c] ss:$20 sps:$4 sm:$0xff]   ;;  %5302 = vmatmul.mubr.bf16.vlgmr.msra.gmra.mrb[104].mxu1 %v8835_v4 }
0x3862   :  { %v8611_v2 = vunpack.i.h.bf16 %v8609_v23  ;;  %v8610_v35 = vunpack.i.l.bf16 %v8609_v23  ;;  %5309 = vmatprep.mubr.bf16.mxu1 %v8838_v9 }
0x3863   :  { %v4991_v59 = vsel %vm2625_vm9, %v8616_v10, %v11453_v63  ;;  %v4990_v34 = vsel %vm2625_vm9, %v8615_v40, %v11456_v56 }
0x3864   :  { %v8632_v50 = vpack.i.bf16 %v4991_v59, %v4990_v34  ;;  %v4989_v29 = vsel %vm2625_vm9, %v8611_v2, %v11459_v11  ;;  %v4988_v32 = vsel %vm2625_vm9, %v8610_v35, %v11462_v25 }
0x3865   :  { %v8627_v43 = vpack.i.bf16 %v4989_v29, %v4988_v32 }
0x3866   :  { %8633 = vrot.lane.b32.xlu1 %v8632_v50, %s8985_s20 }
0x3867   :  { %8628 = vrot.lane.b32.xlu0 %v8627_v43, %s8985_s20 }
0x38d0   :  { %v8624_v51 = vpop.permute.xlu1 %8623 }
0x38d1   :  { %v8626_v47 = vunpack.i.h.bf16 %v8624_v51  ;;  %v8625_v27 = vunpack.i.l.bf16 %v8624_v51  ;;  %v8619_v46 = vpop.permute.xlu0 %8618 }
0x38d2   :  { %v8621_v6 = vunpack.i.h.bf16 %v8619_v46  ;;  %v8620_v57 = vunpack.i.l.bf16 %v8619_v46  ;;  %v8843_v46 = vld [vmem:[%s11818_s1 + $0x4b0] ss:$20 sps:$4 sm:$0xff]  }
0x38d3   :  { %v11511_v30 = vmax.f32 %v11435_v24, %v8626_v47  ;;  %v11514_v16 = vmax.f32 %v11438_v45, %v8625_v27  ;;  %v8840_v47 = vld [vmem:[%s11818_s1 + $0x488] ss:$20 sps:$4 sm:$0xff]  }
0x38d4   :  { %v11517_v60 = vmax.f32 %v11441_v55, %v8621_v6  ;;  %v11520_v1 = vmax.f32 %v11444_v37, %v8620_v57  ;;  %5310 = vmatmul.mubr.bf16.gmra.mrb[108].mxu1 %v8840_v47  ;;  %v8841_v27 = vld [vmem:[%s11818_s1 + $0x4b4] ss:$20 sps:$4 sm:$0xff]  }
0x38d5   :  { %v8642_v53 = vpack.i.bf16 %v11511_v30, %v11514_v16  ;;  %5317 = vmatprep.mubr.bf16.mxu1 %v8841_v27 }
0x38d6   :  { %v8637_v19 = vpack.i.bf16 %v11517_v60, %v11520_v1 }
0x38d7   :  { %8643 = vrot.lane.b32.xlu1 %v8642_v53, %s9003_s8 }
0x38d8   :  { %v8634_v28 = vpop.permute.xlu1 %8633  ;;  %8638 = vrot.lane.b32.xlu0 %v8637_v19, %s9003_s8 }
0x38d9   :  { %v8636_v24 = vunpack.i.h.bf16 %v8634_v28  ;;  %v8635_v45 = vunpack.i.l.bf16 %v8634_v28  ;;  %v8629_v20 = vpop.permute.xlu0 %8628 }
0x38da   :  { %v8631_v38 = vunpack.i.h.bf16 %v8629_v20  ;;  %v8630_v55 = vunpack.i.l.bf16 %v8629_v20 }
0x38db   :  { %v11529_v18 = vmax.f32 %v11453_v63, %v8636_v24  ;;  %v11532_v37 = vmax.f32 %v11456_v56, %v8635_v45 }
0x38dc   :  { %v11535_v42 = vmax.f32 %v11459_v11, %v8631_v38  ;;  %v11538_v44 = vmax.f32 %v11462_v25, %v8630_v55  ;;  %5318 = vmatmul.mubr.bf16.gmra.mrb[112].mxu1 %v8843_v46 }
0x38dd   :  { %v8652_v49 = vpack.i.bf16 %v11529_v18, %v11532_v37 }
0x38de   :  { %v8647_v17 = vpack.i.bf16 %v11535_v42, %v11538_v44 }
0x38df   :  { %8653 = vrot.lane.b32.xlu1 %v8652_v49, %s9003_s8 }
0x38e0   :  { %8648 = vrot.lane.b32.xlu0 %v8647_v17, %s9003_s8 }
0x3949   :  { %v8644_v63 = vpop.permute.xlu1 %8643 }
0x394a   :  { %v8646_v0 = vunpack.i.h.bf16 %v8644_v63  ;;  %v8645_v56 = vunpack.i.l.bf16 %v8644_v63  ;;  %v8639_v62 = vpop.permute.xlu0 %8638  ;;  %v8844_v63 = vld [vmem:[%s11818_s1 + $0x4dc] ss:$20 sps:$4 sm:$0xff]  }
0x394b   :  { %v8641_v33 = vunpack.i.h.bf16 %v8639_v62  ;;  %v8640_v11 = vunpack.i.l.bf16 %v8639_v62  ;;  %5325 = vmatprep.mubr.bf16.mxu1 %v8844_v63 }
0x394c   :  { %v5043_v25 = vsel %vm2625_vm9, %v8646_v0, %v11511_v30  ;;  %v5040_v41 = vsel %vm2625_vm9, %v8645_v56, %v11514_v16  ;;  %v8846_v0 = vld [vmem:[%s11818_s1 + $0x4d8] ss:$20 sps:$4 sm:$0xff]  }
0x394d   :  { %v8662_v14 = vpack.i.bf16 %v5043_v25, %v5040_v41  ;;  %v5037_v13 = vsel %vm2625_vm9, %v8641_v33, %v11517_v60  ;;  %v5034_v31 = vsel %vm2625_vm9, %v8640_v11, %v11520_v1  ;;  %5326 = vmatmul.mubr.bf16.gmra.mrb[116].mxu1 %v8846_v0 }
0x394e   :  { %v8657_v7 = vpack.i.bf16 %v5037_v13, %v5034_v31  ;;  %5366 = vmatprep.mubr.bf16.mxu1 %v8849_v26 }
0x394f   :  { %8663 = vrot.lane.b32.xlu1 %v8662_v14, %s9003_s8 }
0x3950   :  { %8658 = vrot.lane.b32.xlu0 %v8657_v7, %s9003_s8 }
0x3951   :  { %v8654_v10 = vpop.permute.xlu1 %8653 }
0x3952   :  { %v8656_v40 = vunpack.i.h.bf16 %v8654_v10  ;;  %v8655_v23 = vunpack.i.l.bf16 %v8654_v10  ;;  %v8649_v2 = vpop.permute.xlu0 %8648 }
0x3953   :  { %v8651_v35 = vunpack.i.h.bf16 %v8649_v2  ;;  %v8650_v59 = vunpack.i.l.bf16 %v8649_v2 }
0x3954   :  { %v5055_v34 = vsel %vm2625_vm9, %v8656_v40, %v11529_v18  ;;  %v5052_v50 = vsel %vm2625_vm9, %v8655_v23, %v11532_v37 }
0x3955   :  { %v8672_v29 = vpack.i.bf16 %v5055_v34, %v5052_v50  ;;  %v5049_v32 = vsel %vm2625_vm9, %v8651_v35, %v11535_v42  ;;  %v5046_v43 = vsel %vm2625_vm9, %v8650_v59, %v11538_v44 }
0x3956   :  { %v8667_v51 = vpack.i.bf16 %v5049_v32, %v5046_v43 }
0x3957   :  { %8673 = vrot.lane.b32.xlu1 %v8672_v29, %s9003_s8 }
0x3958   :  { %8668 = vrot.lane.b32.xlu0 %v8667_v51, %s9003_s8 }
0x39c1   :  { %v8664_v6 = vpop.permute.xlu1 %8663 }
0x39c2   :  { %v8666_v57 = vunpack.i.h.bf16 %v8664_v6  ;;  %v8665_v53 = vunpack.i.l.bf16 %v8664_v6  ;;  %v8659_v19 = vpop.permute.xlu0 %8658 }
0x39c3   :  { %v8661_v28 = vunpack.i.h.bf16 %v8659_v19  ;;  %v8660_v24 = vunpack.i.l.bf16 %v8659_v19 }
0x39c4   :  { %v5075_v45 = vsel %vm2625_vm9, %v8666_v57, %v11511_v30  ;;  %v5074_v20 = vsel %vm2625_vm9, %v8665_v53, %v11514_v16 }
0x39c5   :  { %v8682_v38 = vpack.i.bf16 %v5075_v45, %v5074_v20  ;;  %v5073_v55 = vsel %vm2625_vm9, %v8661_v28, %v11517_v60  ;;  %v5072_v49 = vsel %vm2625_vm9, %v8660_v24, %v11520_v1  ;;  %v5633_v24 = vsel %vm5628_vm13, %v10608_v61, 0  ;;  %v8856_v45 = vld [vmem:[%s11818_s1 + $0x4e4] ss:$20 sps:$4 sm:$0xff]   ;;  %v8858_v20 = vld [vmem:[%s11818_s1 + $0x4e0] ss:$20 sps:$4 sm:$0xff]  }
0x39c6   :  { %v8677_v17 = vpack.i.bf16 %v5073_v55, %v5072_v49  ;;  %v5639_v55 = vsel %vm5628_vm13, %v10636_v21, 0  ;;  %v5144_v49 = vld [vmem:[%s11819_s2 + $0x1c0] sm:$0xff] }
0x39c7   :  { %8683 = vrot.lane.b32.xlu1 %v8682_v38, %s8979_s9  ;;  %v5636_v38 = vsel %vm5628_vm13, %v10622_v58, 0 }
0x39c8   :  { %8678 = vrot.lane.b32.xlu0 %v8677_v17, %s8979_s9 }
0x39c9   :  { %v8674_v56 = vpop.permute.xlu1 %8673 }
0x39ca   :  { %v8676_v62 = vunpack.i.h.bf16 %v8674_v56  ;;  %v8675_v33 = vunpack.i.l.bf16 %v8674_v56  ;;  %v8669_v11 = vpop.permute.xlu0 %8668 }
0x39cb   :  { %v8671_v25 = vunpack.i.h.bf16 %v8669_v11  ;;  %v8670_v41 = vunpack.i.l.bf16 %v8669_v11 }
0x39cc   :  { %v5079_v14 = vsel %vm2625_vm9, %v8676_v62, %v11529_v18  ;;  %v5078_v13 = vsel %vm2625_vm9, %v8675_v33, %v11532_v37 }
0x39cd   :  { %v8692_v31 = vpack.i.bf16 %v5079_v14, %v5078_v13  ;;  %v5077_v7 = vsel %vm2625_vm9, %v8671_v25, %v11535_v42  ;;  %v5076_v4 = vsel %vm2625_vm9, %v8670_v41, %v11538_v44  ;;  %v5147_v14 = vld [vmem:[%s11819_s2 + $0x1d8] sm:$0xff] }
0x39ce   :  { %v8687_v9 = vpack.i.bf16 %v5077_v7, %v5076_v4 }
0x39cf   :  { %8693 = vrot.lane.b32.xlu1 %v8692_v31, %s8979_s9 }
0x39d0   :  { %8688 = vrot.lane.b32.xlu0 %v8687_v9, %s8979_s9 }
0x3a39   :  { %v8684_v10 = vpop.permute.xlu1 %8683 }
0x3a3a   :  { %v8679_v40 = vpop.permute.xlu0 %8678  ;;  %v8686_v23 = vunpack.i.h.bf16 %v8684_v10  ;;  %v8685_v2 = vunpack.i.l.bf16 %v8684_v10 }
0x3a3b   :  { %v8681_v35 = vunpack.i.h.bf16 %v8679_v40  ;;  %v8680_v59 = vunpack.i.l.bf16 %v8679_v40  ;;  %v5148_v40 = vld [vmem:[%s11819_s2 + $0x1e0] sm:$0xff] }
0x3a3c   :  { %v5115_v32 = vsel %vm9377_vm11, %v8686_v23, %v11511_v30  ;;  %v5114_v43 = vsel %vm9377_vm11, %v8685_v2, %v11514_v16 }
0x3a3d   :  { %v5113_v34 = vsel %vm9377_vm11, %v8681_v35, %v11517_v60  ;;  %v5112_v50 = vsel %vm9377_vm11, %v8680_v59, %v11520_v1  ;;  %v5154_v47 = vpack.c.bf16 %v5115_v32, %v5114_v43 }
0x3a3e   :  { %v5153_v29 = vpack.c.bf16 %v5113_v34, %v5112_v50 }
0x3a40   :  { %5335 = vmatpush1.bf16.msra.mxu1 %v5153_v29 }
0x3a41   :  { %v8694_v51 = vpop.permute.xlu1 %8693  ;;  %5336 = vmatprep.subr.bf16.mxu1 %v8983_v3 }
0x3a42   :  { %v8689_v27 = vpop.permute.xlu0 %8688  ;;  %v8696_v60 = vunpack.i.h.bf16 %v8694_v51  ;;  %v8695_v46 = vunpack.i.l.bf16 %v8694_v51 }
0x3a43   :  { %v8691_v6 = vunpack.i.h.bf16 %v8689_v27  ;;  %v8690_v57 = vunpack.i.l.bf16 %v8689_v27  ;;  %v5150_v27 = vld [vmem:[%s11819_s2 + $0x1f0] sm:$0xff] }
0x3a44   :  { %5337 = vmatpush1.bf16.msra.mxu1 %v5154_v47  ;;  %v5119_v53 = vsel %vm9377_vm11, %v8696_v60, %v11529_v18  ;;  %v5118_v19 = vsel %vm9377_vm11, %v8695_v46, %v11532_v37  ;;  %v8853_v18 = vld [vmem:[%s11818_s1 + $0x4bc] ss:$20 sps:$4 sm:$0xff]   ;;  %v8855_v37 = vld [vmem:[%s11818_s1 + $0x4b8] ss:$20 sps:$4 sm:$0xff]  }
0x3a45   :  { %v5117_v1 = vsel %vm9377_vm11, %v8691_v6, %v11535_v42  ;;  %v5116_v30 = vsel %vm9377_vm11, %v8690_v57, %v11538_v44  ;;  %5338 = vmatprep.subr.bf16.mxu1 %v8983_v3  ;;  %v5156_v28 = vpack.c.bf16 %v5119_v53, %v5118_v19  ;;  %v8847_v42 = vld [vmem:[%s11818_s1 + $0x468] ss:$20 sps:$4 sm:$0xff]   ;;  %vm5726_vm11 = vcmask 7168  }
0x3a46   :  { %v5155_v16 = vpack.c.bf16 %v5117_v1, %v5116_v30  ;;  %v8850_v44 = vld [vmem:[%s11818_s1 + $0x494] ss:$20 sps:$4 sm:$0xff]  }
0x3a48   :  { %5339 = vmatpush1.bf16.msra.mxu1 %v5155_v16 }
0x3a49   :  { %5340 = vmatprep.subr.bf16.mxu1 %v8983_v3  ;;  %v8852_v3 = vld [vmem:[%s11818_s1 + $0x490] ss:$20 sps:$4 sm:$0xff]  }
0x3a4c   :  { %5341 = vmatpush1.bf16.msra.mxu1 %v5156_v28 }
0x3a4d   :  { %7265 = vmatprep.subr.msk.bf16.mxu1 %vm5628_vm13, %v10594_v48 }
0x3a4f   :  { %5367 = vmatmul.mubr.bf16.vlgmr.msra.gmra.mrb[104].mxu1 %v8847_v42 }
0x3a50   :  { %5374 = vmatprep.mubr.bf16.mxu1 %v8850_v44 }
0x3a55   :  { %7208 = vmatpush3.bf16.xpose.msra.mxu1 %v5630_v5 }
0x3a56   :  { %7266 = vmatprep.subr.msk.bf16.mxu1 %vm5628_vm13, %v10608_v61 }
0x3a57   :  { %5375 = vmatmul.mubr.bf16.gmra.mrb[108].mxu1 %v8852_v3 }
0x3a58   :  { %5382 = vmatprep.mubr.bf16.mxu1 %v8853_v18 }
0x3a5d   :  { %7210 = vmatpush3.bf16.xpose.msra.mxu1 %v5633_v24 }
0x3a5e   :  { %7267 = vmatprep.subr.msk.bf16.mxu1 %vm5628_vm13, %v10622_v58 }
0x3a5f   :  { %5383 = vmatmul.mubr.bf16.gmra.mrb[112].mxu1 %v8855_v37 }
0x3a60   :  { %5390 = vmatprep.mubr.bf16.mxu1 %v8856_v45 }
0x3a65   :  { %7212 = vmatpush3.bf16.xpose.msra.mxu1 %v5636_v38 }
0x3a66   :  { %7268 = vmatprep.subr.msk.bf16.mxu1 %vm5628_vm13, %v10636_v21 }
0x3a67   :  { %5391 = vmatmul.mubr.bf16.gmra.mrb[116].mxu1 %v8858_v20 }
0x3a68   :  { %7215 = vmatprep.mubr.msk.bf16.mxu1 %vm5628_vm13, %v10594_v48  ;;  %v5145_v48 = vld [vmem:[%s11819_s2 + $0x1c8] sm:$0xff] }
0x3a6d   :  { %7214 = vmatpush3.bf16.xpose.msra.mxu1 %v5639_v55 }
0x3a74   :  { %7216 = vmatmul.mubr.msk.bf16.vlgmr.msra.gmra.mrb[120].mxu1 %vm5628_vm13, %v10608_v61 }
0x3a75   :  { %7219 = vmatprep.mubr.msk.bf16.mxu1 %vm5628_vm13, %v10622_v58 }
0x3a7c   :  { %7220 = vmatmul.mubr.msk.bf16.gmra.mrb[124].mxu1 %vm5628_vm13, %v10636_v21  ;;  %v5146_v21 = vld [vmem:[%s11819_s2 + $0x1d0] sm:$0xff] }
0x3b22   :  { %v5368_v17 = vpop.f32.mrb[104].mxu1 }
0x3b23   :  { %v7239_v63 = vadd.f32 %v5368_v17, %v5144_v49  ;;  %v5370_v0 = vpop.f32.mrb[105].mxu1 }
0x3b24   :  { %v5371_v56 = vpop.f32.mrb[106].mxu1 }
0x3b25   :  { %v5434_v61 = vadd.f32 %v7239_v63, %v11345_v15  ;;  %v7240_v62 = vadd.f32 %v5371_v56, %v5145_v48  ;;  %v5373_v33 = vpop.f32.mrb[107].mxu1 }
0x3b27   :  { %v5437_v58 = vadd.f32 %v7240_v62, %v11349_v52  ;;  %v5464_v11 = vmax.f32 %v5434_v61, 0.0 }
0x3b29   :  { %v5465_v25 = vmax.f32 %v5437_v58, 0.0 }
0x3b2a   :  { %v5376_v41 = vpop.f32.mrb[108].mxu1 }
0x3b2b   :  { %v5722_v13 = vpack.c.bf16 %v5465_v25, %v5464_v11  ;;  %v7241_v31 = vadd.f32 %v5376_v41, %v5146_v21  ;;  %v5378_v7 = vpop.f32.mrb[109].mxu1 }
0x3b2c   :  { %v5379_v15 = vpop.f32.mrb[110].mxu1 }
0x3b2d   :  { %v5442_v4 = vadd.f32 %v7241_v31, %v11343_v39  ;;  %v7242_v26 = vadd.f32 %v5379_v15, %v5147_v14  ;;  %v5381_v52 = vpop.f32.mrb[111].mxu1  ;;  %7269 = vmatprep.subr.msk.bf16.mxu0 %vm5726_vm11, %v5722_v13  ;;  %7231 = vmatprep.mubr.msk.bf16.mxu0 %vm5726_vm11, %v5722_v13  ;;  %v5728_v9 = vsel %vm5726_vm11, %v5722_v13, 0  ;;  %v5149_v39 = vld [vmem:[%s11819_s2 + $0x1e8] sm:$0xff] }
0x3b2e   :  { %7224 = vmatpush3.bf16.xpose.msra.mxu0 %v5728_v9 }
0x3b2f   :  { %v5445_v10 = vadd.f32 %v7242_v26, %v11347_v36  ;;  %v5466_v23 = vmax.f32 %v5442_v4, 0.0 }
0x3b31   :  { %v5467_v2 = vmax.f32 %v5445_v10, 0.0 }
0x3b32   :  { %v5384_v35 = vpop.f32.mrb[112].mxu1 }
0x3b33   :  { %v5723_v59 = vpack.c.bf16 %v5467_v2, %v5466_v23  ;;  %v7243_v34 = vadd.f32 %v5384_v35, %v5148_v40  ;;  %v5386_v50 = vpop.f32.mrb[113].mxu1 }
0x3b34   :  { %v5387_v29 = vpop.f32.mrb[114].mxu1 }
0x3b35   :  { %v5450_v32 = vadd.f32 %v7243_v34, %v11367_v22  ;;  %v7244_v43 = vadd.f32 %v5387_v29, %v5149_v39  ;;  %v5389_v51 = vpop.f32.mrb[115].mxu1  ;;  %7270 = vmatprep.subr.msk.bf16.mxu0 %vm5726_vm11, %v5723_v59  ;;  %v5731_v36 = vsel %vm5726_vm11, %v5723_v59, 0  ;;  %v5151_v22 = vld [vmem:[%s11819_s2 + $0x1f8] sm:$0xff]  ;;  %s9005_s2 = smov [#allocation4]  }
0x3b36   :  { %7226 = vmatpush3.bf16.xpose.msra.mxu0 %v5731_v36  ;;  %s5835_s30 = sshll.u32 %s9005_s2, 4  ;;  %s5836_s30 = int_to_ptr.vmem [resolvable:$true] %s5835_s30 }
0x3b37   :  { %v5453_v47 = vadd.f32 %v7244_v43, %v11372_v8  ;;  %v5468_v60 = vmax.f32 %v5450_v32, 0.0  ;;  %s8859_s20 = scalar_lea.vmem %s5836_s30, 256  ;;  %p8864_p1 = scmp.lt.s32.totalorder %s5836_s30, %s5836_s30 }
0x3b38   :  { %p8860_p0 = scmp.ne.s32.totalorder %s5836_s30, %s8859_s20  ;;  %p8865_p2 = scmp.lt.s32.totalorder %s8859_s20, %s8859_s20 }
0x3b39   :  { %v5469_v46 = vmax.f32 %v5453_v47, 0.0 }
0x3b3a   :  { %v5392_v6 = vpop.f32.mrb[116].mxu1  ;;  %p8866_p3 = por %p8865_p2, %p8864_p1 }
0x3b3b   :  { %v5724_v57 = vpack.c.bf16 %v5469_v46, %v5468_v60  ;;  %v7245_v1 = vadd.f32 %v5392_v6, %v5150_v27  ;;  %v5394_v30 = vpop.f32.mrb[117].mxu1 }
0x3b3c   :  { %v5395_v16 = vpop.f32.mrb[118].mxu1  ;;  %p8867_p4 = pnand %p8866_p3, %p8860_p0 }
0x3b3d   :  { %v5458_v53 = vadd.f32 %v7245_v1, %v11364_v54  ;;  %v7246_v19 = vadd.f32 %v5395_v16, %v5151_v22  ;;  %v5397_v28 = vpop.f32.mrb[119].mxu1  ;;  %7271 = vmatprep.subr.msk.bf16.mxu0 %vm5726_vm11, %v5724_v57  ;;  %v5734_v8 = vsel %vm5726_vm11, %v5724_v57, 0 }
0x3b3e   :  { %7228 = vmatpush3.bf16.xpose.msra.mxu0 %v5734_v8 }
0x3b3f   :  { %v5461_v42 = vadd.f32 %v7246_v19, %v11370_v12  ;;  %v5470_v44 = vmax.f32 %v5458_v53, 0.0 }
0x3b41   :  { %v5471_v3 = vmax.f32 %v5461_v42, 0.0 }
0x3b43   :  { %v5725_v5 = vpack.c.bf16 %v5471_v3, %v5470_v44 }
0x3b45   :  { %7272 = vmatprep.subr.msk.bf16.mxu0 %vm5726_vm11, %v5725_v5  ;;  %v5737_v18 = vsel %vm5726_vm11, %v5725_v5, 0 }
0x3b46   :  { %7230 = vmatpush3.bf16.xpose.msra.mxu0 %v5737_v18 }
0x3b47   :  { %v7217_v37 = vpop.f32.mrb[120].mxu1 }
0x3b48   :  { %v5708_v24 = vmul.f32 0.00390625, %v7217_v37  ;;  %v5675_v54 = vpop.f32.mrb[121].mxu1 }
0x3b49   :  { %v5706_v45 = vmul.f32 0.00390625, %v5675_v54  ;;  %v7218_v20 = vpop.f32.mrb[122].mxu1 }
0x3b4a   :  { %5716 = vst.msk [vmem:[#allocation7 + $0x10] sm:$0xff] %vm3410_vm7, %v5708_v24  ;;  %v5709_v38 = vmul.f32 0.00390625, %v7218_v20  ;;  %v5678_v55 = vpop.f32.mrb[123].mxu1 }
0x3b4b   :  { %5714 = vst.msk [vmem:[#allocation7] sm:$0xff] %vm3410_vm7, %v5706_v45  ;;  %v5707_v12 = vmul.f32 0.00390625, %v5678_v55 }
0x3b4c   :  { %5717 = vst.msk [vmem:[#allocation7 + $0x18] sm:$0xff] %vm3410_vm7, %v5709_v38 }
0x3b4d   :  { %5715 = vst.msk [vmem:[#allocation7 + $0x8] sm:$0xff] %vm3410_vm7, %v5707_v12  ;;  %7232 = vmatmul.mubr.msk.bf16.vlgmr.msra.gmra.mrb[120].mxu0 %vm5726_vm11, %v5723_v59 }
0x3b4e   :  { %7235 = vmatprep.mubr.msk.bf16.mxu0 %vm5726_vm11, %v5724_v57 }
0x3b4f   :  { %v7221_v49 = vpop.f32.mrb[124].mxu1 }
0x3b50   :  { %v5712_v17 = vmul.f32 0.00390625, %v7221_v49  ;;  %v5691_v48 = vpop.f32.mrb[125].mxu1 }
0x3b51   :  { %v5710_v63 = vmul.f32 0.00390625, %v5691_v48  ;;  %v7222_v0 = vpop.f32.mrb[126].mxu1 }
0x3b52   :  { %5720 = vst.msk [vmem:[#allocation7 + $0x30] sm:$0xff] %vm3410_vm7, %v5712_v17  ;;  %v5713_v56 = vmul.f32 0.00390625, %v7222_v0  ;;  %v5694_v61 = vpop.f32.mrb[127].mxu1 }
0x3b53   :  { %5718 = vst.msk [vmem:[#allocation7 + $0x20] sm:$0xff] %vm3410_vm7, %v5710_v63  ;;  %v5711_v62 = vmul.f32 0.00390625, %v5694_v61 }
0x3b54   :  { %5721 = vst.msk [vmem:[#allocation7 + $0x38] sm:$0xff] %vm3410_vm7, %v5713_v56 }
0x3b55   :  { %5719 = vst.msk [vmem:[#allocation7 + $0x28] sm:$0xff] %vm3410_vm7, %v5711_v62  ;;  %7236 = vmatmul.mubr.msk.bf16.gmra.mrb[124].mxu0 %vm5726_vm11, %v5725_v5 }
0x3b56   :  { %8870 = shalt.err (!%p8867_p4)
}
0x3b57   :  { %s8871_s25 = scalar_lea.hbm %s11821_s4, 256 }
0x3b58   :  { %p8872_p5 = scmp.ne.s32.totalorder %s11821_s4, %s8871_s25  ;;  %p8875_p6 = scmp.lt.u32.totalorder %s8871_s25, %s11821_s4 }
0x3b5a   :  { %p8877_p7 = pnand %p8875_p6, %p8872_p5 }
0x3b5c   :  { %8880 = shalt.err (!%p8877_p7)
}
0x3b5d   :  { %s9006_s1 = smov 128   ;;  %s9007_s22 = smov 8  }
0x3b5e   :  { %5841 = dma.vmem_to_hbm [thread:$0]  %s5836_s30, 256, %s11821_s4, [#allocation5], %s9006_s1, %s9006_s1, %s9007_s22  }
0x3b5f   :  { %s9008_s10 = smov [#allocation7]   ;;  %s9009_s12 = smov [#allocation2]  }
0x3b60   :  { %s5859_s8 = sshll.u32 %s9008_s10, 4  ;;  %s5826_s24 = sshll.u32 %s9009_s12, 4  ;;  %s5860_s8 = int_to_ptr.vmem [resolvable:$true] %s5859_s8  ;;  %s5827_s24 = int_to_ptr.vmem [resolvable:$true] %s5826_s24 }
0x3b61   :  { %s8881_s13 = scalar_lea.vmem %s5860_s8, 1024  ;;  %p8886_p9 = scmp.lt.s32.totalorder %s5860_s8, %s5860_s8 }
0x3b62   :  { %p8882_p8 = scmp.ne.s32.totalorder %s5860_s8, %s8881_s13  ;;  %p8887_p10 = scmp.lt.s32.totalorder %s8881_s13, %s8881_s13 }
0x3b64   :  { %p8888_p11 = por %p8887_p10, %p8886_p9 }
0x3b66   :  { %p8889_p12 = pnand %p8888_p11, %p8882_p8 }
0x3b68   :  { %8892 = shalt.err (!%p8889_p12)
}
0x3b69   :  { %s8893_s9 = scalar_lea.hbm %s11823_s6, 1024 }
0x3b6a   :  { %p8894_p13 = scmp.ne.s32.totalorder %s11823_s6, %s8893_s9  ;;  %p8897_p0 = scmp.lt.u32.totalorder %s8893_s9, %s11823_s6 }
0x3b6c   :  { %p8899_p1 = pnand %p8897_p0, %p8894_p13 }
0x3b6e   :  { %8902 = shalt.err (!%p8899_p1)
}
0x3b6f   :  { %5865 = dma.vmem_to_hbm [thread:$0]  %s5860_s8, 1024, %s11823_s6, [#allocation8], %s9006_s1, %s9006_s1, %s9007_s22  }
0x3b70   :  { %s8903_s30 = scalar_lea.vmem %s5827_s24, 128  ;;  %p8908_p3 = scmp.lt.s32.totalorder %s5827_s24, %s5827_s24 }
0x3b71   :  { %p8904_p2 = scmp.ne.s32.totalorder %s5827_s24, %s8903_s30  ;;  %p8909_p4 = scmp.lt.s32.totalorder %s8903_s30, %s8903_s30 }
0x3b73   :  { %p8910_p5 = por %p8909_p4, %p8908_p3 }
0x3b75   :  { %p8911_p6 = pnand %p8910_p5, %p8904_p2 }
0x3b77   :  { %8914 = shalt.err (!%p8911_p6)
}
0x3b78   :  { %s8915_s23 = scalar_lea.hbm %s11820_s3, 128 }
0x3b79   :  { %p8916_p7 = scmp.ne.s32.totalorder %s11820_s3, %s8915_s23  ;;  %p8919_p8 = scmp.lt.u32.totalorder %s8915_s23, %s11820_s3 }
0x3b7b   :  { %p8921_p9 = pnand %p8919_p8, %p8916_p7 }
0x3b7d   :  { %8924 = shalt.err (!%p8921_p9)
}
0x3b7e   :  { %5829 = dma.vmem_to_hbm [thread:$0]  %s5827_s24, 128, %s11820_s3, [#allocation3]  }
0x3b7f   :  { %s9010_s21 = smov [#allocation6]  }
0x3b80   :  { %s5847_s11 = sshll.u32 %s9010_s21, 4  ;;  %s5848_s11 = int_to_ptr.vmem [resolvable:$true] %s5847_s11 }
0x3b81   :  { %s8925_s10 = scalar_lea.vmem %s5848_s11, 512  ;;  %p8930_p11 = scmp.lt.s32.totalorder %s5848_s11, %s5848_s11 }
0x3b82   :  { %p8926_p10 = scmp.ne.s32.totalorder %s5848_s11, %s8925_s10  ;;  %p8931_p12 = scmp.lt.s32.totalorder %s8925_s10, %s8925_s10 }
0x3b84   :  { %p8932_p13 = por %p8931_p12, %p8930_p11 }
0x3b86   :  { %p8933_p0 = pnand %p8932_p13, %p8926_p10 }
0x3b88   :  { %8936 = shalt.err (!%p8933_p0)
}
0x3b89   :  { %s8937_s13 = scalar_lea.hbm %s11822_s5, 512 }
0x3b8a   :  { %p8938_p1 = scmp.ne.s32.totalorder %s11822_s5, %s8937_s13  ;;  %p8941_p2 = scmp.lt.u32.totalorder %s8937_s13, %s11822_s5 }
0x3b8c   :  { %p8943_p3 = pnand %p8941_p2, %p8938_p1 }
0x3b8e   :  { %8946 = shalt.err (!%p8943_p3)
}
0x3b8f   :  { %5853 = dma.vmem_to_hbm [thread:$0]  %s5848_s11, 512, %s11822_s5, [#allocation5], %s9006_s1, %s9006_s1, %s9007_s22  }
0x3b90   :  { %s9011_s5 = smov [#allocation9]  }
0x3b91   :  { %s5871_s16 = sshll.u32 %s9011_s5, 4  ;;  %s5872_s16 = int_to_ptr.vmem [resolvable:$true] %s5871_s16 }
0x3b92   :  { %s8947_s4 = scalar_lea.vmem %s5872_s16, 1024  ;;  %p8952_p5 = scmp.lt.s32.totalorder %s5872_s16, %s5872_s16 }
0x3b93   :  { %p8948_p4 = scmp.ne.s32.totalorder %s5872_s16, %s8947_s4  ;;  %p8953_p6 = scmp.lt.s32.totalorder %s8947_s4, %s8947_s4 }
0x3b95   :  { %p8954_p7 = por %p8953_p6, %p8952_p5 }
0x3b97   :  { %p8955_p8 = pnand %p8954_p7, %p8948_p4 }
0x3c20   :  { %v7233_v33 = vpop.f32.mrb[120].mxu0 }
0x3c21   :  { %v5806_v58 = vmul.f32 0.015625, %v7233_v33  ;;  %v5773_v21 = vpop.f32.mrb[121].mxu0 }
0x3c22   :  { %v5804_v11 = vmul.f32 0.015625, %v5773_v21  ;;  %v7234_v25 = vpop.f32.mrb[122].mxu0 }
0x3c23   :  { %5814 = vst.msk [vmem:[#allocation9 + $0x10] sm:$0xff] %vm3410_vm7, %v5806_v58  ;;  %v5807_v41 = vmul.f32 0.015625, %v7234_v25  ;;  %v5776_v14 = vpop.f32.mrb[123].mxu0 }
0x3c24   :  { %5812 = vst.msk [vmem:[#allocation9] sm:$0xff] %vm3410_vm7, %v5804_v11  ;;  %v5805_v13 = vmul.f32 0.015625, %v5776_v14 }
0x3c25   :  { %5815 = vst.msk [vmem:[#allocation9 + $0x18] sm:$0xff] %vm3410_vm7, %v5807_v41 }
0x3c26   :  { %5813 = vst.msk [vmem:[#allocation9 + $0x8] sm:$0xff] %vm3410_vm7, %v5805_v13 }
0x3c28   :  { %v7237_v31 = vpop.f32.mrb[124].mxu0 }
0x3c29   :  { %v5810_v7 = vmul.f32 0.015625, %v7237_v31  ;;  %v5789_v15 = vpop.f32.mrb[125].mxu0 }
0x3c2a   :  { %v5808_v4 = vmul.f32 0.015625, %v5789_v15  ;;  %v7238_v26 = vpop.f32.mrb[126].mxu0 }
0x3c2b   :  { %5818 = vst.msk [vmem:[#allocation9 + $0x30] sm:$0xff] %vm3410_vm7, %v5810_v7  ;;  %v5811_v52 = vmul.f32 0.015625, %v7238_v26  ;;  %v5792_v9 = vpop.f32.mrb[127].mxu0 }
0x3c2c   :  { %5816 = vst.msk [vmem:[#allocation9 + $0x20] sm:$0xff] %vm3410_vm7, %v5808_v4  ;;  %v5809_v10 = vmul.f32 0.015625, %v5792_v9 }
0x3c2d   :  { %5819 = vst.msk [vmem:[#allocation9 + $0x38] sm:$0xff] %vm3410_vm7, %v5811_v52 }
0x3c2e   :  { %5817 = vst.msk [vmem:[#allocation9 + $0x28] sm:$0xff] %vm3410_vm7, %v5809_v10 }
0x3c2f   :  { %8958 = shalt.err (!%p8955_p8)
}
0x3c30   :  { %s8959_s2 = scalar_lea.hbm %s11824_s7, 1024 }
0x3c31   :  { %p8960_p9 = scmp.ne.s32.totalorder %s11824_s7, %s8959_s2  ;;  %p8963_p10 = scmp.lt.u32.totalorder %s8959_s2, %s11824_s7 }
0x3c33   :  { %p8965_p11 = pnand %p8963_p10, %p8960_p9 }
0x3c35   :  { %8968 = shalt.err (!%p8965_p11)
}
0x3c36   :  { %5877 = dma.vmem_to_hbm [thread:$0]  %s5872_s16, 1024, %s11824_s7, [#allocation8], %s9006_s1, %s9006_s1, %s9007_s22  }
0x3c37   :  { %8969 = dma.done.wait [#allocation3], 128  }
0x3c38   :  { %8970 = vsyncadd [#allocation3], 4294967168 }
0x3c39   :  { %8971 = dma.done.wait [#allocation5], 768  }
0x3c3a   :  { %8972 = vsyncadd [#allocation5], 4294966528 }
0x3c3b   :  { %8973 = dma.done.wait [#allocation8], 2048  }
0x3c3c   :  { %8974 = vsyncadd [#allocation8], 4294965248 }
0x3c3d   :  { %5893 = vsyncpa [#allocation3], 1 }
0x3c3e   :  { %5894 = vsyncpa [#allocation5], 1 }
0x3c3f   :  { %5895 = vsyncpa [#allocation8], 1 }

</bundles_post_ra>
